<compile_context>
chip_gen: v7x
topology: tpu7x:2x2x1
jax: 0.10.0
libtpu: 0.0.40
codegen_flags: <defaults>
</compile_context>

<pallas_src>
import jax
import jax.numpy as jnp
from jax.experimental import pallas as pl
from jax.experimental.pallas import tpu as pltpu

IN_DIM = 28 * 28          # 784
H1, H2, H3 = 1024, 512, 128
OUT_DIM = 10
OUT_PAD = 128             # lane-dense padded width of the final layer
TB = 256                  # batch tile (MXU M-dim on v6e/v7x; 2x128 for v5e)


# ---------------------------------------------------------------------------
# Kernel: one batch tile per grid step; full 4-layer MLP fused in the body so
# intermediates h1/h2/h3 never leave VMEM/vregs.
# ---------------------------------------------------------------------------
def _dnn_kernel(x_ref,
                w1_ref, b1_ref,
                w2_ref, b2_ref,
                w3_ref, b3_ref,
                w4_ref, b4_ref,
                out_ref):
    x = x_ref[...]                                                     # (TB, 784) bf16

    h1 = jnp.dot(x, w1_ref[...], preferred_element_type=jnp.float32)  # (TB, 1024) f32
    h1 = jnp.maximum(h1 + b1_ref[...], 0.0).astype(jnp.bfloat16)

    h2 = jnp.dot(h1, w2_ref[...], preferred_element_type=jnp.float32)  # (TB, 512)
    h2 = jnp.maximum(h2 + b2_ref[...], 0.0).astype(jnp.bfloat16)

    h3 = jnp.dot(h2, w3_ref[...], preferred_element_type=jnp.float32)  # (TB, 128)
    h3 = jnp.maximum(h3 + b3_ref[...], 0.0).astype(jnp.bfloat16)

    h4 = jnp.dot(h3, w4_ref[...], preferred_element_type=jnp.float32)  # (TB, 128)
    out_ref[...] = (h4 + b4_ref[...]).astype(out_ref.dtype)            # lane-dense store


def dnn_forward(x, params):
    """Fused DNN forward pass.

    x: any shape flattenable to (-1, 784), exactly like the PyTorch module's
       `inputs.reshape(-1, 784)`.
    params: (w1, b1, w2, b2, w3, b3, w4, b4), wi of shape (in, out), bi (1, out).
    """
    w1, b1, w2, b2, w3, b3, w4, b4 = params

    x2d = x.reshape(-1, IN_DIM)
    batch = x2d.shape[0]
    padded_b = ((batch + TB - 1) // TB) * TB
    if padded_b != batch:
        x2d = jnp.pad(x2d, ((0, padded_b - batch), (0, 0)))
    x_bf = x2d.astype(jnp.bfloat16)

    # bf16 weights (halved HBM traffic, native MXU dtype); f32 biases.
    # TODO(synk): for tiny-batch serving, int8 (v5e/v6e) / fp8 (v7x) weights
    # with per-channel scales would cut weight bandwidth a further 2x.
    w1b = w1.astype(jnp.bfloat16)
    w2b = w2.astype(jnp.bfloat16)
    w3b = w3.astype(jnp.bfloat16)
    # Lane-dense final layer: pad (128, 10) -> (128, 128), bias (1, 10) -> (1, 128).
    w4p = jnp.pad(w4, ((0, 0), (0, OUT_PAD - OUT_DIM))).astype(jnp.bfloat16)
    b4p = jnp.pad(b4, ((0, 0), (0, OUT_PAD - OUT_DIM))).astype(jnp.float32)
    b1f = b1.astype(jnp.float32)
    b2f = b2.astype(jnp.float32)
    b3f = b3.astype(jnp.float32)

    grid = (padded_b // TB,)
    const = lambda shape: pl.BlockSpec(shape, lambda i: (0, 0))  # VMEM-resident operand

    # Advisory cost estimate for XLA's scheduler.
    flops = 2 * padded_b * (IN_DIM * H1 + H1 * H2 + H2 * H3 + H3 * OUT_PAD)
    weight_bytes = 2 * (IN_DIM * H1 + H1 * H2 + H2 * H3 + H3 * OUT_PAD)
    bias_bytes = 4 * (H1 + H2 + H3 + OUT_PAD)
    io_bytes = padded_b * (IN_DIM * 2 + OUT_PAD * 4)
    cost = pl.CostEstimate(flops=flops, transcendentals=0,
                           bytes_accessed=weight_bytes + bias_bytes + io_bytes)

    out = pl.pallas_call(
        _dnn_kernel,
        out_shape=jax.ShapeDtypeStruct((padded_b, OUT_PAD), jnp.float32),
        grid=grid,
        in_specs=[
            pl.BlockSpec((TB, IN_DIM), lambda i: (i, 0)),   # activation tile (pipelined)
            const(w1b.shape), const(b1f.shape),
            const(w2b.shape), const(b2f.shape),
            const(w3b.shape), const(b3f.shape),
            const(w4p.shape), const(b4p.shape),
        ],
        out_specs=pl.BlockSpec((TB, OUT_PAD), lambda i: (i, 0)),
        compiler_params=pltpu.CompilerParams(
            dimension_semantics=("parallel",)),
        cost_estimate=cost,
    )(x_bf, w1b, b1f, w2b, b2f, w3b, b3f, w4p, b4p)

    return out[:batch, :OUT_DIM]


# ---------------------------------------------------------------------------
# Deterministic parameter init (mirrors nn.Linear's U(-1/sqrt(fan_in), ...)).
# ---------------------------------------------------------------------------
def init_params(key):
    sizes = [(IN_DIM, H1), (H1, H2), (H2, H3), (H3, OUT_DIM)]
    params = []
    for i, (fan_in, fan_out) in enumerate(sizes):
        kw, kb = jax.random.split(jax.random.fold_in(key, i))
        bound = 1.0 / jnp.sqrt(float(fan_in))
        w = jax.random.uniform(kw, (fan_in, fan_out), jnp.float32, -bound, bound)
        b = jax.random.uniform(kb, (1, fan_out), jnp.float32, -bound, bound)
        params.extend([w, b])
    return tuple(params)


def dnn_reference_bf16(x, params):
    """Pure-JAX reference with the same bf16-in / f32-accumulate precision."""
    w1, b1, w2, b2, w3, b3, w4, b4 = params
    h = x.reshape(-1, IN_DIM).astype(jnp.bfloat16)

    def lin(h, w, b, relu):
        y = jnp.dot(h, w.astype(jnp.bfloat16),
                    preferred_element_type=jnp.float32) + b
        if relu:
            y = jnp.maximum(y, 0.0).astype(jnp.bfloat16)
        return y

    h = lin(h, w1, b1, True)
    h = lin(h, w2, b2, True)
    h = lin(h, w3, b3, True)
    return lin(h, w4, b4, False)


def dnn_reference_f32(x, params):
    """Full-precision reference (PyTorch semantics) for a looser sanity check."""
    w1, b1, w2, b2, w3, b3, w4, b4 = params
    h = x.reshape(-1, IN_DIM).astype(jnp.float32)
    h = jnp.maximum(h @ w1 + b1, 0.0)
    h = jnp.maximum(h @ w2 + b2, 0.0)
    h = jnp.maximum(h @ w3 + b3, 0.0)
    return h @ w4 + b4


if __name__ == "__main__":
    key = jax.random.PRNGKey(0)
    k_x, k_p = jax.random.split(key)

    # Small MNIST-like batch: (batch=2, 28, 28) -> flattened to (2, 784).
    x = jax.random.normal(k_x, (2, 28, 28), dtype=jnp.float32)
    params = init_params(k_p)

    out = jax.jit(dnn_forward)(x, params)
    out = jax.block_until_ready(out)
    assert out.shape == (2, 10), out.shape

    # Kernel-correctness check vs matching-precision reference.
    ref_bf16 = dnn_reference_bf16(x, params)
    assert jnp.allclose(out, ref_bf16, atol=2e-3, rtol=2e-3), (
        float(jnp.max(jnp.abs(out - ref_bf16))))

    # Semantics sanity check vs full f32 PyTorch-equivalent reference
    # (looser tolerance because weights/activations are bf16 in the kernel).
    ref_f32 = dnn_reference_f32(x, params)
    assert jnp.allclose(out, ref_f32, atol=5e-2, rtol=5e-2), (
        float(jnp.max(jnp.abs(out - ref_f32))))

    print("KERNEL_OK")
</pallas_src>

<mosaic_0001>
module attributes {stable_mosaic.version = 11 : i64} {
  func.func @_dnn_kernel(%arg0: i32, %arg1: memref<256x784xbf16, #tpu.memory_space<vmem>>, %arg2: memref<784x1024xbf16, #tpu.memory_space<vmem>>, %arg3: memref<1x1024xf32, #tpu.memory_space<vmem>>, %arg4: memref<1024x512xbf16, #tpu.memory_space<vmem>>, %arg5: memref<1x512xf32, #tpu.memory_space<vmem>>, %arg6: memref<512x128xbf16, #tpu.memory_space<vmem>>, %arg7: memref<1x128xf32, #tpu.memory_space<vmem>>, %arg8: memref<128x128xbf16, #tpu.memory_space<vmem>>, %arg9: memref<1x128xf32, #tpu.memory_space<vmem>>, %arg10: memref<256x128xf32, #tpu.memory_space<vmem>>) attributes {dimension_semantics = [#tpu.dimension_semantics<parallel>], iteration_bounds = array<i64: 1>, scalar_prefetch = 0 : i64, scratch_operands = 0 : i64, tpu.core_type = #tpu.core_type<tc>, window_params = [{transform_indices = @transform_0, window_bounds = array<i64: 256, 784>}, {pipeline_mode = #tpu.pipeline_mode<synchronous>, transform_indices = @transform_1, window_bounds = array<i64: 784, 1024>}, {pipeline_mode = #tpu.pipeline_mode<synchronous>, transform_indices = @transform_2, window_bounds = array<i64: 1, 1024>}, {pipeline_mode = #tpu.pipeline_mode<synchronous>, transform_indices = @transform_3, window_bounds = array<i64: 1024, 512>}, {pipeline_mode = #tpu.pipeline_mode<synchronous>, transform_indices = @transform_4, window_bounds = array<i64: 1, 512>}, {pipeline_mode = #tpu.pipeline_mode<synchronous>, transform_indices = @transform_5, window_bounds = array<i64: 512, 128>}, {pipeline_mode = #tpu.pipeline_mode<synchronous>, transform_indices = @transform_6, window_bounds = array<i64: 1, 128>}, {pipeline_mode = #tpu.pipeline_mode<synchronous>, transform_indices = @transform_7, window_bounds = array<i64: 128, 128>}, {pipeline_mode = #tpu.pipeline_mode<synchronous>, transform_indices = @transform_8, window_bounds = array<i64: 1, 128>}, {transform_indices = @transform_9, window_bounds = array<i64: 256, 128>}]} {
    %c0 = arith.constant 0 : index
    %c0_0 = arith.constant 0 : index
    %0 = vector.load %arg1[%c0, %c0_0] : memref<256x784xbf16, #tpu.memory_space<vmem>>, vector<256x784xbf16>
    %c0_1 = arith.constant 0 : index
    %c0_2 = arith.constant 0 : index
    %1 = vector.load %arg2[%c0_1, %c0_2] : memref<784x1024xbf16, #tpu.memory_space<vmem>>, vector<784x1024xbf16>
    %cst = arith.constant dense<0.000000e+00> : vector<256x1024xf32>
    %2 = tpu.matmul %0, %1, %cst {dimension_numbers = #tpu.dot_dimension_numbers<[1], [0], [0], [1], [0, 0, 1, 1], [], []>} : vector<256x784xbf16>, vector<784x1024xbf16>, vector<256x1024xf32> -> vector<256x1024xf32>
    %c0_3 = arith.constant 0 : index
    %c0_4 = arith.constant 0 : index
    %3 = vector.load %arg3[%c0_3, %c0_4] : memref<1x1024xf32, #tpu.memory_space<vmem>>, vector<1x1024xf32>
    %4 = vector.broadcast %3 : vector<1x1024xf32> to vector<256x1024xf32>
    %5 = arith.addf %2, %4 : vector<256x1024xf32>
    %cst_5 = arith.constant 0.000000e+00 : f32
    %6 = vector.broadcast %cst_5 : f32 to vector<256x1024xf32>
    %7 = arith.maximumf %5, %6 : vector<256x1024xf32>
    %8 = arith.truncf %7 : vector<256x1024xf32> to vector<256x1024xbf16>
    %c0_6 = arith.constant 0 : index
    %c0_7 = arith.constant 0 : index
    %9 = vector.load %arg4[%c0_6, %c0_7] : memref<1024x512xbf16, #tpu.memory_space<vmem>>, vector<1024x512xbf16>
    %cst_8 = arith.constant dense<0.000000e+00> : vector<256x512xf32>
    %10 = tpu.matmul %8, %9, %cst_8 {dimension_numbers = #tpu.dot_dimension_numbers<[1], [0], [0], [1], [0, 0, 1, 1], [], []>} : vector<256x1024xbf16>, vector<1024x512xbf16>, vector<256x512xf32> -> vector<256x512xf32>
    %c0_9 = arith.constant 0 : index
    %c0_10 = arith.constant 0 : index
    %11 = vector.load %arg5[%c0_9, %c0_10] : memref<1x512xf32, #tpu.memory_space<vmem>>, vector<1x512xf32>
    %12 = vector.broadcast %11 : vector<1x512xf32> to vector<256x512xf32>
    %13 = arith.addf %10, %12 : vector<256x512xf32>
    %cst_11 = arith.constant 0.000000e+00 : f32
    %14 = vector.broadcast %cst_11 : f32 to vector<256x512xf32>
    %15 = arith.maximumf %13, %14 : vector<256x512xf32>
    %16 = arith.truncf %15 : vector<256x512xf32> to vector<256x512xbf16>
    %c0_12 = arith.constant 0 : index
    %c0_13 = arith.constant 0 : index
    %17 = vector.load %arg6[%c0_12, %c0_13] : memref<512x128xbf16, #tpu.memory_space<vmem>>, vector<512x128xbf16>
    %cst_14 = arith.constant dense<0.000000e+00> : vector<256x128xf32>
    %18 = tpu.matmul %16, %17, %cst_14 {dimension_numbers = #tpu.dot_dimension_numbers<[1], [0], [0], [1], [0, 0, 1, 1], [], []>} : vector<256x512xbf16>, vector<512x128xbf16>, vector<256x128xf32> -> vector<256x128xf32>
    %c0_15 = arith.constant 0 : index
    %c0_16 = arith.constant 0 : index
    %19 = vector.load %arg7[%c0_15, %c0_16] : memref<1x128xf32, #tpu.memory_space<vmem>>, vector<1x128xf32>
    %20 = vector.broadcast %19 : vector<1x128xf32> to vector<256x128xf32>
    %21 = arith.addf %18, %20 : vector<256x128xf32>
    %cst_17 = arith.constant 0.000000e+00 : f32
    %22 = vector.broadcast %cst_17 : f32 to vector<256x128xf32>
    %23 = arith.maximumf %21, %22 : vector<256x128xf32>
    %24 = arith.truncf %23 : vector<256x128xf32> to vector<256x128xbf16>
    %c0_18 = arith.constant 0 : index
    %c0_19 = arith.constant 0 : index
    %25 = vector.load %arg8[%c0_18, %c0_19] : memref<128x128xbf16, #tpu.memory_space<vmem>>, vector<128x128xbf16>
    %cst_20 = arith.constant dense<0.000000e+00> : vector<256x128xf32>
    %26 = tpu.matmul %24, %25, %cst_20 {dimension_numbers = #tpu.dot_dimension_numbers<[1], [0], [0], [1], [0, 0, 1, 1], [], []>} : vector<256x128xbf16>, vector<128x128xbf16>, vector<256x128xf32> -> vector<256x128xf32>
    %c0_21 = arith.constant 0 : index
    %c0_22 = arith.constant 0 : index
    %27 = vector.load %arg9[%c0_21, %c0_22] : memref<1x128xf32, #tpu.memory_space<vmem>>, vector<1x128xf32>
    %28 = vector.broadcast %27 : vector<1x128xf32> to vector<256x128xf32>
    %29 = arith.addf %26, %28 : vector<256x128xf32>
    %c0_23 = arith.constant 0 : index
    %c0_24 = arith.constant 0 : index
    %30 = vector.load %arg10[%c0_23, %c0_24] : memref<256x128xf32, #tpu.memory_space<vmem>>, vector<256x128xf32>
    tpu.vector_store %arg10[%c0_23, %c0_24], %29 {strides = array<i32>} : memref<256x128xf32, #tpu.memory_space<vmem>>, vector<256x128xf32>,
    return
  }
  func.func @transform_0(%arg0: i32) -> (i32, i32) {
    %c0_i32 = arith.constant 0 : i32
    %c0_i32_0 = arith.constant 0 : i32
    return %arg0, %c0_i32 : i32, i32
  }
  func.func @transform_1(%arg0: i32) -> (i32, i32) {
    %c0_i32 = arith.constant 0 : i32
    %c0_i32_0 = arith.constant 0 : i32
    %c0_i32_1 = arith.constant 0 : i32
    return %c0_i32, %c0_i32_0 : i32, i32
  }
  func.func @transform_2(%arg0: i32) -> (i32, i32) {
    %c0_i32 = arith.constant 0 : i32
    %c0_i32_0 = arith.constant 0 : i32
    %c0_i32_1 = arith.constant 0 : i32
    return %c0_i32, %c0_i32_0 : i32, i32
  }
  func.func @transform_3(%arg0: i32) -> (i32, i32) {
    %c0_i32 = arith.constant 0 : i32
    %c0_i32_0 = arith.constant 0 : i32
    %c0_i32_1 = arith.constant 0 : i32
    return %c0_i32, %c0_i32_0 : i32, i32
  }
  func.func @transform_4(%arg0: i32) -> (i32, i32) {
    %c0_i32 = arith.constant 0 : i32
    %c0_i32_0 = arith.constant 0 : i32
    %c0_i32_1 = arith.constant 0 : i32
    return %c0_i32, %c0_i32_0 : i32, i32
  }
  func.func @transform_5(%arg0: i32) -> (i32, i32) {
    %c0_i32 = arith.constant 0 : i32
    %c0_i32_0 = arith.constant 0 : i32
    %c0_i32_1 = arith.constant 0 : i32
    return %c0_i32, %c0_i32_0 : i32, i32
  }
  func.func @transform_6(%arg0: i32) -> (i32, i32) {
    %c0_i32 = arith.constant 0 : i32
    %c0_i32_0 = arith.constant 0 : i32
    %c0_i32_1 = arith.constant 0 : i32
    return %c0_i32, %c0_i32_0 : i32, i32
  }
  func.func @transform_7(%arg0: i32) -> (i32, i32) {
    %c0_i32 = arith.constant 0 : i32
    %c0_i32_0 = arith.constant 0 : i32
    %c0_i32_1 = arith.constant 0 : i32
    return %c0_i32, %c0_i32_0 : i32, i32
  }
  func.func @transform_8(%arg0: i32) -> (i32, i32) {
    %c0_i32 = arith.constant 0 : i32
    %c0_i32_0 = arith.constant 0 : i32
    %c0_i32_1 = arith.constant 0 : i32
    return %c0_i32, %c0_i32_0 : i32, i32
  }
  func.func @transform_9(%arg0: i32) -> (i32, i32) {
    %c0_i32 = arith.constant 0 : i32
    %c0_i32_0 = arith.constant 0 : i32
    return %arg0, %c0_i32 : i32, i32
  }
}

</mosaic_0001>

<bundles_post_ra>
// kernel: dnn_forward.1
= control target key start
LH: loop header
LB: loop body
LE: loop exit
PB: predicated region body
PF: predicated region fallthrough
CT: control target
= control target key end

     0   :  { %v19028_v3 = vmov 0   ;;  %vm3115_vm0 = vcmask 130048   ;;  %s19018_s1 = inlined_call_operand.vmem [shape: bf16[784,1024], index: 1, kind: input, shape index: {}]   ;;  %s19019_s0 = inlined_call_operand.vmem [shape: bf16[256,784], index: 0, kind: input, shape index: {}]   ;;  %s19020_s2 = inlined_call_operand.vmem [shape: f32[1,1024], index: 2, kind: input, shape index: {}]   ;;  %s19021_s3 = inlined_call_operand.vmem [shape: bf16[1024,512], index: 3, kind: input, shape index: {}]   ;;  %s19022_s5 = inlined_call_operand.vmem [shape: bf16[512,128], index: 5, kind: input, shape index: {}]   ;;  %s19023_s4 = inlined_call_operand.vmem [shape: f32[1,512], index: 4, kind: input, shape index: {}]   ;;  %s19024_s7 = inlined_call_operand.vmem [shape: bf16[128,128], index: 7, kind: input, shape index: {}]   ;;  %s19025_s6 = inlined_call_operand.vmem [shape: f32[1,128], index: 6, kind: input, shape index: {}]   ;;  %s19026_s8 = inlined_call_operand.vmem [shape: f32[1,128], index: 8, kind: input, shape index: {}]   ;;  %s19027_s9 = inlined_call_operand.vmem [shape: f32[256,128], index: 9, kind: output, shape index: {}]  }
   0x1   :  { %v161_v0 = vld [vmem:[%s19018_s1] sm:$0xff]  ;;  %3855 = vmatprep.mubr.bf16.mxu1 %v19028_v3  ;;  %v13532_v12 = vld [vmem:[%s19019_s0 + $0x1d8] ss:$28 sps:$4 sm:$0xff]   ;;  %v162_v13 = vld [vmem:[%s19018_s1 + $0x8] sm:$0xff] }
   0x2   :  { %v165_v1 = vld [vmem:[%s19018_s1 + $0x20] sm:$0xff]  ;;  %v166_v14 = vld [vmem:[%s19018_s1 + $0x28] sm:$0xff] }
   0x3   :  { %v545_v2 = vld [vmem:[%s19018_s1 + $0xc00] sm:$0xff]  ;;  %v10944_v4 = vcombine.high %v161_v0, %v165_v1  ;;  %v10943_v6 = vcombine.low %v161_v0, %v165_v1  ;;  %v10946_v16 = vcombine.high %v162_v13, %v166_v14  ;;  %v170_v19 = vld [vmem:[%s19018_s1 + $0x48] sm:$0xff]  ;;  %v10945_v21 = vcombine.low %v162_v13, %v166_v14 }
   0x4   :  { %v549_v5 = vld [vmem:[%s19018_s1 + $0xc20] sm:$0xff]  ;;  %v174_v20 = vld [vmem:[%s19018_s1 + $0x68] sm:$0xff] }
   0x5   :  { %v169_v7 = vld [vmem:[%s19018_s1 + $0x40] sm:$0xff]  ;;  %v14307_v9 = vcombine.high %v545_v2, %v549_v5  ;;  %v14309_v10 = vcombine.low %v545_v2, %v549_v5  ;;  %3164 = vmatprep.subr.bf16.mxu0 %v10944_v4  ;;  %v10954_v23 = vcombine.high %v170_v19, %v174_v20  ;;  %v178_v26 = vld [vmem:[%s19018_s1 + $0x88] sm:$0xff]  ;;  %v10953_v29 = vcombine.low %v170_v19, %v174_v20 }
   0x6   :  { %v173_v8 = vld [vmem:[%s19018_s1 + $0x60] sm:$0xff]  ;;  %3165 = vmatpush1.bf16.msra.mxu0 %v10943_v6  ;;  %v182_v27 = vld [vmem:[%s19018_s1 + $0xa8] sm:$0xff] }
   0x7   :  { %v10952_v11 = vcombine.high %v169_v7, %v173_v8  ;;  %v177_v15 = vld [vmem:[%s19018_s1 + $0x80] sm:$0xff]  ;;  %11993 = vmatprep.subr.bf16.mxu1 %v14307_v9  ;;  %v10951_v17 = vcombine.low %v169_v7, %v173_v8  ;;  %v10962_v31 = vcombine.high %v178_v26, %v182_v27  ;;  %v186_v34 = vld [vmem:[%s19018_s1 + $0xc8] sm:$0xff]  ;;  %v10961_v38 = vcombine.low %v178_v26, %v182_v27  ;;  %v13536_v27 = vld [vmem:[%s19019_s0 + $0x2b8] ss:$28 sps:$4 sm:$0xff]  }
   0x8   :  { %v181_v18 = vld [vmem:[%s19018_s1 + $0xa0] sm:$0xff]  ;;  %11994 = vmatpush1.bf16.msra.mxu1 %v14309_v10  ;;  %v190_v35 = vld [vmem:[%s19018_s1 + $0xe8] sm:$0xff] }
   0x9   :  { %3166 = vmatprep.subr.bf16.mxu0 %v10952_v11  ;;  %v10960_v22 = vcombine.high %v177_v15, %v181_v18  ;;  %3936 = vmatprep.subr.bf16.mxu1 %v10946_v16  ;;  %v185_v24 = vld [vmem:[%s19018_s1 + $0xc0] sm:$0xff]  ;;  %v10959_v28 = vcombine.low %v177_v15, %v181_v18  ;;  %v13533_v36 = vld [vmem:[%s19019_s0 + $0x210] ss:$28 sps:$4 sm:$0xff]   ;;  %v10970_v40 = vcombine.high %v186_v34, %v190_v35 }
   0xa   :  { %v189_v25 = vld [vmem:[%s19018_s1 + $0xe0] sm:$0xff]  ;;  %3167 = vmatpush1.bf16.msra.mxu0 %v10951_v17  ;;  %v194_v43 = vld [vmem:[%s19018_s1 + $0x108] sm:$0xff]  ;;  %v10969_v46 = vcombine.low %v186_v34, %v190_v35 }
   0xb   :  { %11343 = vmatmul.mubr.msk.bf16.vlgmr.msra.gmra.mrb[0].mxu1 %vm3115_vm0, %v13532_v12  ;;  %3168 = vmatprep.subr.bf16.mxu0 %v10960_v22  ;;  %v10968_v30 = vcombine.high %v185_v24, %v189_v25  ;;  %v193_v32 = vld [vmem:[%s19018_s1 + $0x100] sm:$0xff]  ;;  %v10967_v37 = vcombine.low %v185_v24, %v189_v25  ;;  %v198_v44 = vld [vmem:[%s19018_s1 + $0x128] sm:$0xff] }
   0xc   :  { %3937 = vmatpush1.bf16.msra.mxu1 %v10945_v21  ;;  %3865 = vmatprep.mubr.bf16.mxu1 %v19028_v3  ;;  %v197_v33 = vld [vmem:[%s19018_s1 + $0x120] sm:$0xff]  ;;  %v10978_v48 = vcombine.high %v194_v43, %v198_v44  ;;  %v202_v51 = vld [vmem:[%s19018_s1 + $0x148] sm:$0xff]  ;;  %v10977_v55 = vcombine.low %v194_v43, %v198_v44 }
   0xd   :  { %3938 = vmatprep.subr.bf16.mxu1 %v10954_v23  ;;  %v10976_v39 = vcombine.high %v193_v32, %v197_v33  ;;  %v201_v41 = vld [vmem:[%s19018_s1 + $0x140] sm:$0xff]  ;;  %v10975_v45 = vcombine.low %v193_v32, %v197_v33  ;;  %v206_v52 = vld [vmem:[%s19018_s1 + $0x168] sm:$0xff] }
   0xe   :  { %3169 = vmatpush1.bf16.msra.mxu0 %v10959_v28  ;;  %v205_v42 = vld [vmem:[%s19018_s1 + $0x160] sm:$0xff]  ;;  %v10986_v57 = vcombine.high %v202_v51, %v206_v52  ;;  %v210_v60 = vld [vmem:[%s19018_s1 + $0x188] sm:$0xff]  ;;  %v10985_v63 = vcombine.low %v202_v51, %v206_v52 }
   0xf   :  { %3170 = vmatprep.subr.bf16.mxu0 %v10968_v30  ;;  %v10984_v47 = vcombine.high %v201_v41, %v205_v42  ;;  %v209_v49 = vld [vmem:[%s19018_s1 + $0x180] sm:$0xff]  ;;  %v10983_v54 = vcombine.low %v201_v41, %v205_v42  ;;  %v214_v61 = vld [vmem:[%s19018_s1 + $0x1a8] sm:$0xff] }
  0x10   :  { %3939 = vmatpush1.bf16.msra.mxu1 %v10953_v29  ;;  %v213_v50 = vld [vmem:[%s19018_s1 + $0x1a0] sm:$0xff]  ;;  %v10994_v1 = vcombine.high %v210_v60, %v214_v61  ;;  %v218_v5 = vld [vmem:[%s19018_s1 + $0x1c8] sm:$0xff]  ;;  %v10993_v11 = vcombine.low %v210_v60, %v214_v61 }
  0x11   :  { %3940 = vmatprep.subr.bf16.mxu1 %v10962_v31  ;;  %v13534_v53 = vld [vmem:[%s19019_s0 + $0x248] ss:$28 sps:$4 sm:$0xff]   ;;  %v10992_v56 = vcombine.high %v209_v49, %v213_v50  ;;  %v10991_v62 = vcombine.low %v209_v49, %v213_v50  ;;  %v13535_v7 = vld [vmem:[%s19019_s0 + $0x280] ss:$28 sps:$4 sm:$0xff]   ;;  %v13537_v44 = vld [vmem:[%s19019_s0 + $0x2f0] ss:$28 sps:$4 sm:$0xff]  }
  0x12   :  { %3171 = vmatpush1.bf16.msra.mxu0 %v10967_v37  ;;  %v217_v58 = vld [vmem:[%s19018_s1 + $0x1c0] sm:$0xff]  ;;  %v222_v6 = vld [vmem:[%s19018_s1 + $0x1e8] sm:$0xff] }
  0x13   :  { %11344 = vmatmul.mubr.msk.bf16.gmra.mrb[4].mxu1 %vm3115_vm0, %v13533_v36  ;;  %3172 = vmatprep.subr.bf16.mxu0 %v10976_v39  ;;  %v221_v59 = vld [vmem:[%s19018_s1 + $0x1e0] sm:$0xff]  ;;  %v11002_v13 = vcombine.high %v218_v5, %v222_v6  ;;  %v226_v16 = vld [vmem:[%s19018_s1 + $0x208] sm:$0xff]  ;;  %v11001_v20 = vcombine.low %v218_v5, %v222_v6 }
  0x14   :  { %3941 = vmatpush1.bf16.msra.mxu1 %v10961_v38  ;;  %3875 = vmatprep.mubr.bf16.mxu1 %v19028_v3  ;;  %v11000_v0 = vcombine.high %v217_v58, %v221_v59  ;;  %v225_v2 = vld [vmem:[%s19018_s1 + $0x200] sm:$0xff]  ;;  %v10999_v8 = vcombine.low %v217_v58, %v221_v59  ;;  %v230_v17 = vld [vmem:[%s19018_s1 + $0x228] sm:$0xff] }
  0x15   :  { %3942 = vmatprep.subr.bf16.mxu1 %v10970_v40  ;;  %v229_v4 = vld [vmem:[%s19018_s1 + $0x220] sm:$0xff]  ;;  %v11010_v23 = vcombine.high %v226_v16, %v230_v17  ;;  %v234_v25 = vld [vmem:[%s19018_s1 + $0x248] sm:$0xff]  ;;  %v11009_v29 = vcombine.low %v226_v16, %v230_v17 }
  0x16   :  { %3173 = vmatpush1.bf16.msra.mxu0 %v10975_v45  ;;  %v11008_v12 = vcombine.high %v225_v2, %v229_v4  ;;  %v233_v14 = vld [vmem:[%s19018_s1 + $0x240] sm:$0xff]  ;;  %v11007_v19 = vcombine.low %v225_v2, %v229_v4  ;;  %v238_v26 = vld [vmem:[%s19018_s1 + $0x268] sm:$0xff] }
  0x17   :  { %3174 = vmatprep.subr.bf16.mxu0 %v10984_v47  ;;  %v237_v15 = vld [vmem:[%s19018_s1 + $0x260] sm:$0xff]  ;;  %v11018_v32 = vcombine.high %v234_v25, %v238_v26  ;;  %v242_v34 = vld [vmem:[%s19018_s1 + $0x288] sm:$0xff]  ;;  %v11017_v37 = vcombine.low %v234_v25, %v238_v26 }
  0x18   :  { %3943 = vmatpush1.bf16.msra.mxu1 %v10969_v46  ;;  %v14436_v18 = vld [vmem:[%s19019_s0 + $0x4] ss:$28 sps:$4 sm:$0xff]   ;;  %v11016_v21 = vcombine.high %v233_v14, %v237_v15  ;;  %v11015_v28 = vcombine.low %v233_v14, %v237_v15  ;;  %v246_v35 = vld [vmem:[%s19018_s1 + $0x2a8] sm:$0xff] }
  0x19   :  { %3944 = vmatprep.subr.bf16.mxu1 %v10978_v48  ;;  %v241_v22 = vld [vmem:[%s19018_s1 + $0x280] sm:$0xff]  ;;  %3196 = vmatprep.mubr.bf16.mxu0 %v14436_v18  ;;  %v11026_v40 = vcombine.high %v242_v34, %v246_v35  ;;  %v250_v42 = vld [vmem:[%s19018_s1 + $0x2c8] sm:$0xff]  ;;  %v11025_v46 = vcombine.low %v242_v34, %v246_v35 }
  0x1a   :  { %3175 = vmatpush1.bf16.msra.mxu0 %v10983_v54  ;;  %v245_v24 = vld [vmem:[%s19018_s1 + $0x2a0] sm:$0xff]  ;;  %v254_v43 = vld [vmem:[%s19018_s1 + $0x2e8] sm:$0xff] }
  0x1b   :  { %11345 = vmatmul.mubr.msk.bf16.gmra.mrb[8].mxu1 %vm3115_vm0, %v13534_v53  ;;  %3176 = vmatprep.subr.bf16.mxu0 %v10992_v56  ;;  %v11024_v30 = vcombine.high %v241_v22, %v245_v24  ;;  %v249_v31 = vld [vmem:[%s19018_s1 + $0x2c0] sm:$0xff]  ;;  %v11023_v36 = vcombine.low %v241_v22, %v245_v24  ;;  %v11034_v49 = vcombine.high %v250_v42, %v254_v43  ;;  %v258_v51 = vld [vmem:[%s19018_s1 + $0x308] sm:$0xff] }
  0x1c   :  { %3945 = vmatpush1.bf16.msra.mxu1 %v10977_v55  ;;  %3885 = vmatprep.mubr.bf16.mxu1 %v19028_v3  ;;  %v253_v33 = vld [vmem:[%s19018_s1 + $0x2e0] sm:$0xff]  ;;  %v262_v52 = vld [vmem:[%s19018_s1 + $0x328] sm:$0xff]  ;;  %v11033_v54 = vcombine.low %v250_v42, %v254_v43  ;;  %v13545_v42 = vld [vmem:[%s19019_s0 + $0x38] ss:$28 sps:$4 sm:$0xff]  }
  0x1d   :  { %3946 = vmatprep.subr.bf16.mxu1 %v10986_v57  ;;  %v11032_v38 = vcombine.high %v249_v31, %v253_v33  ;;  %v257_v39 = vld [vmem:[%s19018_s1 + $0x300] sm:$0xff]  ;;  %v11031_v45 = vcombine.low %v249_v31, %v253_v33  ;;  %v11042_v56 = vcombine.high %v258_v51, %v262_v52  ;;  %v266_v59 = vld [vmem:[%s19018_s1 + $0x348] sm:$0xff] }
  0x1e   :  { %3177 = vmatpush1.bf16.msra.mxu0 %v10991_v62  ;;  %v261_v41 = vld [vmem:[%s19018_s1 + $0x320] sm:$0xff]  ;;  %v270_v60 = vld [vmem:[%s19018_s1 + $0x368] sm:$0xff] }
  0x1f   :  { %3178 = vmatprep.subr.bf16.mxu0 %v11000_v0  ;;  %v11040_v47 = vcombine.high %v257_v39, %v261_v41  ;;  %v265_v48 = vld [vmem:[%s19018_s1 + $0x340] sm:$0xff]  ;;  %v11039_v53 = vcombine.low %v257_v39, %v261_v41  ;;  %v274_v5 = vld [vmem:[%s19018_s1 + $0x388] sm:$0xff] }
  0x20   :  { %3947 = vmatpush1.bf16.msra.mxu1 %v10985_v63  ;;  %v269_v50 = vld [vmem:[%s19018_s1 + $0x360] sm:$0xff]  ;;  %v11041_v63 = vcombine.low %v258_v51, %v262_v52  ;;  %v278_v6 = vld [vmem:[%s19018_s1 + $0x3a8] sm:$0xff] }
  0x21   :  { %3948 = vmatprep.subr.bf16.mxu1 %v10994_v1  ;;  %v11048_v55 = vcombine.high %v265_v48, %v269_v50  ;;  %v273_v57 = vld [vmem:[%s19018_s1 + $0x380] sm:$0xff]  ;;  %v11047_v62 = vcombine.low %v265_v48, %v269_v50  ;;  %v11050_v1 = vcombine.high %v266_v59, %v270_v60  ;;  %v286_v14 = vld [vmem:[%s19018_s1 + $0x3e8] sm:$0xff] }
  0x22   :  { %3179 = vmatpush1.bf16.msra.mxu0 %v10999_v8  ;;  %v277_v58 = vld [vmem:[%s19018_s1 + $0x3a0] sm:$0xff]  ;;  %v11049_v8 = vcombine.low %v266_v59, %v270_v60  ;;  %v290_v26 = vld [vmem:[%s19018_s1 + $0x408] sm:$0xff] }
  0x23   :  { %11346 = vmatmul.mubr.msk.bf16.gmra.mrb[12].mxu1 %vm3115_vm0, %v13535_v7  ;;  %3180 = vmatprep.subr.bf16.mxu0 %v11008_v12  ;;  %v13538_v61 = vld [vmem:[%s19019_s0 + $0x328] ss:$28 sps:$4 sm:$0xff]   ;;  %v11056_v0 = vcombine.high %v273_v57, %v277_v58  ;;  %v11055_v7 = vcombine.low %v273_v57, %v277_v58  ;;  %v11058_v12 = vcombine.high %v274_v5, %v278_v6  ;;  %v13539_v17 = vld [vmem:[%s19019_s0 + $0x360] ss:$28 sps:$4 sm:$0xff]   ;;  %v13548_v60 = vld [vmem:[%s19019_s0 + $0x70] ss:$28 sps:$4 sm:$0xff]  }
  0x24   :  { %3949 = vmatpush1.bf16.msra.mxu1 %v10993_v11  ;;  %3895 = vmatprep.mubr.bf16.mxu1 %v19028_v3  ;;  %v281_v2 = vld [vmem:[%s19018_s1 + $0x3c0] sm:$0xff]  ;;  %v298_v33 = vld [vmem:[%s19018_s1 + $0x448] sm:$0xff] }
  0x25   :  { %3950 = vmatprep.subr.bf16.mxu1 %v11002_v13  ;;  %v285_v4 = vld [vmem:[%s19018_s1 + $0x3e0] sm:$0xff]  ;;  %v282_v13 = vld [vmem:[%s19018_s1 + $0x3c8] sm:$0xff] }
  0x26   :  { %3181 = vmatpush1.bf16.msra.mxu0 %v11007_v19  ;;  %v11064_v11 = vcombine.high %v281_v2, %v285_v4  ;;  %v289_v15 = vld [vmem:[%s19018_s1 + $0x400] sm:$0xff]  ;;  %v11063_v19 = vcombine.low %v281_v2, %v285_v4  ;;  %v11066_v22 = vcombine.high %v282_v13, %v286_v14  ;;  %v302_v34 = vld [vmem:[%s19018_s1 + $0x468] sm:$0xff] }
  0x27   :  { %3182 = vmatprep.subr.bf16.mxu0 %v11016_v21  ;;  %v293_v16 = vld [vmem:[%s19018_s1 + $0x420] sm:$0xff]  ;;  %v306_v43 = vld [vmem:[%s19018_s1 + $0x488] sm:$0xff] }
  0x28   :  { %3951 = vmatpush1.bf16.msra.mxu1 %v11001_v20  ;;  %v11057_v20 = vcombine.low %v274_v5, %v278_v6  ;;  %v13542_v21 = vld [vmem:[%s19019_s0] ss:$28 sps:$4 sm:$0xff]   ;;  %v314_v48 = vld [vmem:[%s19018_s1 + $0x4c8] sm:$0xff] }
  0x29   :  { %3952 = vmatprep.subr.bf16.mxu1 %v11010_v23  ;;  %v11072_v23 = vcombine.high %v289_v15, %v293_v16  ;;  %v297_v24 = vld [vmem:[%s19018_s1 + $0x440] sm:$0xff]  ;;  %v14602_v52 = vld [vmem:[%s19018_s1 + $0x808] sm:$0xff] }
  0x2a   :  { %3183 = vmatpush1.bf16.msra.mxu0 %v11015_v28  ;;  %v301_v25 = vld [vmem:[%s19018_s1 + $0x460] sm:$0xff]  ;;  %v13543_v28 = vld [vmem:[%s19019_s0 + $0x3c] ss:$28 sps:$4 sm:$0xff]   ;;  %v13549_v2 = vld [vmem:[%s19019_s0 + $0xac] ss:$28 sps:$4 sm:$0xff]  }
  0x2b   :  { %11347 = vmatmul.mubr.msk.bf16.gmra.mrb[16].mxu1 %vm3115_vm0, %v13536_v27  ;;  %3184 = vmatprep.subr.bf16.mxu0 %v11024_v30  ;;  %v294_v27 = vld [vmem:[%s19018_s1 + $0x428] sm:$0xff]  ;;  %v11065_v30 = vcombine.low %v282_v13, %v286_v14  ;;  %v11080_v31 = vcombine.high %v297_v24, %v301_v25  ;;  %v305_v35 = vld [vmem:[%s19018_s1 + $0x480] sm:$0xff] }
  0x2c   :  { %3953 = vmatpush1.bf16.msra.mxu1 %v11009_v29  ;;  %3905 = vmatprep.mubr.bf16.mxu1 %v19028_v3  ;;  %v11071_v29 = vcombine.low %v289_v15, %v293_v16  ;;  %v317_v41 = vld [vmem:[%s19018_s1 + $0x4e0] sm:$0xff]  ;;  %v330_v6 = vld [vmem:[%s19018_s1 + $0x548] sm:$0xff] }
  0x2d   :  { %3954 = vmatprep.subr.bf16.mxu1 %v11018_v32  ;;  %v11074_v32 = vcombine.high %v290_v26, %v294_v27  ;;  %v329_v58 = vld [vmem:[%s19018_s1 + $0x540] sm:$0xff] }
  0x2e   :  { %3185 = vmatpush1.bf16.msra.mxu0 %v11023_v36  ;;  %v11079_v36 = vcombine.low %v297_v24, %v301_v25  ;;  %v333_v59 = vld [vmem:[%s19018_s1 + $0x560] sm:$0xff] }
  0x2f   :  { %3186 = vmatprep.subr.bf16.mxu0 %v11032_v38  ;;  %v11082_v38 = vcombine.high %v298_v33, %v302_v34  ;;  %v11111_v14 = vcombine.low %v329_v58, %v333_v59  ;;  %v345_v15 = vld [vmem:[%s19018_s1 + $0x5c0] sm:$0xff] }
  0x30   :  { %3955 = vmatpush1.bf16.msra.mxu1 %v11017_v37  ;;  %v11073_v37 = vcombine.low %v290_v26, %v294_v27  ;;  %v349_v16 = vld [vmem:[%s19018_s1 + $0x5e0] sm:$0xff]  ;;  %v346_v27 = vld [vmem:[%s19018_s1 + $0x5c8] sm:$0xff] }
  0x31   :  { %3956 = vmatprep.subr.bf16.mxu1 %v11026_v40  ;;  %v313_v40 = vld [vmem:[%s19018_s1 + $0x4c0] sm:$0xff] }
  0x32   :  { %3187 = vmatpush1.bf16.msra.mxu0 %v11031_v45  ;;  %v13546_v45 = vld [vmem:[%s19019_s0 + $0x74] ss:$28 sps:$4 sm:$0xff]   ;;  %v11096_v50 = vcombine.high %v313_v40, %v317_v41  ;;  %v11095_v57 = vcombine.low %v313_v40, %v317_v41  ;;  %v13552_v24 = vld [vmem:[%s19019_s0 + $0xe4] ss:$28 sps:$4 sm:$0xff]   ;;  %v13555_v41 = vld [vmem:[%s19019_s0 + $0x11c] ss:$28 sps:$4 sm:$0xff]  }
  0x33   :  { %11348 = vmatmul.mubr.msk.bf16.gmra.mrb[20].mxu1 %vm3115_vm0, %v13537_v44  ;;  %3188 = vmatprep.subr.bf16.mxu0 %v11040_v47  ;;  %v310_v44 = vld [vmem:[%s19018_s1 + $0x4a8] sm:$0xff]  ;;  %v11081_v47 = vcombine.low %v298_v33, %v302_v34  ;;  %v11127_v33 = vcombine.low %v345_v15, %v349_v16  ;;  %v361_v34 = vld [vmem:[%s19018_s1 + $0x640] sm:$0xff] }
  0x34   :  { %3957 = vmatpush1.bf16.msra.mxu1 %v11025_v46  ;;  %3915 = vmatprep.mubr.bf16.mxu1 %v19028_v3  ;;  %v11090_v51 = vcombine.high %v306_v43, %v310_v44 }
  0x35   :  { %3958 = vmatprep.subr.bf16.mxu1 %v11034_v49  ;;  %v318_v49 = vld [vmem:[%s19018_s1 + $0x4e8] sm:$0xff] }
  0x36   :  { %3189 = vmatpush1.bf16.msra.mxu0 %v11039_v53  ;;  %v14607_v53 = vld [vmem:[%s19018_s1 + $0x828] sm:$0xff]  ;;  %v11097_v5 = vcombine.low %v314_v48, %v318_v49 }
  0x37   :  { %3190 = vmatprep.subr.bf16.mxu0 %v11048_v55  ;;  %v325_v55 = vld [vmem:[%s19018_s1 + $0x520] sm:$0xff] }
  0x38   :  { %3959 = vmatpush1.bf16.msra.mxu1 %v11033_v54  ;;  %v321_v54 = vld [vmem:[%s19018_s1 + $0x500] sm:$0xff] }
  0x39   :  { %3960 = vmatprep.subr.bf16.mxu1 %v11042_v56  ;;  %v11201_v56 = vcombine.low %v14602_v52, %v14607_v53  ;;  %v11103_v4 = vcombine.low %v321_v54, %v325_v55 }
  0x3a   :  { %3191 = vmatpush1.bf16.msra.mxu0 %v11047_v62  ;;  %v322_v62 = vld [vmem:[%s19018_s1 + $0x508] sm:$0xff] }
  0x3b   :  { %11349 = vmatmul.mubr.msk.bf16.gmra.mrb[24].mxu1 %vm3115_vm0, %v13538_v61  ;;  %3192 = vmatprep.subr.bf16.mxu0 %v11056_v0  ;;  %v11089_v61 = vcombine.low %v306_v43, %v310_v44  ;;  %v11098_v0 = vcombine.high %v314_v48, %v318_v49  ;;  %v362_v44 = vld [vmem:[%s19018_s1 + $0x648] sm:$0xff]  ;;  %v373_v49 = vld [vmem:[%s19018_s1 + $0x6a0] sm:$0xff] }
  0x3c   :  { %3961 = vmatpush1.bf16.msra.mxu1 %v11041_v63  ;;  %3925 = vmatprep.mubr.bf16.mxu1 %v19028_v3  ;;  %v326_v63 = vld [vmem:[%s19018_s1 + $0x528] sm:$0xff] }
  0x3d   :  { %3962 = vmatprep.subr.bf16.mxu1 %v11050_v1  ;;  %v11104_v1 = vcombine.high %v321_v54, %v325_v55  ;;  %v11106_v13 = vcombine.high %v322_v62, %v326_v63  ;;  %v381_v54 = vld [vmem:[%s19018_s1 + $0x6e0] sm:$0xff]  ;;  %v13557_v55 = vld [vmem:[%s19019_s0 + $0x118] ss:$28 sps:$4 sm:$0xff]  }
  0x3e   :  { %3193 = vmatpush1.bf16.msra.mxu0 %v11055_v7  ;;  %v334_v7 = vld [vmem:[%s19018_s1 + $0x568] sm:$0xff] }
  0x3f   :  { %3194 = vmatprep.subr.bf16.mxu0 %v11064_v11  ;;  %v337_v11 = vld [vmem:[%s19018_s1 + $0x580] sm:$0xff]  ;;  %v11113_v26 = vcombine.low %v330_v6, %v334_v7 }
  0x40   :  { %3963 = vmatpush1.bf16.msra.mxu1 %v11049_v8  ;;  %v11112_v8 = vcombine.high %v329_v58, %v333_v59  ;;  %v370_v58 = vld [vmem:[%s19018_s1 + $0x688] sm:$0xff] }
  0x41   :  { %3964 = vmatprep.subr.bf16.mxu1 %v11058_v12  ;;  %v341_v12 = vld [vmem:[%s19018_s1 + $0x5a0] sm:$0xff]  ;;  %v374_v59 = vld [vmem:[%s19018_s1 + $0x6a8] sm:$0xff] }
  0x42   :  { %3195 = vmatpush1.bf16.msra.mxu0 %v11063_v19  ;;  %v11105_v19 = vcombine.low %v322_v62, %v326_v63  ;;  %v11119_v25 = vcombine.low %v337_v11, %v341_v12  ;;  %v13558_v62 = vld [vmem:[%s19019_s0 + $0x154] ss:$28 sps:$4 sm:$0xff]  }
  0x43   :  { %11350 = vmatmul.mubr.msk.bf16.gmra.mrb[28].mxu1 %vm3115_vm0, %v13539_v17  ;;  %3357 = vmatprep.subr.bf16.mxu0 %v11072_v23  ;;  %v13551_v17 = vld [vmem:[%s19019_s0 + $0xa8] ss:$28 sps:$4 sm:$0xff]   ;;  %v11120_v23 = vcombine.high %v337_v11, %v341_v12  ;;  %v11153_v11 = vcombine.low %v370_v58, %v374_v59 }
  0x44   :  { %3965 = vmatpush1.bf16.msra.mxu1 %v11057_v20  ;;  %3968 = vmatprep.mubr.bf16.mxu1 %v14436_v18  ;;  %v309_v18 = vld [vmem:[%s19018_s1 + $0x4a0] sm:$0xff]  ;;  %v338_v20 = vld [vmem:[%s19018_s1 + $0x588] sm:$0xff] }
  0x45   :  { %3966 = vmatprep.subr.bf16.mxu1 %v11066_v22  ;;  %3197 = vmatmul.mubr.bf16.vlgmr.msra.gmra.mrb[0].mxu0 %v13542_v21  ;;  %v11088_v39 = vcombine.high %v305_v35, %v309_v18  ;;  %v11087_v46 = vcombine.low %v305_v35, %v309_v18  ;;  %v11114_v22 = vcombine.high %v330_v6, %v334_v7  ;;  %v365_v35 = vld [vmem:[%s19018_s1 + $0x660] sm:$0xff] }
  0x46   :  { %3206 = vmatprep.mubr.bf16.mxu0 %v13543_v28  ;;  %3358 = vmatpush1.bf16.msra.mxu0 %v11071_v29  ;;  %v11128_v29 = vcombine.high %v345_v15, %v349_v16  ;;  %v13554_v18 = vld [vmem:[%s19019_s0 + $0xe0] ss:$28 sps:$4 sm:$0xff]   ;;  %v13560_v16 = vld [vmem:[%s19019_s0 + $0x150] ss:$28 sps:$4 sm:$0xff]  }
  0x47   :  { %3359 = vmatprep.subr.bf16.mxu0 %v11080_v31  ;;  %v385_v6 = vld [vmem:[%s19018_s1 + $0x700] sm:$0xff] }
  0x48   :  { %3967 = vmatpush1.bf16.msra.mxu1 %v11065_v30  ;;  %v353_v30 = vld [vmem:[%s19018_s1 + $0x600] sm:$0xff] }
  0x49   :  { %4129 = vmatprep.subr.bf16.mxu1 %v11074_v32  ;;  %v357_v32 = vld [vmem:[%s19018_s1 + $0x620] sm:$0xff] }
  0x4a   :  { %3360 = vmatpush1.bf16.msra.mxu0 %v11079_v36  ;;  %v11136_v40 = vcombine.high %v353_v30, %v357_v32  ;;  %v389_v7 = vld [vmem:[%s19018_s1 + $0x720] sm:$0xff] }
  0x4b   :  { %3969 = vmatmul.mubr.bf16.vlgmr.msra.gmra.mrb[32].mxu1 %v13542_v21  ;;  %3361 = vmatprep.subr.bf16.mxu0 %v11088_v39  ;;  %v342_v21 = vld [vmem:[%s19018_s1 + $0x5a8] sm:$0xff]  ;;  %v397_v15 = vld [vmem:[%s19018_s1 + $0x760] sm:$0xff] }
  0x4c   :  { %4130 = vmatpush1.bf16.msra.mxu1 %v11073_v37  ;;  %3978 = vmatprep.mubr.bf16.mxu1 %v13543_v28  ;;  %v350_v28 = vld [vmem:[%s19018_s1 + $0x5e8] sm:$0xff]  ;;  %v11122_v31 = vcombine.high %v338_v20, %v342_v21  ;;  %v11121_v36 = vcombine.low %v338_v20, %v342_v21  ;;  %v11167_v21 = vcombine.low %v385_v6, %v389_v7 }
  0x4d   :  { %4131 = vmatprep.subr.bf16.mxu1 %v11082_v38  ;;  %3207 = vmatmul.mubr.bf16.gmra.mrb[4].mxu0 %v13545_v42  ;;  %v354_v37 = vld [vmem:[%s19018_s1 + $0x608] sm:$0xff]  ;;  %v11130_v39 = vcombine.high %v346_v27, %v350_v28  ;;  %v11129_v43 = vcombine.low %v346_v27, %v350_v28  ;;  %v401_v27 = vld [vmem:[%s19018_s1 + $0x780] sm:$0xff] }
  0x4e   :  { %3216 = vmatprep.mubr.bf16.mxu0 %v13546_v45  ;;  %3362 = vmatpush1.bf16.msra.mxu0 %v11087_v46  ;;  %v358_v38 = vld [vmem:[%s19018_s1 + $0x628] sm:$0xff]  ;;  %v11144_v46 = vcombine.high %v361_v34, %v365_v35  ;;  %v405_v28 = vld [vmem:[%s19018_s1 + $0x7a0] sm:$0xff] }
  0x4f   :  { %3363 = vmatprep.subr.bf16.mxu0 %v11096_v50  ;;  %v11138_v48 = vcombine.high %v354_v37, %v358_v38  ;;  %v11143_v50 = vcombine.low %v361_v34, %v365_v35  ;;  %v13561_v20 = vld [vmem:[%s19019_s0 + $0x18c] ss:$28 sps:$4 sm:$0xff]   ;;  %v413_v34 = vld [vmem:[%s19018_s1 + $0x7e0] sm:$0xff] }
  0x50   :  { %4132 = vmatpush1.bf16.msra.mxu1 %v11081_v47  ;;  %v369_v47 = vld [vmem:[%s19018_s1 + $0x680] sm:$0xff] }
  0x51   :  { %4133 = vmatprep.subr.bf16.mxu1 %v11090_v51  ;;  %v377_v51 = vld [vmem:[%s19018_s1 + $0x6c0] sm:$0xff]  ;;  %v11151_v63 = vcombine.low %v369_v47, %v373_v49 }
  0x52   :  { %3364 = vmatpush1.bf16.msra.mxu0 %v11095_v57  ;;  %v11137_v57 = vcombine.low %v354_v37, %v358_v38  ;;  %v13563_v35 = vld [vmem:[%s19019_s0 + $0x188] ss:$28 sps:$4 sm:$0xff]   ;;  %v11183_v38 = vcombine.low %v401_v27, %v405_v28 }
  0x53   :  { %3979 = vmatmul.mubr.bf16.gmra.mrb[36].mxu1 %v13545_v42  ;;  %3365 = vmatprep.subr.bf16.mxu0 %v11104_v1  ;;  %v11135_v42 = vcombine.low %v353_v30, %v357_v32  ;;  %v11160_v1 = vcombine.high %v377_v51, %v381_v54  ;;  %v11184_v32 = vcombine.high %v401_v27, %v405_v28  ;;  %v13564_v37 = vld [vmem:[%s19019_s0 + $0x1c4] ss:$28 sps:$4 sm:$0xff]   ;;  %v434_v27 = vld [vmem:[%s19018_s1 + $0x888] sm:$0xff] }
  0x54   :  { %3988 = vmatprep.mubr.bf16.mxu1 %v13546_v45  ;;  %4134 = vmatpush1.bf16.msra.mxu1 %v11089_v61  ;;  %v366_v45 = vld [vmem:[%s19018_s1 + $0x668] sm:$0xff]  ;;  %v11152_v61 = vcombine.high %v369_v47, %v373_v49  ;;  %v13566_v47 = vld [vmem:[%s19019_s0 + $0x1c0] ss:$28 sps:$4 sm:$0xff]  }
  0x55   :  { %4135 = vmatprep.subr.bf16.mxu1 %v11098_v0  ;;  %3217 = vmatmul.mubr.bf16.gmra.mrb[8].mxu0 %v13548_v60  ;;  %v11145_v0 = vcombine.low %v362_v44, %v366_v45  ;;  %v438_v28 = vld [vmem:[%s19018_s1 + $0x8a8] sm:$0xff] }
  0x56   :  { %3226 = vmatprep.mubr.bf16.mxu0 %v13549_v2  ;;  %3366 = vmatpush1.bf16.msra.mxu0 %v11103_v4  ;;  %v378_v4 = vld [vmem:[%s19018_s1 + $0x6c8] sm:$0xff] }
  0x57   :  { %3367 = vmatprep.subr.bf16.mxu0 %v11112_v8  ;;  %v11159_v8 = vcombine.low %v377_v51, %v381_v54  ;;  %v14805_v51 = vld [vmem:[%s19018_s1 + $0x820] sm:$0xff]  ;;  %v11202_v54 = vcombine.high %v14602_v52, %v14607_v53 }
  0x58   :  { %4136 = vmatpush1.bf16.msra.mxu1 %v11097_v5  ;;  %v382_v5 = vld [vmem:[%s19018_s1 + $0x6e8] sm:$0xff]  ;;  %v449_v52 = vld [vmem:[%s19018_s1 + $0x900] sm:$0xff] }
  0x59   :  { %4137 = vmatprep.subr.bf16.mxu1 %v11106_v13  ;;  %v11162_v12 = vcombine.high %v378_v4, %v382_v5  ;;  %v11168_v13 = vcombine.high %v385_v6, %v389_v7  ;;  %v13585_v6 = vld [vmem:[%s19019_s0 + $0x34c] ss:$28 sps:$4 sm:$0xff]   ;;  %v453_v53 = vld [vmem:[%s19018_s1 + $0x920] sm:$0xff] }
  0x5a   :  { %3368 = vmatpush1.bf16.msra.mxu0 %v11111_v14  ;;  %v393_v14 = vld [vmem:[%s19018_s1 + $0x740] sm:$0xff] }
  0x5b   :  { %3989 = vmatmul.mubr.bf16.gmra.mrb[40].mxu1 %v13548_v60  ;;  %3369 = vmatprep.subr.bf16.mxu0 %v11120_v23  ;;  %v11146_v60 = vcombine.high %v362_v44, %v366_v45  ;;  %v11176_v23 = vcombine.high %v393_v14, %v397_v15  ;;  %v13587_v7 = vld [vmem:[%s19019_s0 + $0x348] ss:$28 sps:$4 sm:$0xff]  }
  0x5c   :  { %3998 = vmatprep.mubr.bf16.mxu1 %v13549_v2  ;;  %4138 = vmatpush1.bf16.msra.mxu1 %v11105_v19  ;;  %v11154_v2 = vcombine.high %v370_v58, %v374_v59  ;;  %v390_v19 = vld [vmem:[%s19018_s1 + $0x728] sm:$0xff]  ;;  %v13569_v58 = vld [vmem:[%s19019_s0 + $0x1f8] ss:$28 sps:$4 sm:$0xff]  }
  0x5d   :  { %4139 = vmatprep.subr.bf16.mxu1 %v11114_v22  ;;  %3227 = vmatmul.mubr.bf16.gmra.mrb[12].mxu0 %v13551_v17  ;;  %v11161_v22 = vcombine.low %v378_v4, %v382_v5  ;;  %v13570_v59 = vld [vmem:[%s19019_s0 + $0x234] ss:$28 sps:$4 sm:$0xff]  }
  0x5e   :  { %3236 = vmatprep.mubr.bf16.mxu0 %v13552_v24  ;;  %3370 = vmatpush1.bf16.msra.mxu0 %v11119_v25  ;;  %v394_v25 = vld [vmem:[%s19018_s1 + $0x748] sm:$0xff]  ;;  %v13582_v4 = vld [vmem:[%s19019_s0 + $0x314] ss:$28 sps:$4 sm:$0xff]  }
  0x5f   :  { %3371 = vmatprep.subr.bf16.mxu0 %v11128_v29  ;;  %v11175_v29 = vcombine.low %v393_v14, %v397_v15  ;;  %v13584_v5 = vld [vmem:[%s19019_s0 + $0x310] ss:$28 sps:$4 sm:$0xff]   ;;  %v13591_v14 = vld [vmem:[%s19019_s0 + $0x44] ss:$28 sps:$4 sm:$0xff]  }
  0x60   :  { %4140 = vmatpush1.bf16.msra.mxu1 %v11113_v26  ;;  %v398_v26 = vld [vmem:[%s19018_s1 + $0x768] sm:$0xff] }
  0x61   :  { %4141 = vmatprep.subr.bf16.mxu1 %v11122_v31  ;;  %v11178_v31 = vcombine.high %v394_v25, %v398_v26 }
  0x62   :  { %3372 = vmatpush1.bf16.msra.mxu0 %v11127_v33  ;;  %v409_v33 = vld [vmem:[%s19018_s1 + $0x7c0] sm:$0xff] }
  0x63   :  { %3999 = vmatmul.mubr.bf16.gmra.mrb[44].mxu1 %v13551_v17  ;;  %3373 = vmatprep.subr.bf16.mxu0 %v11136_v40  ;;  %v386_v17 = vld [vmem:[%s19018_s1 + $0x708] sm:$0xff]  ;;  %v11192_v40 = vcombine.high %v409_v33, %v413_v34  ;;  %v11191_v44 = vcombine.low %v409_v33, %v413_v34 }
  0x64   :  { %4008 = vmatprep.mubr.bf16.mxu1 %v13552_v24  ;;  %4142 = vmatpush1.bf16.msra.mxu1 %v11121_v36  ;;  %v11170_v24 = vcombine.high %v386_v17, %v390_v19  ;;  %v11169_v30 = vcombine.low %v386_v17, %v390_v19  ;;  %v406_v36 = vld [vmem:[%s19018_s1 + $0x7a8] sm:$0xff]  ;;  %v433_v19 = vld [vmem:[%s19018_s1 + $0x880] sm:$0xff] }
  0x65   :  { %4143 = vmatprep.subr.bf16.mxu1 %v11130_v39  ;;  %3237 = vmatmul.mubr.bf16.gmra.mrb[16].mxu0 %v13554_v18  ;;  %v11177_v39 = vcombine.low %v394_v25, %v398_v26  ;;  %v430_v17 = vld [vmem:[%s19018_s1 + $0x868] sm:$0xff]  ;;  %v445_v25 = vld [vmem:[%s19018_s1 + $0x8e0] sm:$0xff] }
  0x66   :  { %3246 = vmatprep.mubr.bf16.mxu0 %v13555_v41  ;;  %3374 = vmatpush1.bf16.msra.mxu0 %v11135_v42  ;;  %v410_v42 = vld [vmem:[%s19018_s1 + $0x7c8] sm:$0xff]  ;;  %v13593_v26 = vld [vmem:[%s19019_s0 + $0x40] ss:$28 sps:$4 sm:$0xff]  }
  0x67   :  { %3375 = vmatprep.subr.bf16.mxu0 %v11144_v46 }
  0x68   :  { %4144 = vmatpush1.bf16.msra.mxu1 %v11129_v43  ;;  %v414_v43 = vld [vmem:[%s19018_s1 + $0x7e8] sm:$0xff] }
  0x69   :  { %4145 = vmatprep.subr.bf16.mxu1 %v11138_v48  ;;  %v11194_v46 = vcombine.high %v410_v42, %v414_v43  ;;  %v13567_v48 = vld [vmem:[%s19019_s0 + $0x1fc] ss:$28 sps:$4 sm:$0xff]   ;;  %v11193_v49 = vcombine.low %v410_v42, %v414_v43  ;;  %v461_v42 = vld [vmem:[%s19018_s1 + $0x960] sm:$0xff] }
  0x6a   :  { %3376 = vmatpush1.bf16.msra.mxu0 %v11143_v50  ;;  %v14800_v50 = vld [vmem:[%s19018_s1 + $0x800] sm:$0xff]  ;;  %v13596_v43 = vld [vmem:[%s19019_s0 + $0x78] ss:$28 sps:$4 sm:$0xff]  }
  0x6b   :  { %4009 = vmatmul.mubr.bf16.gmra.mrb[48].mxu1 %v13554_v18  ;;  %3377 = vmatprep.subr.bf16.mxu0 %v11152_v61  ;;  %v402_v18 = vld [vmem:[%s19018_s1 + $0x788] sm:$0xff] }
  0x6c   :  { %4018 = vmatprep.mubr.bf16.mxu1 %v13555_v41  ;;  %4146 = vmatpush1.bf16.msra.mxu1 %v11137_v57  ;;  %v11186_v41 = vcombine.high %v402_v18, %v406_v36  ;;  %v11185_v45 = vcombine.low %v402_v18, %v406_v36  ;;  %v11199_v57 = vcombine.low %v14800_v50, %v14805_v51  ;;  %v13573_v61 = vld [vmem:[%s19019_s0 + $0x26c] ss:$28 sps:$4 sm:$0xff]  }
  0x6d   :  { %4147 = vmatprep.subr.bf16.mxu1 %v11146_v60  ;;  %3247 = vmatmul.mubr.bf16.gmra.mrb[20].mxu0 %v13557_v55  ;;  %v13572_v60 = vld [vmem:[%s19019_s0 + $0x230] ss:$28 sps:$4 sm:$0xff]   ;;  %v11218_v18 = vcombine.high %v434_v27, %v438_v28 }
  0x6e   :  { %3256 = vmatprep.mubr.bf16.mxu0 %v13558_v62  ;;  %3378 = vmatpush1.bf16.msra.mxu0 %v11151_v63  ;;  %v13576_v63 = vld [vmem:[%s19019_s0 + $0x2a4] ss:$28 sps:$4 sm:$0xff]   ;;  %v442_v36 = vld [vmem:[%s19018_s1 + $0x8c8] sm:$0xff] }
  0x6f   :  { %3379 = vmatprep.subr.bf16.mxu0 %v11160_v1  ;;  %v13579_v1 = vld [vmem:[%s19019_s0 + $0x2dc] ss:$28 sps:$4 sm:$0xff]  }
  0x70   :  { %4148 = vmatpush1.bf16.msra.mxu1 %v11145_v0  ;;  %v13578_v0 = vld [vmem:[%s19019_s0 + $0x2a0] ss:$28 sps:$4 sm:$0xff]  }
  0x71   :  { %4149 = vmatprep.subr.bf16.mxu1 %v11154_v2  ;;  %v13581_v2 = vld [vmem:[%s19019_s0 + $0x2d8] ss:$28 sps:$4 sm:$0xff]  }
  0x72   :  { %3380 = vmatpush1.bf16.msra.mxu0 %v11159_v8  ;;  %v13590_v8 = vld [vmem:[%s19019_s0 + $0xc] ss:$28 sps:$4 sm:$0xff]  }
  0x73   :  { %4019 = vmatmul.mubr.bf16.gmra.mrb[52].mxu1 %v13557_v55  ;;  %3381 = vmatprep.subr.bf16.mxu0 %v11168_v13  ;;  %v11200_v55 = vcombine.high %v14800_v50, %v14805_v51  ;;  %v13588_v13 = vld [vmem:[%s19019_s0 + $0x8] ss:$28 sps:$4 sm:$0xff]  }
  0x74   :  { %4028 = vmatprep.mubr.bf16.mxu1 %v13558_v62  ;;  %4150 = vmatpush1.bf16.msra.mxu1 %v11153_v11  ;;  %v13575_v62 = vld [vmem:[%s19019_s0 + $0x268] ss:$28 sps:$4 sm:$0xff]  }
  0x75   :  { %4151 = vmatprep.subr.bf16.mxu1 %v11162_v12  ;;  %3257 = vmatmul.mubr.bf16.gmra.mrb[24].mxu0 %v13560_v16  ;;  %v425_v11 = vld [vmem:[%s19018_s1 + $0x840] sm:$0xff]  ;;  %v458_v51 = vld [vmem:[%s19018_s1 + $0x948] sm:$0xff] }
  0x76   :  { %3266 = vmatprep.mubr.bf16.mxu0 %v13561_v20  ;;  %3382 = vmatpush1.bf16.msra.mxu0 %v11167_v21  ;;  %v429_v12 = vld [vmem:[%s19018_s1 + $0x860] sm:$0xff] }
  0x77   :  { %3383 = vmatprep.subr.bf16.mxu0 %v11176_v23  ;;  %v11208_v15 = vcombine.high %v425_v11, %v429_v12  ;;  %v11207_v21 = vcombine.low %v425_v11, %v429_v12  ;;  %v474_v11 = vld [vmem:[%s19018_s1 + $0x9c8] sm:$0xff] }
  0x78   :  { %4152 = vmatpush1.bf16.msra.mxu1 %v11161_v22 }
  0x79   :  { %4153 = vmatprep.subr.bf16.mxu1 %v11170_v24  ;;  %v441_v24 = vld [vmem:[%s19018_s1 + $0x8c0] sm:$0xff] }
  0x7a   :  { %3384 = vmatpush1.bf16.msra.mxu0 %v11175_v29  ;;  %v13594_v29 = vld [vmem:[%s19019_s0 + $0x7c] ss:$28 sps:$4 sm:$0xff]   ;;  %v11224_v34 = vcombine.high %v441_v24, %v445_v25 }
  0x7b   :  { %4029 = vmatmul.mubr.bf16.gmra.mrb[56].mxu1 %v13560_v16  ;;  %3385 = vmatprep.subr.bf16.mxu0 %v11184_v32  ;;  %v426_v16 = vld [vmem:[%s19018_s1 + $0x848] sm:$0xff] }
  0x7c   :  { %4038 = vmatprep.mubr.bf16.mxu1 %v13561_v20  ;;  %4154 = vmatpush1.bf16.msra.mxu1 %v11169_v30  ;;  %v437_v20 = vld [vmem:[%s19018_s1 + $0x8a0] sm:$0xff]  ;;  %v11210_v22 = vcombine.high %v426_v16, %v430_v17  ;;  %v14905_v32 = vld [vmem:[%s19018_s1 + $0xc28] sm:$0xff]  ;;  %v11209_v33 = vcombine.low %v426_v16, %v430_v17 }
  0x7d   :  { %4155 = vmatprep.subr.bf16.mxu1 %v11178_v31  ;;  %3267 = vmatmul.mubr.bf16.gmra.mrb[28].mxu0 %v13563_v35  ;;  %v11216_v23 = vcombine.high %v433_v19, %v437_v20  ;;  %v11215_v30 = vcombine.low %v433_v19, %v437_v20  ;;  %v14900_v31 = vld [vmem:[%s19018_s1 + $0xc08] sm:$0xff] }
  0x7e   :  { %3276 = vmatprep.mubr.bf16.mxu0 %v13564_v37  ;;  %3386 = vmatpush1.bf16.msra.mxu0 %v11183_v38  ;;  %v11217_v38 = vcombine.low %v434_v27, %v438_v28  ;;  %v482_v27 = vld [vmem:[%s19018_s1 + $0xa08] sm:$0xff] }
  0x7f   :  { %3387 = vmatprep.subr.bf16.mxu0 %v11192_v40  ;;  %v11232_v40 = vcombine.high %v449_v52, %v453_v53  ;;  %v486_v28 = vld [vmem:[%s19018_s1 + $0xa28] sm:$0xff] }
  0x80   :  { %4156 = vmatpush1.bf16.msra.mxu1 %v11177_v39 }
  0x81   :  { %4157 = vmatprep.subr.bf16.mxu1 %v11186_v41  ;;  %v457_v41 = vld [vmem:[%s19018_s1 + $0x940] sm:$0xff] }
  0x82   :  { %3388 = vmatpush1.bf16.msra.mxu0 %v11191_v44  ;;  %v450_v44 = vld [vmem:[%s19018_s1 + $0x908] sm:$0xff] }
  0x83   :  { %4039 = vmatmul.mubr.bf16.gmra.mrb[60].mxu1 %v13563_v35  ;;  %3550 = vmatprep.subr.bf16.mxu0 %v11200_v55  ;;  %v11329_v35 = vcombine.low %v14900_v31, %v14905_v32  ;;  %v465_v55 = vld [vmem:[%s19018_s1 + $0x980] sm:$0xff] }
  0x84   :  { %4048 = vmatprep.mubr.bf16.mxu1 %v13564_v37  ;;  %4158 = vmatpush1.bf16.msra.mxu1 %v11185_v45  ;;  %v446_v37 = vld [vmem:[%s19018_s1 + $0x8e8] sm:$0xff] }
  0x85   :  { %4159 = vmatprep.subr.bf16.mxu1 %v11194_v46  ;;  %3277 = vmatmul.mubr.bf16.gmra.mrb[32].mxu0 %v13566_v47  ;;  %v11226_v39 = vcombine.high %v442_v36, %v446_v37  ;;  %v454_v45 = vld [vmem:[%s19018_s1 + $0x928] sm:$0xff]  ;;  %v13597_v46 = vld [vmem:[%s19019_s0 + $0xb4] ss:$28 sps:$4 sm:$0xff]  }
  0x86   :  { %3286 = vmatprep.mubr.bf16.mxu0 %v13567_v48  ;;  %v11234_v50 = vcombine.high %v450_v44, %v454_v45 }
  0x88   :  { %4160 = vmatpush1.bf16.msra.mxu1 %v11193_v49  ;;  %v11240_v49 = vcombine.high %v457_v41, %v461_v42 }
  0x89   :  { %4322 = vmatprep.subr.bf16.mxu1 %v11202_v54  ;;  %v462_v54 = vld [vmem:[%s19018_s1 + $0x968] sm:$0xff] }
  0x8b   :  { %4049 = vmatmul.mubr.bf16.gmra.mrb[64].mxu1 %v13566_v47  ;;  %v11231_v47 = vcombine.low %v449_v52, %v453_v53  ;;  %v494_v52 = vld [vmem:[%s19018_s1 + $0xa68] sm:$0xff]  ;;  %v497_v53 = vld [vmem:[%s19018_s1 + $0xa80] sm:$0xff] }
  0x8c   :  { %4058 = vmatprep.mubr.bf16.mxu1 %v13567_v48  ;;  %v11225_v48 = vcombine.low %v442_v36, %v446_v37  ;;  %v490_v36 = vld [vmem:[%s19018_s1 + $0xa48] sm:$0xff] }
  0x8d   :  { %3287 = vmatmul.mubr.bf16.gmra.mrb[36].mxu0 %v13569_v58 }
  0x8e   :  { %3296 = vmatprep.mubr.bf16.mxu0 %v13570_v59 }
  0x93   :  { %4059 = vmatmul.mubr.bf16.gmra.mrb[68].mxu1 %v13569_v58  ;;  %v11239_v58 = vcombine.low %v457_v41, %v461_v42  ;;  %v11265_v41 = vcombine.low %v482_v27, %v486_v28 }
  0x94   :  { %4068 = vmatprep.mubr.bf16.mxu1 %v13570_v59  ;;  %v11233_v59 = vcombine.low %v450_v44, %v454_v45  ;;  %v505_v45 = vld [vmem:[%s19018_s1 + $0xac0] sm:$0xff] }
  0x95   :  { %3297 = vmatmul.mubr.bf16.gmra.mrb[40].mxu0 %v13572_v60 }
  0x96   :  { %3306 = vmatprep.mubr.bf16.mxu0 %v13573_v61 }
  0x9b   :  { %4069 = vmatmul.mubr.bf16.gmra.mrb[72].mxu1 %v13572_v60  ;;  %v11242_v60 = vcombine.high %v458_v51, %v462_v54 }
  0x9c   :  { %4078 = vmatprep.mubr.bf16.mxu1 %v13573_v61 }
  0x9d   :  { %3307 = vmatmul.mubr.bf16.gmra.mrb[44].mxu0 %v13575_v62 }
  0x9e   :  { %3316 = vmatprep.mubr.bf16.mxu0 %v13576_v63 }
  0xa3   :  { %4079 = vmatmul.mubr.bf16.gmra.mrb[76].mxu1 %v13575_v62  ;;  %v473_v62 = vld [vmem:[%s19018_s1 + $0x9c0] sm:$0xff] }
  0xa4   :  { %4088 = vmatprep.mubr.bf16.mxu1 %v13576_v63  ;;  %v477_v63 = vld [vmem:[%s19018_s1 + $0x9e0] sm:$0xff] }
  0xa5   :  { %3317 = vmatmul.mubr.bf16.gmra.mrb[48].mxu0 %v13578_v0  ;;  %v11255_v17 = vcombine.low %v473_v62, %v477_v63 }
  0xa6   :  { %3326 = vmatprep.mubr.bf16.mxu0 %v13579_v1 }
  0xab   :  { %4089 = vmatmul.mubr.bf16.gmra.mrb[80].mxu1 %v13578_v0  ;;  %v13599_v0 = vld [vmem:[%s19019_s0 + $0xb0] ss:$28 sps:$4 sm:$0xff]  }
  0xac   :  { %4098 = vmatprep.mubr.bf16.mxu1 %v13579_v1  ;;  %v466_v1 = vld [vmem:[%s19018_s1 + $0x988] sm:$0xff] }
  0xad   :  { %3327 = vmatmul.mubr.bf16.gmra.mrb[52].mxu0 %v13581_v2 }
  0xae   :  { %3336 = vmatprep.mubr.bf16.mxu0 %v13582_v4 }
  0xb3   :  { %4099 = vmatmul.mubr.bf16.gmra.mrb[84].mxu1 %v13581_v2  ;;  %v470_v2 = vld [vmem:[%s19018_s1 + $0x9a8] sm:$0xff] }
  0xb4   :  { %4108 = vmatprep.mubr.bf16.mxu1 %v13582_v4  ;;  %v13600_v4 = vld [vmem:[%s19019_s0 + $0xec] ss:$28 sps:$4 sm:$0xff]   ;;  %v11249_v20 = vcombine.low %v466_v1, %v470_v2 }
  0xb5   :  { %3337 = vmatmul.mubr.bf16.gmra.mrb[56].mxu0 %v13584_v5 }
  0xb6   :  { %3346 = vmatprep.mubr.bf16.mxu0 %v13585_v6 }
  0xbb   :  { %4109 = vmatmul.mubr.bf16.gmra.mrb[88].mxu1 %v13584_v5 }
  0xbc   :  { %4118 = vmatprep.mubr.bf16.mxu1 %v13585_v6  ;;  %v11241_v6 = vcombine.low %v458_v51, %v462_v54  ;;  %v11273_v54 = vcombine.low %v490_v36, %v494_v52 }
  0xbd   :  { %3347 = vmatmul.mubr.bf16.gmra.mrb[60].mxu0 %v13587_v7 }
  0xbe   :  { %3389 = vmatprep.mubr.bf16.mxu0 %v13590_v8 }
  0xc3   :  { %4119 = vmatmul.mubr.bf16.gmra.mrb[92].mxu1 %v13587_v7  ;;  %v11256_v7 = vcombine.high %v473_v62, %v477_v63  ;;  %v517_v62 = vld [vmem:[%s19018_s1 + $0xb20] sm:$0xff] }
  0xc4   :  { %4161 = vmatprep.mubr.bf16.mxu1 %v13590_v8  ;;  %v11250_v8 = vcombine.high %v466_v1, %v470_v2 }
  0xc5   :  { %3390 = vmatmul.mubr.bf16.vlgmr.msra.gmra.mrb[0].mxu0 %v13588_v13 }
  0xc6   :  { %3399 = vmatprep.mubr.bf16.mxu0 %v13591_v14  ;;  %3551 = vmatpush1.bf16.msra.mxu0 %v11199_v57  ;;  %v469_v57 = vld [vmem:[%s19018_s1 + $0x9a0] sm:$0xff] }
  0xc7   :  { %3552 = vmatprep.subr.bf16.mxu0 %v11208_v15  ;;  %v11248_v61 = vcombine.high %v465_v55, %v469_v57  ;;  %v11247_v5 = vcombine.low %v465_v55, %v469_v57  ;;  %v485_v15 = vld [vmem:[%s19018_s1 + $0xa20] sm:$0xff] }
  0xca   :  { %3553 = vmatpush1.bf16.msra.mxu0 %v11207_v21 }
  0xcb   :  { %4162 = vmatmul.mubr.bf16.vlgmr.msra.gmra.mrb[32].mxu1 %v13588_v13  ;;  %3554 = vmatprep.subr.bf16.mxu0 %v11216_v23  ;;  %v478_v13 = vld [vmem:[%s19018_s1 + $0x9e8] sm:$0xff] }
  0xcc   :  { %4323 = vmatpush1.bf16.msra.mxu1 %v11201_v56  ;;  %4171 = vmatprep.mubr.bf16.mxu1 %v13591_v14  ;;  %v11223_v56 = vcombine.low %v441_v24, %v445_v25  ;;  %v481_v14 = vld [vmem:[%s19018_s1 + $0xa00] sm:$0xff] }
  0xcd   :  { %4324 = vmatprep.subr.bf16.mxu1 %v11210_v22  ;;  %3400 = vmatmul.mubr.bf16.gmra.mrb[4].mxu0 %v13593_v26  ;;  %v11258_v22 = vcombine.high %v474_v11, %v478_v13  ;;  %v11264_v23 = vcombine.high %v481_v14, %v485_v15  ;;  %v489_v24 = vld [vmem:[%s19018_s1 + $0xa40] sm:$0xff] }
  0xce   :  { %3409 = vmatprep.mubr.bf16.mxu0 %v13594_v29  ;;  %3555 = vmatpush1.bf16.msra.mxu0 %v11215_v30  ;;  %v493_v25 = vld [vmem:[%s19018_s1 + $0xa60] sm:$0xff]  ;;  %v11263_v30 = vcombine.low %v481_v14, %v485_v15  ;;  %v518_v14 = vld [vmem:[%s19018_s1 + $0xb28] sm:$0xff]  ;;  %v13609_v15 = vld [vmem:[%s19019_s0 + $0x194] ss:$28 sps:$4 sm:$0xff]  }
  0xcf   :  { %3556 = vmatprep.subr.bf16.mxu0 %v11224_v34  ;;  %v11272_v34 = vcombine.high %v489_v24, %v493_v25 }
  0xd0   :  { %4325 = vmatpush1.bf16.msra.mxu1 %v11209_v33  ;;  %v11257_v33 = vcombine.low %v474_v11, %v478_v13  ;;  %v13608_v11 = vld [vmem:[%s19019_s0 + $0x158] ss:$28 sps:$4 sm:$0xff]   ;;  %v514_v13 = vld [vmem:[%s19018_s1 + $0xb08] sm:$0xff] }
  0xd1   :  { %4326 = vmatprep.subr.bf16.mxu1 %v11218_v18  ;;  %v11266_v18 = vcombine.high %v482_v27, %v486_v28  ;;  %v529_v27 = vld [vmem:[%s19018_s1 + $0xb80] sm:$0xff] }
  0xd2   :  { %3557 = vmatpush1.bf16.msra.mxu0 %v11223_v56  ;;  %v501_v56 = vld [vmem:[%s19018_s1 + $0xaa0] sm:$0xff] }
  0xd3   :  { %4172 = vmatmul.mubr.bf16.gmra.mrb[36].mxu1 %v13593_v26  ;;  %3558 = vmatprep.subr.bf16.mxu0 %v11232_v40  ;;  %v13602_v26 = vld [vmem:[%s19019_s0 + $0xe8] ss:$28 sps:$4 sm:$0xff]   ;;  %v11280_v44 = vcombine.high %v497_v53, %v501_v56  ;;  %v11279_v51 = vcombine.low %v497_v53, %v501_v56 }
  0xd4   :  { %4181 = vmatprep.mubr.bf16.mxu1 %v13594_v29  ;;  %4327 = vmatpush1.bf16.msra.mxu1 %v11217_v38  ;;  %v13603_v29 = vld [vmem:[%s19019_s0 + $0x124] ss:$28 sps:$4 sm:$0xff]  }
  0xd5   :  { %4328 = vmatprep.subr.bf16.mxu1 %v11226_v39  ;;  %3410 = vmatmul.mubr.bf16.gmra.mrb[8].mxu0 %v13596_v43  ;;  %v11271_v39 = vcombine.low %v489_v24, %v493_v25  ;;  %v522_v24 = vld [vmem:[%s19018_s1 + $0xb48] sm:$0xff]  ;;  %v533_v28 = vld [vmem:[%s19018_s1 + $0xba0] sm:$0xff] }
  0xd6   :  { %3419 = vmatprep.mubr.bf16.mxu0 %v13597_v46  ;;  %3559 = vmatpush1.bf16.msra.mxu0 %v11231_v47  ;;  %v13605_v47 = vld [vmem:[%s19019_s0 + $0x120] ss:$28 sps:$4 sm:$0xff]  }
  0xd7   :  { %3560 = vmatprep.subr.bf16.mxu0 %v11240_v49  ;;  %v502_v49 = vld [vmem:[%s19018_s1 + $0xaa8] sm:$0xff]  ;;  %v537_v53 = vld [vmem:[%s19018_s1 + $0xbc0] sm:$0xff] }
  0xd8   :  { %4329 = vmatpush1.bf16.msra.mxu1 %v11225_v48  ;;  %v498_v48 = vld [vmem:[%s19018_s1 + $0xa88] sm:$0xff]  ;;  %v541_v56 = vld [vmem:[%s19018_s1 + $0xbe0] sm:$0xff] }
  0xd9   :  { %4330 = vmatprep.subr.bf16.mxu1 %v11234_v50  ;;  %v13606_v50 = vld [vmem:[%s19019_s0 + $0x15c] ss:$28 sps:$4 sm:$0xff]   ;;  %v11282_v57 = vcombine.high %v498_v48, %v502_v49  ;;  %v11281_v2 = vcombine.low %v498_v48, %v502_v49 }
  0xda   :  { %3561 = vmatpush1.bf16.msra.mxu0 %v11239_v58  ;;  %v506_v58 = vld [vmem:[%s19018_s1 + $0xac8] sm:$0xff] }
  0xdb   :  { %4182 = vmatmul.mubr.bf16.gmra.mrb[40].mxu1 %v13596_v43  ;;  %3562 = vmatprep.subr.bf16.mxu0 %v11248_v61  ;;  %v11274_v43 = vcombine.high %v490_v36, %v494_v52  ;;  %v513_v61 = vld [vmem:[%s19018_s1 + $0xb00] sm:$0xff]  ;;  %v11312_v52 = vcombine.high %v529_v27, %v533_v28 }
  0xdc   :  { %4191 = vmatprep.mubr.bf16.mxu1 %v13597_v46  ;;  %4331 = vmatpush1.bf16.msra.mxu1 %v11233_v59  ;;  %v509_v46 = vld [vmem:[%s19018_s1 + $0xae0] sm:$0xff] }
  0xdd   :  { %4332 = vmatprep.subr.bf16.mxu1 %v11242_v60  ;;  %3420 = vmatmul.mubr.bf16.gmra.mrb[12].mxu0 %v13599_v0  ;;  %v11288_v55 = vcombine.high %v505_v45, %v509_v46  ;;  %v510_v60 = vld [vmem:[%s19018_s1 + $0xae8] sm:$0xff] }
  0xde   :  { %v14975_v12 = vpop.f32.mrb[0].mxu1  ;;  %3429 = vmatprep.mubr.bf16.mxu0 %v13600_v4  ;;  %3563 = vmatpush1.bf16.msra.mxu0 %v11247_v5  ;;  %v11290_v5 = vcombine.high %v506_v58, %v510_v60 }
  0xdf   :  { %v14986_v16 = vpop.f32.mrb[1].mxu1  ;;  %3564 = vmatprep.subr.bf16.mxu0 %v11256_v7  ;;  %v521_v7 = vld [vmem:[%s19018_s1 + $0xb40] sm:$0xff] }
  0xe0   :  { %v14988_v19 = vpop.f32.mrb[2].mxu1  ;;  %4333 = vmatpush1.bf16.msra.mxu1 %v11241_v6  ;;  %v11296_v6 = vcombine.high %v513_v61, %v517_v62 }
  0xe1   :  { %v14990_v21 = vpop.f32.mrb[3].mxu1  ;;  %4334 = vmatprep.subr.bf16.mxu1 %v11250_v8  ;;  %v525_v8 = vld [vmem:[%s19018_s1 + $0xb60] sm:$0xff] }
  0xe2   :  { %3565 = vmatpush1.bf16.msra.mxu0 %v11255_v17  ;;  %v11295_v17 = vcombine.low %v513_v61, %v517_v62  ;;  %v13614_v62 = vld [vmem:[%s19019_s0 + $0x1c8] ss:$28 sps:$4 sm:$0xff]  }
  0xe3   :  { %4192 = vmatmul.mubr.bf16.gmra.mrb[44].mxu1 %v13599_v0  ;;  %3566 = vmatprep.subr.bf16.mxu0 %v11264_v23  ;;  %v11287_v0 = vcombine.low %v505_v45, %v509_v46  ;;  %v11298_v23 = vcombine.high %v514_v13, %v518_v14  ;;  %v11311_v45 = vcombine.low %v529_v27, %v533_v28 }
  0xe4   :  { %4201 = vmatprep.mubr.bf16.mxu1 %v13600_v4  ;;  %4335 = vmatpush1.bf16.msra.mxu1 %v11249_v20  ;;  %v11289_v20 = vcombine.low %v506_v58, %v510_v60 }
  0xe5   :  { %4336 = vmatprep.subr.bf16.mxu1 %v11258_v22  ;;  %3430 = vmatmul.mubr.bf16.gmra.mrb[16].mxu0 %v13602_v26  ;;  %v11304_v22 = vcombine.high %v521_v7, %v525_v8 }
  0xe6   :  { %v15013_v37 = vpop.f32.mrb[4].mxu1  ;;  %3439 = vmatprep.mubr.bf16.mxu0 %v13603_v29  ;;  %3567 = vmatpush1.bf16.msra.mxu0 %v11263_v30  ;;  %v11303_v30 = vcombine.low %v521_v7, %v525_v8 }
  0xe7   :  { %v15024_v38 = vpop.f32.mrb[5].mxu1  ;;  %3568 = vmatprep.subr.bf16.mxu0 %v11272_v34  ;;  %v11297_v34 = vcombine.low %v514_v13, %v518_v14  ;;  %v13617_v13 = vld [vmem:[%s19019_s0 + $0x200] ss:$28 sps:$4 sm:$0xff]  }
  0xe8   :  { %v15026_v40 = vpop.f32.mrb[6].mxu1  ;;  %4337 = vmatpush1.bf16.msra.mxu1 %v11257_v33 }
  0xe9   :  { %v15028_v42 = vpop.f32.mrb[7].mxu1  ;;  %4338 = vmatprep.subr.bf16.mxu1 %v11266_v18 }
  0xea   :  { %3569 = vmatpush1.bf16.msra.mxu0 %v11271_v39  ;;  %v13611_v39 = vld [vmem:[%s19019_s0 + $0x190] ss:$28 sps:$4 sm:$0xff]  }
  0xeb   :  { %4202 = vmatmul.mubr.bf16.gmra.mrb[48].mxu1 %v13602_v26  ;;  %3570 = vmatprep.subr.bf16.mxu0 %v11280_v44  ;;  %v526_v26 = vld [vmem:[%s19018_s1 + $0xb68] sm:$0xff] }
  0xec   :  { %4211 = vmatprep.mubr.bf16.mxu1 %v13603_v29  ;;  %4339 = vmatpush1.bf16.msra.mxu1 %v11265_v41  ;;  %v11306_v36 = vcombine.high %v522_v24, %v526_v26  ;;  %v530_v41 = vld [vmem:[%s19018_s1 + $0xb88] sm:$0xff]  ;;  %v11305_v46 = vcombine.low %v522_v24, %v526_v26 }
  0xed   :  { %4340 = vmatprep.subr.bf16.mxu1 %v11274_v43  ;;  %3440 = vmatmul.mubr.bf16.gmra.mrb[20].mxu0 %v13605_v47  ;;  %v534_v43 = vld [vmem:[%s19018_s1 + $0xba8] sm:$0xff] }
  0xee   :  { %v15051_v59 = vpop.f32.mrb[8].mxu1  ;;  %3449 = vmatprep.mubr.bf16.mxu0 %v13606_v50  ;;  %3571 = vmatpush1.bf16.msra.mxu0 %v11279_v51  ;;  %v13612_v44 = vld [vmem:[%s19019_s0 + $0x1cc] ss:$28 sps:$4 sm:$0xff]   ;;  %v11314_v48 = vcombine.high %v530_v41, %v534_v43  ;;  %v11313_v58 = vcombine.low %v530_v41, %v534_v43  ;;  %v13633_v41 = vld [vmem:[%s19019_s0 + $0x354] ss:$28 sps:$4 sm:$0xff]  }
  0xef   :  { %v15062_v63 = vpop.f32.mrb[9].mxu1  ;;  %3572 = vmatprep.subr.bf16.mxu0 %v11288_v55  ;;  %v542_v51 = vld [vmem:[%s19018_s1 + $0xbe8] sm:$0xff]  ;;  %v11319_v55 = vcombine.low %v537_v53, %v541_v56 }
  0xf0   :  { %v15064_v1 = vpop.f32.mrb[10].mxu1  ;;  %4341 = vmatpush1.bf16.msra.mxu1 %v11273_v54  ;;  %v13635_v43 = vld [vmem:[%s19019_s0 + $0x350] ss:$28 sps:$4 sm:$0xff]  }
  0xf1   :  { %v15066_v4 = vpop.f32.mrb[11].mxu1  ;;  %4342 = vmatprep.subr.bf16.mxu1 %v11282_v57 }
  0xf2   :  { %3573 = vmatpush1.bf16.msra.mxu0 %v11287_v0  ;;  %v13615_v0 = vld [vmem:[%s19019_s0 + $0x204] ss:$28 sps:$4 sm:$0xff]  }
  0xf3   :  { %4212 = vmatmul.mubr.bf16.gmra.mrb[52].mxu1 %v13605_v47  ;;  %3574 = vmatprep.subr.bf16.mxu0 %v11296_v6  ;;  %v11320_v47 = vcombine.high %v537_v53, %v541_v56  ;;  %v13629_v53 = vld [vmem:[%s19019_s0 + $0x2e0] ss:$28 sps:$4 sm:$0xff]  }
  0xf4   :  { %4221 = vmatprep.mubr.bf16.mxu1 %v13606_v50  ;;  %4343 = vmatpush1.bf16.msra.mxu1 %v11281_v2  ;;  %v538_v50 = vld [vmem:[%s19018_s1 + $0xbc8] sm:$0xff]  ;;  %v13630_v56 = vld [vmem:[%s19019_s0 + $0x31c] ss:$28 sps:$4 sm:$0xff]  }
  0xf5   :  { %4344 = vmatprep.subr.bf16.mxu1 %v11290_v5  ;;  %3450 = vmatmul.mubr.bf16.gmra.mrb[24].mxu0 %v13608_v11  ;;  %v11322_v61 = vcombine.high %v538_v50, %v542_v51  ;;  %v11321_v2 = vcombine.low %v538_v50, %v542_v51  ;;  %v11330_v5 = vcombine.high %v14900_v31, %v14905_v32  ;;  %v13645_v31 = vld [vmem:[%s19019_s0 + $0xbc] ss:$28 sps:$4 sm:$0xff]  }
  0xf6   :  { %v15089_v25 = vpop.f32.mrb[12].mxu1  ;;  %3459 = vmatprep.mubr.bf16.mxu0 %v13609_v15  ;;  %3575 = vmatpush1.bf16.msra.mxu0 %v11295_v17  ;;  %v13647_v32 = vld [vmem:[%s19019_s0 + $0xb8] ss:$28 sps:$4 sm:$0xff]  }
  0xf7   :  { %v15100_v29 = vpop.f32.mrb[13].mxu1  ;;  %3576 = vmatprep.subr.bf16.mxu0 %v11304_v22  ;;  %v13620_v22 = vld [vmem:[%s19019_s0 + $0x238] ss:$28 sps:$4 sm:$0xff]  }
  0xf8   :  { %v15102_v33 = vpop.f32.mrb[14].mxu1  ;;  %4345 = vmatpush1.bf16.msra.mxu1 %v11289_v20 }
  0xf9   :  { %v15104_v18 = vpop.f32.mrb[15].mxu1  ;;  %4346 = vmatprep.subr.bf16.mxu1 %v11298_v23  ;;  %v13621_v23 = vld [vmem:[%s19019_s0 + $0x274] ss:$28 sps:$4 sm:$0xff]  }
  0xfa   :  { %3577 = vmatpush1.bf16.msra.mxu0 %v11303_v30  ;;  %v13623_v30 = vld [vmem:[%s19019_s0 + $0x270] ss:$28 sps:$4 sm:$0xff]  }
  0xfb   :  { %4222 = vmatmul.mubr.bf16.gmra.mrb[56].mxu1 %v13608_v11  ;;  %3578 = vmatprep.subr.bf16.mxu0 %v11312_v52  ;;  %v13627_v52 = vld [vmem:[%s19019_s0 + $0x2e4] ss:$28 sps:$4 sm:$0xff]  }
  0xfc   :  { %4231 = vmatprep.mubr.bf16.mxu1 %v13609_v15  ;;  %4347 = vmatpush1.bf16.msra.mxu1 %v11297_v34  ;;  %v13624_v34 = vld [vmem:[%s19019_s0 + $0x2ac] ss:$28 sps:$4 sm:$0xff]  }
  0xfd   :  { %4348 = vmatprep.subr.bf16.mxu1 %v11306_v36  ;;  %3460 = vmatmul.mubr.bf16.gmra.mrb[28].mxu0 %v13611_v39  ;;  %v13626_v36 = vld [vmem:[%s19019_s0 + $0x2a8] ss:$28 sps:$4 sm:$0xff]  }
  0xfe   :  { %v15124_v49 = vpop.f32.mrb[16].mxu1  ;;  %3469 = vmatprep.mubr.bf16.mxu0 %v13612_v44  ;;  %3579 = vmatpush1.bf16.msra.mxu0 %v11311_v45  ;;  %v13636_v45 = vld [vmem:[%s19019_s0 + $0x10] ss:$28 sps:$4 sm:$0xff]  }
  0xff   :  { %v15132_v54 = vpop.f32.mrb[17].mxu1  ;;  %3580 = vmatprep.subr.bf16.mxu0 %v11320_v47  ;;  %v15222_v47 = vld [vmem:[%s19018_s1 + $0x10] sm:$0xff] }
 0x100   :  { %v15134_v57 = vpop.f32.mrb[18].mxu1  ;;  %4349 = vmatpush1.bf16.msra.mxu1 %v11305_v46  ;;  %v13639_v46 = vld [vmem:[%s19019_s0 + $0x4c] ss:$28 sps:$4 sm:$0xff]  }
 0x101   :  { %v15136_v60 = vpop.f32.mrb[19].mxu1  ;;  %4350 = vmatprep.subr.bf16.mxu1 %v11314_v48  ;;  %v15227_v48 = vld [vmem:[%s19018_s1 + $0x30] sm:$0xff] }
 0x102   :  { %3581 = vmatpush1.bf16.msra.mxu0 %v11319_v55  ;;  %v10948_v50 = vcombine.high %v15222_v47, %v15227_v48  ;;  %v10947_v51 = vcombine.low %v15222_v47, %v15227_v48  ;;  %v13641_v55 = vld [vmem:[%s19019_s0 + $0x48] ss:$28 sps:$4 sm:$0xff]   ;;  %v180_v47 = vld [vmem:[%s19018_s1 + $0x98] sm:$0xff] }
 0x103   :  { %4232 = vmatmul.mubr.bf16.gmra.mrb[60].mxu1 %v13611_v39  ;;  %3743 = vmatprep.subr.bf16.mxu0 %v14307_v9  ;;  %v13618_v9 = vld [vmem:[%s19019_s0 + $0x23c] ss:$28 sps:$4 sm:$0xff]  }
 0x104   :  { %4241 = vmatprep.mubr.bf16.mxu1 %v13612_v44  ;;  %4351 = vmatpush1.bf16.msra.mxu1 %v11313_v58  ;;  %v13632_v39 = vld [vmem:[%s19019_s0 + $0x318] ss:$28 sps:$4 sm:$0xff]   ;;  %v13642_v58 = vld [vmem:[%s19019_s0 + $0x84] ss:$28 sps:$4 sm:$0xff]  }
 0x105   :  { %4352 = vmatprep.subr.bf16.mxu1 %v11322_v61  ;;  %3470 = vmatmul.mubr.bf16.gmra.mrb[32].mxu0 %v13614_v62  ;;  %v13638_v44 = vld [vmem:[%s19019_s0 + $0x14] ss:$28 sps:$4 sm:$0xff]   ;;  %v15243_v61 = vld [vmem:[%s19018_s1 + $0x18] sm:$0xff] }
 0x106   :  { %v15147_v6 = vpop.f32.mrb[20].mxu1  ;;  %3479 = vmatprep.mubr.bf16.mxu0 %v13615_v0  ;;  %v184_v48 = vld [vmem:[%s19018_s1 + $0xb8] sm:$0xff] }
 0x107   :  { %v15149_v7 = vpop.f32.mrb[21].mxu1 }
 0x108   :  { %v15151_v8 = vpop.f32.mrb[22].mxu1  ;;  %4353 = vmatpush1.bf16.msra.mxu1 %v11321_v2  ;;  %v13644_v2 = vld [vmem:[%s19019_s0 + $0x80] ss:$28 sps:$4 sm:$0xff]  }
 0x109   :  { %v15153_v11 = vpop.f32.mrb[23].mxu1  ;;  %4515 = vmatprep.subr.bf16.mxu1 %v11330_v5  ;;  %v13650_v5 = vld [vmem:[%s19019_s0 + $0xf0] ss:$28 sps:$4 sm:$0xff]  }
 0x10b   :  { %4242 = vmatmul.mubr.bf16.gmra.mrb[64].mxu1 %v13614_v62  ;;  %v15248_v62 = vld [vmem:[%s19018_s1 + $0x38] sm:$0xff] }
 0x10c   :  { %4251 = vmatprep.mubr.bf16.mxu1 %v13615_v0  ;;  %v10950_v0 = vcombine.high %v15243_v61, %v15248_v62 }
 0x10d   :  { %3480 = vmatmul.mubr.bf16.gmra.mrb[36].mxu0 %v13617_v13 }
 0x10e   :  { %v15161_v14 = vpop.f32.mrb[24].mxu1  ;;  %3489 = vmatprep.mubr.bf16.mxu0 %v13618_v9 }
 0x10f   :  { %v15163_v15 = vpop.f32.mrb[25].mxu1 }
 0x110   :  { %v15165_v17 = vpop.f32.mrb[26].mxu1 }
 0x111   :  { %v15167_v20 = vpop.f32.mrb[27].mxu1 }
 0x112   :  { %19106 = vst [vmem:[#allocation2_spill] sm:$0xff] %v15167_v20 }
 0x113   :  { %4252 = vmatmul.mubr.bf16.gmra.mrb[68].mxu1 %v13617_v13  ;;  %v13651_v13 = vld [vmem:[%s19019_s0 + $0x12c] ss:$28 sps:$4 sm:$0xff]  }
 0x114   :  { %4261 = vmatprep.mubr.bf16.mxu1 %v13618_v9  ;;  %v13653_v9 = vld [vmem:[%s19019_s0 + $0x128] ss:$28 sps:$4 sm:$0xff]  }
 0x115   :  { %3490 = vmatmul.mubr.bf16.gmra.mrb[40].mxu0 %v13620_v22 }
 0x116   :  { %v15175_v24 = vpop.f32.mrb[28].mxu1  ;;  %3499 = vmatprep.mubr.bf16.mxu0 %v13621_v23 }
 0x117   :  { %19107 = vst [vmem:[#allocation3_spill] sm:$0xff] %v15175_v24  ;;  %v15177_v26 = vpop.f32.mrb[29].mxu1 }
 0x118   :  { %19108 = vst [vmem:[#allocation4_spill] sm:$0xff] %v15177_v26  ;;  %v15179_v27 = vpop.f32.mrb[30].mxu1  ;;  %v328_v26 = vld [vmem:[%s19018_s1 + $0x538] sm:$0xff] }
 0x119   :  { %19109 = vst [vmem:[#allocation5_spill] sm:$0xff] %v15179_v27  ;;  %v15181_v28 = vpop.f32.mrb[31].mxu1  ;;  %v324_v27 = vld [vmem:[%s19018_s1 + $0x518] sm:$0xff] }
 0x11a   :  { %19110 = vst [vmem:[#allocation6_spill] sm:$0xff] %v15181_v28  ;;  %v15880_v28 = vld [vmem:[%s19019_s0 + $0x1f8] ss:$28 sps:$4 sm:$0xff]  }
 0x11b   :  { %4262 = vmatmul.mubr.bf16.gmra.mrb[72].mxu1 %v13620_v22  ;;  %v13654_v22 = vld [vmem:[%s19019_s0 + $0x164] ss:$28 sps:$4 sm:$0xff]   ;;  %19111 = vst [vmem:[#allocation7_spill] sm:$0xff] %v15880_v28 }
 0x11c   :  { %4271 = vmatprep.mubr.bf16.mxu1 %v13621_v23  ;;  %v13656_v23 = vld [vmem:[%s19019_s0 + $0x160] ss:$28 sps:$4 sm:$0xff]  }
 0x11d   :  { %3500 = vmatmul.mubr.bf16.gmra.mrb[44].mxu0 %v13623_v30 }
 0x11e   :  { %3509 = vmatprep.mubr.bf16.mxu0 %v13624_v34 }
 0x123   :  { %4272 = vmatmul.mubr.bf16.gmra.mrb[76].mxu1 %v13623_v30  ;;  %v13657_v30 = vld [vmem:[%s19019_s0 + $0x19c] ss:$28 sps:$4 sm:$0xff]  }
 0x124   :  { %4281 = vmatprep.mubr.bf16.mxu1 %v13624_v34  ;;  %v13659_v34 = vld [vmem:[%s19019_s0 + $0x198] ss:$28 sps:$4 sm:$0xff]  }
 0x125   :  { %3510 = vmatmul.mubr.bf16.gmra.mrb[48].mxu0 %v13626_v36 }
 0x126   :  { %3519 = vmatprep.mubr.bf16.mxu0 %v13627_v52 }
 0x12b   :  { %4282 = vmatmul.mubr.bf16.gmra.mrb[80].mxu1 %v13626_v36  ;;  %v13660_v36 = vld [vmem:[%s19019_s0 + $0x1d4] ss:$28 sps:$4 sm:$0xff]  }
 0x12c   :  { %4291 = vmatprep.mubr.bf16.mxu1 %v13627_v52  ;;  %v13662_v52 = vld [vmem:[%s19019_s0 + $0x1d0] ss:$28 sps:$4 sm:$0xff]  }
 0x12d   :  { %3520 = vmatmul.mubr.bf16.gmra.mrb[52].mxu0 %v13629_v53 }
 0x12e   :  { %3529 = vmatprep.mubr.bf16.mxu0 %v13630_v56 }
 0x133   :  { %4292 = vmatmul.mubr.bf16.gmra.mrb[84].mxu1 %v13629_v53  ;;  %v13663_v53 = vld [vmem:[%s19019_s0 + $0x20c] ss:$28 sps:$4 sm:$0xff]  }
 0x134   :  { %4301 = vmatprep.mubr.bf16.mxu1 %v13630_v56  ;;  %v13665_v56 = vld [vmem:[%s19019_s0 + $0x208] ss:$28 sps:$4 sm:$0xff]  }
 0x135   :  { %3530 = vmatmul.mubr.bf16.gmra.mrb[56].mxu0 %v13632_v39 }
 0x136   :  { %3539 = vmatprep.mubr.bf16.mxu0 %v13633_v41 }
 0x13b   :  { %4302 = vmatmul.mubr.bf16.gmra.mrb[88].mxu1 %v13632_v39  ;;  %v13666_v39 = vld [vmem:[%s19019_s0 + $0x244] ss:$28 sps:$4 sm:$0xff]  }
 0x13c   :  { %4311 = vmatprep.mubr.bf16.mxu1 %v13633_v41  ;;  %v13668_v41 = vld [vmem:[%s19019_s0 + $0x240] ss:$28 sps:$4 sm:$0xff]  }
 0x13d   :  { %3540 = vmatmul.mubr.bf16.gmra.mrb[60].mxu0 %v13635_v43 }
 0x13e   :  { %3582 = vmatprep.mubr.bf16.mxu0 %v13638_v44 }
 0x143   :  { %4312 = vmatmul.mubr.bf16.gmra.mrb[92].mxu1 %v13635_v43  ;;  %v13669_v43 = vld [vmem:[%s19019_s0 + $0x27c] ss:$28 sps:$4 sm:$0xff]  }
 0x144   :  { %4354 = vmatprep.mubr.bf16.mxu1 %v13638_v44  ;;  %v13671_v44 = vld [vmem:[%s19019_s0 + $0x278] ss:$28 sps:$4 sm:$0xff]  }
 0x145   :  { %3583 = vmatmul.mubr.bf16.vlgmr.msra.gmra.mrb[0].mxu0 %v13636_v45 }
 0x146   :  { %3592 = vmatprep.mubr.bf16.mxu0 %v13639_v46  ;;  %3744 = vmatpush1.bf16.msra.mxu0 %v14309_v10  ;;  %v10949_v10 = vcombine.low %v15243_v61, %v15248_v62  ;;  %v188_v62 = vld [vmem:[%s19018_s1 + $0xd8] sm:$0xff] }
 0x147   :  { %4708 = vmatprep.subr.bf16.mxu0 %v10948_v50  ;;  %v13675_v50 = vld [vmem:[%s19019_s0 + $0x2ec] ss:$28 sps:$4 sm:$0xff]  }
 0x14b   :  { %4355 = vmatmul.mubr.bf16.vlgmr.msra.gmra.mrb[32].mxu1 %v13636_v45  ;;  %v13672_v45 = vld [vmem:[%s19019_s0 + $0x2b4] ss:$28 sps:$4 sm:$0xff]  }
 0x14c   :  { %4516 = vmatpush1.bf16.msra.mxu1 %v11329_v35  ;;  %4364 = vmatprep.mubr.bf16.mxu1 %v13639_v46  ;;  %v13648_v35 = vld [vmem:[%s19019_s0 + $0xf4] ss:$28 sps:$4 sm:$0xff]  }
 0x14d   :  { %3593 = vmatmul.mubr.bf16.gmra.mrb[4].mxu0 %v13641_v55  ;;  %5480 = vmatprep.subr.bf16.mxu1 %v10950_v0  ;;  %v13674_v46 = vld [vmem:[%s19019_s0 + $0x2b0] ss:$28 sps:$4 sm:$0xff]   ;;  %v13680_v0 = vld [vmem:[%s19019_s0 + $0x320] ss:$28 sps:$4 sm:$0xff]  }
 0x14e   :  { %3602 = vmatprep.mubr.bf16.mxu0 %v13642_v58 }
 0x153   :  { %4365 = vmatmul.mubr.bf16.gmra.mrb[36].mxu1 %v13641_v55  ;;  %v13677_v55 = vld [vmem:[%s19019_s0 + $0x2e8] ss:$28 sps:$4 sm:$0xff]  }
 0x154   :  { %4374 = vmatprep.mubr.bf16.mxu1 %v13642_v58  ;;  %v13678_v58 = vld [vmem:[%s19019_s0 + $0x324] ss:$28 sps:$4 sm:$0xff]  }
 0x155   :  { %3603 = vmatmul.mubr.bf16.gmra.mrb[8].mxu0 %v13644_v2 }
 0x156   :  { %3612 = vmatprep.mubr.bf16.mxu0 %v13645_v31 }
 0x15b   :  { %4375 = vmatmul.mubr.bf16.gmra.mrb[40].mxu1 %v13644_v2  ;;  %v13681_v2 = vld [vmem:[%s19019_s0 + $0x35c] ss:$28 sps:$4 sm:$0xff]  }
 0x15c   :  { %4384 = vmatprep.mubr.bf16.mxu1 %v13645_v31  ;;  %v13683_v31 = vld [vmem:[%s19019_s0 + $0x358] ss:$28 sps:$4 sm:$0xff]  }
 0x15d   :  { %3613 = vmatmul.mubr.bf16.gmra.mrb[12].mxu0 %v13647_v32 }
 0x15e   :  { %3622 = vmatprep.mubr.bf16.mxu0 %v13648_v35 }
 0x163   :  { %4385 = vmatmul.mubr.bf16.gmra.mrb[44].mxu1 %v13647_v32  ;;  %v171_v32 = vld [vmem:[%s19018_s1 + $0x50] sm:$0xff] }
 0x164   :  { %4394 = vmatprep.mubr.bf16.mxu1 %v13648_v35  ;;  %v175_v35 = vld [vmem:[%s19018_s1 + $0x70] sm:$0xff] }
 0x165   :  { %3623 = vmatmul.mubr.bf16.gmra.mrb[16].mxu0 %v13650_v5 }
 0x166   :  { %3632 = vmatprep.mubr.bf16.mxu0 %v13651_v13 }
 0x16b   :  { %4395 = vmatmul.mubr.bf16.gmra.mrb[48].mxu1 %v13650_v5  ;;  %v13684_v5 = vld [vmem:[%s19019_s0 + $0x18] ss:$28 sps:$4 sm:$0xff]  }
 0x16c   :  { %4404 = vmatprep.mubr.bf16.mxu1 %v13651_v13  ;;  %v10956_v13 = vcombine.high %v171_v32, %v175_v35 }
 0x16d   :  { %3633 = vmatmul.mubr.bf16.gmra.mrb[20].mxu0 %v13653_v9 }
 0x16e   :  { %3642 = vmatprep.mubr.bf16.mxu0 %v13654_v22 }
 0x173   :  { %4405 = vmatmul.mubr.bf16.gmra.mrb[52].mxu1 %v13653_v9  ;;  %v179_v9 = vld [vmem:[%s19018_s1 + $0x90] sm:$0xff] }
 0x174   :  { %4414 = vmatprep.mubr.bf16.mxu1 %v13654_v22  ;;  %v183_v22 = vld [vmem:[%s19018_s1 + $0xb0] sm:$0xff] }
 0x175   :  { %3643 = vmatmul.mubr.bf16.gmra.mrb[24].mxu0 %v13656_v23 }
 0x176   :  { %3652 = vmatprep.mubr.bf16.mxu0 %v13657_v30 }
 0x17b   :  { %4415 = vmatmul.mubr.bf16.gmra.mrb[56].mxu1 %v13656_v23  ;;  %v172_v23 = vld [vmem:[%s19018_s1 + $0x58] sm:$0xff] }
 0x17c   :  { %4424 = vmatprep.mubr.bf16.mxu1 %v13657_v30  ;;  %v176_v30 = vld [vmem:[%s19018_s1 + $0x78] sm:$0xff] }
 0x17d   :  { %3653 = vmatmul.mubr.bf16.gmra.mrb[28].mxu0 %v13659_v34 }
 0x17e   :  { %3662 = vmatprep.mubr.bf16.mxu0 %v13660_v36 }
 0x183   :  { %4425 = vmatmul.mubr.bf16.gmra.mrb[60].mxu1 %v13659_v34  ;;  %v10955_v34 = vcombine.low %v171_v32, %v175_v35  ;;  %v10965_v32 = vcombine.low %v180_v47, %v184_v48  ;;  %v13686_v35 = vld [vmem:[%s19019_s0 + $0x88] ss:$28 sps:$4 sm:$0xff]  }
 0x184   :  { %4434 = vmatprep.mubr.bf16.mxu1 %v13660_v36  ;;  %v10964_v36 = vcombine.high %v179_v9, %v183_v22 }
 0x185   :  { %3663 = vmatmul.mubr.bf16.gmra.mrb[32].mxu0 %v13662_v52 }
 0x186   :  { %3672 = vmatprep.mubr.bf16.mxu0 %v13663_v53 }
 0x18b   :  { %4435 = vmatmul.mubr.bf16.gmra.mrb[64].mxu1 %v13662_v52  ;;  %v187_v52 = vld [vmem:[%s19018_s1 + $0xd0] sm:$0xff] }
 0x18c   :  { %4444 = vmatprep.mubr.bf16.mxu1 %v13663_v53  ;;  %v191_v53 = vld [vmem:[%s19018_s1 + $0xf0] sm:$0xff] }
 0x18d   :  { %3673 = vmatmul.mubr.bf16.gmra.mrb[36].mxu0 %v13665_v56  ;;  %v10971_v61 = vcombine.low %v187_v52, %v191_v53 }
 0x18e   :  { %3682 = vmatprep.mubr.bf16.mxu0 %v13666_v39 }
 0x193   :  { %4445 = vmatmul.mubr.bf16.gmra.mrb[68].mxu1 %v13665_v56  ;;  %v10958_v56 = vcombine.high %v172_v23, %v176_v30 }
 0x194   :  { %4454 = vmatprep.mubr.bf16.mxu1 %v13666_v39  ;;  %v13685_v39 = vld [vmem:[%s19019_s0 + $0x50] ss:$28 sps:$4 sm:$0xff]  }
 0x195   :  { %3683 = vmatmul.mubr.bf16.gmra.mrb[40].mxu0 %v13668_v41 }
 0x196   :  { %3692 = vmatprep.mubr.bf16.mxu0 %v13669_v43 }
 0x19b   :  { %4455 = vmatmul.mubr.bf16.gmra.mrb[72].mxu1 %v13668_v41  ;;  %v15385_v41 = vld [vmem:[%s19018_s1 + $0x418] sm:$0xff] }
 0x19c   :  { %4464 = vmatprep.mubr.bf16.mxu1 %v13669_v43  ;;  %v15390_v43 = vld [vmem:[%s19018_s1 + $0x438] sm:$0xff] }
 0x19d   :  { %3693 = vmatmul.mubr.bf16.gmra.mrb[44].mxu0 %v13671_v44 }
 0x19e   :  { %3702 = vmatprep.mubr.bf16.mxu0 %v13672_v45 }
 0x1a3   :  { %4465 = vmatmul.mubr.bf16.gmra.mrb[76].mxu1 %v13671_v44  ;;  %v10972_v44 = vcombine.high %v187_v52, %v191_v53 }
 0x1a4   :  { %4474 = vmatprep.mubr.bf16.mxu1 %v13672_v45  ;;  %v10957_v45 = vcombine.low %v172_v23, %v176_v30  ;;  %v211_v30 = vld [vmem:[%s19018_s1 + $0x190] sm:$0xff] }
 0x1a5   :  { %3703 = vmatmul.mubr.bf16.gmra.mrb[48].mxu0 %v13674_v46 }
 0x1a6   :  { %3712 = vmatprep.mubr.bf16.mxu0 %v13675_v50 }
 0x1ab   :  { %4475 = vmatmul.mubr.bf16.gmra.mrb[80].mxu1 %v13674_v46  ;;  %v11077_v46 = vcombine.low %v15385_v41, %v15390_v43 }
 0x1ac   :  { %4484 = vmatprep.mubr.bf16.mxu1 %v13675_v50  ;;  %v195_v50 = vld [vmem:[%s19018_s1 + $0x110] sm:$0xff] }
 0x1ad   :  { %3713 = vmatmul.mubr.bf16.gmra.mrb[52].mxu0 %v13677_v55 }
 0x1ae   :  { %3722 = vmatprep.mubr.bf16.mxu0 %v13678_v58 }
 0x1b3   :  { %4485 = vmatmul.mubr.bf16.gmra.mrb[84].mxu1 %v13677_v55  ;;  %v199_v55 = vld [vmem:[%s19018_s1 + $0x130] sm:$0xff] }
 0x1b4   :  { %4494 = vmatprep.mubr.bf16.mxu1 %v13678_v58  ;;  %v10966_v58 = vcombine.high %v180_v47, %v184_v48  ;;  %v219_v48 = vld [vmem:[%s19018_s1 + $0x1d0] sm:$0xff] }
 0x1b5   :  { %3723 = vmatmul.mubr.bf16.gmra.mrb[56].mxu0 %v13680_v0 }
 0x1b6   :  { %3732 = vmatprep.mubr.bf16.mxu0 %v13681_v2 }
 0x1bb   :  { %4495 = vmatmul.mubr.bf16.gmra.mrb[88].mxu1 %v13680_v0  ;;  %v10980_v0 = vcombine.high %v195_v50, %v199_v55 }
 0x1bc   :  { %4504 = vmatprep.mubr.bf16.mxu1 %v13681_v2  ;;  %v203_v2 = vld [vmem:[%s19018_s1 + $0x150] sm:$0xff] }
 0x1bd   :  { %3733 = vmatmul.mubr.bf16.gmra.mrb[60].mxu0 %v13683_v31 }
 0x1be   :  { %3775 = vmatprep.mubr.bf16.mxu0 %v19028_v3 }
 0x1c3   :  { %4505 = vmatmul.mubr.bf16.gmra.mrb[92].mxu1 %v13683_v31  ;;  %v207_v31 = vld [vmem:[%s19018_s1 + $0x170] sm:$0xff] }
 0x1c4   :  { %4547 = vmatprep.mubr.bf16.mxu1 %v19028_v3  ;;  %v10988_v23 = vcombine.high %v203_v2, %v207_v31  ;;  %v10987_v53 = vcombine.low %v203_v2, %v207_v31 }
 0x1c5   :  { %11335 = vmatmul.mubr.msk.bf16.vlgmr.msra.gmra.mrb[0].mxu0 %vm3115_vm0, %v13684_v5 }
 0x1c6   :  { %4709 = vmatpush1.bf16.msra.mxu0 %v10947_v51  ;;  %3785 = vmatprep.mubr.bf16.mxu0 %v19028_v3  ;;  %v10963_v51 = vcombine.low %v179_v9, %v183_v22  ;;  %v196_v9 = vld [vmem:[%s19018_s1 + $0x118] sm:$0xff] }
 0x1c7   :  { %4710 = vmatprep.subr.bf16.mxu0 %v10956_v13  ;;  %v10979_v13 = vcombine.low %v195_v50, %v199_v55  ;;  %v200_v22 = vld [vmem:[%s19018_s1 + $0x138] sm:$0xff] }
 0x1c8   :  { %v10982_v52 = vcombine.high %v196_v9, %v200_v22 }
 0x1ca   :  { %4711 = vmatpush1.bf16.msra.mxu0 %v10955_v34  ;;  %v215_v34 = vld [vmem:[%s19018_s1 + $0x1b0] sm:$0xff] }
 0x1cb   :  { %11351 = vmatmul.mubr.msk.bf16.vlgmr.msra.gmra.mrb[32].mxu1 %vm3115_vm0, %v13684_v5  ;;  %4712 = vmatprep.subr.bf16.mxu0 %v10964_v36  ;;  %v10996_v47 = vcombine.high %v211_v30, %v215_v34  ;;  %v10995_v55 = vcombine.low %v211_v30, %v215_v34  ;;  %v13688_v30 = vld [vmem:[%s19019_s0 + $0xf8] ss:$28 sps:$4 sm:$0xff]  }
 0x1cc   :  { %5481 = vmatpush1.bf16.msra.mxu1 %v10949_v10  ;;  %4557 = vmatprep.mubr.bf16.mxu1 %v19028_v3  ;;  %v192_v10 = vld [vmem:[%s19018_s1 + $0xf8] sm:$0xff] }
 0x1cd   :  { %5482 = vmatprep.subr.bf16.mxu1 %v10958_v56  ;;  %11336 = vmatmul.mubr.msk.bf16.gmra.mrb[4].mxu0 %vm3115_vm0, %v13685_v39  ;;  %v10974_v5 = vcombine.high %v188_v62, %v192_v10  ;;  %v10973_v36 = vcombine.low %v188_v62, %v192_v10  ;;  %v204_v56 = vld [vmem:[%s19018_s1 + $0x158] sm:$0xff]  ;;  %v227_v10 = vld [vmem:[%s19018_s1 + $0x210] sm:$0xff] }
 0x1ce   :  { %4713 = vmatpush1.bf16.msra.mxu0 %v10963_v51  ;;  %3795 = vmatprep.mubr.bf16.mxu0 %v19028_v3  ;;  %v223_v51 = vld [vmem:[%s19018_s1 + $0x1f0] sm:$0xff] }
 0x1cf   :  { %4714 = vmatprep.subr.bf16.mxu0 %v10972_v44  ;;  %v10981_v44 = vcombine.low %v196_v9, %v200_v22  ;;  %v11004_v62 = vcombine.high %v219_v48, %v223_v51  ;;  %v235_v9 = vld [vmem:[%s19018_s1 + $0x250] sm:$0xff] }
 0x1d0   :  { %5483 = vmatpush1.bf16.msra.mxu1 %v10957_v45  ;;  %v13687_v45 = vld [vmem:[%s19019_s0 + $0xc0] ss:$28 sps:$4 sm:$0xff]   ;;  %v239_v22 = vld [vmem:[%s19018_s1 + $0x270] sm:$0xff] }
 0x1d1   :  { %5484 = vmatprep.subr.bf16.mxu1 %v10966_v58  ;;  %v212_v58 = vld [vmem:[%s19018_s1 + $0x198] sm:$0xff] }
 0x1d2   :  { %4715 = vmatpush1.bf16.msra.mxu0 %v10971_v61  ;;  %v216_v61 = vld [vmem:[%s19018_s1 + $0x1b8] sm:$0xff] }
 0x1d3   :  { %11352 = vmatmul.mubr.msk.bf16.gmra.mrb[36].mxu1 %vm3115_vm0, %v13685_v39  ;;  %4716 = vmatprep.subr.bf16.mxu0 %v10980_v0  ;;  %v208_v39 = vld [vmem:[%s19018_s1 + $0x178] sm:$0xff]  ;;  %v231_v0 = vld [vmem:[%s19018_s1 + $0x230] sm:$0xff]  ;;  %v10998_v31 = vcombine.high %v212_v58, %v216_v61 }
 0x1d4   :  { %4567 = vmatprep.mubr.bf16.mxu1 %v19028_v3  ;;  %5485 = vmatpush1.bf16.msra.mxu1 %v10965_v32  ;;  %v10990_v50 = vcombine.high %v204_v56, %v208_v39  ;;  %v10989_v2 = vcombine.low %v204_v56, %v208_v39  ;;  %v11003_v32 = vcombine.low %v219_v48, %v223_v51  ;;  %v243_v39 = vld [vmem:[%s19018_s1 + $0x290] sm:$0xff] }
 0x1d5   :  { %11337 = vmatmul.mubr.msk.bf16.gmra.mrb[8].mxu0 %vm3115_vm0, %v13686_v35  ;;  %5486 = vmatprep.subr.bf16.mxu1 %v10974_v5  ;;  %v224_v5 = vld [vmem:[%s19018_s1 + $0x1f8] sm:$0xff]  ;;  %v11020_v56 = vcombine.high %v235_v9, %v239_v22 }
 0x1d6   :  { %4717 = vmatpush1.bf16.msra.mxu0 %v10979_v13  ;;  %3805 = vmatprep.mubr.bf16.mxu0 %v19028_v3  ;;  %v11012_v13 = vcombine.high %v227_v10, %v231_v0 }
 0x1d7   :  { %4718 = vmatprep.subr.bf16.mxu0 %v10988_v23  ;;  %v10997_v23 = vcombine.low %v212_v58, %v216_v61  ;;  %v251_v58 = vld [vmem:[%s19018_s1 + $0x2d0] sm:$0xff] }
 0x1d8   :  { %5487 = vmatpush1.bf16.msra.mxu1 %v10973_v36  ;;  %v11011_v36 = vcombine.low %v227_v10, %v231_v0  ;;  %v255_v61 = vld [vmem:[%s19018_s1 + $0x2f0] sm:$0xff] }
 0x1d9   :  { %5488 = vmatprep.subr.bf16.mxu1 %v10982_v52  ;;  %v228_v52 = vld [vmem:[%s19018_s1 + $0x218] sm:$0xff]  ;;  %v13689_v10 = vld [vmem:[%s19019_s0 + $0x130] ss:$28 sps:$4 sm:$0xff]  }
 0x1da   :  { %4719 = vmatpush1.bf16.msra.mxu0 %v10987_v53  ;;  %v232_v53 = vld [vmem:[%s19018_s1 + $0x238] sm:$0xff] }
 0x1db   :  { %11353 = vmatmul.mubr.msk.bf16.gmra.mrb[40].mxu1 %vm3115_vm0, %v13686_v35  ;;  %4720 = vmatprep.subr.bf16.mxu0 %v10996_v47  ;;  %v220_v35 = vld [vmem:[%s19018_s1 + $0x1d8] sm:$0xff]  ;;  %v247_v47 = vld [vmem:[%s19018_s1 + $0x2b0] sm:$0xff]  ;;  %v11014_v51 = vcombine.high %v228_v52, %v232_v53 }
 0x1dc   :  { %4577 = vmatprep.mubr.bf16.mxu1 %v19028_v3  ;;  %5489 = vmatpush1.bf16.msra.mxu1 %v10981_v44  ;;  %v11006_v34 = vcombine.high %v220_v35, %v224_v5  ;;  %v11005_v48 = vcombine.low %v220_v35, %v224_v5  ;;  %v11019_v44 = vcombine.low %v235_v9, %v239_v22  ;;  %v259_v5 = vld [vmem:[%s19018_s1 + $0x310] sm:$0xff] }
 0x1dd   :  { %11338 = vmatmul.mubr.msk.bf16.gmra.mrb[12].mxu0 %vm3115_vm0, %v13687_v45  ;;  %5490 = vmatprep.subr.bf16.mxu1 %v10990_v50  ;;  %v240_v50 = vld [vmem:[%s19018_s1 + $0x278] sm:$0xff]  ;;  %v11036_v35 = vcombine.high %v251_v58, %v255_v61 }
 0x1de   :  { %4721 = vmatpush1.bf16.msra.mxu0 %v10995_v55  ;;  %3815 = vmatprep.mubr.bf16.mxu0 %v19028_v3  ;;  %v11028_v55 = vcombine.high %v243_v39, %v247_v47 }
 0x1df   :  { %4722 = vmatprep.subr.bf16.mxu0 %v11004_v62  ;;  %v11013_v62 = vcombine.low %v228_v52, %v232_v53  ;;  %v267_v52 = vld [vmem:[%s19018_s1 + $0x350] sm:$0xff] }
 0x1e0   :  { %5491 = vmatpush1.bf16.msra.mxu1 %v10989_v2  ;;  %v11027_v2 = vcombine.low %v243_v39, %v247_v47  ;;  %v271_v53 = vld [vmem:[%s19018_s1 + $0x370] sm:$0xff]  ;;  %v13690_v39 = vld [vmem:[%s19019_s0 + $0x168] ss:$28 sps:$4 sm:$0xff]  }
 0x1e1   :  { %5492 = vmatprep.subr.bf16.mxu1 %v10998_v31  ;;  %v244_v31 = vld [vmem:[%s19018_s1 + $0x298] sm:$0xff] }
 0x1e2   :  { %4723 = vmatpush1.bf16.msra.mxu0 %v11003_v32  ;;  %v248_v32 = vld [vmem:[%s19018_s1 + $0x2b8] sm:$0xff] }
 0x1e3   :  { %11354 = vmatmul.mubr.msk.bf16.gmra.mrb[44].mxu1 %vm3115_vm0, %v13687_v45  ;;  %4724 = vmatprep.subr.bf16.mxu0 %v11012_v13  ;;  %v236_v45 = vld [vmem:[%s19018_s1 + $0x258] sm:$0xff]  ;;  %v263_v13 = vld [vmem:[%s19018_s1 + $0x330] sm:$0xff]  ;;  %v11030_v22 = vcombine.high %v244_v31, %v248_v32 }
 0x1e4   :  { %4587 = vmatprep.mubr.bf16.mxu1 %v19028_v3  ;;  %5493 = vmatpush1.bf16.msra.mxu1 %v10997_v23  ;;  %v11022_v0 = vcombine.high %v236_v45, %v240_v50  ;;  %v11021_v9 = vcombine.low %v236_v45, %v240_v50  ;;  %v11035_v23 = vcombine.low %v251_v58, %v255_v61  ;;  %v275_v50 = vld [vmem:[%s19018_s1 + $0x390] sm:$0xff] }
 0x1e5   :  { %11339 = vmatmul.mubr.msk.bf16.gmra.mrb[16].mxu0 %vm3115_vm0, %v13688_v30  ;;  %5494 = vmatprep.subr.bf16.mxu1 %v11006_v34  ;;  %v256_v34 = vld [vmem:[%s19018_s1 + $0x2f8] sm:$0xff]  ;;  %v11052_v45 = vcombine.high %v267_v52, %v271_v53 }
 0x1e6   :  { %4725 = vmatpush1.bf16.msra.mxu0 %v11011_v36  ;;  %3825 = vmatprep.mubr.bf16.mxu0 %v19028_v3  ;;  %v11044_v36 = vcombine.high %v259_v5, %v263_v13 }
 0x1e7   :  { %4726 = vmatprep.subr.bf16.mxu0 %v11020_v56  ;;  %v11029_v56 = vcombine.low %v244_v31, %v248_v32  ;;  %v283_v31 = vld [vmem:[%s19018_s1 + $0x3d0] sm:$0xff] }
 0x1e8   :  { %5495 = vmatpush1.bf16.msra.mxu1 %v11005_v48  ;;  %v11043_v48 = vcombine.low %v259_v5, %v263_v13  ;;  %v287_v32 = vld [vmem:[%s19018_s1 + $0x3f0] sm:$0xff]  ;;  %v13691_v5 = vld [vmem:[%s19019_s0 + $0x1a0] ss:$28 sps:$4 sm:$0xff]  }
 0x1e9   :  { %5496 = vmatprep.subr.bf16.mxu1 %v11014_v51  ;;  %v260_v51 = vld [vmem:[%s19018_s1 + $0x318] sm:$0xff] }
 0x1ea   :  { %4727 = vmatpush1.bf16.msra.mxu0 %v11019_v44  ;;  %v264_v44 = vld [vmem:[%s19018_s1 + $0x338] sm:$0xff] }
 0x1eb   :  { %11355 = vmatmul.mubr.msk.bf16.gmra.mrb[48].mxu1 %vm3115_vm0, %v13688_v30  ;;  %4728 = vmatprep.subr.bf16.mxu0 %v11028_v55  ;;  %v252_v30 = vld [vmem:[%s19018_s1 + $0x2d8] sm:$0xff]  ;;  %v279_v55 = vld [vmem:[%s19018_s1 + $0x3b0] sm:$0xff]  ;;  %v11046_v61 = vcombine.high %v260_v51, %v264_v44 }
 0x1ec   :  { %4597 = vmatprep.mubr.bf16.mxu1 %v19028_v3  ;;  %5497 = vmatpush1.bf16.msra.mxu1 %v11013_v62  ;;  %v11038_v47 = vcombine.high %v252_v30, %v256_v34  ;;  %v11037_v58 = vcombine.low %v252_v30, %v256_v34  ;;  %v11051_v62 = vcombine.low %v267_v52, %v271_v53  ;;  %v295_v52 = vld [vmem:[%s19018_s1 + $0x430] sm:$0xff] }
 0x1ed   :  { %11340 = vmatmul.mubr.msk.bf16.gmra.mrb[20].mxu0 %vm3115_vm0, %v13689_v10  ;;  %5498 = vmatprep.subr.bf16.mxu1 %v11022_v0  ;;  %v272_v0 = vld [vmem:[%s19018_s1 + $0x378] sm:$0xff]  ;;  %v11068_v30 = vcombine.high %v283_v31, %v287_v32 }
 0x1ee   :  { %4729 = vmatpush1.bf16.msra.mxu0 %v11027_v2  ;;  %3835 = vmatprep.mubr.bf16.mxu0 %v19028_v3  ;;  %v11060_v2 = vcombine.high %v275_v50, %v279_v55 }
 0x1ef   :  { %4730 = vmatprep.subr.bf16.mxu0 %v11036_v35  ;;  %v11045_v35 = vcombine.low %v260_v51, %v264_v44 }
 0x1f0   :  { %5499 = vmatpush1.bf16.msra.mxu1 %v11021_v9  ;;  %v11059_v9 = vcombine.low %v275_v50, %v279_v55  ;;  %v303_v50 = vld [vmem:[%s19018_s1 + $0x470] sm:$0xff] }
 0x1f1   :  { %5500 = vmatprep.subr.bf16.mxu1 %v11030_v22  ;;  %v276_v22 = vld [vmem:[%s19018_s1 + $0x398] sm:$0xff] }
 0x1f2   :  { %4731 = vmatpush1.bf16.msra.mxu0 %v11035_v23  ;;  %v280_v23 = vld [vmem:[%s19018_s1 + $0x3b8] sm:$0xff] }
 0x1f3   :  { %11356 = vmatmul.mubr.msk.bf16.gmra.mrb[52].mxu1 %vm3115_vm0, %v13689_v10  ;;  %4732 = vmatprep.subr.bf16.mxu0 %v11044_v36  ;;  %v268_v10 = vld [vmem:[%s19018_s1 + $0x358] sm:$0xff]  ;;  %v291_v36 = vld [vmem:[%s19018_s1 + $0x410] sm:$0xff]  ;;  %v11062_v53 = vcombine.high %v276_v22, %v280_v23  ;;  %v11061_v44 = vcombine.low %v276_v22, %v280_v23 }
 0x1f4   :  { %4607 = vmatprep.mubr.bf16.mxu1 %v19028_v3  ;;  %5501 = vmatpush1.bf16.msra.mxu1 %v11029_v56  ;;  %v11054_v13 = vcombine.high %v268_v10, %v272_v0  ;;  %v11053_v34 = vcombine.low %v268_v10, %v272_v0  ;;  %v11067_v56 = vcombine.low %v283_v31, %v287_v32  ;;  %v307_v10 = vld [vmem:[%s19018_s1 + $0x490] sm:$0xff]  ;;  %v15628_v32 = vld [vmem:[%s19019_s0 + $0x3c] ss:$28 sps:$4 sm:$0xff]  }
 0x1f5   :  { %11341 = vmatmul.mubr.msk.bf16.gmra.mrb[24].mxu0 %vm3115_vm0, %v13690_v39  ;;  %5502 = vmatprep.subr.bf16.mxu1 %v11038_v47  ;;  %v284_v47 = vld [vmem:[%s19018_s1 + $0x3d8] sm:$0xff]  ;;  %v11076_v51 = vcombine.high %v291_v36, %v295_v52  ;;  %v311_v0 = vld [vmem:[%s19018_s1 + $0x4b0] sm:$0xff]  ;;  %v11078_v31 = vcombine.high %v15385_v41, %v15390_v43 }
 0x1f6   :  { %4733 = vmatpush1.bf16.msra.mxu0 %v11043_v48  ;;  %3845 = vmatprep.mubr.bf16.mxu0 %v19028_v3  ;;  %v288_v48 = vld [vmem:[%s19018_s1 + $0x3f8] sm:$0xff]  ;;  %v11091_v23 = vcombine.low %v307_v10, %v311_v0 }
 0x1f7   :  { %4734 = vmatprep.subr.bf16.mxu0 %v11052_v45  ;;  %v299_v45 = vld [vmem:[%s19018_s1 + $0x450] sm:$0xff]  ;;  %v11070_v55 = vcombine.high %v284_v47, %v288_v48  ;;  %v320_v41 = vld [vmem:[%s19018_s1 + $0x4f8] sm:$0xff] }
 0x1f8   :  { %5503 = vmatpush1.bf16.msra.mxu1 %v11037_v58  ;;  %v11075_v58 = vcombine.low %v291_v36, %v295_v52  ;;  %v14119_v22 = vld [vmem:[%s19019_s0 + $0x1d8] ss:$28 sps:$4 sm:$0xff]  }
 0x1f9   :  { %5504 = vmatprep.subr.bf16.mxu1 %v11046_v61  ;;  %v11084_v61 = vcombine.high %v299_v45, %v303_v50  ;;  %v327_v36 = vld [vmem:[%s19018_s1 + $0x530] sm:$0xff]  ;;  %v15891_v43 = vld [vmem:[%s19018_s1 + $0x818] sm:$0xff] }
 0x1fa   :  { %4735 = vmatpush1.bf16.msra.mxu0 %v11051_v62  ;;  %v11069_v62 = vcombine.low %v284_v47, %v288_v48  ;;  %v15651_v52 = vld [vmem:[%s19019_s0 + $0x38] ss:$28 sps:$4 sm:$0xff]  }
 0x1fb   :  { %11357 = vmatmul.mubr.msk.bf16.gmra.mrb[56].mxu1 %vm3115_vm0, %v13690_v39  ;;  %4736 = vmatprep.subr.bf16.mxu0 %v11060_v2  ;;  %v15594_v39 = vld [vmem:[%s19019_s0 + $0x4] ss:$28 sps:$4 sm:$0xff]   ;;  %v331_v48 = vld [vmem:[%s19018_s1 + $0x550] sm:$0xff] }
 0x1fc   :  { %4617 = vmatprep.mubr.bf16.mxu1 %v19028_v3  ;;  %5505 = vmatpush1.bf16.msra.mxu1 %v11045_v35  ;;  %v15620_v2 = vld [vmem:[%s19019_s0] ss:$28 sps:$4 sm:$0xff]   ;;  %v11083_v35 = vcombine.low %v299_v45, %v303_v50 }
 0x1fd   :  { %11342 = vmatmul.mubr.msk.bf16.gmra.mrb[28].mxu0 %vm3115_vm0, %v13691_v5  ;;  %5506 = vmatprep.subr.bf16.mxu1 %v11054_v13  ;;  %v315_v13 = vld [vmem:[%s19018_s1 + $0x4d0] sm:$0xff] }
 0x1fe   :  { %4737 = vmatpush1.bf16.msra.mxu0 %v11059_v9  ;;  %4740 = vmatprep.mubr.bf16.mxu0 %v15594_v39  ;;  %v319_v9 = vld [vmem:[%s19018_s1 + $0x4f0] sm:$0xff] }
 0x1ff   :  { %4738 = vmatprep.subr.bf16.mxu0 %v11068_v30  ;;  %v11100_v30 = vcombine.high %v315_v13, %v319_v9 }
 0x200   :  { %5507 = vmatpush1.bf16.msra.mxu1 %v11053_v34  ;;  %v323_v34 = vld [vmem:[%s19018_s1 + $0x510] sm:$0xff] }
 0x201   :  { %5508 = vmatprep.subr.bf16.mxu1 %v11062_v53  ;;  %v15657_v53 = vld [vmem:[%s19019_s0 + $0x74] ss:$28 sps:$4 sm:$0xff]   ;;  %v11108_v47 = vcombine.high %v323_v34, %v327_v36  ;;  %v11107_v45 = vcombine.low %v323_v34, %v327_v36  ;;  %v15715_v34 = vld [vmem:[%s19019_s0 + $0xe4] ss:$28 sps:$4 sm:$0xff]  }
 0x202   :  { %4739 = vmatpush1.bf16.msra.mxu0 %v11067_v56  ;;  %v11099_v56 = vcombine.low %v315_v13, %v319_v9 }
 0x203   :  { %11358 = vmatmul.mubr.msk.bf16.gmra.mrb[60].mxu1 %vm3115_vm0, %v13691_v5  ;;  %4901 = vmatprep.subr.bf16.mxu0 %v11076_v51  ;;  %v11092_v5 = vcombine.high %v307_v10, %v311_v0  ;;  %v335_v51 = vld [vmem:[%s19018_s1 + $0x570] sm:$0xff] }
 0x204   :  { %4627 = vmatprep.mubr.bf16.mxu1 %v19028_v3  ;;  %5509 = vmatpush1.bf16.msra.mxu1 %v11061_v44  ;;  %v14122_v44 = vld [vmem:[%s19019_s0 + $0x210] ss:$28 sps:$4 sm:$0xff]   ;;  %v11116_v50 = vcombine.high %v331_v48, %v335_v51  ;;  %v11115_v10 = vcombine.low %v331_v48, %v335_v51  ;;  %v14128_v51 = vld [vmem:[%s19019_s0 + $0x280] ss:$28 sps:$4 sm:$0xff]  }
 0x205   :  { %4741 = vmatmul.mubr.bf16.vlgmr.msra.gmra.mrb[64].mxu0 %v15620_v2  ;;  %5510 = vmatprep.subr.bf16.mxu1 %v11070_v55  ;;  %v339_v55 = vld [vmem:[%s19018_s1 + $0x590] sm:$0xff] }
 0x206   :  { %4750 = vmatprep.mubr.bf16.mxu0 %v15628_v32  ;;  %4902 = vmatpush1.bf16.msra.mxu0 %v11075_v58  ;;  %v343_v58 = vld [vmem:[%s19018_s1 + $0x5b0] sm:$0xff] }
 0x207   :  { %4903 = vmatprep.subr.bf16.mxu0 %v11084_v61  ;;  %v15680_v61 = vld [vmem:[%s19019_s0 + $0x70] ss:$28 sps:$4 sm:$0xff]   ;;  %v11124_v0 = vcombine.high %v339_v55, %v343_v58  ;;  %v11123_v13 = vcombine.low %v339_v55, %v343_v58  ;;  %v15738_v58 = vld [vmem:[%s19019_s0 + $0xe0] ss:$28 sps:$4 sm:$0xff]  }
 0x208   :  { %5511 = vmatpush1.bf16.msra.mxu1 %v11069_v62  ;;  %v15686_v62 = vld [vmem:[%s19019_s0 + $0xac] ss:$28 sps:$4 sm:$0xff]   ;;  %v367_v48 = vld [vmem:[%s19018_s1 + $0x670] sm:$0xff] }
 0x209   :  { %5673 = vmatprep.subr.bf16.mxu1 %v11078_v31  ;;  %v347_v31 = vld [vmem:[%s19018_s1 + $0x5d0] sm:$0xff] }
 0x20a   :  { %4904 = vmatpush1.bf16.msra.mxu0 %v11083_v35  ;;  %v351_v35 = vld [vmem:[%s19018_s1 + $0x5f0] sm:$0xff] }
 0x20b   :  { %11359 = vmatmul.mubr.msk.bf16.gmra.mrb[64].mxu1 %vm3115_vm0, %v14119_v22  ;;  %4905 = vmatprep.subr.bf16.mxu0 %v11092_v5  ;;  %v14125_v5 = vld [vmem:[%s19019_s0 + $0x248] ss:$28 sps:$4 sm:$0xff]   ;;  %v11132_v9 = vcombine.high %v347_v31, %v351_v35  ;;  %v355_v22 = vld [vmem:[%s19018_s1 + $0x610] sm:$0xff]  ;;  %v11131_v36 = vcombine.low %v347_v31, %v351_v35 }
 0x20c   :  { %4637 = vmatprep.mubr.bf16.mxu1 %v19028_v3  ;;  %v375_v55 = vld [vmem:[%s19018_s1 + $0x6b0] sm:$0xff] }
 0x20d   :  { %4751 = vmatmul.mubr.bf16.gmra.mrb[68].mxu0 %v15651_v52  ;;  %v379_v35 = vld [vmem:[%s19018_s1 + $0x6d0] sm:$0xff] }
 0x20e   :  { %4760 = vmatprep.mubr.bf16.mxu0 %v15657_v53  ;;  %4906 = vmatpush1.bf16.msra.mxu0 %v11091_v23  ;;  %v359_v23 = vld [vmem:[%s19018_s1 + $0x630] sm:$0xff] }
 0x20f   :  { %4907 = vmatprep.subr.bf16.mxu0 %v11100_v30  ;;  %v15709_v30 = vld [vmem:[%s19019_s0 + $0xa8] ss:$28 sps:$4 sm:$0xff]  }
 0x212   :  { %4908 = vmatpush1.bf16.msra.mxu0 %v11099_v56  ;;  %v11140_v56 = vcombine.high %v355_v22, %v359_v23 }
 0x213   :  { %11360 = vmatmul.mubr.msk.bf16.gmra.mrb[68].mxu1 %vm3115_vm0, %v14122_v44  ;;  %4909 = vmatprep.subr.bf16.mxu0 %v11108_v47  ;;  %v363_v47 = vld [vmem:[%s19018_s1 + $0x650] sm:$0xff]  ;;  %v11139_v44 = vcombine.low %v355_v22, %v359_v23 }
 0x214   :  { %4647 = vmatprep.mubr.bf16.mxu1 %v19028_v3  ;;  %v387_v23 = vld [vmem:[%s19018_s1 + $0x710] sm:$0xff] }
 0x215   :  { %4761 = vmatmul.mubr.bf16.gmra.mrb[72].mxu0 %v15680_v61 }
 0x216   :  { %4770 = vmatprep.mubr.bf16.mxu0 %v15686_v62  ;;  %4910 = vmatpush1.bf16.msra.mxu0 %v11107_v45  ;;  %v11148_v45 = vcombine.high %v363_v47, %v367_v48 }
 0x217   :  { %4911 = vmatprep.subr.bf16.mxu0 %v11116_v50  ;;  %v371_v50 = vld [vmem:[%s19018_s1 + $0x690] sm:$0xff] }
 0x218   :  { %v11156_v31 = vcombine.high %v371_v50, %v375_v55 }
 0x21a   :  { %4912 = vmatpush1.bf16.msra.mxu0 %v11115_v10  ;;  %v15744_v10 = vld [vmem:[%s19019_s0 + $0x11c] ss:$28 sps:$4 sm:$0xff]  }
 0x21b   :  { %11361 = vmatmul.mubr.msk.bf16.gmra.mrb[72].mxu1 %vm3115_vm0, %v14125_v5  ;;  %4913 = vmatprep.subr.bf16.mxu0 %v11124_v0  ;;  %v11147_v0 = vcombine.low %v363_v47, %v367_v48  ;;  %v383_v5 = vld [vmem:[%s19018_s1 + $0x6f0] sm:$0xff] }
 0x21c   :  { %4657 = vmatprep.mubr.bf16.mxu1 %v19028_v3  ;;  %v11164_v22 = vcombine.high %v379_v35, %v383_v5  ;;  %v15773_v47 = vld [vmem:[%s19019_s0 + $0x154] ss:$28 sps:$4 sm:$0xff]   ;;  %v11163_v48 = vcombine.low %v379_v35, %v383_v5 }
 0x21d   :  { %4771 = vmatmul.mubr.bf16.gmra.mrb[76].mxu0 %v15709_v30  ;;  %v407_v35 = vld [vmem:[%s19018_s1 + $0x7b0] sm:$0xff] }
 0x21e   :  { %4780 = vmatprep.mubr.bf16.mxu0 %v15715_v34  ;;  %4914 = vmatpush1.bf16.msra.mxu0 %v11123_v13  ;;  %v14131_v13 = vld [vmem:[%s19019_s0 + $0x2b8] ss:$28 sps:$4 sm:$0xff]   ;;  %v15796_v5 = vld [vmem:[%s19019_s0 + $0x150] ss:$28 sps:$4 sm:$0xff]  }
 0x21f   :  { %4915 = vmatprep.subr.bf16.mxu0 %v11132_v9  ;;  %v11155_v9 = vcombine.low %v371_v50, %v375_v55  ;;  %v14134_v50 = vld [vmem:[%s19019_s0 + $0x2f0] ss:$28 sps:$4 sm:$0xff]  }
 0x222   :  { %4916 = vmatpush1.bf16.msra.mxu0 %v11131_v36  ;;  %v391_v36 = vld [vmem:[%s19018_s1 + $0x730] sm:$0xff] }
 0x223   :  { %11362 = vmatmul.mubr.msk.bf16.gmra.mrb[76].mxu1 %vm3115_vm0, %v14128_v51  ;;  %4917 = vmatprep.subr.bf16.mxu0 %v11140_v56  ;;  %v15767_v56 = vld [vmem:[%s19019_s0 + $0x118] ss:$28 sps:$4 sm:$0xff]   ;;  %v11172_v51 = vcombine.high %v387_v23, %v391_v36  ;;  %v11171_v55 = vcombine.low %v387_v23, %v391_v36 }
 0x224   :  { %4667 = vmatprep.mubr.bf16.mxu1 %v19028_v3  ;;  %v411_v23 = vld [vmem:[%s19018_s1 + $0x7d0] sm:$0xff] }
 0x225   :  { %4781 = vmatmul.mubr.bf16.gmra.mrb[80].mxu0 %v15738_v58  ;;  %v415_v36 = vld [vmem:[%s19018_s1 + $0x7f0] sm:$0xff] }
 0x226   :  { %4790 = vmatprep.mubr.bf16.mxu0 %v15744_v10  ;;  %4918 = vmatpush1.bf16.msra.mxu0 %v11139_v44  ;;  %v395_v44 = vld [vmem:[%s19018_s1 + $0x750] sm:$0xff] }
 0x227   :  { %4919 = vmatprep.subr.bf16.mxu0 %v11148_v45  ;;  %v399_v45 = vld [vmem:[%s19018_s1 + $0x770] sm:$0xff] }
 0x22a   :  { %4920 = vmatpush1.bf16.msra.mxu0 %v11147_v0  ;;  %v11180_v0 = vcombine.high %v395_v44, %v399_v45 }
 0x22b   :  { %11363 = vmatmul.mubr.msk.bf16.gmra.mrb[80].mxu1 %vm3115_vm0, %v14131_v13  ;;  %4921 = vmatprep.subr.bf16.mxu0 %v11156_v31  ;;  %v403_v31 = vld [vmem:[%s19018_s1 + $0x790] sm:$0xff]  ;;  %v15802_v13 = vld [vmem:[%s19019_s0 + $0x18c] ss:$28 sps:$4 sm:$0xff]  }
 0x22c   :  { %4677 = vmatprep.mubr.bf16.mxu1 %v19028_v3 }
 0x22d   :  { %4791 = vmatmul.mubr.bf16.gmra.mrb[84].mxu0 %v15767_v56 }
 0x22e   :  { %4800 = vmatprep.mubr.bf16.mxu0 %v15773_v47  ;;  %4922 = vmatpush1.bf16.msra.mxu0 %v11155_v9  ;;  %v11179_v9 = vcombine.low %v395_v44, %v399_v45  ;;  %v11196_v44 = vcombine.high %v411_v23, %v415_v36  ;;  %v15819_v45 = vld [vmem:[%s19019_s0 + $0x188] ss:$28 sps:$4 sm:$0xff]  }
 0x22f   :  { %4923 = vmatprep.subr.bf16.mxu0 %v11164_v22  ;;  %v11188_v22 = vcombine.high %v403_v31, %v407_v35 }
 0x232   :  { %4924 = vmatpush1.bf16.msra.mxu0 %v11163_v48  ;;  %v14137_v48 = vld [vmem:[%s19019_s0 + $0x328] ss:$28 sps:$4 sm:$0xff]  }
 0x233   :  { %11364 = vmatmul.mubr.msk.bf16.gmra.mrb[84].mxu1 %vm3115_vm0, %v14134_v50  ;;  %4925 = vmatprep.subr.bf16.mxu0 %v11172_v51  ;;  %v11187_v51 = vcombine.low %v403_v31, %v407_v35  ;;  %v15825_v50 = vld [vmem:[%s19019_s0 + $0x1c4] ss:$28 sps:$4 sm:$0xff]   ;;  %v15836_v31 = vld [vmem:[%s19018_s1 + $0x810] sm:$0xff] }
 0x234   :  { %4687 = vmatprep.mubr.bf16.mxu1 %v19028_v3  ;;  %v15841_v35 = vld [vmem:[%s19018_s1 + $0x830] sm:$0xff] }
 0x235   :  { %4801 = vmatmul.mubr.bf16.gmra.mrb[88].mxu0 %v15796_v5 }
 0x236   :  { %4810 = vmatprep.mubr.bf16.mxu0 %v15802_v13  ;;  %4926 = vmatpush1.bf16.msra.mxu0 %v11171_v55  ;;  %v11195_v55 = vcombine.low %v411_v23, %v415_v36  ;;  %v11204_v23 = vcombine.high %v15836_v31, %v15841_v35  ;;  %v15860_v36 = vld [vmem:[%s19019_s0 + $0x1fc] ss:$28 sps:$4 sm:$0xff]  }
 0x237   :  { %4927 = vmatprep.subr.bf16.mxu0 %v11180_v0  ;;  %v14140_v0 = vld [vmem:[%s19019_s0 + $0x360] ss:$28 sps:$4 sm:$0xff]  }
 0x23a   :  { %4928 = vmatpush1.bf16.msra.mxu0 %v11179_v9  ;;  %v15846_v9 = vld [vmem:[%s19019_s0 + $0x1c0] ss:$28 sps:$4 sm:$0xff]  }
 0x23b   :  { %11365 = vmatmul.mubr.msk.bf16.gmra.mrb[88].mxu1 %vm3115_vm0, %v14137_v48  ;;  %4929 = vmatprep.subr.bf16.mxu0 %v11188_v22  ;;  %v304_v22 = vld [vmem:[%s19018_s1 + $0x478] sm:$0xff] }
 0x23c   :  { %4697 = vmatprep.mubr.bf16.mxu1 %v19028_v3  ;;  %v316_v3 = vld [vmem:[%s19018_s1 + $0x4d8] sm:$0xff] }
 0x23d   :  { %4811 = vmatmul.mubr.bf16.gmra.mrb[92].mxu0 %v15819_v45 }
 0x23e   :  { %4820 = vmatprep.mubr.bf16.mxu0 %v15825_v50  ;;  %4930 = vmatpush1.bf16.msra.mxu0 %v11187_v51  ;;  %v555_v51 = vlaneseq }
 0x23f   :  { %4931 = vmatprep.subr.bf16.mxu0 %v11196_v44  ;;  %v308_v44 = vld [vmem:[%s19018_s1 + $0x498] sm:$0xff] }
 0x242   :  { %4932 = vmatpush1.bf16.msra.mxu0 %v11195_v55  ;;  %v312_v55 = vld [vmem:[%s19018_s1 + $0x4b8] sm:$0xff] }
 0x243   :  { %11366 = vmatmul.mubr.msk.bf16.gmra.mrb[92].mxu1 %vm3115_vm0, %v14140_v0  ;;  %5094 = vmatprep.subr.bf16.mxu0 %v11204_v23  ;;  %v11094_v23 = vcombine.high %v308_v44, %v312_v55 }
 0x244   :  { %5512 = vmatprep.mubr.bf16.mxu1 %v15594_v39  ;;  %v300_v39 = vld [vmem:[%s19018_s1 + $0x458] sm:$0xff] }
 0x245   :  { %4821 = vmatmul.mubr.bf16.gmra.mrb[96].mxu0 %v15846_v9  ;;  %v11086_v48 = vcombine.high %v300_v39, %v304_v22  ;;  %v11085_v0 = vcombine.low %v300_v39, %v304_v22  ;;  %v11093_v22 = vcombine.low %v308_v44, %v312_v55  ;;  %v15917_v39 = vld [vmem:[%s19020_s2] sm:$0xff]  ;;  %v11101_v55 = vcombine.low %v316_v3, %v320_v41 }
 0x246   :  { %4830 = vmatprep.mubr.bf16.mxu0 %v15860_v36  ;;  %19114 = vst [vmem:[#allocation10_spill] sm:$0xff] %v15917_v39 }
 0x24b   :  { %5513 = vmatmul.mubr.bf16.vlgmr.msra.gmra.mrb[96].mxu1 %v15620_v2  ;;  %v15883_v2 = vshrl.u32 %v555_v51, 7 }
 0x24c   :  { %5674 = vmatpush1.bf16.msra.mxu1 %v11077_v46  ;;  %5522 = vmatprep.mubr.bf16.mxu1 %v15628_v32  ;;  %v15896_v46 = vld [vmem:[%s19018_s1 + $0x838] sm:$0xff]  ;;  %v15901_v32 = vld [vmem:[%s19019_s0 + $0x234] ss:$28 sps:$4 sm:$0xff]  }
 0x24d   :  { %5675 = vmatprep.subr.bf16.mxu1 %v11086_v48  ;;  %4831 = vmatmul.mubr.bf16.gmra.mrb[100].mxu0 %v15880_v28  ;;  %19112 = vst [vmem:[#allocation8_spill] sm:$0xff] %v15883_v2  ;;  %19113 = vst [vmem:[#allocation9_spill] sm:$0xff] %v15901_v32  ;;  %v11102_v48 = vcombine.high %v316_v3, %v320_v41  ;;  %v19030_v51 = vsub.s32 0, %v15883_v2  ;;  %v19033_v44 = vsub.s32 1, %v15883_v2  ;;  %v336_v3 = vld [vmem:[%s19018_s1 + $0x578] sm:$0xff] }
 0x24e   :  { %4840 = vmatprep.mubr.bf16.mxu0 %v15901_v32 }
 0x24f   :  { %v15941_v41 = vrot.slane %v15917_v39, %v19033_v44  ;;  %v340_v44 = vld [vmem:[%s19018_s1 + $0x598] sm:$0xff] }
 0x250   :  { %5676 = vmatpush1.bf16.msra.mxu1 %v11085_v0  ;;  %v11110_v0 = vcombine.high %v324_v27, %v328_v26 }
 0x251   :  { %5677 = vmatprep.subr.bf16.mxu1 %v11094_v23  ;;  %v15924_v23 = vld [vmem:[%s19019_s0 + $0x230] ss:$28 sps:$4 sm:$0xff]  }
 0x252   :  { %19115 = vst [vmem:[#allocation11_spill] sm:$0xff] %v15924_v23 }
 0x253   :  { %5523 = vmatmul.mubr.bf16.gmra.mrb[100].mxu1 %v15651_v52  ;;  %v15930_v52 = vrot.slane %v15917_v39, %v19030_v51  ;;  %v344_v39 = vld [vmem:[%s19018_s1 + $0x5b8] sm:$0xff] }
 0x254   :  { %5532 = vmatprep.mubr.bf16.mxu1 %v15657_v53  ;;  %5678 = vmatpush1.bf16.msra.mxu1 %v11093_v22  ;;  %v332_v53 = vld [vmem:[%s19018_s1 + $0x558] sm:$0xff]  ;;  %v15946_v22 = vld [vmem:[%s19019_s0 + $0x26c] ss:$28 sps:$4 sm:$0xff]   ;;  %v11126_v20 = vcombine.high %v340_v44, %v344_v39 }
 0x255   :  { %5679 = vmatprep.subr.bf16.mxu1 %v11102_v48  ;;  %4841 = vmatmul.mubr.bf16.gmra.mrb[104].mxu0 %v15924_v23  ;;  %19116 = vst [vmem:[#allocation12_spill] sm:$0xff] %v15946_v22  ;;  %v11109_v48 = vcombine.low %v324_v27, %v328_v26  ;;  %v11118_v23 = vcombine.high %v332_v53, %v336_v3 }
 0x256   :  { %4850 = vmatprep.mubr.bf16.mxu0 %v15946_v22 }
 0x258   :  { %5680 = vmatpush1.bf16.msra.mxu1 %v11101_v55  ;;  %v3664_v51 = vpop.f32.mrb[32].mxu0 }
 0x259   :  { %5681 = vmatprep.subr.bf16.mxu1 %v11110_v0  ;;  %v12027_v32 = vadd.f32 %v3664_v51, %v15930_v52  ;;  %v3666_v24 = vpop.f32.mrb[33].mxu0  ;;  %v11117_v51 = vcombine.low %v332_v53, %v336_v3 }
 0x25a   :  { %v12029_v2 = vadd.f32 %v3666_v24, %v15941_v41  ;;  %v3668_v55 = vpop.f32.mrb[34].mxu0 }
 0x25b   :  { %5533 = vmatmul.mubr.bf16.gmra.mrb[104].mxu1 %v15680_v61  ;;  %v12028_v26 = vadd.f32 %v12027_v32, %v14975_v12  ;;  %v12031_v27 = vadd.f32 %v3668_v55, %v15930_v52  ;;  %v3670_v0 = vpop.f32.mrb[35].mxu0  ;;  %v15967_v61 = vld [vmem:[%s19019_s0 + $0x268] ss:$28 sps:$4 sm:$0xff]   ;;  %v348_v12 = vld [vmem:[%s19018_s1 + $0x5d8] sm:$0xff] }
 0x25c   :  { %5542 = vmatprep.mubr.bf16.mxu1 %v15686_v62  ;;  %5682 = vmatpush1.bf16.msra.mxu1 %v11109_v48  ;;  %v12030_v22 = vadd.f32 %v12029_v2, %v14986_v16  ;;  %v12033_v28 = vadd.f32 %v3670_v0, %v15941_v41  ;;  %v352_v16 = vld [vmem:[%s19018_s1 + $0x5f8] sm:$0xff]  ;;  %v11125_v2 = vcombine.low %v340_v44, %v344_v39 }
 0x25d   :  { %5683 = vmatprep.subr.bf16.mxu1 %v11118_v23  ;;  %v12032_v24 = vadd.f32 %v12031_v27, %v14988_v19  ;;  %4851 = vmatmul.mubr.bf16.gmra.mrb[108].mxu0 %v15967_v61  ;;  %v15980_v19 = vld [vmem:[%s19019_s0 + $0x2a4] ss:$28 sps:$4 sm:$0xff]   ;;  %v6380_v32 = vmax.f32 %v12028_v26, 0.0  ;;  %v11134_v3 = vcombine.high %v348_v12, %v352_v16 }
 0x25e   :  { %v12034_v62 = vadd.f32 %v12033_v28, %v14990_v21  ;;  %4860 = vmatprep.mubr.bf16.mxu0 %v15980_v19  ;;  %v6381_v48 = vmax.f32 %v12030_v22, 0.0  ;;  %v356_v21 = vld [vmem:[%s19018_s1 + $0x618] sm:$0xff] }
 0x25f   :  { %v6388_v23 = vmax.f32 %v12032_v24, 0.0  ;;  %v360_v28 = vld [vmem:[%s19018_s1 + $0x638] sm:$0xff] }
 0x260   :  { %5684 = vmatpush1.bf16.msra.mxu1 %v11117_v51  ;;  %v3674_v53 = vpop.f32.mrb[36].mxu0  ;;  %v6389_v55 = vmax.f32 %v12034_v62, 0.0  ;;  %v11133_v62 = vcombine.low %v348_v12, %v352_v16 }
 0x261   :  { %5685 = vmatprep.subr.bf16.mxu1 %v11126_v20  ;;  %v12035_v27 = vadd.f32 %v3674_v53, %v15930_v52  ;;  %v3676_v0 = vpop.f32.mrb[37].mxu0  ;;  %v15990_v51 = vpack.c.bf16 %v6388_v23, %v6380_v32  ;;  %v11142_v23 = vcombine.high %v356_v21, %v360_v28 }
 0x262   :  { %v12037_v39 = vadd.f32 %v3676_v0, %v15941_v41  ;;  %v3678_v20 = vpop.f32.mrb[38].mxu0  ;;  %v15994_v44 = vpack.c.bf16 %v6389_v55, %v6381_v48  ;;  %v16005_v48 = vld [vmem:[%s19019_s0 + $0x2a0] ss:$28 sps:$4 sm:$0xff]  }
 0x263   :  { %19117 = vst [vmem:[#allocation13_spill] sm:$0xff] %v15990_v51  ;;  %5543 = vmatmul.mubr.bf16.gmra.mrb[108].mxu1 %v15709_v30  ;;  %v12036_v22 = vadd.f32 %v12035_v27, %v15013_v37  ;;  %v12039_v26 = vadd.f32 %v3678_v20, %v15930_v52  ;;  %v3680_v24 = vpop.f32.mrb[39].mxu0  ;;  %v364_v37 = vld [vmem:[%s19018_s1 + $0x658] sm:$0xff] }
 0x264   :  { %19118 = vst [vmem:[#allocation14_spill] sm:$0xff] %v15994_v44  ;;  %5552 = vmatprep.mubr.bf16.mxu1 %v15715_v34  ;;  %5686 = vmatpush1.bf16.msra.mxu1 %v11125_v2  ;;  %v12038_v53 = vadd.f32 %v12037_v39, %v15024_v38  ;;  %v12041_v32 = vadd.f32 %v3680_v24, %v15941_v41  ;;  %v368_v38 = vld [vmem:[%s19018_s1 + $0x678] sm:$0xff] }
 0x265   :  { %5687 = vmatprep.subr.bf16.mxu1 %v11134_v3  ;;  %v12040_v30 = vadd.f32 %v12039_v26, %v15026_v40  ;;  %4861 = vmatmul.mubr.bf16.gmra.mrb[112].mxu0 %v16005_v48  ;;  %v16018_v40 = vld [vmem:[%s19019_s0 + $0x2dc] ss:$28 sps:$4 sm:$0xff]   ;;  %v6396_v12 = vmax.f32 %v12036_v22, 0.0  ;;  %v11141_v2 = vcombine.low %v356_v21, %v360_v28  ;;  %v11150_v0 = vcombine.high %v364_v37, %v368_v38 }
 0x266   :  { %v12042_v34 = vadd.f32 %v12041_v32, %v15028_v42  ;;  %4870 = vmatprep.mubr.bf16.mxu0 %v16018_v40  ;;  %v6397_v3 = vmax.f32 %v12038_v53, 0.0  ;;  %v372_v42 = vld [vmem:[%s19018_s1 + $0x698] sm:$0xff] }
 0x267   :  { %v6404_v16 = vmax.f32 %v12040_v30, 0.0  ;;  %v376_v26 = vld [vmem:[%s19018_s1 + $0x6b8] sm:$0xff] }
 0x268   :  { %5688 = vmatpush1.bf16.msra.mxu1 %v11133_v62  ;;  %v6405_v55 = vmax.f32 %v12042_v34, 0.0  ;;  %v3684_v27 = vpop.f32.mrb[40].mxu0 }
 0x269   :  { %5689 = vmatprep.subr.bf16.mxu1 %v11142_v23  ;;  %v12043_v39 = vadd.f32 %v3684_v27, %v15930_v52  ;;  %v3686_v20 = vpop.f32.mrb[41].mxu0  ;;  %v16028_v22 = vpack.c.bf16 %v6404_v16, %v6396_v12  ;;  %v11149_v23 = vcombine.low %v364_v37, %v368_v38  ;;  %v11158_v12 = vcombine.high %v372_v42, %v376_v26  ;;  %v16043_v16 = vld [vmem:[%s19019_s0 + $0x2d8] ss:$28 sps:$4 sm:$0xff]  }
 0x26a   :  { %v12045_v21 = vadd.f32 %v3686_v20, %v15941_v41  ;;  %v3688_v28 = vpop.f32.mrb[42].mxu0  ;;  %v16032_v24 = vpack.c.bf16 %v6405_v55, %v6397_v3 }
 0x26b   :  { %19119 = vst [vmem:[#allocation15_spill] sm:$0xff] %v16028_v22  ;;  %5553 = vmatmul.mubr.bf16.gmra.mrb[112].mxu1 %v15738_v58  ;;  %v12044_v62 = vadd.f32 %v12043_v39, %v15051_v59  ;;  %v12047_v53 = vadd.f32 %v3688_v28, %v15930_v52  ;;  %v3690_v32 = vpop.f32.mrb[43].mxu0  ;;  %v380_v59 = vld [vmem:[%s19018_s1 + $0x6d8] sm:$0xff] }
 0x26c   :  { %19120 = vst [vmem:[#allocation16_spill] sm:$0xff] %v16032_v24  ;;  %5562 = vmatprep.mubr.bf16.mxu1 %v15744_v10  ;;  %5690 = vmatpush1.bf16.msra.mxu1 %v11141_v2  ;;  %v12046_v30 = vadd.f32 %v12045_v21, %v15062_v63  ;;  %v12049_v34 = vadd.f32 %v3690_v32, %v15941_v41  ;;  %v384_v63 = vld [vmem:[%s19018_s1 + $0x6f8] sm:$0xff] }
 0x26d   :  { %5691 = vmatprep.subr.bf16.mxu1 %v11150_v0  ;;  %v12048_v58 = vadd.f32 %v12047_v53, %v15064_v1  ;;  %4871 = vmatmul.mubr.bf16.gmra.mrb[116].mxu0 %v16043_v16  ;;  %v16056_v1 = vld [vmem:[%s19019_s0 + $0x314] ss:$28 sps:$4 sm:$0xff]   ;;  %v6412_v37 = vmax.f32 %v12044_v62, 0.0  ;;  %v11157_v2 = vcombine.low %v372_v42, %v376_v26  ;;  %v11166_v0 = vcombine.high %v380_v59, %v384_v63  ;;  %v392_v21 = vld [vmem:[%s19018_s1 + $0x738] sm:$0xff] }
 0x26e   :  { %v12050_v10 = vadd.f32 %v12049_v34, %v15066_v4  ;;  %4880 = vmatprep.mubr.bf16.mxu0 %v16056_v1  ;;  %v6413_v3 = vmax.f32 %v12046_v30, 0.0  ;;  %v388_v4 = vld [vmem:[%s19018_s1 + $0x718] sm:$0xff]  ;;  %v11165_v30 = vcombine.low %v380_v59, %v384_v63 }
 0x26f   :  { %v6420_v38 = vmax.f32 %v12048_v58, 0.0  ;;  %v11174_v58 = vcombine.high %v388_v4, %v392_v21 }
 0x270   :  { %5692 = vmatpush1.bf16.msra.mxu1 %v11149_v23  ;;  %v6421_v55 = vmax.f32 %v12050_v10, 0.0  ;;  %v3694_v27 = vpop.f32.mrb[44].mxu0  ;;  %v16081_v10 = vld [vmem:[%s19019_s0 + $0x310] ss:$28 sps:$4 sm:$0xff]  }
 0x271   :  { %5693 = vmatprep.subr.bf16.mxu1 %v11158_v12  ;;  %v12051_v39 = vadd.f32 %v3694_v27, %v15930_v52  ;;  %v3696_v20 = vpop.f32.mrb[45].mxu0  ;;  %v16066_v28 = vpack.c.bf16 %v6420_v38, %v6412_v37  ;;  %v11173_v37 = vcombine.low %v388_v4, %v392_v21 }
 0x272   :  { %v12053_v42 = vadd.f32 %v3696_v20, %v15941_v41  ;;  %v3698_v26 = vpop.f32.mrb[46].mxu0  ;;  %v16070_v62 = vpack.c.bf16 %v6421_v55, %v6413_v3 }
 0x273   :  { %19121 = vst [vmem:[#allocation17_spill] sm:$0xff] %v16066_v28  ;;  %5563 = vmatmul.mubr.bf16.gmra.mrb[116].mxu1 %v15767_v56  ;;  %v12052_v53 = vadd.f32 %v12051_v39, %v15089_v25  ;;  %v12055_v32 = vadd.f32 %v3698_v26, %v15930_v52  ;;  %v3700_v23 = vpop.f32.mrb[47].mxu0  ;;  %v396_v25 = vld [vmem:[%s19018_s1 + $0x758] sm:$0xff] }
 0x274   :  { %19122 = vst [vmem:[#allocation18_spill] sm:$0xff] %v16070_v62  ;;  %5572 = vmatprep.mubr.bf16.mxu1 %v15773_v47  ;;  %5694 = vmatpush1.bf16.msra.mxu1 %v11157_v2  ;;  %v12054_v34 = vadd.f32 %v12053_v42, %v15100_v29  ;;  %v12057_v12 = vadd.f32 %v3700_v23, %v15941_v41  ;;  %v400_v29 = vld [vmem:[%s19018_s1 + $0x778] sm:$0xff] }
 0x275   :  { %5695 = vmatprep.subr.bf16.mxu1 %v11166_v0  ;;  %v12056_v56 = vadd.f32 %v12055_v32, %v15102_v33  ;;  %4881 = vmatmul.mubr.bf16.gmra.mrb[120].mxu0 %v16081_v10  ;;  %v16094_v33 = vld [vmem:[%s19019_s0 + $0x34c] ss:$28 sps:$4 sm:$0xff]   ;;  %v6428_v59 = vmax.f32 %v12052_v53, 0.0  ;;  %v11182_v55 = vcombine.high %v396_v25, %v400_v29  ;;  %v408_v39 = vld [vmem:[%s19018_s1 + $0x7b8] sm:$0xff]  ;;  %v11181_v23 = vcombine.low %v396_v25, %v400_v29 }
 0x276   :  { %v12058_v47 = vadd.f32 %v12057_v12, %v15104_v18  ;;  %4890 = vmatprep.mubr.bf16.mxu0 %v16094_v33  ;;  %v6429_v38 = vmax.f32 %v12054_v34, 0.0  ;;  %v404_v18 = vld [vmem:[%s19018_s1 + $0x798] sm:$0xff] }
 0x277   :  { %v6436_v63 = vmax.f32 %v12056_v56, 0.0  ;;  %v11190_v12 = vcombine.high %v404_v18, %v408_v39  ;;  %v11189_v29 = vcombine.low %v404_v18, %v408_v39  ;;  %v11203_v39 = vcombine.low %v15836_v31, %v15841_v35  ;;  %v435_v31 = vld [vmem:[%s19018_s1 + $0x890] sm:$0xff] }
 0x278   :  { %5696 = vmatpush1.bf16.msra.mxu1 %v11165_v30  ;;  %v6437_v2 = vmax.f32 %v12058_v47, 0.0  ;;  %v3704_v3 = vpop.f32.mrb[48].mxu0 }
 0x279   :  { %5697 = vmatprep.subr.bf16.mxu1 %v11174_v58  ;;  %v12059_v27 = vadd.f32 %v3704_v3, %v15930_v52  ;;  %v3706_v0 = vpop.f32.mrb[49].mxu0  ;;  %v16104_v20 = vpack.c.bf16 %v6436_v63, %v6428_v59  ;;  %v16119_v58 = vld [vmem:[%s19019_s0 + $0x348] ss:$28 sps:$4 sm:$0xff]  }
 0x27a   :  { %v12061_v4 = vadd.f32 %v3706_v0, %v15941_v41  ;;  %v3708_v21 = vpop.f32.mrb[50].mxu0  ;;  %v16108_v42 = vpack.c.bf16 %v6437_v2, %v6429_v38  ;;  %v431_v38 = vld [vmem:[%s19018_s1 + $0x870] sm:$0xff] }
 0x27b   :  { %19123 = vst [vmem:[#allocation19_spill] sm:$0xff] %v16104_v20  ;;  %5573 = vmatmul.mubr.bf16.gmra.mrb[120].mxu1 %v15796_v5  ;;  %v12060_v26 = vadd.f32 %v12059_v27, %v15124_v49  ;;  %v12063_v53 = vadd.f32 %v3708_v21, %v15930_v52  ;;  %v3710_v32 = vpop.f32.mrb[51].mxu0  ;;  %v412_v49 = vld [vmem:[%s19018_s1 + $0x7d8] sm:$0xff] }
 0x27c   :  { %19124 = vst [vmem:[#allocation20_spill] sm:$0xff] %v16108_v42  ;;  %5582 = vmatprep.mubr.bf16.mxu1 %v15802_v13  ;;  %5698 = vmatpush1.bf16.msra.mxu1 %v11173_v37  ;;  %v12062_v30 = vadd.f32 %v12061_v4, %v15132_v54  ;;  %v12065_v34 = vadd.f32 %v3710_v32, %v15941_v41  ;;  %v416_v54 = vld [vmem:[%s19018_s1 + $0x7f8] sm:$0xff] }
 0x27d   :  { %5699 = vmatprep.subr.bf16.mxu1 %v11182_v55  ;;  %v12064_v5 = vadd.f32 %v12063_v53, %v15134_v57  ;;  %4891 = vmatmul.mubr.bf16.gmra.mrb[124].mxu0 %v16119_v58  ;;  %v16132_v57 = vld [vmem:[%s19019_s0 + $0xc] ss:$28 sps:$4 sm:$0xff]   ;;  %v6444_v56 = vmax.f32 %v12060_v26, 0.0  ;;  %v11198_v37 = vcombine.high %v412_v49, %v416_v54  ;;  %v11197_v18 = vcombine.low %v412_v49, %v416_v54 }
 0x27e   :  { %v12066_v13 = vadd.f32 %v12065_v34, %v15136_v60  ;;  %4933 = vmatprep.mubr.bf16.mxu0 %v16132_v57  ;;  %v6445_v47 = vmax.f32 %v12062_v30, 0.0  ;;  %v427_v60 = vld [vmem:[%s19018_s1 + $0x850] sm:$0xff]  ;;  %v11206_v30 = vcombine.high %v15891_v43, %v15896_v46  ;;  %v16174_v34 = vld [vmem:[%s19019_s0 + $0x44] ss:$28 sps:$4 sm:$0xff]  }
 0x27f   :  { %v6452_v25 = vmax.f32 %v12064_v5, 0.0  ;;  %v11212_v32 = vcombine.high %v427_v60, %v431_v38 }
 0x280   :  { %5700 = vmatpush1.bf16.msra.mxu1 %v11181_v23  ;;  %v6453_v59 = vmax.f32 %v12066_v13, 0.0  ;;  %v3714_v63 = vpop.f32.mrb[52].mxu0 }
 0x281   :  { %5701 = vmatprep.subr.bf16.mxu1 %v11190_v12  ;;  %v12067_v2 = vadd.f32 %v3714_v63, %v15930_v52  ;;  %v3716_v3 = vpop.f32.mrb[53].mxu0  ;;  %v16142_v55 = vpack.c.bf16 %v6452_v25, %v6444_v56  ;;  %v11211_v12 = vcombine.low %v427_v60, %v431_v38  ;;  %v447_v25 = vld [vmem:[%s19018_s1 + $0x8f0] sm:$0xff] }
 0x282   :  { %v12069_v27 = vadd.f32 %v3716_v3, %v15941_v41  ;;  %v3718_v0 = vpop.f32.mrb[54].mxu0  ;;  %v16148_v4 = vpack.c.bf16 %v6453_v59, %v6445_v47 }
 0x283   :  { %19125 = vst [vmem:[#allocation21_spill] sm:$0xff] %v16142_v55  ;;  %5583 = vmatmul.mubr.bf16.gmra.mrb[124].mxu1 %v15819_v45  ;;  %v12068_v21 = vadd.f32 %v12067_v2, %v15147_v6  ;;  %v12071_v26 = vadd.f32 %v3718_v0, %v15930_v52  ;;  %v3720_v53 = vpop.f32.mrb[55].mxu0  ;;  %v439_v6 = vld [vmem:[%s19018_s1 + $0x8b0] sm:$0xff] }
 0x284   :  { %19126 = vst [vmem:[#allocation22_spill] sm:$0xff] %v16148_v4  ;;  %5592 = vmatprep.mubr.bf16.mxu1 %v15825_v50  ;;  %5702 = vmatpush1.bf16.msra.mxu1 %v11189_v29  ;;  %v12070_v23 = vadd.f32 %v12069_v27, %v15149_v7  ;;  %v12073_v45 = vadd.f32 %v3720_v53, %v15941_v41  ;;  %v16167_v7 = vld [vmem:[%s19019_s0 + $0x8] ss:$28 sps:$4 sm:$0xff]   ;;  %v16212_v53 = vld [vmem:[%s19019_s0 + $0x7c] ss:$28 sps:$4 sm:$0xff]  }
 0x285   :  { %5703 = vmatprep.subr.bf16.mxu1 %v11198_v37  ;;  %v12072_v50 = vadd.f32 %v12071_v26, %v15151_v8  ;;  %4934 = vmatmul.mubr.bf16.vlgmr.msra.gmra.mrb[64].mxu0 %v16167_v7  ;;  %v6460_v5 = vmax.f32 %v12068_v21, 0.0  ;;  %v11220_v49 = vcombine.high %v435_v31, %v439_v6  ;;  %v11219_v60 = vcombine.low %v435_v31, %v439_v6  ;;  %v455_v21 = vld [vmem:[%s19018_s1 + $0x930] sm:$0xff] }
 0x286   :  { %v12074_v35 = vadd.f32 %v12073_v45, %v15153_v11  ;;  %4943 = vmatprep.mubr.bf16.mxu0 %v16174_v34  ;;  %5095 = vmatpush1.bf16.msra.mxu0 %v11203_v39  ;;  %v6461_v54 = vmax.f32 %v12070_v23, 0.0  ;;  %v443_v11 = vld [vmem:[%s19018_s1 + $0x8d0] sm:$0xff] }
 0x287   :  { %v6468_v8 = vmax.f32 %v12072_v50, 0.0  ;;  %5096 = vmatprep.subr.bf16.mxu0 %v11212_v32  ;;  %v11228_v0 = vcombine.high %v443_v11, %v447_v25  ;;  %v11227_v32 = vcombine.low %v443_v11, %v447_v25  ;;  %v459_v50 = vld [vmem:[%s19018_s1 + $0x950] sm:$0xff]  ;;  %v19133_v25 = vld [vmem:[#allocation3_spill] sm:$0xff] }
 0x288   :  { %5704 = vmatpush1.bf16.msra.mxu1 %v11197_v18  ;;  %v6469_v13 = vmax.f32 %v12074_v35, 0.0  ;;  %v3724_v56 = vpop.f32.mrb[56].mxu0  ;;  %v463_v35 = vld [vmem:[%s19018_s1 + $0x970] sm:$0xff] }
 0x289   :  { %5866 = vmatprep.subr.bf16.mxu1 %v11206_v30  ;;  %v12075_v29 = vadd.f32 %v3724_v56, %v15930_v52  ;;  %v3726_v47 = vpop.f32.mrb[57].mxu0  ;;  %v16184_v59 = vpack.c.bf16 %v6468_v8, %v6460_v5 }
 0x28a   :  { %v12077_v63 = vadd.f32 %v3726_v47, %v15941_v41  ;;  %v3728_v37 = vpop.f32.mrb[58].mxu0  ;;  %5097 = vmatpush1.bf16.msra.mxu0 %v11211_v12  ;;  %v16188_v38 = vpack.c.bf16 %v6469_v13, %v6461_v54  ;;  %v19131_v54 = vld [vmem:[#allocation7_spill] sm:$0xff] }
 0x28b   :  { %19127 = vst [vmem:[#allocation23_spill] sm:$0xff] %v16184_v59  ;;  %5593 = vmatmul.mubr.bf16.gmra.mrb[128].mxu1 %v15846_v9  ;;  %v12076_v2 = vadd.f32 %v12075_v29, %v15161_v14  ;;  %v12079_v3 = vadd.f32 %v3728_v37, %v15930_v52  ;;  %v3730_v27 = vpop.f32.mrb[59].mxu0  ;;  %5098 = vmatprep.subr.bf16.mxu0 %v11220_v49  ;;  %v451_v9 = vld [vmem:[%s19018_s1 + $0x910] sm:$0xff]  ;;  %v19134_v37 = vld [vmem:[#allocation9_spill] sm:$0xff] }
 0x28c   :  { %19128 = vst [vmem:[#allocation24_spill] sm:$0xff] %v16188_v38  ;;  %5602 = vmatprep.mubr.bf16.mxu1 %v15860_v36  ;;  %v12078_v18 = vadd.f32 %v12077_v63, %v15163_v15  ;;  %v12081_v39 = vadd.f32 %v3730_v27, %v15941_v41  ;;  %v16205_v36 = vld [vmem:[%s19019_s0 + $0x40] ss:$28 sps:$4 sm:$0xff]   ;;  %v11236_v45 = vcombine.high %v451_v9, %v455_v21 }
 0x28d   :  { %v12080_v14 = vadd.f32 %v12079_v3, %v15165_v17  ;;  %4944 = vmatmul.mubr.bf16.gmra.mrb[68].mxu0 %v16205_v36  ;;  %v19129_v15 = vld [vmem:[#allocation2_spill] sm:$0xff]  ;;  %v6476_v23 = vmax.f32 %v12076_v2, 0.0  ;;  %v11235_v56 = vcombine.low %v451_v9, %v455_v21  ;;  %v19135_v2 = vld [vmem:[#allocation4_spill] sm:$0xff] }
 0x28e   :  { %v12082_v26 = vadd.f32 %v12081_v39, %v19129_v15  ;;  %4953 = vmatprep.mubr.bf16.mxu0 %v16212_v53  ;;  %5099 = vmatpush1.bf16.msra.mxu0 %v11219_v60  ;;  %v6477_v30 = vmax.f32 %v12078_v18, 0.0  ;;  %v11244_v60 = vcombine.high %v459_v50, %v463_v35  ;;  %v471_v18 = vld [vmem:[%s19018_s1 + $0x9b0] sm:$0xff]  ;;  %v19136_v39 = vld [vmem:[#allocation5_spill] sm:$0xff] }
 0x28f   :  { %v6484_v17 = vmax.f32 %v12080_v14, 0.0  ;;  %5100 = vmatprep.subr.bf16.mxu0 %v11228_v0  ;;  %v467_v0 = vld [vmem:[%s19018_s1 + $0x990] sm:$0xff] }
 0x290   :  { %v6485_v31 = vmax.f32 %v12082_v26, 0.0  ;;  %v3734_v6 = vpop.f32.mrb[60].mxu0  ;;  %v16243_v21 = vld [vmem:[%s19019_s0 + $0x78] ss:$28 sps:$4 sm:$0xff]   ;;  %v19138_v26 = vld [vmem:[#allocation6_spill] sm:$0xff] }
 0x291   :  { %v12083_v12 = vadd.f32 %v3734_v6, %v15930_v52  ;;  %v3736_v5 = vpop.f32.mrb[61].mxu0  ;;  %v16222_v8 = vpack.c.bf16 %v6484_v17, %v6476_v23  ;;  %v19137_v14 = vld [vmem:[#allocation8_spill] sm:$0xff]  ;;  %v11243_v17 = vcombine.low %v459_v50, %v463_v35  ;;  %v11252_v6 = vcombine.high %v467_v0, %v471_v18  ;;  %v19139_v35 = vld [vmem:[#allocation10_spill] sm:$0xff] }
 0x292   :  { %v12085_v49 = vadd.f32 %v3736_v5, %v15941_v41  ;;  %v3738_v13 = vpop.f32.mrb[62].mxu0  ;;  %5101 = vmatpush1.bf16.msra.mxu0 %v11227_v32  ;;  %v16226_v11 = vpack.c.bf16 %v6485_v31, %v6477_v30  ;;  %v19041_v15 = vsub.s32 2, %v19137_v14  ;;  %v16251_v23 = vld [vmem:[%s19019_s0 + $0xb4] ss:$28 sps:$4 sm:$0xff]   ;;  %v19040_v31 = vsub.s32 3, %v19137_v14 }
 0x293   :  { %19130 = vst [vmem:[#allocation2_spill] sm:$0xff] %v16222_v8  ;;  %5603 = vmatmul.mubr.bf16.gmra.mrb[132].mxu1 %v19131_v54  ;;  %v12084_v29 = vadd.f32 %v12083_v12, %v19133_v25  ;;  %v12087_v47 = vadd.f32 %v3738_v13, %v15930_v52  ;;  %v3740_v63 = vpop.f32.mrb[63].mxu0  ;;  %5102 = vmatprep.subr.bf16.mxu0 %v11236_v45  ;;  %v475_v54 = vld [vmem:[%s19018_s1 + $0x9d0] sm:$0xff] }
 0x294   :  { %19132 = vst [vmem:[#allocation7_spill] sm:$0xff] %v16226_v11  ;;  %5612 = vmatprep.mubr.bf16.mxu1 %v19134_v37  ;;  %v12086_v3 = vadd.f32 %v12085_v49, %v19135_v2  ;;  %v12089_v27 = vadd.f32 %v3740_v63, %v15941_v41  ;;  %v479_v13 = vld [vmem:[%s19018_s1 + $0x9f0] sm:$0xff]  ;;  %v16265_v25 = vrot.slane %v19139_v35, %v19041_v15  ;;  %v19141_v63 = vld [vmem:[#allocation11_spill] sm:$0xff] }
 0x295   :  { %v12088_v9 = vadd.f32 %v12087_v47, %v19136_v39  ;;  %4954 = vmatmul.mubr.bf16.gmra.mrb[72].mxu0 %v16243_v21  ;;  %v6492_v45 = vmax.f32 %v12084_v29, 0.0  ;;  %v16277_v39 = vrot.slane %v19139_v35, %v19040_v31  ;;  %v16297_v35 = vld [vmem:[%s19019_s0 + $0xec] ss:$28 sps:$4 sm:$0xff]  }
 0x296   :  { %v12090_v32 = vadd.f32 %v12089_v27, %v19138_v26  ;;  %4963 = vmatprep.mubr.bf16.mxu0 %v16251_v23  ;;  %5103 = vmatpush1.bf16.msra.mxu0 %v11235_v56  ;;  %v6493_v12 = vmax.f32 %v12086_v3, 0.0  ;;  %v11260_v26 = vcombine.high %v475_v54, %v479_v13 }
 0x297   :  { %v6500_v30 = vmax.f32 %v12088_v9, 0.0  ;;  %5104 = vmatprep.subr.bf16.mxu0 %v11244_v60  ;;  %v11251_v60 = vcombine.low %v467_v0, %v471_v18  ;;  %v19143_v9 = vld [vmem:[#allocation12_spill] sm:$0xff] }
 0x298   :  { %v6501_v5 = vmax.f32 %v12090_v32, 0.0  ;;  %v3777_v49 = vpop.f32.mrb[0].mxu0  ;;  %v483_v0 = vld [vmem:[%s19018_s1 + $0xa10] sm:$0xff] }
 0x299   :  { %v11995_v56 = vadd.f32 %v3777_v49, %v15930_v52  ;;  %v3779_v50 = vpop.f32.mrb[1].mxu0  ;;  %v16267_v29 = vpack.c.bf16 %v6500_v30, %v6492_v45  ;;  %v487_v18 = vld [vmem:[%s19018_s1 + $0xa30] sm:$0xff] }
 0x29a   :  { %v11996_v47 = vadd.f32 %v3779_v50, %v15941_v41  ;;  %v3781_v37 = vpop.f32.mrb[2].mxu0  ;;  %5105 = vmatpush1.bf16.msra.mxu0 %v11243_v17  ;;  %v16271_v2 = vpack.c.bf16 %v6501_v5, %v6493_v12  ;;  %v16290_v12 = vld [vmem:[%s19019_s0 + $0xb0] ss:$28 sps:$4 sm:$0xff]   ;;  %v11267_v15 = vcombine.low %v483_v0, %v487_v18 }
 0x29b   :  { %19140 = vst [vmem:[#allocation3_spill] sm:$0xff] %v16267_v29  ;;  %5613 = vmatmul.mubr.bf16.gmra.mrb[136].mxu1 %v19141_v63  ;;  %v11997_v3 = vadd.f32 %v3781_v37, %v15930_v52  ;;  %v3783_v27 = vpop.f32.mrb[3].mxu0  ;;  %5106 = vmatprep.subr.bf16.mxu0 %v11252_v6  ;;  %v6252_v17 = vmax.f32 %v11995_v56, 0.0  ;;  %v11259_v56 = vcombine.low %v475_v54, %v479_v13 }
 0x29c   :  { %19142 = vst [vmem:[#allocation9_spill] sm:$0xff] %v16271_v2  ;;  %5622 = vmatprep.mubr.bf16.mxu1 %v19143_v9  ;;  %v11998_v32 = vadd.f32 %v3783_v27, %v15941_v41  ;;  %v6253_v6 = vmax.f32 %v11996_v47, 0.0  ;;  %v11268_v47 = vcombine.high %v483_v0, %v487_v18  ;;  %v503_v0 = vld [vmem:[%s19018_s1 + $0xab0] sm:$0xff] }
 0x29d   :  { %v6260_v45 = vmax.f32 %v11997_v3, 0.0  ;;  %4964 = vmatmul.mubr.bf16.gmra.mrb[76].mxu0 %v16290_v12 }
 0x29e   :  { %v4549_v30 = vpop.f32.mrb[32].mxu1  ;;  %v6261_v5 = vmax.f32 %v11998_v32, 0.0  ;;  %4973 = vmatprep.mubr.bf16.mxu0 %v16297_v35  ;;  %5107 = vmatpush1.bf16.msra.mxu0 %v11251_v60  ;;  %v495_v60 = vld [vmem:[%s19018_s1 + $0xa70] sm:$0xff] }
 0x29f   :  { %v12091_v49 = vadd.f32 %v4549_v30, %v16265_v25  ;;  %v4551_v50 = vpop.f32.mrb[33].mxu1  ;;  %v16300_v63 = vpack.c.bf16 %v6260_v45, %v6252_v17  ;;  %5108 = vmatprep.subr.bf16.mxu0 %v11260_v26  ;;  %v491_v30 = vld [vmem:[%s19018_s1 + $0xa50] sm:$0xff] }
 0x2a0   :  { %v12092_v37 = vadd.f32 %v4551_v50, %v16277_v39  ;;  %v4553_v3 = vpop.f32.mrb[34].mxu1  ;;  %v3787_v32 = vpop.f32.mrb[4].mxu0  ;;  %v16310_v54 = vpack.c.bf16 %v6261_v5, %v6253_v6  ;;  %v11276_v5 = vcombine.high %v491_v30, %v495_v60 }
 0x2a1   :  { %v12093_v27 = vadd.f32 %v4553_v3, %v16265_v25  ;;  %v4555_v9 = vpop.f32.mrb[35].mxu1  ;;  %v11999_v17 = vadd.f32 %v3787_v32, %v15930_v52  ;;  %v3789_v26 = vpop.f32.mrb[5].mxu0  ;;  %v6254_v45 = vmax.f32 %v12091_v49, 0.0 }
 0x2a2   :  { %v12094_v13 = vadd.f32 %v4555_v9, %v16277_v39  ;;  %v12000_v3 = vadd.f32 %v3789_v26, %v15941_v41  ;;  %v3791_v31 = vpop.f32.mrb[6].mxu0  ;;  %5109 = vmatpush1.bf16.msra.mxu0 %v11259_v56  ;;  %v6255_v29 = vmax.f32 %v12092_v37, 0.0 }
 0x2a3   :  { %v6262_v50 = vmax.f32 %v12093_v27, 0.0  ;;  %5623 = vmatmul.mubr.bf16.gmra.mrb[140].mxu1 %v15967_v61  ;;  %v12001_v8 = vadd.f32 %v3791_v31, %v15930_v52  ;;  %v3793_v6 = vpop.f32.mrb[7].mxu0  ;;  %5110 = vmatprep.subr.bf16.mxu0 %v11268_v47  ;;  %v499_v61 = vld [vmem:[%s19018_s1 + $0xa90] sm:$0xff]  ;;  %v6268_v31 = vmax.f32 %v11999_v17, 0.0 }
 0x2a4   :  { %v6263_v2 = vmax.f32 %v12094_v13, 0.0  ;;  %5632 = vmatprep.mubr.bf16.mxu1 %v15980_v19  ;;  %v12002_v49 = vadd.f32 %v3793_v6, %v15941_v41  ;;  %v16332_v19 = vld [vmem:[%s19019_s0 + $0xe8] ss:$28 sps:$4 sm:$0xff]   ;;  %v6269_v47 = vmax.f32 %v12000_v3, 0.0  ;;  %v11284_v26 = vcombine.high %v499_v61, %v503_v0 }
 0x2a5   :  { %v16318_v9 = vpack.c.bf16 %v6262_v50, %v6254_v45  ;;  %v6276_v56 = vmax.f32 %v12001_v8, 0.0  ;;  %4974 = vmatmul.mubr.bf16.gmra.mrb[80].mxu0 %v16332_v19  ;;  %v11275_v8 = vcombine.low %v491_v30, %v495_v60 }
 0x2a6   :  { %v16327_v18 = vpack.c.bf16 %v6263_v2, %v6255_v29  ;;  %v4559_v37 = vpop.f32.mrb[36].mxu1  ;;  %v6277_v27 = vmax.f32 %v12002_v49, 0.0  ;;  %v16339_v29 = vld [vmem:[%s19019_s0 + $0x124] ss:$28 sps:$4 sm:$0xff]   ;;  %5111 = vmatpush1.bf16.msra.mxu0 %v11267_v15  ;;  %v507_v49 = vld [vmem:[%s19018_s1 + $0xad0] sm:$0xff] }
 0x2a7   :  { %19144 = vst [vmem:[#allocation4_spill] sm:$0xff] %v16318_v9  ;;  %v12095_v32 = vadd.f32 %v4559_v37, %v16265_v25  ;;  %v4561_v13 = vpop.f32.mrb[37].mxu1  ;;  %4983 = vmatprep.mubr.bf16.mxu0 %v16339_v29  ;;  %5112 = vmatprep.subr.bf16.mxu0 %v11276_v5  ;;  %v16343_v45 = vpack.c.bf16 %v6276_v56, %v6268_v31  ;;  %v511_v15 = vld [vmem:[%s19018_s1 + $0xaf0] sm:$0xff] }
 0x2a8   :  { %19145 = vst [vmem:[#allocation5_spill] sm:$0xff] %v16327_v18  ;;  %v12096_v2 = vadd.f32 %v4561_v13, %v16277_v39  ;;  %v4563_v17 = vpop.f32.mrb[38].mxu1  ;;  %v3797_v6 = vpop.f32.mrb[8].mxu0  ;;  %v16352_v30 = vpack.c.bf16 %v6277_v27, %v6269_v47  ;;  %v11283_v9 = vcombine.low %v499_v61, %v503_v0  ;;  %v11292_v27 = vcombine.high %v507_v49, %v511_v15  ;;  %v519_v61 = vld [vmem:[%s19018_s1 + $0xb30] sm:$0xff] }
 0x2a9   :  { %v12097_v50 = vadd.f32 %v4563_v17, %v16265_v25  ;;  %v4565_v3 = vpop.f32.mrb[39].mxu1  ;;  %v12003_v5 = vadd.f32 %v3797_v6, %v15930_v52  ;;  %v3799_v31 = vpop.f32.mrb[9].mxu0  ;;  %v6270_v56 = vmax.f32 %v12095_v32, 0.0 }
 0x2aa   :  { %v12098_v60 = vadd.f32 %v4565_v3, %v16277_v39  ;;  %v12004_v13 = vadd.f32 %v3799_v31, %v15941_v41  ;;  %v3801_v17 = vpop.f32.mrb[10].mxu0  ;;  %5113 = vmatpush1.bf16.msra.mxu0 %v11275_v8  ;;  %v6271_v18 = vmax.f32 %v12096_v2, 0.0 }
 0x2ab   :  { %v6278_v37 = vmax.f32 %v12097_v50, 0.0  ;;  %5633 = vmatmul.mubr.bf16.gmra.mrb[144].mxu1 %v16005_v48  ;;  %v12005_v59 = vadd.f32 %v3801_v17, %v15930_v52  ;;  %v3803_v47 = vpop.f32.mrb[11].mxu0  ;;  %5114 = vmatprep.subr.bf16.mxu0 %v11284_v26  ;;  %v515_v48 = vld [vmem:[%s19018_s1 + $0xb10] sm:$0xff]  ;;  %v6284_v8 = vmax.f32 %v12003_v5, 0.0 }
 0x2ac   :  { %v6279_v11 = vmax.f32 %v12098_v60, 0.0  ;;  %5642 = vmatprep.mubr.bf16.mxu1 %v16018_v40  ;;  %v12006_v32 = vadd.f32 %v3803_v47, %v15941_v41  ;;  %v16374_v40 = vld [vmem:[%s19019_s0 + $0x120] ss:$28 sps:$4 sm:$0xff]   ;;  %v6285_v26 = vmax.f32 %v12004_v13, 0.0 }
 0x2ad   :  { %v16360_v3 = vpack.c.bf16 %v6278_v37, %v6270_v56  ;;  %v6292_v2 = vmax.f32 %v12005_v59, 0.0  ;;  %4984 = vmatmul.mubr.bf16.gmra.mrb[84].mxu0 %v16374_v40  ;;  %v11291_v59 = vcombine.low %v507_v49, %v511_v15  ;;  %v11300_v56 = vcombine.high %v515_v48, %v519_v61 }
 0x2ae   :  { %v16369_v0 = vpack.c.bf16 %v6279_v11, %v6271_v18  ;;  %v4569_v50 = vpop.f32.mrb[40].mxu1  ;;  %v6293_v6 = vmax.f32 %v12006_v32, 0.0  ;;  %v16381_v11 = vld [vmem:[%s19019_s0 + $0x15c] ss:$28 sps:$4 sm:$0xff]   ;;  %5115 = vmatpush1.bf16.msra.mxu0 %v11283_v9  ;;  %v523_v32 = vld [vmem:[%s19018_s1 + $0xb50] sm:$0xff] }
 0x2af   :  { %19146 = vst [vmem:[#allocation6_spill] sm:$0xff] %v16360_v3  ;;  %v12099_v60 = vadd.f32 %v4569_v50, %v16265_v25  ;;  %v4571_v31 = vpop.f32.mrb[41].mxu1  ;;  %4993 = vmatprep.mubr.bf16.mxu0 %v16381_v11  ;;  %5116 = vmatprep.subr.bf16.mxu0 %v11292_v27  ;;  %v16385_v37 = vpack.c.bf16 %v6292_v2, %v6284_v8  ;;  %v527_v9 = vld [vmem:[%s19018_s1 + $0xb70] sm:$0xff] }
 0x2b0   :  { %19147 = vst [vmem:[#allocation10_spill] sm:$0xff] %v16369_v0  ;;  %v12100_v18 = vadd.f32 %v4571_v31, %v16277_v39  ;;  %v4573_v5 = vpop.f32.mrb[42].mxu1  ;;  %v3807_v47 = vpop.f32.mrb[12].mxu0  ;;  %v16394_v49 = vpack.c.bf16 %v6293_v6, %v6285_v26  ;;  %v11299_v3 = vcombine.low %v515_v48, %v519_v61  ;;  %v11308_v6 = vcombine.high %v523_v32, %v527_v9  ;;  %v535_v48 = vld [vmem:[%s19018_s1 + $0xbb0] sm:$0xff] }
 0x2b1   :  { %v12101_v13 = vadd.f32 %v4573_v5, %v16265_v25  ;;  %v4575_v17 = vpop.f32.mrb[43].mxu1  ;;  %v12007_v27 = vadd.f32 %v3807_v47, %v15930_v52  ;;  %v3809_v8 = vpop.f32.mrb[13].mxu0  ;;  %v6286_v2 = vmax.f32 %v12099_v60, 0.0 }
 0x2b2   :  { %v12102_v15 = vadd.f32 %v4575_v17, %v16277_v39  ;;  %v12008_v31 = vadd.f32 %v3809_v8, %v15941_v41  ;;  %v3811_v5 = vpop.f32.mrb[14].mxu0  ;;  %5117 = vmatpush1.bf16.msra.mxu0 %v11291_v59  ;;  %v6287_v0 = vmax.f32 %v12100_v18, 0.0 }
 0x2b3   :  { %v6294_v50 = vmax.f32 %v12101_v13, 0.0  ;;  %5643 = vmatmul.mubr.bf16.gmra.mrb[148].mxu1 %v16043_v16  ;;  %v12009_v55 = vadd.f32 %v3811_v5, %v15930_v52  ;;  %v3813_v26 = vpop.f32.mrb[15].mxu0  ;;  %5118 = vmatprep.subr.bf16.mxu0 %v11300_v56  ;;  %v531_v16 = vld [vmem:[%s19018_s1 + $0xb90] sm:$0xff]  ;;  %v6300_v59 = vmax.f32 %v12007_v27, 0.0 }
 0x2b4   :  { %v6295_v38 = vmax.f32 %v12102_v15, 0.0  ;;  %5652 = vmatprep.mubr.bf16.mxu1 %v16056_v1  ;;  %v12010_v60 = vadd.f32 %v3813_v26, %v15941_v41  ;;  %v16416_v1 = vld [vmem:[%s19019_s0 + $0x158] ss:$28 sps:$4 sm:$0xff]   ;;  %v6301_v56 = vmax.f32 %v12008_v31, 0.0 }
 0x2b5   :  { %v16402_v17 = vpack.c.bf16 %v6294_v50, %v6286_v2  ;;  %v6308_v18 = vmax.f32 %v12009_v55, 0.0  ;;  %4994 = vmatmul.mubr.bf16.gmra.mrb[88].mxu0 %v16416_v1  ;;  %v11307_v55 = vcombine.low %v523_v32, %v527_v9  ;;  %v11316_v2 = vcombine.high %v531_v16, %v535_v48 }
 0x2b6   :  { %v16411_v61 = vpack.c.bf16 %v6295_v38, %v6287_v0  ;;  %v4579_v13 = vpop.f32.mrb[44].mxu1  ;;  %v6309_v47 = vmax.f32 %v12010_v60, 0.0  ;;  %v16423_v38 = vld [vmem:[%s19019_s0 + $0x194] ss:$28 sps:$4 sm:$0xff]   ;;  %5119 = vmatpush1.bf16.msra.mxu0 %v11299_v3 }
 0x2b7   :  { %19148 = vst [vmem:[#allocation11_spill] sm:$0xff] %v16402_v17  ;;  %v12103_v15 = vadd.f32 %v4579_v13, %v16265_v25  ;;  %v4581_v8 = vpop.f32.mrb[45].mxu1  ;;  %5003 = vmatprep.mubr.bf16.mxu0 %v16423_v38  ;;  %5120 = vmatprep.subr.bf16.mxu0 %v11308_v6  ;;  %v16427_v50 = vpack.c.bf16 %v6308_v18, %v6300_v59  ;;  %v539_v60 = vld [vmem:[%s19018_s1 + $0xbd0] sm:$0xff] }
 0x2b8   :  { %19149 = vst [vmem:[#allocation12_spill] sm:$0xff] %v16411_v61  ;;  %v12104_v0 = vadd.f32 %v4581_v8, %v16277_v39  ;;  %v4583_v27 = vpop.f32.mrb[46].mxu1  ;;  %v3817_v26 = vpop.f32.mrb[16].mxu0  ;;  %v543_v3 = vld [vmem:[%s19018_s1 + $0xbf0] sm:$0xff]  ;;  %v16436_v32 = vpack.c.bf16 %v6309_v47, %v6301_v56  ;;  %v11315_v17 = vcombine.low %v531_v16, %v535_v48 }
 0x2b9   :  { %v12105_v31 = vadd.f32 %v4583_v27, %v16265_v25  ;;  %v4585_v5 = vpop.f32.mrb[47].mxu1  ;;  %v12011_v6 = vadd.f32 %v3817_v26, %v15930_v52  ;;  %v3819_v59 = vpop.f32.mrb[17].mxu0  ;;  %v6302_v18 = vmax.f32 %v12103_v15, 0.0  ;;  %v11324_v47 = vcombine.high %v539_v60, %v543_v3  ;;  %v16452_v16 = vld [vmem:[%s19019_s0 + $0x190] ss:$28 sps:$4 sm:$0xff]  }
 0x2ba   :  { %v12106_v9 = vadd.f32 %v4585_v5, %v16277_v39  ;;  %v12012_v8 = vadd.f32 %v3819_v59, %v15941_v41  ;;  %v3821_v27 = vpop.f32.mrb[18].mxu0  ;;  %5121 = vmatpush1.bf16.msra.mxu0 %v11307_v55  ;;  %v6303_v61 = vmax.f32 %v12104_v0, 0.0 }
 0x2bb   :  { %v6310_v13 = vmax.f32 %v12105_v31, 0.0  ;;  %5653 = vmatmul.mubr.bf16.gmra.mrb[152].mxu1 %v16081_v10  ;;  %v12013_v20 = vadd.f32 %v3821_v27, %v15930_v52  ;;  %v3823_v56 = vpop.f32.mrb[19].mxu0  ;;  %5122 = vmatprep.subr.bf16.mxu0 %v11316_v2  ;;  %v6316_v26 = vmax.f32 %v12011_v6, 0.0 }
 0x2bc   :  { %v6311_v4 = vmax.f32 %v12106_v9, 0.0  ;;  %5662 = vmatprep.mubr.bf16.mxu1 %v16094_v33  ;;  %v12014_v15 = vadd.f32 %v3823_v56, %v15941_v41  ;;  %v6317_v48 = vmax.f32 %v12012_v8, 0.0 }
 0x2bd   :  { %v16444_v5 = vpack.c.bf16 %v6310_v13, %v6302_v18  ;;  %v6324_v10 = vmax.f32 %v12013_v20, 0.0  ;;  %5004 = vmatmul.mubr.bf16.gmra.mrb[92].mxu0 %v16452_v16  ;;  %v11323_v20 = vcombine.low %v539_v60, %v543_v3 }
 0x2be   :  { %v16447_v31 = vpack.c.bf16 %v6311_v4, %v6303_v61  ;;  %v4589_v59 = vpop.f32.mrb[48].mxu1  ;;  %v6325_v33 = vmax.f32 %v12014_v15, 0.0  ;;  %v16459_v4 = vld [vmem:[%s19019_s0 + $0x1cc] ss:$28 sps:$4 sm:$0xff]   ;;  %5123 = vmatpush1.bf16.msra.mxu0 %v11315_v17 }
 0x2bf   :  { %19150 = vst [vmem:[#allocation25_spill] sm:$0xff] %v16444_v5  ;;  %v12107_v55 = vadd.f32 %v4589_v59, %v16265_v25  ;;  %v4591_v0 = vpop.f32.mrb[49].mxu1  ;;  %5013 = vmatprep.mubr.bf16.mxu0 %v16459_v4  ;;  %5124 = vmatprep.subr.bf16.mxu0 %v11324_v47  ;;  %v16463_v9 = vpack.c.bf16 %v6324_v10, %v6316_v26 }
 0x2c0   :  { %19151 = vst [vmem:[#allocation26_spill] sm:$0xff] %v16447_v31  ;;  %v12108_v61 = vadd.f32 %v4591_v0, %v16277_v39  ;;  %v4593_v2 = vpop.f32.mrb[50].mxu1  ;;  %v3827_v13 = vpop.f32.mrb[20].mxu0  ;;  %v16466_v8 = vpack.c.bf16 %v6325_v33, %v6317_v48 }
 0x2c1   :  { %v12109_v6 = vadd.f32 %v4593_v2, %v16265_v25  ;;  %v4595_v18 = vpop.f32.mrb[51].mxu1  ;;  %v12015_v56 = vadd.f32 %v3827_v13, %v15930_v52  ;;  %v3829_v15 = vpop.f32.mrb[21].mxu0  ;;  %v6318_v59 = vmax.f32 %v12107_v55, 0.0  ;;  %v16480_v55 = vld [vmem:[%s19018_s1 + $0x858] sm:$0xff]  ;;  %v16501_v13 = vld [vmem:[%s19018_s1 + $0xc30] sm:$0xff] }
 0x2c2   :  { %v12110_v27 = vadd.f32 %v4595_v18, %v16277_v39  ;;  %v12016_v60 = vadd.f32 %v3829_v15, %v15941_v41  ;;  %v3831_v3 = vpop.f32.mrb[22].mxu0  ;;  %5125 = vmatpush1.bf16.msra.mxu0 %v11323_v20  ;;  %v6319_v47 = vmax.f32 %v12108_v61, 0.0  ;;  %v16496_v18 = vld [vmem:[%s19018_s1 + $0xc10] sm:$0xff] }
 0x2c3   :  { %v6326_v17 = vmax.f32 %v12109_v6, 0.0  ;;  %5663 = vmatmul.mubr.bf16.gmra.mrb[156].mxu1 %v16119_v58  ;;  %v12017_v10 = vadd.f32 %v3831_v3, %v15930_v52  ;;  %v3833_v0 = vpop.f32.mrb[23].mxu0  ;;  %v6332_v58 = vmax.f32 %v12015_v56, 0.0  ;;  %v16487_v6 = vld [vmem:[%s19019_s0 + $0x1c8] ss:$28 sps:$4 sm:$0xff]   ;;  %v11332_v3 = vcombine.high %v16496_v18, %v16501_v13 }
 0x2c4   :  { %v6327_v26 = vmax.f32 %v12110_v27, 0.0  ;;  %5705 = vmatprep.mubr.bf16.mxu1 %v16132_v57  ;;  %v12018_v33 = vadd.f32 %v3833_v0, %v15941_v41  ;;  %v432_v57 = vld [vmem:[%s19018_s1 + $0x878] sm:$0xff]  ;;  %v6333_v27 = vmax.f32 %v12016_v60, 0.0 }
 0x2c5   :  { %v16474_v48 = vpack.c.bf16 %v6326_v17, %v6318_v59  ;;  %v6340_v20 = vmax.f32 %v12017_v10, 0.0  ;;  %5014 = vmatmul.mubr.bf16.gmra.mrb[96].mxu0 %v16487_v6  ;;  %v16507_v17 = vld [vmem:[%s19019_s0 + $0x204] ss:$28 sps:$4 sm:$0xff]   ;;  %5287 = vmatprep.subr.bf16.mxu0 %v11332_v3  ;;  %v16533_v3 = vld [vmem:[%s19018_s1 + $0xc18] sm:$0xff] }
 0x2c6   :  { %v16482_v2 = vpack.c.bf16 %v6327_v26, %v6319_v47  ;;  %v4599_v61 = vpop.f32.mrb[52].mxu1  ;;  %v6341_v56 = vmax.f32 %v12018_v33, 0.0  ;;  %5023 = vmatprep.mubr.bf16.mxu0 %v16507_v17 }
 0x2c7   :  { %19152 = vst [vmem:[#allocation27_spill] sm:$0xff] %v16474_v48  ;;  %v12111_v15 = vadd.f32 %v4599_v61, %v16265_v25  ;;  %v4601_v59 = vpop.f32.mrb[53].mxu1  ;;  %v16513_v10 = vpack.c.bf16 %v6340_v20, %v6332_v58  ;;  %v11214_v61 = vcombine.high %v16480_v55, %v432_v57  ;;  %v440_v58 = vld [vmem:[%s19018_s1 + $0x8b8] sm:$0xff] }
 0x2c8   :  { %19153 = vst [vmem:[#allocation28_spill] sm:$0xff] %v16482_v2  ;;  %v12112_v47 = vadd.f32 %v4601_v59, %v16277_v39  ;;  %v4603_v26 = vpop.f32.mrb[54].mxu1  ;;  %v3837_v33 = vpop.f32.mrb[24].mxu0  ;;  %v16517_v48 = vpack.c.bf16 %v6341_v56, %v6333_v27  ;;  %v436_v59 = vld [vmem:[%s19018_s1 + $0x898] sm:$0xff]  ;;  %v11213_v56 = vcombine.low %v16480_v55, %v432_v57 }
 0x2c9   :  { %v12113_v60 = vadd.f32 %v4603_v26, %v16265_v25  ;;  %v4605_v0 = vpop.f32.mrb[55].mxu1  ;;  %v12019_v5 = vadd.f32 %v3837_v33, %v15930_v52  ;;  %v3839_v31 = vpop.f32.mrb[25].mxu0  ;;  %v6334_v20 = vmax.f32 %v12111_v15, 0.0  ;;  %v11222_v14 = vcombine.high %v436_v59, %v440_v58 }
 0x2ca   :  { %v12114_v2 = vadd.f32 %v4605_v0, %v16277_v39  ;;  %v12020_v42 = vadd.f32 %v3839_v31, %v15941_v41  ;;  %v3841_v27 = vpop.f32.mrb[26].mxu0  ;;  %v16538_v0 = vld [vmem:[%s19018_s1 + $0xc38] sm:$0xff]  ;;  %v6335_v33 = vmax.f32 %v12112_v47, 0.0 }
 0x2cb   :  { %v6342_v26 = vmax.f32 %v12113_v60, 0.0  ;;  %5706 = vmatmul.mubr.bf16.vlgmr.msra.gmra.mrb[96].mxu1 %v16167_v7  ;;  %v12021_v60 = vadd.f32 %v3841_v27, %v15930_v52  ;;  %v19154_v7 = vcombine.low %v15891_v43, %v15896_v46  ;;  %v3843_v31 = vpop.f32.mrb[27].mxu0  ;;  %v16555_v43 = vld [vmem:[%s19019_s0 + $0x200] ss:$28 sps:$4 sm:$0xff]  }
 0x2cc   :  { %v6343_v15 = vmax.f32 %v12114_v2, 0.0  ;;  %5715 = vmatprep.mubr.bf16.mxu1 %v16174_v34  ;;  %v12022_v28 = vadd.f32 %v3843_v31, %v15941_v41  ;;  %v6348_v2 = vmax.f32 %v12019_v5, 0.0  ;;  %v444_v46 = vld [vmem:[%s19018_s1 + $0x8d8] sm:$0xff] }
 0x2cd   :  { %5867 = vmatpush1.bf16.msra.mxu1 %v19154_v7  ;;  %v16547_v57 = vpack.c.bf16 %v6342_v26, %v6334_v20  ;;  %v6356_v27 = vmax.f32 %v12021_v60, 0.0  ;;  %5024 = vmatmul.mubr.bf16.gmra.mrb[100].mxu0 %v16555_v43  ;;  %v448_v34 = vld [vmem:[%s19018_s1 + $0x8f8] sm:$0xff]  ;;  %v11221_v7 = vcombine.low %v436_v59, %v440_v58 }
 0x2ce   :  { %5868 = vmatprep.subr.bf16.mxu1 %v11214_v61  ;;  %v16550_v47 = vpack.c.bf16 %v6343_v15, %v6335_v33  ;;  %v4609_v62 = vpop.f32.mrb[56].mxu1  ;;  %v6349_v61 = vmax.f32 %v12020_v42, 0.0  ;;  %v6357_v20 = vmax.f32 %v12022_v28, 0.0  ;;  %v16568_v33 = vld [vmem:[%s19019_s0 + $0x23c] ss:$28 sps:$4 sm:$0xff]  }
 0x2cf   :  { %19155 = vst [vmem:[#allocation29_spill] sm:$0xff] %v16547_v57  ;;  %v12115_v5 = vadd.f32 %v4609_v62, %v16265_v25  ;;  %v4611_v26 = vpop.f32.mrb[57].mxu1  ;;  %5033 = vmatprep.mubr.bf16.mxu0 %v16568_v33  ;;  %v16572_v31 = vpack.c.bf16 %v6356_v27, %v6348_v2  ;;  %v11230_v62 = vcombine.high %v444_v46, %v448_v34  ;;  %v456_v59 = vld [vmem:[%s19018_s1 + $0x938] sm:$0xff] }
 0x2d0   :  { %19156 = vst [vmem:[#allocation30_spill] sm:$0xff] %v16550_v47  ;;  %v12116_v15 = vadd.f32 %v4611_v26, %v16277_v39  ;;  %v4613_v60 = vpop.f32.mrb[58].mxu1  ;;  %v3847_v55 = vpop.f32.mrb[28].mxu0  ;;  %v16575_v57 = vpack.c.bf16 %v6357_v20, %v6349_v61 }
 0x2d1   :  { %5869 = vmatpush1.bf16.msra.mxu1 %v11213_v56  ;;  %v12117_v42 = vadd.f32 %v4613_v60, %v16265_v25  ;;  %v4615_v28 = vpop.f32.mrb[59].mxu1  ;;  %v12023_v22 = vadd.f32 %v3847_v55, %v15930_v52  ;;  %v3849_v24 = vpop.f32.mrb[29].mxu0  ;;  %v452_v56 = vld [vmem:[%s19018_s1 + $0x918] sm:$0xff]  ;;  %v6350_v58 = vmax.f32 %v12115_v5, 0.0  ;;  %v11229_v60 = vcombine.low %v444_v46, %v448_v34 }
 0x2d2   :  { %5870 = vmatprep.subr.bf16.mxu1 %v11222_v14  ;;  %v12118_v47 = vadd.f32 %v4615_v28, %v16277_v39  ;;  %v12024_v14 = vadd.f32 %v3849_v24, %v15941_v41  ;;  %v3851_v27 = vpop.f32.mrb[30].mxu0  ;;  %v6351_v61 = vmax.f32 %v12116_v15, 0.0  ;;  %v11238_v5 = vcombine.high %v452_v56, %v456_v59  ;;  %v16610_v15 = vld [vmem:[%s19019_s0 + $0x274] ss:$28 sps:$4 sm:$0xff]  }
 0x2d3   :  { %v6358_v2 = vmax.f32 %v12117_v42, 0.0  ;;  %5716 = vmatmul.mubr.bf16.gmra.mrb[100].mxu1 %v16205_v36  ;;  %v12025_v55 = vadd.f32 %v3851_v27, %v15930_v52  ;;  %v3853_v26 = vpop.f32.mrb[31].mxu0  ;;  %v6364_v24 = vmax.f32 %v12023_v22, 0.0  ;;  %v16597_v52 = vld [vmem:[%s19019_s0 + $0x238] ss:$28 sps:$4 sm:$0xff]  }
 0x2d4   :  { %v6359_v20 = vmax.f32 %v12118_v47, 0.0  ;;  %5725 = vmatprep.mubr.bf16.mxu1 %v16212_v53  ;;  %v12026_v51 = vadd.f32 %v3853_v26, %v15941_v41  ;;  %v460_v53 = vld [vmem:[%s19018_s1 + $0x958] sm:$0xff]  ;;  %v6365_v47 = vmax.f32 %v12024_v14, 0.0 }
 0x2d5   :  { %5871 = vmatpush1.bf16.msra.mxu1 %v11221_v7  ;;  %v16589_v28 = vpack.c.bf16 %v6358_v2, %v6350_v58  ;;  %v6372_v36 = vmax.f32 %v12025_v55, 0.0  ;;  %5034 = vmatmul.mubr.bf16.gmra.mrb[104].mxu0 %v16597_v52  ;;  %v464_v41 = vld [vmem:[%s19018_s1 + $0x978] sm:$0xff]  ;;  %v11237_v2 = vcombine.low %v452_v56, %v456_v59 }
 0x2d6   :  { %5872 = vmatprep.subr.bf16.mxu1 %v11230_v62  ;;  %v16592_v42 = vpack.c.bf16 %v6359_v20, %v6351_v61  ;;  %v4619_v44 = vpop.f32.mrb[60].mxu1  ;;  %v6373_v46 = vmax.f32 %v12026_v51, 0.0  ;;  %5043 = vmatprep.mubr.bf16.mxu0 %v16610_v15  ;;  %v11246_v14 = vcombine.high %v460_v53, %v464_v41  ;;  %v468_v20 = vld [vmem:[%s19018_s1 + $0x998] sm:$0xff] }
 0x2d7   :  { %v12119_v22 = vadd.f32 %v4619_v44, %v16265_v25  ;;  %v4621_v34 = vpop.f32.mrb[61].mxu1  ;;  %v16613_v7 = vpack.c.bf16 %v6372_v36, %v6364_v24  ;;  %v472_v55 = vld [vmem:[%s19018_s1 + $0x9b8] sm:$0xff] }
 0x2d8   :  { %v12120_v62 = vadd.f32 %v4621_v34, %v16277_v39  ;;  %v4623_v58 = vpop.f32.mrb[62].mxu1  ;;  %v16616_v27 = vpack.c.bf16 %v6373_v46, %v6365_v47  ;;  %v11254_v36 = vcombine.high %v468_v20, %v472_v55  ;;  %v16648_v34 = vld [vmem:[%s19019_s0 + $0x2ac] ss:$28 sps:$4 sm:$0xff]  }
 0x2d9   :  { %5873 = vmatpush1.bf16.msra.mxu1 %v11229_v60  ;;  %v12121_v51 = vadd.f32 %v4623_v58, %v16265_v25  ;;  %v4625_v44 = vpop.f32.mrb[63].mxu1  ;;  %v6366_v26 = vmax.f32 %v12119_v22, 0.0  ;;  %v16635_v22 = vld [vmem:[%s19019_s0 + $0x270] ss:$28 sps:$4 sm:$0xff]  }
 0x2da   :  { %5874 = vmatprep.subr.bf16.mxu1 %v11238_v5  ;;  %v12122_v61 = vadd.f32 %v4625_v44, %v16277_v39  ;;  %v6367_v56 = vmax.f32 %v12120_v62, 0.0  ;;  %v11245_v5 = vcombine.low %v460_v53, %v464_v41 }
 0x2db   :  { %v6374_v60 = vmax.f32 %v12121_v51, 0.0  ;;  %5726 = vmatmul.mubr.bf16.gmra.mrb[104].mxu1 %v16243_v21  ;;  %v476_v21 = vld [vmem:[%s19018_s1 + $0x9d8] sm:$0xff] }
 0x2dc   :  { %v6375_v59 = vmax.f32 %v12122_v61, 0.0  ;;  %5735 = vmatprep.mubr.bf16.mxu1 %v16251_v23  ;;  %v480_v23 = vld [vmem:[%s19018_s1 + $0x9f8] sm:$0xff] }
 0x2dd   :  { %5875 = vmatpush1.bf16.msra.mxu1 %v11237_v2  ;;  %v16628_v24 = vpack.c.bf16 %v6374_v60, %v6366_v26  ;;  %5044 = vmatmul.mubr.bf16.gmra.mrb[108].mxu0 %v16635_v22  ;;  %v11253_v2 = vcombine.low %v468_v20, %v472_v55  ;;  %v484_v26 = vld [vmem:[%s19018_s1 + $0xa18] sm:$0xff] }
 0x2de   :  { %5876 = vmatprep.subr.bf16.mxu1 %v11246_v14  ;;  %v16630_v47 = vpack.c.bf16 %v6375_v59, %v6367_v56  ;;  %v4629_v46 = vpop.f32.mrb[64].mxu1  ;;  %5053 = vmatprep.mubr.bf16.mxu0 %v16648_v34  ;;  %v11262_v14 = vcombine.high %v476_v21, %v480_v23  ;;  %v488_v60 = vld [vmem:[%s19018_s1 + $0xa38] sm:$0xff] }
 0x2df   :  { %v12123_v53 = vadd.f32 %v4629_v46, %v16265_v25  ;;  %v4631_v41 = vpop.f32.mrb[65].mxu1  ;;  %v11270_v46 = vcombine.high %v484_v26, %v488_v60 }
 0x2e0   :  { %v12124_v62 = vadd.f32 %v4631_v41, %v16277_v39  ;;  %v4633_v58 = vpop.f32.mrb[66].mxu1 }
 0x2e1   :  { %5877 = vmatpush1.bf16.msra.mxu1 %v11245_v5  ;;  %v12125_v51 = vadd.f32 %v4633_v58, %v16265_v25  ;;  %v4635_v44 = vpop.f32.mrb[67].mxu1  ;;  %v6382_v56 = vmax.f32 %v12123_v53, 0.0  ;;  %v11261_v5 = vcombine.low %v476_v21, %v480_v23  ;;  %v16669_v53 = vld [vmem:[%s19019_s0 + $0x2a8] ss:$28 sps:$4 sm:$0xff]  }
 0x2e2   :  { %5878 = vmatprep.subr.bf16.mxu1 %v11254_v36  ;;  %v12126_v61 = vadd.f32 %v4635_v44, %v16277_v39  ;;  %v6383_v20 = vmax.f32 %v12124_v62, 0.0  ;;  %v16682_v62 = vld [vmem:[%s19019_s0 + $0x2e4] ss:$28 sps:$4 sm:$0xff]   ;;  %v11269_v44 = vcombine.low %v484_v26, %v488_v60 }
 0x2e3   :  { %v6390_v59 = vmax.f32 %v12125_v51, 0.0  ;;  %5736 = vmatmul.mubr.bf16.gmra.mrb[108].mxu1 %v16290_v12  ;;  %v492_v12 = vld [vmem:[%s19018_s1 + $0xa58] sm:$0xff] }
 0x2e4   :  { %v6391_v55 = vmax.f32 %v12126_v61, 0.0  ;;  %5745 = vmatprep.mubr.bf16.mxu1 %v16297_v35  ;;  %v496_v35 = vld [vmem:[%s19018_s1 + $0xa78] sm:$0xff] }
 0x2e5   :  { %5879 = vmatpush1.bf16.msra.mxu1 %v11253_v2  ;;  %v16662_v36 = vpack.c.bf16 %v6390_v59, %v6382_v56  ;;  %5054 = vmatmul.mubr.bf16.gmra.mrb[112].mxu0 %v16669_v53  ;;  %v11278_v56 = vcombine.high %v492_v12, %v496_v35 }
 0x2e6   :  { %5880 = vmatprep.subr.bf16.mxu1 %v11262_v14  ;;  %v16664_v41 = vpack.c.bf16 %v6391_v55, %v6383_v20  ;;  %v4639_v58 = vpop.f32.mrb[68].mxu1  ;;  %5063 = vmatprep.mubr.bf16.mxu0 %v16682_v62  ;;  %v500_v20 = vld [vmem:[%s19018_s1 + $0xa98] sm:$0xff] }
 0x2e7   :  { %19157 = vst [vmem:[#allocation31_spill] sm:$0xff] %v16662_v36  ;;  %v12127_v21 = vadd.f32 %v4639_v58, %v16265_v25  ;;  %v4641_v23 = vpop.f32.mrb[69].mxu1  ;;  %v504_v55 = vld [vmem:[%s19018_s1 + $0xab8] sm:$0xff] }
 0x2e8   :  { %19158 = vst [vmem:[#allocation32_spill] sm:$0xff] %v16664_v41  ;;  %v12128_v2 = vadd.f32 %v4641_v23, %v16277_v39  ;;  %v4643_v51 = vpop.f32.mrb[70].mxu1 }
 0x2e9   :  { %5881 = vmatpush1.bf16.msra.mxu1 %v11261_v5  ;;  %v12129_v14 = vadd.f32 %v4643_v51, %v16265_v25  ;;  %v4645_v61 = vpop.f32.mrb[71].mxu1  ;;  %v6398_v58 = vmax.f32 %v12127_v21, 0.0  ;;  %v11277_v5 = vcombine.low %v492_v12, %v496_v35  ;;  %v11286_v51 = vcombine.high %v500_v20, %v504_v55  ;;  %v16703_v21 = vld [vmem:[%s19019_s0 + $0x2e0] ss:$28 sps:$4 sm:$0xff]  }
 0x2ea   :  { %5882 = vmatprep.subr.bf16.mxu1 %v11270_v46  ;;  %v12130_v59 = vadd.f32 %v4645_v61, %v16277_v39  ;;  %v6399_v26 = vmax.f32 %v12128_v2, 0.0  ;;  %v16716_v2 = vld [vmem:[%s19019_s0 + $0x31c] ss:$28 sps:$4 sm:$0xff]  }
 0x2eb   :  { %v6406_v23 = vmax.f32 %v12129_v14, 0.0  ;;  %5746 = vmatmul.mubr.bf16.gmra.mrb[112].mxu1 %v16332_v19  ;;  %v508_v19 = vld [vmem:[%s19018_s1 + $0xad8] sm:$0xff] }
 0x2ec   :  { %v6407_v60 = vmax.f32 %v12130_v59, 0.0  ;;  %5755 = vmatprep.mubr.bf16.mxu1 %v16339_v29  ;;  %v512_v29 = vld [vmem:[%s19018_s1 + $0xaf8] sm:$0xff] }
 0x2ed   :  { %5883 = vmatpush1.bf16.msra.mxu1 %v11269_v44  ;;  %v16696_v46 = vpack.c.bf16 %v6406_v23, %v6398_v58  ;;  %5064 = vmatmul.mubr.bf16.gmra.mrb[116].mxu0 %v16703_v21  ;;  %v11294_v23 = vcombine.high %v508_v19, %v512_v29 }
 0x2ee   :  { %5884 = vmatprep.subr.bf16.mxu1 %v11278_v56  ;;  %v16698_v61 = vpack.c.bf16 %v6407_v60, %v6399_v26  ;;  %v4649_v36 = vpop.f32.mrb[72].mxu1  ;;  %5073 = vmatprep.mubr.bf16.mxu0 %v16716_v2  ;;  %v11285_v56 = vcombine.low %v500_v20, %v504_v55  ;;  %v516_v26 = vld [vmem:[%s19018_s1 + $0xb18] sm:$0xff] }
 0x2ef   :  { %19159 = vst [vmem:[#allocation33_spill] sm:$0xff] %v16696_v46  ;;  %v12131_v12 = vadd.f32 %v4649_v36, %v16265_v25  ;;  %v4651_v35 = vpop.f32.mrb[73].mxu1  ;;  %v520_v60 = vld [vmem:[%s19018_s1 + $0xb38] sm:$0xff] }
 0x2f0   :  { %19160 = vst [vmem:[#allocation34_spill] sm:$0xff] %v16698_v61  ;;  %v12132_v44 = vadd.f32 %v4651_v35, %v16277_v39  ;;  %v4653_v14 = vpop.f32.mrb[74].mxu1 }
 0x2f1   :  { %5885 = vmatpush1.bf16.msra.mxu1 %v11277_v5  ;;  %v12133_v59 = vadd.f32 %v4653_v14, %v16265_v25  ;;  %v4655_v58 = vpop.f32.mrb[75].mxu1  ;;  %v6414_v46 = vmax.f32 %v12131_v12, 0.0  ;;  %v11293_v5 = vcombine.low %v508_v19, %v512_v29  ;;  %v11302_v14 = vcombine.high %v516_v26, %v520_v60  ;;  %v16737_v12 = vld [vmem:[%s19019_s0 + $0x318] ss:$28 sps:$4 sm:$0xff]  }
 0x2f2   :  { %5886 = vmatprep.subr.bf16.mxu1 %v11286_v51  ;;  %v12134_v36 = vadd.f32 %v4655_v58, %v16277_v39  ;;  %v6415_v20 = vmax.f32 %v12132_v44, 0.0  ;;  %v16750_v29 = vld [vmem:[%s19019_s0 + $0x354] ss:$28 sps:$4 sm:$0xff]  }
 0x2f3   :  { %v6422_v35 = vmax.f32 %v12133_v59, 0.0  ;;  %5756 = vmatmul.mubr.bf16.gmra.mrb[116].mxu1 %v16374_v40  ;;  %v524_v40 = vld [vmem:[%s19018_s1 + $0xb58] sm:$0xff]  ;;  %v11301_v59 = vcombine.low %v516_v26, %v520_v60 }
 0x2f4   :  { %v6423_v55 = vmax.f32 %v12134_v36, 0.0  ;;  %5765 = vmatprep.mubr.bf16.mxu1 %v16381_v11  ;;  %v528_v11 = vld [vmem:[%s19018_s1 + $0xb78] sm:$0xff] }
 0x2f5   :  { %5887 = vmatpush1.bf16.msra.mxu1 %v11285_v56  ;;  %v16730_v51 = vpack.c.bf16 %v6422_v35, %v6414_v46  ;;  %5074 = vmatmul.mubr.bf16.gmra.mrb[120].mxu0 %v16737_v12  ;;  %v11310_v35 = vcombine.high %v524_v40, %v528_v11 }
 0x2f6   :  { %5888 = vmatprep.subr.bf16.mxu1 %v11294_v23  ;;  %v16732_v58 = vpack.c.bf16 %v6423_v55, %v6415_v20  ;;  %v4659_v61 = vpop.f32.mrb[76].mxu1  ;;  %5083 = vmatprep.mubr.bf16.mxu0 %v16750_v29  ;;  %v532_v20 = vld [vmem:[%s19018_s1 + $0xb98] sm:$0xff] }
 0x2f7   :  { %19161 = vst [vmem:[#allocation35_spill] sm:$0xff] %v16730_v51  ;;  %v12135_v46 = vadd.f32 %v4659_v61, %v16265_v25  ;;  %v4661_v19 = vpop.f32.mrb[77].mxu1  ;;  %v536_v55 = vld [vmem:[%s19018_s1 + $0xbb8] sm:$0xff] }
 0x2f8   :  { %19162 = vst [vmem:[#allocation36_spill] sm:$0xff] %v16732_v58  ;;  %v12136_v44 = vadd.f32 %v4661_v19, %v16277_v39  ;;  %v4663_v56 = vpop.f32.mrb[78].mxu1 }
 0x2f9   :  { %5889 = vmatpush1.bf16.msra.mxu1 %v11293_v5  ;;  %v12137_v23 = vadd.f32 %v4663_v56, %v16265_v25  ;;  %v4665_v36 = vpop.f32.mrb[79].mxu1  ;;  %v6430_v51 = vmax.f32 %v12135_v46, 0.0  ;;  %v11309_v5 = vcombine.low %v524_v40, %v528_v11  ;;  %v11318_v56 = vcombine.high %v532_v20, %v536_v55  ;;  %v16771_v46 = vld [vmem:[%s19019_s0 + $0x350] ss:$28 sps:$4 sm:$0xff]  }
 0x2fa   :  { %5890 = vmatprep.subr.bf16.mxu1 %v11302_v14  ;;  %v12138_v61 = vadd.f32 %v4665_v36, %v16277_v39  ;;  %v6431_v26 = vmax.f32 %v12136_v44, 0.0  ;;  %v16784_v11 = vld [vmem:[%s19019_s0 + $0x14] ss:$28 sps:$4 sm:$0xff]  }
 0x2fb   :  { %v6438_v19 = vmax.f32 %v12137_v23, 0.0  ;;  %5766 = vmatmul.mubr.bf16.gmra.mrb[120].mxu1 %v16416_v1  ;;  %v540_v1 = vld [vmem:[%s19018_s1 + $0xbd8] sm:$0xff]  ;;  %v11317_v23 = vcombine.low %v532_v20, %v536_v55 }
 0x2fc   :  { %v6439_v60 = vmax.f32 %v12138_v61, 0.0  ;;  %5775 = vmatprep.mubr.bf16.mxu1 %v16423_v38  ;;  %v544_v38 = vld [vmem:[%s19018_s1 + $0xbf8] sm:$0xff] }
 0x2fd   :  { %5891 = vmatpush1.bf16.msra.mxu1 %v11301_v59  ;;  %v16764_v14 = vpack.c.bf16 %v6438_v19, %v6430_v51  ;;  %5084 = vmatmul.mubr.bf16.gmra.mrb[124].mxu0 %v16771_v46  ;;  %v11326_v19 = vcombine.high %v540_v1, %v544_v38  ;;  %v11325_v20 = vcombine.low %v540_v1, %v544_v38 }
 0x2fe   :  { %5892 = vmatprep.subr.bf16.mxu1 %v11310_v35  ;;  %v16766_v36 = vpack.c.bf16 %v6439_v60, %v6431_v26  ;;  %v4669_v58 = vpop.f32.mrb[80].mxu1  ;;  %5126 = vmatprep.mubr.bf16.mxu0 %v16784_v11 }
 0x2ff   :  { %19163 = vst [vmem:[#allocation37_spill] sm:$0xff] %v16764_v14  ;;  %v12139_v51 = vadd.f32 %v4669_v58, %v16265_v25  ;;  %v4671_v40 = vpop.f32.mrb[81].mxu1  ;;  %v11331_v14 = vcombine.low %v16496_v18, %v16501_v13  ;;  %v16810_v13 = vld [vmem:[%s19019_s0 + $0x4c] ss:$28 sps:$4 sm:$0xff]  }
 0x300   :  { %19164 = vst [vmem:[#allocation38_spill] sm:$0xff] %v16766_v36  ;;  %v12140_v44 = vadd.f32 %v4671_v40, %v16277_v39  ;;  %v4673_v59 = vpop.f32.mrb[82].mxu1 }
 0x301   :  { %5893 = vmatpush1.bf16.msra.mxu1 %v11309_v5  ;;  %v12141_v35 = vadd.f32 %v4673_v59, %v16265_v25  ;;  %v4675_v61 = vpop.f32.mrb[83].mxu1  ;;  %v6446_v26 = vmax.f32 %v12139_v51, 0.0  ;;  %v11334_v5 = vcombine.high %v16533_v3, %v16538_v0 }
 0x302   :  { %5894 = vmatprep.subr.bf16.mxu1 %v11318_v56  ;;  %v12142_v58 = vadd.f32 %v4675_v61, %v16277_v39  ;;  %v6447_v36 = vmax.f32 %v12140_v44, 0.0 }
 0x303   :  { %v6454_v60 = vmax.f32 %v12141_v35, 0.0  ;;  %5776 = vmatmul.mubr.bf16.gmra.mrb[124].mxu1 %v16452_v16  ;;  %v16803_v16 = vld [vmem:[%s19019_s0 + $0x10] ss:$28 sps:$4 sm:$0xff]  }
 0x304   :  { %v6455_v41 = vmax.f32 %v12142_v58, 0.0  ;;  %5785 = vmatprep.mubr.bf16.mxu1 %v16459_v4  ;;  %v16825_v58 = vld [vmem:[%s19019_s0 + $0x48] ss:$28 sps:$4 sm:$0xff]  }
 0x305   :  { %5895 = vmatpush1.bf16.msra.mxu1 %v11317_v23  ;;  %v16794_v55 = vpack.c.bf16 %v6454_v60, %v6446_v26  ;;  %5127 = vmatmul.mubr.bf16.vlgmr.msra.gmra.mrb[64].mxu0 %v16803_v16 }
 0x306   :  { %5896 = vmatprep.subr.bf16.mxu1 %v11326_v19  ;;  %v16798_v56 = vpack.c.bf16 %v6455_v41, %v6447_v36  ;;  %v4679_v51 = vpop.f32.mrb[84].mxu1  ;;  %5136 = vmatprep.mubr.bf16.mxu0 %v16810_v13 }
 0x307   :  { %v12143_v4 = vadd.f32 %v4679_v51, %v16265_v25  ;;  %v4681_v18 = vpop.f32.mrb[85].mxu1  ;;  %5288 = vmatpush1.bf16.msra.mxu0 %v11331_v14 }
 0x308   :  { %v12144_v41 = vadd.f32 %v4681_v18, %v16277_v39  ;;  %v4683_v36 = vpop.f32.mrb[86].mxu1 }
 0x309   :  { %5897 = vmatpush1.bf16.msra.mxu1 %v11325_v20  ;;  %v12145_v1 = vadd.f32 %v4683_v36, %v16265_v25  ;;  %v4685_v38 = vpop.f32.mrb[87].mxu1  ;;  %v6462_v44 = vmax.f32 %v12143_v4, 0.0 }
 0x30a   :  { %6059 = vmatprep.subr.bf16.mxu1 %v11334_v5  ;;  %v12146_v40 = vadd.f32 %v4685_v38, %v16277_v39  ;;  %v6463_v23 = vmax.f32 %v12144_v41, 0.0 }
 0x30b   :  { %v6470_v59 = vmax.f32 %v12145_v1, 0.0  ;;  %5786 = vmatmul.mubr.bf16.gmra.mrb[128].mxu1 %v16487_v6  ;;  %v16832_v6 = vld [vmem:[%s19019_s0 + $0x84] ss:$28 sps:$4 sm:$0xff]  }
 0x30c   :  { %v6471_v35 = vmax.f32 %v12146_v40, 0.0  ;;  %5795 = vmatprep.mubr.bf16.mxu1 %v16507_v17 }
 0x30d   :  { %v16818_v61 = vpack.c.bf16 %v6470_v59, %v6462_v44  ;;  %5137 = vmatmul.mubr.bf16.gmra.mrb[68].mxu0 %v16825_v58  ;;  %v16847_v59 = vld [vmem:[%s19019_s0 + $0x80] ss:$28 sps:$4 sm:$0xff]  }
 0x30e   :  { %v16820_v14 = vpack.c.bf16 %v6471_v35, %v6463_v23  ;;  %v4689_v19 = vpop.f32.mrb[88].mxu1  ;;  %5146 = vmatprep.mubr.bf16.mxu0 %v16832_v6 }
 0x30f   :  { %v12147_v26 = vadd.f32 %v4689_v19, %v16265_v25  ;;  %v4691_v60 = vpop.f32.mrb[89].mxu1 }
 0x310   :  { %v12148_v17 = vadd.f32 %v4691_v60, %v16277_v39  ;;  %v4693_v20 = vpop.f32.mrb[90].mxu1 }
 0x311   :  { %v12149_v5 = vadd.f32 %v4693_v20, %v16265_v25  ;;  %v4695_v51 = vpop.f32.mrb[91].mxu1  ;;  %v6478_v18 = vmax.f32 %v12147_v26, 0.0 }
 0x312   :  { %v12150_v4 = vadd.f32 %v4695_v51, %v16277_v39  ;;  %v6479_v36 = vmax.f32 %v12148_v17, 0.0 }
 0x313   :  { %v6486_v41 = vmax.f32 %v12149_v5, 0.0  ;;  %5796 = vmatmul.mubr.bf16.gmra.mrb[132].mxu1 %v16555_v43  ;;  %v16854_v43 = vld [vmem:[%s19019_s0 + $0xbc] ss:$28 sps:$4 sm:$0xff]  }
 0x314   :  { %v6487_v1 = vmax.f32 %v12150_v4, 0.0  ;;  %5805 = vmatprep.mubr.bf16.mxu1 %v16568_v33 }
 0x315   :  { %v16840_v38 = vpack.c.bf16 %v6486_v41, %v6478_v18  ;;  %5147 = vmatmul.mubr.bf16.gmra.mrb[72].mxu0 %v16847_v59 }
 0x316   :  { %v16842_v40 = vpack.c.bf16 %v6487_v1, %v6479_v36  ;;  %v4699_v44 = vpop.f32.mrb[92].mxu1  ;;  %5156 = vmatprep.mubr.bf16.mxu0 %v16854_v43  ;;  %v14195_v36 = vld [vmem:[%s19019_s0 + $0xb8] ss:$28 sps:$4 sm:$0xff]   ;;  %v14207_v1 = vld [vmem:[%s19019_s0 + $0x208] ss:$28 sps:$4 sm:$0xff]  }
 0x317   :  { %v12151_v23 = vadd.f32 %v4699_v44, %v16265_v25  ;;  %v4701_v35 = vpop.f32.mrb[93].mxu1  ;;  %v16969_v44 = vld [vmem:[%s19019_s0 + $0x2ec] ss:$28 sps:$4 sm:$0xff]  }
 0x318   :  { %v12152_v33 = vadd.f32 %v4701_v35, %v16277_v39  ;;  %v4703_v19 = vpop.f32.mrb[94].mxu1  ;;  %v16987_v35 = vld [vmem:[%s19019_s0 + $0x320] ss:$28 sps:$4 sm:$0xff]  }
 0x319   :  { %v12153_v26 = vadd.f32 %v4703_v19, %v16265_v25  ;;  %v4705_v60 = vpop.f32.mrb[95].mxu1  ;;  %v6494_v20 = vmax.f32 %v12151_v23, 0.0  ;;  %v14196_v25 = vld [vmem:[%s19019_s0 + $0xf4] ss:$28 sps:$4 sm:$0xff]   ;;  %v16981_v23 = vld [vmem:[%s19019_s0 + $0x324] ss:$28 sps:$4 sm:$0xff]  }
 0x31a   :  { %v12154_v17 = vadd.f32 %v4705_v60, %v16277_v39  ;;  %v6495_v51 = vmax.f32 %v12152_v33, 0.0  ;;  %v14197_v39 = vld [vmem:[%s19019_s0 + $0xf0] ss:$28 sps:$4 sm:$0xff]   ;;  %v16999_v33 = vld [vmem:[%s19019_s0 + $0x358] ss:$28 sps:$4 sm:$0xff]   ;;  %v19166_v19 = vmov 0  }
 0x31b   :  { %v6502_v5 = vmax.f32 %v12153_v26, 0.0  ;;  %5806 = vmatmul.mubr.bf16.gmra.mrb[136].mxu1 %v16597_v52  ;;  %v14198_v52 = vld [vmem:[%s19019_s0 + $0x12c] ss:$28 sps:$4 sm:$0xff]   ;;  %v13692_v26 = vld [vmem:[%s19021_s3] ss:$16 sps:$4 sm:$0xff]  }
 0x31c   :  { %v6503_v4 = vmax.f32 %v12154_v17, 0.0  ;;  %5815 = vmatprep.mubr.bf16.mxu1 %v16610_v15  ;;  %v14199_v15 = vld [vmem:[%s19019_s0 + $0x128] ss:$28 sps:$4 sm:$0xff]   ;;  %v13695_v17 = vld [vmem:[%s19021_s3 + $0x20] ss:$16 sps:$4 sm:$0xff]  }
 0x31d   :  { %v16862_v18 = vpack.c.bf16 %v6502_v5, %v6494_v20  ;;  %5157 = vmatmul.mubr.bf16.gmra.mrb[76].mxu0 %v14195_v36  ;;  %v13697_v60 = vld [vmem:[%s19021_s3 + $0x24] ss:$16 sps:$4 sm:$0xff]  }
 0x31e   :  { %v16864_v41 = vpack.c.bf16 %v6503_v4, %v6495_v51  ;;  %5166 = vmatprep.mubr.bf16.mxu0 %v14196_v25  ;;  %v17015_v20 = vld [vmem:[%s19019_s0 + $0x18] ss:$28 sps:$4 sm:$0xff]   ;;  %v13701_v51 = vld [vmem:[%s19021_s3 + $0x40] ss:$16 sps:$4 sm:$0xff]  }
 0x31f   :  { %v13703_v5 = vld [vmem:[%s19021_s3 + $0x44] ss:$16 sps:$4 sm:$0xff]  }
 0x320   :  { %v13706_v4 = vld [vmem:[%s19021_s3 + $0x64] ss:$16 sps:$4 sm:$0xff]  }
 0x323   :  { %5816 = vmatmul.mubr.bf16.gmra.mrb[140].mxu1 %v16635_v22  ;;  %v14200_v22 = vld [vmem:[%s19019_s0 + $0x164] ss:$28 sps:$4 sm:$0xff]  }
 0x324   :  { %5825 = vmatprep.mubr.bf16.mxu1 %v16648_v34  ;;  %v14201_v34 = vld [vmem:[%s19019_s0 + $0x160] ss:$28 sps:$4 sm:$0xff]  }
 0x325   :  { %5167 = vmatmul.mubr.bf16.gmra.mrb[80].mxu0 %v14197_v39 }
 0x326   :  { %5176 = vmatprep.mubr.bf16.mxu0 %v14198_v52 }
 0x32b   :  { %5826 = vmatmul.mubr.bf16.gmra.mrb[144].mxu1 %v16669_v53  ;;  %v14202_v53 = vld [vmem:[%s19019_s0 + $0x19c] ss:$28 sps:$4 sm:$0xff]  }
 0x32c   :  { %5835 = vmatprep.mubr.bf16.mxu1 %v16682_v62  ;;  %v14203_v62 = vld [vmem:[%s19019_s0 + $0x198] ss:$28 sps:$4 sm:$0xff]  }
 0x32d   :  { %5177 = vmatmul.mubr.bf16.gmra.mrb[84].mxu0 %v14199_v15 }
 0x32e   :  { %5186 = vmatprep.mubr.bf16.mxu0 %v14200_v22 }
 0x333   :  { %5836 = vmatmul.mubr.bf16.gmra.mrb[148].mxu1 %v16703_v21  ;;  %v14204_v21 = vld [vmem:[%s19019_s0 + $0x1d4] ss:$28 sps:$4 sm:$0xff]  }
 0x334   :  { %5845 = vmatprep.mubr.bf16.mxu1 %v16716_v2  ;;  %v13694_v2 = vld [vmem:[%s19021_s3 + $0x4] ss:$16 sps:$4 sm:$0xff]  }
 0x335   :  { %5187 = vmatmul.mubr.bf16.gmra.mrb[88].mxu0 %v14201_v34  ;;  %8194 = vmatprep.subr.bf16.mxu0 %v13694_v2  ;;  %v13722_v2 = vld [vmem:[%s19021_s3 + $0xe0] ss:$16 sps:$4 sm:$0xff]  }
 0x336   :  { %5196 = vmatprep.mubr.bf16.mxu0 %v14202_v53 }
 0x33b   :  { %5846 = vmatmul.mubr.bf16.gmra.mrb[152].mxu1 %v16737_v12  ;;  %v14205_v12 = vld [vmem:[%s19019_s0 + $0x1d0] ss:$28 sps:$4 sm:$0xff]  }
 0x33c   :  { %5855 = vmatprep.mubr.bf16.mxu1 %v16750_v29  ;;  %v14206_v29 = vld [vmem:[%s19019_s0 + $0x20c] ss:$28 sps:$4 sm:$0xff]  }
 0x33d   :  { %5197 = vmatmul.mubr.bf16.gmra.mrb[92].mxu0 %v14203_v62 }
 0x33e   :  { %5206 = vmatprep.mubr.bf16.mxu0 %v14204_v21 }
 0x343   :  { %5856 = vmatmul.mubr.bf16.gmra.mrb[156].mxu1 %v16771_v46  ;;  %v13700_v46 = vld [vmem:[%s19021_s3 + $0xc] ss:$16 sps:$4 sm:$0xff]  }
 0x344   :  { %5898 = vmatprep.mubr.bf16.mxu1 %v16784_v11  ;;  %v19165_v11 = vcombine.low %v16533_v3, %v16538_v0  ;;  %v16937_v3 = vld [vmem:[%s19019_s0 + $0x240] ss:$28 sps:$4 sm:$0xff]  }
 0x345   :  { %5207 = vmatmul.mubr.bf16.gmra.mrb[96].mxu0 %v14205_v12  ;;  %v16943_v0 = vld [vmem:[%s19019_s0 + $0x27c] ss:$28 sps:$4 sm:$0xff]  }
 0x346   :  { %5216 = vmatprep.mubr.bf16.mxu0 %v14206_v29 }
 0x34b   :  { %5899 = vmatmul.mubr.bf16.vlgmr.msra.gmra.mrb[96].mxu1 %v16803_v16  ;;  %v16929_v16 = vld [vmem:[%s19019_s0 + $0x244] ss:$28 sps:$4 sm:$0xff]  }
 0x34c   :  { %6060 = vmatpush1.bf16.msra.mxu1 %v19165_v11  ;;  %5908 = vmatprep.mubr.bf16.mxu1 %v16810_v13  ;;  %v16951_v13 = vld [vmem:[%s19019_s0 + $0x278] ss:$28 sps:$4 sm:$0xff]  }
 0x34d   :  { %8966 = vmatprep.subr.bf16.mxu1 %v13700_v46  ;;  %5217 = vmatmul.mubr.bf16.gmra.mrb[100].mxu0 %v14207_v1  ;;  %v13728_v46 = vld [vmem:[%s19021_s3 + $0x100] ss:$16 sps:$4 sm:$0xff]   ;;  %v13733_v11 = vld [vmem:[%s19021_s3 + $0x124] ss:$16 sps:$4 sm:$0xff]  }
 0x34e   :  { %5226 = vmatprep.mubr.bf16.mxu0 %v16929_v16 }
 0x353   :  { %5909 = vmatmul.mubr.bf16.gmra.mrb[100].mxu1 %v16825_v58  ;;  %v16957_v58 = vld [vmem:[%s19019_s0 + $0x2b4] ss:$28 sps:$4 sm:$0xff]  }
 0x354   :  { %5918 = vmatprep.mubr.bf16.mxu1 %v16832_v6  ;;  %v16963_v6 = vld [vmem:[%s19019_s0 + $0x2b0] ss:$28 sps:$4 sm:$0xff]  }
 0x355   :  { %5227 = vmatmul.mubr.bf16.gmra.mrb[104].mxu0 %v16937_v3 }
 0x356   :  { %5236 = vmatprep.mubr.bf16.mxu0 %v16943_v0 }
 0x35b   :  { %5919 = vmatmul.mubr.bf16.gmra.mrb[104].mxu1 %v16847_v59  ;;  %v16975_v59 = vld [vmem:[%s19019_s0 + $0x2e8] ss:$28 sps:$4 sm:$0xff]  }
 0x35c   :  { %5928 = vmatprep.mubr.bf16.mxu1 %v16854_v43  ;;  %v16993_v43 = vld [vmem:[%s19019_s0 + $0x35c] ss:$28 sps:$4 sm:$0xff]  }
 0x35d   :  { %5237 = vmatmul.mubr.bf16.gmra.mrb[108].mxu0 %v16951_v13 }
 0x35e   :  { %5246 = vmatprep.mubr.bf16.mxu0 %v16957_v58 }
 0x363   :  { %5929 = vmatmul.mubr.bf16.gmra.mrb[108].mxu1 %v14195_v36  ;;  %v13704_v36 = vld [vmem:[%s19021_s3 + $0x60] ss:$16 sps:$4 sm:$0xff]  }
 0x364   :  { %5938 = vmatprep.mubr.bf16.mxu1 %v14196_v25  ;;  %v17035_v25 = vld [vmem:[%s19019_s0 + $0x50] ss:$28 sps:$4 sm:$0xff]  }
 0x365   :  { %5247 = vmatmul.mubr.bf16.gmra.mrb[112].mxu0 %v16963_v6 }
 0x366   :  { %5256 = vmatprep.mubr.bf16.mxu0 %v16969_v44 }
 0x36b   :  { %5939 = vmatmul.mubr.bf16.gmra.mrb[112].mxu1 %v14197_v39  ;;  %v13712_v39 = vld [vmem:[%s19021_s3 + $0x84] ss:$16 sps:$4 sm:$0xff]  }
 0x36c   :  { %5948 = vmatprep.mubr.bf16.mxu1 %v14198_v52  ;;  %v13710_v52 = vld [vmem:[%s19021_s3 + $0x80] ss:$16 sps:$4 sm:$0xff]  }
 0x36d   :  { %5257 = vmatmul.mubr.bf16.gmra.mrb[116].mxu0 %v16975_v59 }
 0x36e   :  { %5266 = vmatprep.mubr.bf16.mxu0 %v16981_v23 }
 0x373   :  { %5949 = vmatmul.mubr.bf16.gmra.mrb[116].mxu1 %v14199_v15  ;;  %v13715_v15 = vld [vmem:[%s19021_s3 + $0xa4] ss:$16 sps:$4 sm:$0xff]  }
 0x374   :  { %5958 = vmatprep.mubr.bf16.mxu1 %v14200_v22  ;;  %v13713_v22 = vld [vmem:[%s19021_s3 + $0xa0] ss:$16 sps:$4 sm:$0xff]  }
 0x375   :  { %5267 = vmatmul.mubr.bf16.gmra.mrb[120].mxu0 %v16987_v35 }
 0x376   :  { %5276 = vmatprep.mubr.bf16.mxu0 %v16993_v43 }
 0x37b   :  { %5959 = vmatmul.mubr.bf16.gmra.mrb[120].mxu1 %v14201_v34  ;;  %v17056_v34 = vld [vmem:[%s19019_s0 + $0x88] ss:$28 sps:$4 sm:$0xff]  }
 0x37c   :  { %5968 = vmatprep.mubr.bf16.mxu1 %v14202_v53  ;;  %v13721_v53 = vld [vmem:[%s19021_s3 + $0xc4] ss:$16 sps:$4 sm:$0xff]  }
 0x37d   :  { %5277 = vmatmul.mubr.bf16.gmra.mrb[124].mxu0 %v16999_v33 }
 0x37e   :  { %5319 = vmatprep.mubr.bf16.mxu0 %v19166_v19 }
 0x383   :  { %5969 = vmatmul.mubr.bf16.gmra.mrb[124].mxu1 %v14203_v62  ;;  %v13719_v62 = vld [vmem:[%s19021_s3 + $0xc0] ss:$16 sps:$4 sm:$0xff]  }
 0x384   :  { %5978 = vmatprep.mubr.bf16.mxu1 %v14204_v21  ;;  %v13724_v21 = vld [vmem:[%s19021_s3 + $0xe4] ss:$16 sps:$4 sm:$0xff]  }
 0x385   :  { %11367 = vmatmul.mubr.msk.bf16.vlgmr.msra.gmra.mrb[64].mxu0 %vm3115_vm0, %v17015_v20 }
 0x386   :  { %5329 = vmatprep.mubr.bf16.mxu0 %v19166_v19  ;;  %8195 = vmatpush1.bf16.msra.mxu0 %v13692_v26  ;;  %v13746_v26 = vld [vmem:[%s19021_s3 + $0x180] ss:$16 sps:$4 sm:$0xff]  }
 0x387   :  { %8196 = vmatprep.subr.bf16.mxu0 %v13697_v60  ;;  %v13751_v60 = vld [vmem:[%s19021_s3 + $0x1a4] ss:$16 sps:$4 sm:$0xff]  }
 0x38a   :  { %8197 = vmatpush1.bf16.msra.mxu0 %v13695_v17  ;;  %v17141_v17 = vld [vmem:[%s19019_s0 + $0x168] ss:$28 sps:$4 sm:$0xff]  }
 0x38b   :  { %5979 = vmatmul.mubr.bf16.gmra.mrb[128].mxu1 %v14205_v12  ;;  %8198 = vmatprep.subr.bf16.mxu0 %v13703_v5  ;;  %v17078_v12 = vld [vmem:[%s19019_s0 + $0xc0] ss:$28 sps:$4 sm:$0xff]  }
 0x38c   :  { %5988 = vmatprep.mubr.bf16.mxu1 %v14206_v29  ;;  %v13730_v29 = vld [vmem:[%s19021_s3 + $0x104] ss:$16 sps:$4 sm:$0xff]   ;;  %v13755_v5 = vld [vmem:[%s19021_s3 + $0x1c0] ss:$16 sps:$4 sm:$0xff]  }
 0x38d   :  { %11368 = vmatmul.mubr.msk.bf16.gmra.mrb[68].mxu0 %vm3115_vm0, %v17035_v25 }
 0x38e   :  { %5339 = vmatprep.mubr.bf16.mxu0 %v19166_v19  ;;  %8199 = vmatpush1.bf16.msra.mxu0 %v13701_v51  ;;  %v13760_v51 = vld [vmem:[%s19021_s3 + $0x1e4] ss:$16 sps:$4 sm:$0xff]  }
 0x38f   :  { %8200 = vmatprep.subr.bf16.mxu0 %v13706_v4  ;;  %v17163_v4 = vld [vmem:[%s19019_s0 + $0x1a0] ss:$28 sps:$4 sm:$0xff]  }
 0x392   :  { %8201 = vmatpush1.bf16.msra.mxu0 %v13704_v36  ;;  %v17179_v36 = vld [vmem:[%s19019_s0 + $0x1d8] ss:$28 sps:$4 sm:$0xff]  }
 0x393   :  { %5989 = vmatmul.mubr.bf16.gmra.mrb[132].mxu1 %v14207_v1  ;;  %8202 = vmatprep.subr.bf16.mxu0 %v13712_v39  ;;  %v13731_v1 = vld [vmem:[%s19021_s3 + $0x120] ss:$16 sps:$4 sm:$0xff]   ;;  %v13709_v39 = vld [vmem:[%s19021_s3 + $0x2c] ss:$16 sps:$4 sm:$0xff]  }
 0x394   :  { %5998 = vmatprep.mubr.bf16.mxu1 %v16929_v16  ;;  %v17100_v16 = vld [vmem:[%s19019_s0 + $0xf8] ss:$28 sps:$4 sm:$0xff]  }
 0x395   :  { %11369 = vmatmul.mubr.msk.bf16.gmra.mrb[72].mxu0 %vm3115_vm0, %v17056_v34 }
 0x396   :  { %5349 = vmatprep.mubr.bf16.mxu0 %v19166_v19  ;;  %8203 = vmatpush1.bf16.msra.mxu0 %v13710_v52  ;;  %v13707_v52 = vld [vmem:[%s19021_s3 + $0x28] ss:$16 sps:$4 sm:$0xff]  }
 0x397   :  { %8204 = vmatprep.subr.bf16.mxu0 %v13715_v15  ;;  %v13718_v15 = vld [vmem:[%s19021_s3 + $0x4c] ss:$16 sps:$4 sm:$0xff]  }
 0x39a   :  { %8205 = vmatpush1.bf16.msra.mxu0 %v13713_v22  ;;  %v17202_v22 = vld [vmem:[%s19019_s0 + $0x210] ss:$28 sps:$4 sm:$0xff]  }
 0x39b   :  { %5999 = vmatmul.mubr.bf16.gmra.mrb[136].mxu1 %v16937_v3  ;;  %8206 = vmatprep.subr.bf16.mxu0 %v13721_v53  ;;  %v13739_v3 = vld [vmem:[%s19021_s3 + $0x144] ss:$16 sps:$4 sm:$0xff]   ;;  %v13727_v53 = vld [vmem:[%s19021_s3 + $0x6c] ss:$16 sps:$4 sm:$0xff]  }
 0x39c   :  { %6008 = vmatprep.mubr.bf16.mxu1 %v16943_v0  ;;  %v13737_v0 = vld [vmem:[%s19021_s3 + $0x140] ss:$16 sps:$4 sm:$0xff]  }
 0x39d   :  { %11370 = vmatmul.mubr.msk.bf16.gmra.mrb[76].mxu0 %vm3115_vm0, %v17078_v12 }
 0x39e   :  { %5359 = vmatprep.mubr.bf16.mxu0 %v19166_v19  ;;  %8207 = vmatpush1.bf16.msra.mxu0 %v13719_v62  ;;  %v13725_v62 = vld [vmem:[%s19021_s3 + $0x68] ss:$16 sps:$4 sm:$0xff]  }
 0x39f   :  { %8208 = vmatprep.subr.bf16.mxu0 %v13724_v21  ;;  %v13736_v21 = vld [vmem:[%s19021_s3 + $0x8c] ss:$16 sps:$4 sm:$0xff]  }
 0x3a2   :  { %8209 = vmatpush1.bf16.msra.mxu0 %v13722_v2  ;;  %v17225_v2 = vld [vmem:[%s19019_s0 + $0x248] ss:$28 sps:$4 sm:$0xff]  }
 0x3a3   :  { %6009 = vmatmul.mubr.bf16.gmra.mrb[140].mxu1 %v16951_v13  ;;  %8210 = vmatprep.subr.bf16.mxu0 %v13730_v29  ;;  %v13742_v13 = vld [vmem:[%s19021_s3 + $0x164] ss:$16 sps:$4 sm:$0xff]   ;;  %v13745_v29 = vld [vmem:[%s19021_s3 + $0xac] ss:$16 sps:$4 sm:$0xff]  }
 0x3a4   :  { %6018 = vmatprep.mubr.bf16.mxu1 %v16957_v58  ;;  %v17119_v58 = vld [vmem:[%s19019_s0 + $0x130] ss:$28 sps:$4 sm:$0xff]  }
 0x3a5   :  { %11371 = vmatmul.mubr.msk.bf16.gmra.mrb[80].mxu0 %vm3115_vm0, %v17100_v16 }
 0x3a6   :  { %5369 = vmatprep.mubr.bf16.mxu0 %v19166_v19  ;;  %8211 = vmatpush1.bf16.msra.mxu0 %v13728_v46  ;;  %v13743_v46 = vld [vmem:[%s19021_s3 + $0xa8] ss:$16 sps:$4 sm:$0xff]  }
 0x3a7   :  { %8212 = vmatprep.subr.bf16.mxu0 %v13733_v11  ;;  %v13754_v11 = vld [vmem:[%s19021_s3 + $0xcc] ss:$16 sps:$4 sm:$0xff]  }
 0x3aa   :  { %8213 = vmatpush1.bf16.msra.mxu0 %v13731_v1  ;;  %v17248_v1 = vld [vmem:[%s19019_s0 + $0x280] ss:$28 sps:$4 sm:$0xff]  }
 0x3ab   :  { %6019 = vmatmul.mubr.bf16.gmra.mrb[144].mxu1 %v16963_v6  ;;  %8214 = vmatprep.subr.bf16.mxu0 %v13739_v3  ;;  %v13740_v6 = vld [vmem:[%s19021_s3 + $0x160] ss:$16 sps:$4 sm:$0xff]   ;;  %v13763_v3 = vld [vmem:[%s19021_s3 + $0xec] ss:$16 sps:$4 sm:$0xff]  }
 0x3ac   :  { %6028 = vmatprep.mubr.bf16.mxu1 %v16969_v44  ;;  %v13748_v44 = vld [vmem:[%s19021_s3 + $0x184] ss:$16 sps:$4 sm:$0xff]  }
 0x3ad   :  { %11372 = vmatmul.mubr.msk.bf16.gmra.mrb[84].mxu0 %vm3115_vm0, %v17119_v58 }
 0x3ae   :  { %5379 = vmatprep.mubr.bf16.mxu0 %v19166_v19  ;;  %8215 = vmatpush1.bf16.msra.mxu0 %v13737_v0  ;;  %v13761_v0 = vld [vmem:[%s19021_s3 + $0xe8] ss:$16 sps:$4 sm:$0xff]  }
 0x3af   :  { %8216 = vmatprep.subr.bf16.mxu0 %v13742_v13  ;;  %v13766_v13 = vld [vmem:[%s19021_s3 + $0x10c] ss:$16 sps:$4 sm:$0xff]  }
 0x3b2   :  { %8217 = vmatpush1.bf16.msra.mxu0 %v13740_v6  ;;  %v17271_v6 = vld [vmem:[%s19019_s0 + $0x2b8] ss:$28 sps:$4 sm:$0xff]  }
 0x3b3   :  { %6029 = vmatmul.mubr.bf16.gmra.mrb[148].mxu1 %v16975_v59  ;;  %8218 = vmatprep.subr.bf16.mxu0 %v13748_v44  ;;  %v13749_v59 = vld [vmem:[%s19021_s3 + $0x1a0] ss:$16 sps:$4 sm:$0xff]   ;;  %v13769_v44 = vld [vmem:[%s19021_s3 + $0x12c] ss:$16 sps:$4 sm:$0xff]  }
 0x3b4   :  { %6038 = vmatprep.mubr.bf16.mxu1 %v16981_v23  ;;  %v13757_v23 = vld [vmem:[%s19021_s3 + $0x1c4] ss:$16 sps:$4 sm:$0xff]  }
 0x3b5   :  { %11373 = vmatmul.mubr.msk.bf16.gmra.mrb[88].mxu0 %vm3115_vm0, %v17141_v17 }
 0x3b6   :  { %5389 = vmatprep.mubr.bf16.mxu0 %v19166_v19  ;;  %8219 = vmatpush1.bf16.msra.mxu0 %v13746_v26  ;;  %v13767_v26 = vld [vmem:[%s19021_s3 + $0x128] ss:$16 sps:$4 sm:$0xff]  }
 0x3b7   :  { %8220 = vmatprep.subr.bf16.mxu0 %v13751_v60  ;;  %v13772_v60 = vld [vmem:[%s19021_s3 + $0x14c] ss:$16 sps:$4 sm:$0xff]  }
 0x3ba   :  { %8221 = vmatpush1.bf16.msra.mxu0 %v13749_v59  ;;  %v17294_v59 = vld [vmem:[%s19019_s0 + $0x2f0] ss:$28 sps:$4 sm:$0xff]  }
 0x3bb   :  { %6039 = vmatmul.mubr.bf16.gmra.mrb[152].mxu1 %v16987_v35  ;;  %8222 = vmatprep.subr.bf16.mxu0 %v13757_v23  ;;  %v13758_v35 = vld [vmem:[%s19021_s3 + $0x1e0] ss:$16 sps:$4 sm:$0xff]   ;;  %v13775_v23 = vld [vmem:[%s19021_s3 + $0x16c] ss:$16 sps:$4 sm:$0xff]  }
 0x3bc   :  { %6048 = vmatprep.mubr.bf16.mxu1 %v16993_v43  ;;  %v13790_v43 = vld [vmem:[%s19021_s3 + $0x204] ss:$16 sps:$4 sm:$0xff]  }
 0x3bd   :  { %11374 = vmatmul.mubr.msk.bf16.gmra.mrb[92].mxu0 %vm3115_vm0, %v17163_v4 }
 0x3be   :  { %5399 = vmatprep.mubr.bf16.mxu0 %v19166_v19  ;;  %8223 = vmatpush1.bf16.msra.mxu0 %v13755_v5  ;;  %v13773_v5 = vld [vmem:[%s19021_s3 + $0x168] ss:$16 sps:$4 sm:$0xff]  }
 0x3bf   :  { %8224 = vmatprep.subr.bf16.mxu0 %v13760_v51  ;;  %v13778_v51 = vld [vmem:[%s19021_s3 + $0x18c] ss:$16 sps:$4 sm:$0xff]  }
 0x3c2   :  { %8225 = vmatpush1.bf16.msra.mxu0 %v13758_v35  ;;  %v17317_v35 = vld [vmem:[%s19019_s0 + $0x328] ss:$28 sps:$4 sm:$0xff]  }
 0x3c3   :  { %6049 = vmatmul.mubr.bf16.gmra.mrb[156].mxu1 %v16999_v33  ;;  %8387 = vmatprep.subr.bf16.mxu0 %v13790_v43  ;;  %v13698_v33 = vld [vmem:[%s19021_s3 + $0x8] ss:$16 sps:$4 sm:$0xff]   ;;  %v13781_v43 = vld [vmem:[%s19021_s3 + $0x1ac] ss:$16 sps:$4 sm:$0xff]  }
 0x3c4   :  { %6091 = vmatprep.mubr.bf16.mxu1 %v19166_v19 }
 0x3c5   :  { %11375 = vmatmul.mubr.msk.bf16.gmra.mrb[96].mxu0 %vm3115_vm0, %v17179_v36 }
 0x3c6   :  { %5409 = vmatprep.mubr.bf16.mxu0 %v19166_v19 }
 0x3cb   :  { %11383 = vmatmul.mubr.msk.bf16.vlgmr.msra.gmra.mrb[96].mxu1 %vm3115_vm0, %v17015_v20  ;;  %v13716_v20 = vld [vmem:[%s19021_s3 + $0x48] ss:$16 sps:$4 sm:$0xff]  }
 0x3cc   :  { %8967 = vmatpush1.bf16.msra.mxu1 %v13698_v33  ;;  %6101 = vmatprep.mubr.bf16.mxu1 %v19166_v19  ;;  %v13779_v33 = vld [vmem:[%s19021_s3 + $0x1a8] ss:$16 sps:$4 sm:$0xff]  }
 0x3cd   :  { %8968 = vmatprep.subr.bf16.mxu1 %v13709_v39  ;;  %11376 = vmatmul.mubr.msk.bf16.gmra.mrb[100].mxu0 %vm3115_vm0, %v17202_v22  ;;  %v13784_v39 = vld [vmem:[%s19021_s3 + $0x1cc] ss:$16 sps:$4 sm:$0xff]  }
 0x3ce   :  { %5419 = vmatprep.mubr.bf16.mxu0 %v19166_v19 }
 0x3d0   :  { %8969 = vmatpush1.bf16.msra.mxu1 %v13707_v52  ;;  %v17340_v52 = vld [vmem:[%s19019_s0 + $0x360] ss:$28 sps:$4 sm:$0xff]  }
 0x3d1   :  { %8970 = vmatprep.subr.bf16.mxu1 %v13718_v15  ;;  %v13787_v15 = vld [vmem:[%s19021_s3 + $0x1ec] ss:$16 sps:$4 sm:$0xff]  }
 0x3d3   :  { %11384 = vmatmul.mubr.msk.bf16.gmra.mrb[100].mxu1 %vm3115_vm0, %v17035_v25  ;;  %v13734_v25 = vld [vmem:[%s19021_s3 + $0x88] ss:$16 sps:$4 sm:$0xff]  }
 0x3d4   :  { %6111 = vmatprep.mubr.bf16.mxu1 %v19166_v19  ;;  %8971 = vmatpush1.bf16.msra.mxu1 %v13716_v20  ;;  %v13788_v20 = vld [vmem:[%s19021_s3 + $0x200] ss:$16 sps:$4 sm:$0xff]  }
 0x3d5   :  { %8972 = vmatprep.subr.bf16.mxu1 %v13727_v53  ;;  %11377 = vmatmul.mubr.msk.bf16.gmra.mrb[104].mxu0 %vm3115_vm0, %v17225_v2  ;;  %v13785_v53 = vld [vmem:[%s19021_s3 + $0x1e8] ss:$16 sps:$4 sm:$0xff]  }
 0x3d6   :  { %5429 = vmatprep.mubr.bf16.mxu0 %v19166_v19 }
 0x3d8   :  { %8973 = vmatpush1.bf16.msra.mxu1 %v13725_v62  ;;  %v13793_v62 = vld [vmem:[%s19021_s3 + $0x224] ss:$16 sps:$4 sm:$0xff]  }
 0x3d9   :  { %8974 = vmatprep.subr.bf16.mxu1 %v13736_v21  ;;  %v13791_v21 = vld [vmem:[%s19021_s3 + $0x220] ss:$16 sps:$4 sm:$0xff]  }
 0x3db   :  { %11385 = vmatmul.mubr.msk.bf16.gmra.mrb[104].mxu1 %vm3115_vm0, %v17056_v34  ;;  %v13752_v34 = vld [vmem:[%s19021_s3 + $0xc8] ss:$16 sps:$4 sm:$0xff]  }
 0x3dc   :  { %6121 = vmatprep.mubr.bf16.mxu1 %v19166_v19  ;;  %8975 = vmatpush1.bf16.msra.mxu1 %v13734_v25  ;;  %v13799_v25 = vld [vmem:[%s19021_s3 + $0x244] ss:$16 sps:$4 sm:$0xff]  }
 0x3dd   :  { %8976 = vmatprep.subr.bf16.mxu1 %v13745_v29  ;;  %11378 = vmatmul.mubr.msk.bf16.gmra.mrb[108].mxu0 %vm3115_vm0, %v17248_v1  ;;  %v13797_v29 = vld [vmem:[%s19021_s3 + $0x240] ss:$16 sps:$4 sm:$0xff]  }
 0x3de   :  { %5439 = vmatprep.mubr.bf16.mxu0 %v19166_v19 }
 0x3e0   :  { %8977 = vmatpush1.bf16.msra.mxu1 %v13743_v46  ;;  %v13802_v46 = vld [vmem:[%s19021_s3 + $0x264] ss:$16 sps:$4 sm:$0xff]  }
 0x3e1   :  { %8978 = vmatprep.subr.bf16.mxu1 %v13754_v11  ;;  %v13808_v11 = vld [vmem:[%s19021_s3 + $0x284] ss:$16 sps:$4 sm:$0xff]  }
 0x3e3   :  { %11386 = vmatmul.mubr.msk.bf16.gmra.mrb[108].mxu1 %vm3115_vm0, %v17078_v12  ;;  %v13764_v12 = vld [vmem:[%s19021_s3 + $0x108] ss:$16 sps:$4 sm:$0xff]  }
 0x3e4   :  { %6131 = vmatprep.mubr.bf16.mxu1 %v19166_v19  ;;  %8979 = vmatpush1.bf16.msra.mxu1 %v13752_v34  ;;  %v13806_v34 = vld [vmem:[%s19021_s3 + $0x280] ss:$16 sps:$4 sm:$0xff]  }
 0x3e5   :  { %8980 = vmatprep.subr.bf16.mxu1 %v13763_v3  ;;  %11379 = vmatmul.mubr.msk.bf16.gmra.mrb[112].mxu0 %vm3115_vm0, %v17271_v6  ;;  %v13811_v3 = vld [vmem:[%s19021_s3 + $0x2a4] ss:$16 sps:$4 sm:$0xff]  }
 0x3e6   :  { %5449 = vmatprep.mubr.bf16.mxu0 %v19166_v19 }
 0x3e8   :  { %8981 = vmatpush1.bf16.msra.mxu1 %v13761_v0  ;;  %v13817_v0 = vld [vmem:[%s19021_s3 + $0x2c4] ss:$16 sps:$4 sm:$0xff]  }
 0x3e9   :  { %8982 = vmatprep.subr.bf16.mxu1 %v13766_v13  ;;  %v13815_v13 = vld [vmem:[%s19021_s3 + $0x2c0] ss:$16 sps:$4 sm:$0xff]  }
 0x3eb   :  { %11387 = vmatmul.mubr.msk.bf16.gmra.mrb[112].mxu1 %vm3115_vm0, %v17100_v16  ;;  %v13770_v16 = vld [vmem:[%s19021_s3 + $0x148] ss:$16 sps:$4 sm:$0xff]  }
 0x3ec   :  { %6141 = vmatprep.mubr.bf16.mxu1 %v19166_v19  ;;  %8983 = vmatpush1.bf16.msra.mxu1 %v13764_v12  ;;  %v13820_v12 = vld [vmem:[%s19021_s3 + $0x2e4] ss:$16 sps:$4 sm:$0xff]  }
 0x3ed   :  { %8984 = vmatprep.subr.bf16.mxu1 %v13769_v44  ;;  %11380 = vmatmul.mubr.msk.bf16.gmra.mrb[116].mxu0 %vm3115_vm0, %v17294_v59  ;;  %v13826_v44 = vld [vmem:[%s19021_s3 + $0x304] ss:$16 sps:$4 sm:$0xff]  }
 0x3ee   :  { %5459 = vmatprep.mubr.bf16.mxu0 %v19166_v19 }
 0x3f0   :  { %8985 = vmatpush1.bf16.msra.mxu1 %v13767_v26  ;;  %v13824_v26 = vld [vmem:[%s19021_s3 + $0x300] ss:$16 sps:$4 sm:$0xff]  }
 0x3f1   :  { %8986 = vmatprep.subr.bf16.mxu1 %v13772_v60  ;;  %v13829_v60 = vld [vmem:[%s19021_s3 + $0x324] ss:$16 sps:$4 sm:$0xff]  }
 0x3f3   :  { %11388 = vmatmul.mubr.msk.bf16.gmra.mrb[116].mxu1 %vm3115_vm0, %v17119_v58  ;;  %v13776_v58 = vld [vmem:[%s19021_s3 + $0x188] ss:$16 sps:$4 sm:$0xff]  }
 0x3f4   :  { %6151 = vmatprep.mubr.bf16.mxu1 %v19166_v19  ;;  %8987 = vmatpush1.bf16.msra.mxu1 %v13770_v16  ;;  %v13835_v16 = vld [vmem:[%s19021_s3 + $0x344] ss:$16 sps:$4 sm:$0xff]  }
 0x3f5   :  { %8988 = vmatprep.subr.bf16.mxu1 %v13775_v23  ;;  %11381 = vmatmul.mubr.msk.bf16.gmra.mrb[120].mxu0 %vm3115_vm0, %v17317_v35  ;;  %v13833_v23 = vld [vmem:[%s19021_s3 + $0x340] ss:$16 sps:$4 sm:$0xff]  }
 0x3f6   :  { %5469 = vmatprep.mubr.bf16.mxu0 %v19166_v19 }
 0x3f8   :  { %8989 = vmatpush1.bf16.msra.mxu1 %v13773_v5  ;;  %v13838_v5 = vld [vmem:[%s19021_s3 + $0x364] ss:$16 sps:$4 sm:$0xff]  }
 0x3f9   :  { %8990 = vmatprep.subr.bf16.mxu1 %v13778_v51  ;;  %v13844_v51 = vld [vmem:[%s19021_s3 + $0x384] ss:$16 sps:$4 sm:$0xff]  }
 0x3fb   :  { %11389 = vmatmul.mubr.msk.bf16.gmra.mrb[120].mxu1 %vm3115_vm0, %v17141_v17  ;;  %v13782_v17 = vld [vmem:[%s19021_s3 + $0x1c8] ss:$16 sps:$4 sm:$0xff]  }
 0x3fc   :  { %6161 = vmatprep.mubr.bf16.mxu1 %v19166_v19  ;;  %8991 = vmatpush1.bf16.msra.mxu1 %v13776_v58  ;;  %v13842_v58 = vld [vmem:[%s19021_s3 + $0x380] ss:$16 sps:$4 sm:$0xff]  }
 0x3fd   :  { %8992 = vmatprep.subr.bf16.mxu1 %v13781_v43  ;;  %11382 = vmatmul.mubr.msk.bf16.gmra.mrb[124].mxu0 %vm3115_vm0, %v17340_v52  ;;  %v13847_v43 = vld [vmem:[%s19021_s3 + $0x3a4] ss:$16 sps:$4 sm:$0xff]  }
 0x3fe   :  { %8226 = vmatprep.mubr.bf16.mxu0 %v16310_v54 }
 0x400   :  { %8993 = vmatpush1.bf16.msra.mxu1 %v13779_v33  ;;  %v13853_v33 = vld [vmem:[%s19021_s3 + $0x3c4] ss:$16 sps:$4 sm:$0xff]  }
 0x401   :  { %8994 = vmatprep.subr.bf16.mxu1 %v13784_v39  ;;  %v13851_v39 = vld [vmem:[%s19021_s3 + $0x3c0] ss:$16 sps:$4 sm:$0xff]  }
 0x403   :  { %11390 = vmatmul.mubr.msk.bf16.gmra.mrb[124].mxu1 %vm3115_vm0, %v17163_v4  ;;  %v13796_v4 = vld [vmem:[%s19021_s3 + $0x20c] ss:$16 sps:$4 sm:$0xff]  }
 0x404   :  { %6171 = vmatprep.mubr.bf16.mxu1 %v19166_v19  ;;  %8995 = vmatpush1.bf16.msra.mxu1 %v13782_v17  ;;  %v13856_v17 = vld [vmem:[%s19021_s3 + $0x3e4] ss:$16 sps:$4 sm:$0xff]  }
 0x405   :  { %8996 = vmatprep.subr.bf16.mxu1 %v13787_v15  ;;  %8227 = vmatmul.mubr.bf16.vlgmr.msra.gmra.mrb[128].mxu0 %v16300_v63  ;;  %v19167_v15 = vld [vmem:[#allocation14_spill] sm:$0xff] }
 0x406   :  { %8236 = vmatprep.mubr.bf16.mxu0 %v16352_v30  ;;  %8388 = vmatpush1.bf16.msra.mxu0 %v13788_v20  ;;  %v19168_v20 = vld [vmem:[#allocation13_spill] sm:$0xff] }
 0x407   :  { %8389 = vmatprep.subr.bf16.mxu0 %v13793_v62  ;;  %v13794_v62 = vld [vmem:[%s19021_s3 + $0x208] ss:$16 sps:$4 sm:$0xff]  }
 0x408   :  { %8997 = vmatpush1.bf16.msra.mxu1 %v13785_v53  ;;  %v19169_v53 = vld [vmem:[#allocation16_spill] sm:$0xff] }
 0x409   :  { %9159 = vmatprep.subr.bf16.mxu1 %v13796_v4  ;;  %v13814_v4 = vld [vmem:[%s19021_s3 + $0x24c] ss:$16 sps:$4 sm:$0xff]  }
 0x40a   :  { %8390 = vmatpush1.bf16.msra.mxu0 %v13791_v21  ;;  %v19170_v21 = vld [vmem:[#allocation15_spill] sm:$0xff] }
 0x40b   :  { %11391 = vmatmul.mubr.msk.bf16.gmra.mrb[128].mxu1 %vm3115_vm0, %v17179_v36  ;;  %8391 = vmatprep.subr.bf16.mxu0 %v13799_v25  ;;  %v13800_v36 = vld [vmem:[%s19021_s3 + $0x260] ss:$16 sps:$4 sm:$0xff]  }
 0x40c   :  { %6181 = vmatprep.mubr.bf16.mxu1 %v19166_v19  ;;  %v19171_v25 = vld [vmem:[#allocation18_spill] sm:$0xff] }
 0x40d   :  { %8237 = vmatmul.mubr.bf16.gmra.mrb[132].mxu0 %v16343_v45 }
 0x40e   :  { %8246 = vmatprep.mubr.bf16.mxu0 %v16394_v49  ;;  %8392 = vmatpush1.bf16.msra.mxu0 %v13797_v29  ;;  %v19172_v29 = vld [vmem:[#allocation8_spill] sm:$0xff] }
 0x40f   :  { %8393 = vmatprep.subr.bf16.mxu0 %v13802_v46  ;;  %v573_v46 = vsub.s32 4, %v19172_v29 }
 0x412   :  { %8394 = vmatpush1.bf16.msra.mxu0 %v13800_v36  ;;  %v577_v36 = vsub.s32 5, %v19172_v29 }
 0x413   :  { %11392 = vmatmul.mubr.msk.bf16.gmra.mrb[132].mxu1 %vm3115_vm0, %v17202_v22  ;;  %8395 = vmatprep.subr.bf16.mxu0 %v13808_v11  ;;  %v13809_v22 = vld [vmem:[%s19021_s3 + $0x2a0] ss:$16 sps:$4 sm:$0xff]   ;;  %v13821_v11 = vld [vmem:[%s19021_s3 + $0x268] ss:$16 sps:$4 sm:$0xff]  }
 0x414   :  { %6191 = vmatprep.mubr.bf16.mxu1 %v19166_v19 }
 0x415   :  { %8247 = vmatmul.mubr.bf16.gmra.mrb[136].mxu0 %v16385_v37 }
 0x416   :  { %8256 = vmatprep.mubr.bf16.mxu0 %v16436_v32  ;;  %8396 = vmatpush1.bf16.msra.mxu0 %v13806_v34  ;;  %v13832_v34 = vld [vmem:[%s19021_s3 + $0x28c] ss:$16 sps:$4 sm:$0xff]  }
 0x417   :  { %8397 = vmatprep.subr.bf16.mxu0 %v13811_v3  ;;  %v19173_v3 = vld [vmem:[#allocation17_spill] sm:$0xff] }
 0x41a   :  { %8398 = vmatpush1.bf16.msra.mxu0 %v13809_v22 }
 0x41b   :  { %11393 = vmatmul.mubr.msk.bf16.gmra.mrb[136].mxu1 %vm3115_vm0, %v17225_v2  ;;  %8399 = vmatprep.subr.bf16.mxu0 %v13817_v0  ;;  %v13818_v2 = vld [vmem:[%s19021_s3 + $0x2e0] ss:$16 sps:$4 sm:$0xff]  }
 0x41c   :  { %6201 = vmatprep.mubr.bf16.mxu1 %v19166_v19 }
 0x41d   :  { %8257 = vmatmul.mubr.bf16.gmra.mrb[140].mxu0 %v16427_v50 }
 0x41e   :  { %8266 = vmatprep.mubr.bf16.mxu0 %v16466_v8  ;;  %8400 = vmatpush1.bf16.msra.mxu0 %v13815_v13  ;;  %v13830_v13 = vld [vmem:[%s19021_s3 + $0x288] ss:$16 sps:$4 sm:$0xff]  }
 0x41f   :  { %8401 = vmatprep.subr.bf16.mxu0 %v13820_v12 }
 0x422   :  { %8402 = vmatpush1.bf16.msra.mxu0 %v13818_v2  ;;  %v13841_v2 = vld [vmem:[%s19021_s3 + $0x2ac] ss:$16 sps:$4 sm:$0xff]  }
 0x423   :  { %11394 = vmatmul.mubr.msk.bf16.gmra.mrb[140].mxu1 %vm3115_vm0, %v17248_v1  ;;  %8403 = vmatprep.subr.bf16.mxu0 %v13826_v44  ;;  %v13827_v1 = vld [vmem:[%s19021_s3 + $0x320] ss:$16 sps:$4 sm:$0xff]  }
 0x424   :  { %6211 = vmatprep.mubr.bf16.mxu1 %v19166_v19 }
 0x425   :  { %8267 = vmatmul.mubr.bf16.gmra.mrb[144].mxu0 %v16463_v9 }
 0x426   :  { %8276 = vmatprep.mubr.bf16.mxu0 %v16517_v48  ;;  %8404 = vmatpush1.bf16.msra.mxu0 %v13824_v26 }
 0x427   :  { %8405 = vmatprep.subr.bf16.mxu0 %v13829_v60 }
 0x42a   :  { %8406 = vmatpush1.bf16.msra.mxu0 %v13827_v1 }
 0x42b   :  { %11395 = vmatmul.mubr.msk.bf16.gmra.mrb[144].mxu1 %vm3115_vm0, %v17271_v6  ;;  %8407 = vmatprep.subr.bf16.mxu0 %v13835_v16  ;;  %v13836_v6 = vld [vmem:[%s19021_s3 + $0x360] ss:$16 sps:$4 sm:$0xff]  }
 0x42c   :  { %6221 = vmatprep.mubr.bf16.mxu1 %v19166_v19 }
 0x42d   :  { %8277 = vmatmul.mubr.bf16.gmra.mrb[148].mxu0 %v16513_v10 }
 0x42e   :  { %8286 = vmatprep.mubr.bf16.mxu0 %v16575_v57  ;;  %8408 = vmatpush1.bf16.msra.mxu0 %v13833_v23 }
 0x42f   :  { %8409 = vmatprep.subr.bf16.mxu0 %v13838_v5  ;;  %v13839_v5 = vld [vmem:[%s19021_s3 + $0x2a8] ss:$16 sps:$4 sm:$0xff]  }
 0x432   :  { %8410 = vmatpush1.bf16.msra.mxu0 %v13836_v6 }
 0x433   :  { %11396 = vmatmul.mubr.msk.bf16.gmra.mrb[148].mxu1 %vm3115_vm0, %v17294_v59  ;;  %8411 = vmatprep.subr.bf16.mxu0 %v13844_v51  ;;  %v13845_v59 = vld [vmem:[%s19021_s3 + $0x3a0] ss:$16 sps:$4 sm:$0xff]   ;;  %v13850_v51 = vld [vmem:[%s19021_s3 + $0x2cc] ss:$16 sps:$4 sm:$0xff]  }
 0x434   :  { %6231 = vmatprep.mubr.bf16.mxu1 %v19166_v19 }
 0x435   :  { %8287 = vmatmul.mubr.bf16.gmra.mrb[152].mxu0 %v16572_v31 }
 0x436   :  { %8296 = vmatprep.mubr.bf16.mxu0 %v16616_v27  ;;  %8412 = vmatpush1.bf16.msra.mxu0 %v13842_v58 }
 0x437   :  { %8413 = vmatprep.subr.bf16.mxu0 %v13847_v43  ;;  %v19175_v43 = vld [vmem:[#allocation19_spill] sm:$0xff] }
 0x43a   :  { %8414 = vmatpush1.bf16.msra.mxu0 %v13845_v59 }
 0x43b   :  { %11397 = vmatmul.mubr.msk.bf16.gmra.mrb[152].mxu1 %vm3115_vm0, %v17317_v35  ;;  %8415 = vmatprep.subr.bf16.mxu0 %v13853_v33  ;;  %v13854_v35 = vld [vmem:[%s19021_s3 + $0x3e0] ss:$16 sps:$4 sm:$0xff]  }
 0x43c   :  { %6241 = vmatprep.mubr.bf16.mxu1 %v19166_v19  ;;  %v13886_v19 = vld [vmem:[%s19021_s3 + $0x404] ss:$16 sps:$4 sm:$0xff]  }
 0x43d   :  { %8297 = vmatmul.mubr.bf16.gmra.mrb[156].mxu0 %v16613_v7 }
 0x43e   :  { %8306 = vmatprep.mubr.bf16.mxu0 %v19167_v15  ;;  %8416 = vmatpush1.bf16.msra.mxu0 %v13851_v39 }
 0x43f   :  { %8417 = vmatprep.subr.bf16.mxu0 %v13856_v17  ;;  %v13848_v17 = vld [vmem:[%s19021_s3 + $0x2c8] ss:$16 sps:$4 sm:$0xff]  }
 0x442   :  { %8418 = vmatpush1.bf16.msra.mxu0 %v13854_v35 }
 0x443   :  { %11398 = vmatmul.mubr.msk.bf16.gmra.mrb[156].mxu1 %vm3115_vm0, %v17340_v52  ;;  %8580 = vmatprep.subr.bf16.mxu0 %v13886_v19  ;;  %v13805_v52 = vld [vmem:[%s19021_s3 + $0x22c] ss:$16 sps:$4 sm:$0xff]  }
 0x444   :  { %8998 = vmatprep.mubr.bf16.mxu1 %v16310_v54  ;;  %v13803_v54 = vld [vmem:[%s19021_s3 + $0x228] ss:$16 sps:$4 sm:$0xff]  }
 0x445   :  { %8307 = vmatmul.mubr.bf16.gmra.mrb[160].mxu0 %v19168_v20 }
 0x446   :  { %8316 = vmatprep.mubr.bf16.mxu0 %v19169_v53 }
 0x44b   :  { %8999 = vmatmul.mubr.bf16.vlgmr.msra.gmra.mrb[160].mxu1 %v16300_v63  ;;  %v13812_v63 = vld [vmem:[%s19021_s3 + $0x248] ss:$16 sps:$4 sm:$0xff]  }
 0x44c   :  { %9008 = vmatprep.mubr.bf16.mxu1 %v16352_v30  ;;  %9160 = vmatpush1.bf16.msra.mxu1 %v13794_v62  ;;  %v13823_v30 = vld [vmem:[%s19021_s3 + $0x26c] ss:$16 sps:$4 sm:$0xff]  }
 0x44d   :  { %9161 = vmatprep.subr.bf16.mxu1 %v13805_v52  ;;  %8317 = vmatmul.mubr.bf16.gmra.mrb[164].mxu0 %v19170_v21  ;;  %v13859_v62 = vld [vmem:[%s19021_s3 + $0x2ec] ss:$16 sps:$4 sm:$0xff]  }
 0x44e   :  { %8326 = vmatprep.mubr.bf16.mxu0 %v19171_v25 }
 0x450   :  { %9162 = vmatpush1.bf16.msra.mxu1 %v13803_v54 }
 0x451   :  { %9163 = vmatprep.subr.bf16.mxu1 %v13814_v4 }
 0x453   :  { %9009 = vmatmul.mubr.bf16.gmra.mrb[164].mxu1 %v16343_v45  ;;  %v17534_v45 = vld [vmem:[%s19020_s2] sm:$0xff] }
 0x454   :  { %9018 = vmatprep.mubr.bf16.mxu1 %v16394_v49  ;;  %9164 = vmatpush1.bf16.msra.mxu1 %v13812_v63  ;;  %v17537_v22 = vrot.slane %v17534_v45, %v573_v46  ;;  %v19174_v49 = vld [vmem:[#allocation20_spill] sm:$0xff]  ;;  %v17541_v0 = vrot.slane %v17534_v45, %v577_v36  ;;  %v13857_v36 = vld [vmem:[%s19021_s3 + $0x2e8] ss:$16 sps:$4 sm:$0xff]  }
 0x455   :  { %9165 = vmatprep.subr.bf16.mxu1 %v13823_v30  ;;  %8327 = vmatmul.mubr.bf16.gmra.mrb[168].mxu0 %v19173_v3 }
 0x456   :  { %8336 = vmatprep.mubr.bf16.mxu0 %v19174_v49 }
 0x458   :  { %9166 = vmatpush1.bf16.msra.mxu1 %v13821_v11  ;;  %v5321_v12 = vpop.f32.mrb[64].mxu0 }
 0x459   :  { %9167 = vmatprep.subr.bf16.mxu1 %v13832_v34  ;;  %v12155_v44 = vadd.f32 %v5321_v12, %v17537_v22  ;;  %v5323_v26 = vpop.f32.mrb[65].mxu0  ;;  %v13862_v34 = vld [vmem:[%s19021_s3 + $0x30c] ss:$16 sps:$4 sm:$0xff]  }
 0x45a   :  { %v12156_v60 = vadd.f32 %v5323_v26, %v17541_v0  ;;  %v5325_v1 = vpop.f32.mrb[66].mxu0  ;;  %v19177_v12 = vld [vmem:[#allocation21_spill] sm:$0xff] }
 0x45b   :  { %9019 = vmatmul.mubr.bf16.gmra.mrb[168].mxu1 %v16385_v37  ;;  %v12157_v16 = vadd.f32 %v5325_v1, %v17537_v22  ;;  %v5327_v23 = vpop.f32.mrb[67].mxu0  ;;  %v6256_v58 = vmax.f32 %v12155_v44, 0.0 }
 0x45c   :  { %9028 = vmatprep.mubr.bf16.mxu1 %v16436_v32  ;;  %9168 = vmatpush1.bf16.msra.mxu1 %v13830_v13  ;;  %v12158_v6 = vadd.f32 %v5327_v23, %v17541_v0  ;;  %v6257_v59 = vmax.f32 %v12156_v60, 0.0  ;;  %v19176_v32 = vld [vmem:[#allocation22_spill] sm:$0xff]  ;;  %v13860_v60 = vld [vmem:[%s19021_s3 + $0x308] ss:$16 sps:$4 sm:$0xff]   ;;  %v13865_v23 = vld [vmem:[%s19021_s3 + $0x32c] ss:$16 sps:$4 sm:$0xff]  }
 0x45d   :  { %9169 = vmatprep.subr.bf16.mxu1 %v13841_v2  ;;  %v6264_v37 = vmax.f32 %v12157_v16, 0.0  ;;  %8337 = vmatmul.mubr.bf16.gmra.mrb[172].mxu0 %v19175_v43 }
 0x45e   :  { %v6265_v33 = vmax.f32 %v12158_v6, 0.0  ;;  %8346 = vmatprep.mubr.bf16.mxu0 %v19176_v32 }
 0x45f   :  { %v17563_v39 = vpack.c.bf16 %v6264_v37, %v6256_v58 }
 0x460   :  { %9170 = vmatpush1.bf16.msra.mxu1 %v13839_v5  ;;  %v17568_v35 = vpack.c.bf16 %v6265_v33, %v6257_v59  ;;  %v5331_v19 = vpop.f32.mrb[68].mxu0  ;;  %v13863_v33 = vld [vmem:[%s19021_s3 + $0x328] ss:$16 sps:$4 sm:$0xff]  }
 0x461   :  { %9171 = vmatprep.subr.bf16.mxu1 %v13850_v51  ;;  %v12159_v52 = vadd.f32 %v5331_v19, %v17537_v22  ;;  %v5333_v54 = vpop.f32.mrb[69].mxu0  ;;  %v13868_v19 = vld [vmem:[%s19021_s3 + $0x34c] ss:$16 sps:$4 sm:$0xff]  }
 0x462   :  { %v12160_v4 = vadd.f32 %v5333_v54, %v17541_v0  ;;  %v5335_v63 = vpop.f32.mrb[70].mxu0 }
 0x463   :  { %9029 = vmatmul.mubr.bf16.gmra.mrb[172].mxu1 %v16427_v50  ;;  %v12161_v30 = vadd.f32 %v5335_v63, %v17537_v22  ;;  %v5337_v46 = vpop.f32.mrb[71].mxu0  ;;  %v6272_v13 = vmax.f32 %v12159_v52, 0.0  ;;  %v19179_v52 = vld [vmem:[#allocation23_spill] sm:$0xff] }
 0x464   :  { %9038 = vmatprep.mubr.bf16.mxu1 %v16466_v8  ;;  %9172 = vmatpush1.bf16.msra.mxu1 %v13848_v17  ;;  %v12162_v11 = vadd.f32 %v5337_v46, %v17541_v0  ;;  %v6273_v2 = vmax.f32 %v12160_v4, 0.0  ;;  %v19178_v8 = vld [vmem:[#allocation24_spill] sm:$0xff] }
 0x465   :  { %9173 = vmatprep.subr.bf16.mxu1 %v13859_v62  ;;  %v6280_v50 = vmax.f32 %v12161_v30, 0.0  ;;  %8347 = vmatmul.mubr.bf16.gmra.mrb[176].mxu0 %v19177_v12  ;;  %v13866_v30 = vld [vmem:[%s19021_s3 + $0x348] ss:$16 sps:$4 sm:$0xff]  }
 0x466   :  { %v6281_v44 = vmax.f32 %v12162_v11, 0.0  ;;  %8356 = vmatprep.mubr.bf16.mxu0 %v19178_v8  ;;  %v13871_v11 = vld [vmem:[%s19021_s3 + $0x36c] ss:$16 sps:$4 sm:$0xff]  }
 0x467   :  { %v17587_v26 = vpack.c.bf16 %v6280_v50, %v6272_v13 }
 0x468   :  { %9174 = vmatpush1.bf16.msra.mxu1 %v13857_v36  ;;  %v17592_v1 = vpack.c.bf16 %v6281_v44, %v6273_v2  ;;  %v5341_v16 = vpop.f32.mrb[72].mxu0 }
 0x469   :  { %9175 = vmatprep.subr.bf16.mxu1 %v13862_v34  ;;  %v12163_v5 = vadd.f32 %v5341_v16, %v17537_v22  ;;  %v5343_v6 = vpop.f32.mrb[73].mxu0  ;;  %v13869_v16 = vld [vmem:[%s19021_s3 + $0x368] ss:$16 sps:$4 sm:$0xff]  }
 0x46a   :  { %v12164_v51 = vadd.f32 %v5343_v6, %v17541_v0  ;;  %v5345_v58 = vpop.f32.mrb[74].mxu0 }
 0x46b   :  { %9039 = vmatmul.mubr.bf16.gmra.mrb[176].mxu1 %v16463_v9  ;;  %v12165_v37 = vadd.f32 %v5345_v58, %v17537_v22  ;;  %v5347_v59 = vpop.f32.mrb[75].mxu0  ;;  %v6288_v62 = vmax.f32 %v12163_v5, 0.0  ;;  %v13874_v5 = vld [vmem:[%s19021_s3 + $0x38c] ss:$16 sps:$4 sm:$0xff]  }
 0x46c   :  { %9048 = vmatprep.mubr.bf16.mxu1 %v16517_v48  ;;  %9176 = vmatpush1.bf16.msra.mxu1 %v13860_v60  ;;  %v12166_v17 = vadd.f32 %v5347_v59, %v17541_v0  ;;  %v6289_v54 = vmax.f32 %v12164_v51, 0.0  ;;  %v19180_v48 = vld [vmem:[#allocation7_spill] sm:$0xff]  ;;  %v19181_v51 = vld [vmem:[#allocation2_spill] sm:$0xff] }
 0x46d   :  { %9177 = vmatprep.subr.bf16.mxu1 %v13865_v23  ;;  %v6296_v9 = vmax.f32 %v12165_v37, 0.0  ;;  %8357 = vmatmul.mubr.bf16.gmra.mrb[180].mxu0 %v19179_v52 }
 0x46e   :  { %v6297_v4 = vmax.f32 %v12166_v17, 0.0  ;;  %8366 = vmatprep.mubr.bf16.mxu0 %v19180_v48 }
 0x46f   :  { %v17611_v63 = vpack.c.bf16 %v6296_v9, %v6288_v62  ;;  %v13877_v62 = vld [vmem:[%s19021_s3 + $0x3ac] ss:$16 sps:$4 sm:$0xff]  }
 0x470   :  { %9178 = vmatpush1.bf16.msra.mxu1 %v13863_v33  ;;  %v17616_v46 = vpack.c.bf16 %v6297_v4, %v6289_v54  ;;  %v5351_v36 = vpop.f32.mrb[76].mxu0  ;;  %v13872_v33 = vld [vmem:[%s19021_s3 + $0x388] ss:$16 sps:$4 sm:$0xff]  }
 0x471   :  { %9179 = vmatprep.subr.bf16.mxu1 %v13868_v19  ;;  %v12167_v34 = vadd.f32 %v5351_v36, %v17537_v22  ;;  %v5353_v13 = vpop.f32.mrb[77].mxu0 }
 0x472   :  { %v12168_v50 = vadd.f32 %v5353_v13, %v17541_v0  ;;  %v5355_v2 = vpop.f32.mrb[78].mxu0 }
 0x473   :  { %9049 = vmatmul.mubr.bf16.gmra.mrb[180].mxu1 %v16513_v10  ;;  %v12169_v44 = vadd.f32 %v5355_v2, %v17537_v22  ;;  %v5357_v60 = vpop.f32.mrb[79].mxu0  ;;  %v6304_v6 = vmax.f32 %v12167_v34, 0.0  ;;  %v13875_v34 = vld [vmem:[%s19021_s3 + $0x3a8] ss:$16 sps:$4 sm:$0xff]  }
 0x474   :  { %9058 = vmatprep.mubr.bf16.mxu1 %v16575_v57  ;;  %9180 = vmatpush1.bf16.msra.mxu1 %v13866_v30  ;;  %v12170_v23 = vadd.f32 %v5357_v60, %v17541_v0  ;;  %v6305_v58 = vmax.f32 %v12168_v50, 0.0  ;;  %v19182_v57 = vld [vmem:[#allocation9_spill] sm:$0xff] }
 0x475   :  { %9181 = vmatprep.subr.bf16.mxu1 %v13871_v11  ;;  %v6312_v10 = vmax.f32 %v12169_v44, 0.0  ;;  %8367 = vmatmul.mubr.bf16.gmra.mrb[184].mxu0 %v19181_v51  ;;  %v13880_v50 = vld [vmem:[%s19021_s3 + $0x3cc] ss:$16 sps:$4 sm:$0xff]  }
 0x476   :  { %v6313_v37 = vmax.f32 %v12170_v23, 0.0  ;;  %8376 = vmatprep.mubr.bf16.mxu0 %v19182_v57  ;;  %v19183_v44 = vld [vmem:[#allocation3_spill] sm:$0xff] }
 0x477   :  { %v17635_v59 = vpack.c.bf16 %v6312_v10, %v6304_v6 }
 0x478   :  { %9182 = vmatpush1.bf16.msra.mxu1 %v13869_v16  ;;  %v17640_v17 = vpack.c.bf16 %v6313_v37, %v6305_v58  ;;  %v5361_v19 = vpop.f32.mrb[80].mxu0  ;;  %v13883_v58 = vld [vmem:[%s19021_s3 + $0x3ec] ss:$16 sps:$4 sm:$0xff]  }
 0x479   :  { %9183 = vmatprep.subr.bf16.mxu1 %v13874_v5  ;;  %v12171_v9 = vadd.f32 %v5361_v19, %v17537_v22  ;;  %v5363_v54 = vpop.f32.mrb[81].mxu0  ;;  %v13878_v5 = vld [vmem:[%s19021_s3 + $0x3c8] ss:$16 sps:$4 sm:$0xff]  }
 0x47a   :  { %v12172_v4 = vadd.f32 %v5363_v54, %v17541_v0  ;;  %v5365_v30 = vpop.f32.mrb[82].mxu0 }
 0x47b   :  { %9059 = vmatmul.mubr.bf16.gmra.mrb[184].mxu1 %v16572_v31  ;;  %v12173_v36 = vadd.f32 %v5365_v30, %v17537_v22  ;;  %v5367_v11 = vpop.f32.mrb[83].mxu0  ;;  %v6320_v2 = vmax.f32 %v12171_v9, 0.0  ;;  %v13884_v9 = vld [vmem:[%s19021_s3 + $0x400] ss:$16 sps:$4 sm:$0xff]   ;;  %v13881_v30 = vld [vmem:[%s19021_s3 + $0x3e8] ss:$16 sps:$4 sm:$0xff]  }
 0x47c   :  { %9068 = vmatprep.mubr.bf16.mxu1 %v16616_v27  ;;  %9184 = vmatpush1.bf16.msra.mxu1 %v13872_v33  ;;  %v12174_v13 = vadd.f32 %v5367_v11, %v17541_v0  ;;  %v6321_v60 = vmax.f32 %v12172_v4, 0.0  ;;  %v19184_v27 = vld [vmem:[#allocation5_spill] sm:$0xff] }
 0x47d   :  { %9185 = vmatprep.subr.bf16.mxu1 %v13877_v62  ;;  %v6328_v31 = vmax.f32 %v12173_v36, 0.0  ;;  %8377 = vmatmul.mubr.bf16.gmra.mrb[188].mxu0 %v19183_v44  ;;  %v13889_v36 = vld [vmem:[%s19021_s3 + $0x424] ss:$16 sps:$4 sm:$0xff]   ;;  %v13892_v11 = vld [vmem:[%s19021_s3 + $0x40c] ss:$16 sps:$4 sm:$0xff]  }
 0x47e   :  { %v6329_v16 = vmax.f32 %v12174_v13, 0.0  ;;  %8419 = vmatprep.mubr.bf16.mxu0 %v19184_v27 }
 0x47f   :  { %v17659_v23 = vpack.c.bf16 %v6328_v31, %v6320_v2  ;;  %v19186_v31 = vld [vmem:[#allocation10_spill] sm:$0xff] }
 0x480   :  { %9186 = vmatpush1.bf16.msra.mxu1 %v13875_v34  ;;  %v17664_v6 = vpack.c.bf16 %v6329_v16, %v6321_v60  ;;  %v5371_v10 = vpop.f32.mrb[84].mxu0  ;;  %v13887_v60 = vld [vmem:[%s19021_s3 + $0x420] ss:$16 sps:$4 sm:$0xff]  }
 0x481   :  { %9187 = vmatprep.subr.bf16.mxu1 %v13880_v50  ;;  %v12175_v37 = vadd.f32 %v5371_v10, %v17537_v22  ;;  %v5373_v33 = vpop.f32.mrb[85].mxu0 }
 0x482   :  { %v12176_v19 = vadd.f32 %v5373_v33, %v17541_v0  ;;  %v5375_v62 = vpop.f32.mrb[86].mxu0 }
 0x483   :  { %9069 = vmatmul.mubr.bf16.gmra.mrb[188].mxu1 %v16613_v7  ;;  %v12177_v54 = vadd.f32 %v5375_v62, %v17537_v22  ;;  %v5377_v4 = vpop.f32.mrb[87].mxu0  ;;  %v6336_v34 = vmax.f32 %v12175_v37, 0.0 }
 0x484   :  { %9078 = vmatprep.mubr.bf16.mxu1 %v19167_v15  ;;  %9188 = vmatpush1.bf16.msra.mxu1 %v13878_v5  ;;  %v12178_v7 = vadd.f32 %v5377_v4, %v17541_v0  ;;  %v19185_v15 = vld [vmem:[#allocation4_spill] sm:$0xff]  ;;  %v6337_v50 = vmax.f32 %v12176_v19, 0.0 }
 0x485   :  { %9189 = vmatprep.subr.bf16.mxu1 %v13883_v58  ;;  %v6344_v13 = vmax.f32 %v12177_v54, 0.0  ;;  %8420 = vmatmul.mubr.bf16.vlgmr.msra.gmra.mrb[128].mxu0 %v19185_v15  ;;  %v13895_v5 = vld [vmem:[%s19021_s3 + $0x444] ss:$16 sps:$4 sm:$0xff]  }
 0x486   :  { %v6345_v2 = vmax.f32 %v12178_v7, 0.0  ;;  %8429 = vmatprep.mubr.bf16.mxu0 %v19186_v31  ;;  %8581 = vmatpush1.bf16.msra.mxu0 %v13884_v9  ;;  %v13893_v9 = vld [vmem:[%s19021_s3 + $0x440] ss:$16 sps:$4 sm:$0xff]  }
 0x487   :  { %v17692_v16 = vpack.c.bf16 %v6344_v13, %v6336_v34  ;;  %8582 = vmatprep.subr.bf16.mxu0 %v13889_v36 }
 0x488   :  { %9190 = vmatpush1.bf16.msra.mxu1 %v13881_v30  ;;  %v17697_v10 = vpack.c.bf16 %v6345_v2, %v6337_v50  ;;  %v5381_v58 = vpop.f32.mrb[88].mxu0  ;;  %v13898_v30 = vld [vmem:[%s19021_s3 + $0x464] ss:$16 sps:$4 sm:$0xff]  }
 0x489   :  { %19187 = vst [vmem:[#allocation14_spill] sm:$0xff] %v17692_v16  ;;  %9352 = vmatprep.subr.bf16.mxu1 %v13892_v11  ;;  %v12179_v37 = vadd.f32 %v5381_v58, %v17537_v22  ;;  %v5383_v33 = vpop.f32.mrb[89].mxu0  ;;  %v19189_v11 = vld [vmem:[#allocation6_spill] sm:$0xff]  ;;  %v19190_v50 = vld [vmem:[#allocation12_spill] sm:$0xff] }
 0x48a   :  { %19188 = vst [vmem:[#allocation13_spill] sm:$0xff] %v17697_v10  ;;  %v12180_v19 = vadd.f32 %v5383_v33, %v17541_v0  ;;  %v5385_v62 = vpop.f32.mrb[90].mxu0  ;;  %8583 = vmatpush1.bf16.msra.mxu0 %v13887_v60  ;;  %v13904_v60 = vld [vmem:[%s19021_s3 + $0x484] ss:$16 sps:$4 sm:$0xff]  }
 0x48b   :  { %9079 = vmatmul.mubr.bf16.gmra.mrb[192].mxu1 %v19168_v20  ;;  %v12181_v54 = vadd.f32 %v5385_v62, %v17537_v22  ;;  %v5387_v4 = vpop.f32.mrb[91].mxu0  ;;  %8584 = vmatprep.subr.bf16.mxu0 %v13895_v5  ;;  %v6352_v7 = vmax.f32 %v12179_v37, 0.0  ;;  %v19204_v10 = vld [vmem:[#allocation30_spill] sm:$0xff] }
 0x48c   :  { %9088 = vmatprep.mubr.bf16.mxu1 %v19169_v53  ;;  %v12182_v36 = vadd.f32 %v5387_v4, %v17541_v0  ;;  %v6353_v34 = vmax.f32 %v12180_v19, 0.0  ;;  %v13896_v53 = vld [vmem:[%s19021_s3 + $0x460] ss:$16 sps:$4 sm:$0xff]  }
 0x48d   :  { %v6360_v20 = vmax.f32 %v12181_v54, 0.0  ;;  %8430 = vmatmul.mubr.bf16.gmra.mrb[132].mxu0 %v19189_v11 }
 0x48e   :  { %v6361_v13 = vmax.f32 %v12182_v36, 0.0  ;;  %8439 = vmatprep.mubr.bf16.mxu0 %v19190_v50  ;;  %8585 = vmatpush1.bf16.msra.mxu0 %v13893_v9  ;;  %v13902_v9 = vld [vmem:[%s19021_s3 + $0x480] ss:$16 sps:$4 sm:$0xff]  }
 0x48f   :  { %v17716_v2 = vpack.c.bf16 %v6360_v20, %v6352_v7  ;;  %8586 = vmatprep.subr.bf16.mxu0 %v13898_v30  ;;  %v13907_v30 = vld [vmem:[%s19021_s3 + $0x4a4] ss:$16 sps:$4 sm:$0xff]   ;;  %v19193_v20 = vld [vmem:[#allocation11_spill] sm:$0xff] }
 0x490   :  { %v17721_v5 = vpack.c.bf16 %v6361_v13, %v6353_v34  ;;  %v5391_v58 = vpop.f32.mrb[92].mxu0 }
 0x491   :  { %19191 = vst [vmem:[#allocation16_spill] sm:$0xff] %v17716_v2  ;;  %v12183_v37 = vadd.f32 %v5391_v58, %v17537_v22  ;;  %v5393_v33 = vpop.f32.mrb[93].mxu0  ;;  %v581_v58 = vsub.s32 6, %v19172_v29  ;;  %v19198_v2 = vld [vmem:[#allocation28_spill] sm:$0xff] }
 0x492   :  { %19192 = vst [vmem:[#allocation15_spill] sm:$0xff] %v17721_v5  ;;  %v12184_v19 = vadd.f32 %v5393_v33, %v17541_v0  ;;  %v5395_v62 = vpop.f32.mrb[94].mxu0  ;;  %8587 = vmatpush1.bf16.msra.mxu0 %v13896_v53  ;;  %v19194_v53 = vld [vmem:[#allocation26_spill] sm:$0xff]  ;;  %v585_v33 = vsub.s32 7, %v19172_v29  ;;  %v19197_v29 = vld [vmem:[#allocation25_spill] sm:$0xff] }
 0x493   :  { %9089 = vmatmul.mubr.bf16.gmra.mrb[196].mxu1 %v19170_v21  ;;  %v12185_v54 = vadd.f32 %v5395_v62, %v17537_v22  ;;  %v5397_v4 = vpop.f32.mrb[95].mxu0  ;;  %8588 = vmatprep.subr.bf16.mxu0 %v13904_v60  ;;  %v6368_v7 = vmax.f32 %v12183_v37, 0.0  ;;  %v13913_v37 = vld [vmem:[%s19021_s3 + $0x4c4] ss:$16 sps:$4 sm:$0xff]  }
 0x494   :  { %9098 = vmatprep.mubr.bf16.mxu1 %v19171_v25  ;;  %v12186_v36 = vadd.f32 %v5397_v4, %v17541_v0  ;;  %v6369_v34 = vmax.f32 %v12184_v19, 0.0  ;;  %v13905_v25 = vld [vmem:[%s19021_s3 + $0x4a0] ss:$16 sps:$4 sm:$0xff]  }
 0x495   :  { %v6376_v21 = vmax.f32 %v12185_v54, 0.0  ;;  %8440 = vmatmul.mubr.bf16.gmra.mrb[136].mxu0 %v19193_v20 }
 0x496   :  { %v6377_v13 = vmax.f32 %v12186_v36, 0.0  ;;  %8449 = vmatprep.mubr.bf16.mxu0 %v19194_v53  ;;  %8589 = vmatpush1.bf16.msra.mxu0 %v13902_v9 }
 0x497   :  { %v17741_v60 = vpack.c.bf16 %v6376_v21, %v6368_v7  ;;  %8590 = vmatprep.subr.bf16.mxu0 %v13907_v30  ;;  %v17753_v7 = vrot.slane %v17534_v45, %v581_v58  ;;  %v13911_v30 = vld [vmem:[%s19021_s3 + $0x4c0] ss:$16 sps:$4 sm:$0xff]  }
 0x498   :  { %v17747_v19 = vpack.c.bf16 %v6377_v13, %v6369_v34  ;;  %v5401_v62 = vpop.f32.mrb[96].mxu0  ;;  %v17761_v13 = vrot.slane %v17534_v45, %v585_v33  ;;  %v13914_v45 = vld [vmem:[%s19021_s3 + $0x4e0] ss:$16 sps:$4 sm:$0xff]  }
 0x499   :  { %19195 = vst [vmem:[#allocation18_spill] sm:$0xff] %v17741_v60  ;;  %v12187_v54 = vadd.f32 %v5401_v62, %v17537_v22  ;;  %v5403_v4 = vpop.f32.mrb[97].mxu0 }
 0x49a   :  { %19196 = vst [vmem:[#allocation17_spill] sm:$0xff] %v17747_v19  ;;  %v12188_v9 = vadd.f32 %v5403_v4, %v17541_v0  ;;  %v5405_v36 = vpop.f32.mrb[98].mxu0  ;;  %8591 = vmatpush1.bf16.msra.mxu0 %v13905_v25 }
 0x49b   :  { %9099 = vmatmul.mubr.bf16.gmra.mrb[200].mxu1 %v19173_v3  ;;  %v12189_v21 = vadd.f32 %v5405_v36, %v17537_v22  ;;  %v5407_v34 = vpop.f32.mrb[99].mxu0  ;;  %8592 = vmatprep.subr.bf16.mxu0 %v13913_v37  ;;  %v13916_v3 = vld [vmem:[%s19021_s3 + $0x4e4] ss:$16 sps:$4 sm:$0xff]   ;;  %v6384_v25 = vmax.f32 %v12187_v54, 0.0 }
 0x49c   :  { %9108 = vmatprep.mubr.bf16.mxu1 %v19174_v49  ;;  %v12190_v58 = vadd.f32 %v5407_v34, %v17541_v0  ;;  %v6385_v60 = vmax.f32 %v12188_v9, 0.0  ;;  %v13922_v9 = vld [vmem:[%s19021_s3 + $0x504] ss:$16 sps:$4 sm:$0xff]  }
 0x49d   :  { %v6392_v62 = vmax.f32 %v12189_v21, 0.0  ;;  %8450 = vmatmul.mubr.bf16.gmra.mrb[140].mxu0 %v19197_v29 }
 0x49e   :  { %v6093_v4 = vpop.f32.mrb[96].mxu1  ;;  %v6393_v36 = vmax.f32 %v12190_v58, 0.0  ;;  %8459 = vmatprep.mubr.bf16.mxu0 %v19198_v2  ;;  %8593 = vmatpush1.bf16.msra.mxu0 %v13911_v30 }
 0x49f   :  { %v12219_v49 = vadd.f32 %v6093_v4, %v17753_v7  ;;  %v6095_v19 = vpop.f32.mrb[97].mxu1  ;;  %v17773_v33 = vpack.c.bf16 %v6392_v62, %v6384_v25  ;;  %8594 = vmatprep.subr.bf16.mxu0 %v13916_v3 }
 0x4a0   :  { %v12220_v37 = vadd.f32 %v6095_v19, %v17761_v13  ;;  %v6097_v54 = vpop.f32.mrb[98].mxu1  ;;  %v17779_v21 = vpack.c.bf16 %v6393_v36, %v6385_v60  ;;  %v5411_v30 = vpop.f32.mrb[100].mxu0  ;;  %v13920_v60 = vld [vmem:[%s19021_s3 + $0x500] ss:$16 sps:$4 sm:$0xff]  }
 0x4a1   :  { %19199 = vst [vmem:[#allocation20_spill] sm:$0xff] %v17773_v33  ;;  %v12221_v34 = vadd.f32 %v6097_v54, %v17753_v7  ;;  %v6099_v58 = vpop.f32.mrb[99].mxu1  ;;  %v12191_v5 = vadd.f32 %v5411_v30, %v17537_v22  ;;  %v5413_v25 = vpop.f32.mrb[101].mxu0  ;;  %v6258_v62 = vmax.f32 %v12219_v49, 0.0  ;;  %v13925_v49 = vld [vmem:[%s19021_s3 + $0x524] ss:$16 sps:$4 sm:$0xff]  }
 0x4a2   :  { %19200 = vst [vmem:[#allocation19_spill] sm:$0xff] %v17779_v21  ;;  %v12222_v4 = vadd.f32 %v6099_v58, %v17761_v13  ;;  %v12192_v19 = vadd.f32 %v5413_v25, %v17541_v0  ;;  %v5415_v3 = vpop.f32.mrb[102].mxu0  ;;  %8595 = vmatpush1.bf16.msra.mxu0 %v13914_v45  ;;  %v6259_v36 = vmax.f32 %v12220_v37, 0.0 }
 0x4a3   :  { %v6266_v33 = vmax.f32 %v12221_v34, 0.0  ;;  %9109 = vmatmul.mubr.bf16.gmra.mrb[204].mxu1 %v19175_v43  ;;  %v12193_v21 = vadd.f32 %v5415_v3, %v17537_v22  ;;  %v5417_v58 = vpop.f32.mrb[103].mxu0  ;;  %8596 = vmatprep.subr.bf16.mxu0 %v13922_v9  ;;  %v6400_v30 = vmax.f32 %v12191_v5, 0.0 }
 0x4a4   :  { %v6267_v54 = vmax.f32 %v12222_v4, 0.0  ;;  %9118 = vmatprep.mubr.bf16.mxu1 %v19176_v32  ;;  %v12194_v43 = vadd.f32 %v5417_v58, %v17541_v0  ;;  %v19203_v4 = vld [vmem:[#allocation27_spill] sm:$0xff]  ;;  %v6401_v3 = vmax.f32 %v12192_v19, 0.0  ;;  %v13931_v19 = vld [vmem:[%s19021_s3 + $0x544] ss:$16 sps:$4 sm:$0xff]  }
 0x4a5   :  { %v17794_v34 = vpack.c.bf16 %v6266_v33, %v6258_v62  ;;  %v6408_v25 = vmax.f32 %v12193_v21, 0.0  ;;  %8460 = vmatmul.mubr.bf16.gmra.mrb[144].mxu0 %v19203_v4  ;;  %v13923_v33 = vld [vmem:[%s19021_s3 + $0x520] ss:$16 sps:$4 sm:$0xff]  }
 0x4a6   :  { %v17797_v45 = vpack.c.bf16 %v6267_v54, %v6259_v36  ;;  %v6103_v37 = vpop.f32.mrb[100].mxu1  ;;  %v6409_v16 = vmax.f32 %v12194_v43, 0.0  ;;  %8469 = vmatprep.mubr.bf16.mxu0 %v19204_v10  ;;  %8597 = vmatpush1.bf16.msra.mxu0 %v13920_v60 }
 0x4a7   :  { %19201 = vst [vmem:[#allocation22_spill] sm:$0xff] %v17794_v34  ;;  %v12223_v32 = vadd.f32 %v6103_v37, %v17753_v7  ;;  %v6105_v9 = vpop.f32.mrb[101].mxu1  ;;  %v17805_v62 = vpack.c.bf16 %v6408_v25, %v6400_v30  ;;  %8598 = vmatprep.subr.bf16.mxu0 %v13925_v49 }
 0x4a8   :  { %19202 = vst [vmem:[#allocation21_spill] sm:$0xff] %v17797_v45  ;;  %v12224_v5 = vadd.f32 %v6105_v9, %v17761_v13  ;;  %v6107_v21 = vpop.f32.mrb[102].mxu1  ;;  %v17811_v36 = vpack.c.bf16 %v6409_v16, %v6401_v3  ;;  %v5421_v60 = vpop.f32.mrb[104].mxu0  ;;  %v13929_v16 = vld [vmem:[%s19021_s3 + $0x540] ss:$16 sps:$4 sm:$0xff]  }
 0x4a9   :  { %19205 = vst [vmem:[#allocation24_spill] sm:$0xff] %v17805_v62  ;;  %v12225_v54 = vadd.f32 %v6107_v21, %v17753_v7  ;;  %v6109_v58 = vpop.f32.mrb[103].mxu1  ;;  %v12195_v37 = vadd.f32 %v5421_v60, %v17537_v22  ;;  %v5423_v30 = vpop.f32.mrb[105].mxu0  ;;  %v6274_v25 = vmax.f32 %v12223_v32, 0.0  ;;  %v13934_v32 = vld [vmem:[%s19021_s3 + $0x564] ss:$16 sps:$4 sm:$0xff]  }
 0x4aa   :  { %v12226_v43 = vadd.f32 %v6109_v58, %v17761_v13  ;;  %v12196_v9 = vadd.f32 %v5423_v30, %v17541_v0  ;;  %v5425_v49 = vpop.f32.mrb[106].mxu0  ;;  %8599 = vmatpush1.bf16.msra.mxu0 %v13923_v33  ;;  %v6275_v3 = vmax.f32 %v12224_v5, 0.0 }
 0x4ab   :  { %v6282_v34 = vmax.f32 %v12225_v54, 0.0  ;;  %9119 = vmatmul.mubr.bf16.gmra.mrb[208].mxu1 %v19177_v12  ;;  %v12197_v45 = vadd.f32 %v5425_v49, %v17537_v22  ;;  %v5427_v58 = vpop.f32.mrb[107].mxu0  ;;  %8600 = vmatprep.subr.bf16.mxu0 %v13931_v19  ;;  %v6416_v60 = vmax.f32 %v12195_v37, 0.0 }
 0x4ac   :  { %v6283_v21 = vmax.f32 %v12226_v43, 0.0  ;;  %9128 = vmatprep.mubr.bf16.mxu1 %v19178_v8  ;;  %v12198_v12 = vadd.f32 %v5427_v58, %v17541_v0  ;;  %v19208_v43 = vld [vmem:[#allocation29_spill] sm:$0xff]  ;;  %v6417_v49 = vmax.f32 %v12196_v9, 0.0  ;;  %v13940_v9 = vld [vmem:[%s19021_s3 + $0x584] ss:$16 sps:$4 sm:$0xff]  }
 0x4ad   :  { %v17826_v54 = vpack.c.bf16 %v6282_v34, %v6274_v25  ;;  %v6424_v30 = vmax.f32 %v12197_v45, 0.0  ;;  %8470 = vmatmul.mubr.bf16.gmra.mrb[148].mxu0 %v19208_v43  ;;  %v13932_v34 = vld [vmem:[%s19021_s3 + $0x560] ss:$16 sps:$4 sm:$0xff]  }
 0x4ae   :  { %v17829_v33 = vpack.c.bf16 %v6283_v21, %v6275_v3  ;;  %v6113_v5 = vpop.f32.mrb[104].mxu1  ;;  %v6425_v62 = vmax.f32 %v12198_v12, 0.0  ;;  %8479 = vmatprep.mubr.bf16.mxu0 %v16592_v42  ;;  %8601 = vmatpush1.bf16.msra.mxu0 %v13929_v16 }
 0x4af   :  { %19206 = vst [vmem:[#allocation23_spill] sm:$0xff] %v17826_v54  ;;  %v12227_v8 = vadd.f32 %v6113_v5, %v17753_v7  ;;  %v6115_v19 = vpop.f32.mrb[105].mxu1  ;;  %v17837_v25 = vpack.c.bf16 %v6424_v30, %v6416_v60  ;;  %8602 = vmatprep.subr.bf16.mxu0 %v13934_v32 }
 0x4b0   :  { %19207 = vst [vmem:[#allocation7_spill] sm:$0xff] %v17829_v33  ;;  %v12228_v37 = vadd.f32 %v6115_v19, %v17761_v13  ;;  %v6117_v45 = vpop.f32.mrb[106].mxu1  ;;  %v17843_v3 = vpack.c.bf16 %v6425_v62, %v6417_v49  ;;  %v5431_v16 = vpop.f32.mrb[108].mxu0  ;;  %v13938_v62 = vld [vmem:[%s19021_s3 + $0x580] ss:$16 sps:$4 sm:$0xff]  }
 0x4b1   :  { %v12229_v21 = vadd.f32 %v6117_v45, %v17753_v7  ;;  %v6119_v58 = vpop.f32.mrb[107].mxu1  ;;  %v12199_v5 = vadd.f32 %v5431_v16, %v17537_v22  ;;  %v5433_v60 = vpop.f32.mrb[109].mxu0  ;;  %v6290_v30 = vmax.f32 %v12227_v8, 0.0  ;;  %v13943_v8 = vld [vmem:[%s19021_s3 + $0x5a4] ss:$16 sps:$4 sm:$0xff]  }
 0x4b2   :  { %v12230_v12 = vadd.f32 %v6119_v58, %v17761_v13  ;;  %v12200_v19 = vadd.f32 %v5433_v60, %v17541_v0  ;;  %v5435_v32 = vpop.f32.mrb[110].mxu0  ;;  %8603 = vmatpush1.bf16.msra.mxu0 %v13932_v34  ;;  %v6291_v49 = vmax.f32 %v12228_v37, 0.0 }
 0x4b3   :  { %v6298_v54 = vmax.f32 %v12229_v21, 0.0  ;;  %9129 = vmatmul.mubr.bf16.gmra.mrb[212].mxu1 %v19179_v52  ;;  %v12201_v33 = vadd.f32 %v5435_v32, %v17537_v22  ;;  %v5437_v58 = vpop.f32.mrb[111].mxu0  ;;  %8604 = vmatprep.subr.bf16.mxu0 %v13940_v9  ;;  %v6432_v16 = vmax.f32 %v12199_v5, 0.0 }
 0x4b4   :  { %v6299_v45 = vmax.f32 %v12230_v12, 0.0  ;;  %9138 = vmatprep.mubr.bf16.mxu1 %v19180_v48  ;;  %v12202_v52 = vadd.f32 %v5437_v58, %v17541_v0  ;;  %v6433_v12 = vmax.f32 %v12200_v19, 0.0  ;;  %v13949_v19 = vld [vmem:[%s19021_s3 + $0x5c4] ss:$16 sps:$4 sm:$0xff]  }
 0x4b5   :  { %v17858_v21 = vpack.c.bf16 %v6298_v54, %v6290_v30  ;;  %v6440_v60 = vmax.f32 %v12201_v33, 0.0  ;;  %8480 = vmatmul.mubr.bf16.gmra.mrb[152].mxu0 %v16589_v28  ;;  %v13941_v54 = vld [vmem:[%s19021_s3 + $0x5a0] ss:$16 sps:$4 sm:$0xff]  }
 0x4b6   :  { %v17861_v34 = vpack.c.bf16 %v6299_v45, %v6291_v49  ;;  %v6123_v37 = vpop.f32.mrb[108].mxu1  ;;  %v6441_v32 = vmax.f32 %v12202_v52, 0.0  ;;  %8489 = vmatprep.mubr.bf16.mxu0 %v16630_v47  ;;  %8605 = vmatpush1.bf16.msra.mxu0 %v13938_v62 }
 0x4b7   :  { %19209 = vst [vmem:[#allocation2_spill] sm:$0xff] %v17858_v21  ;;  %v12231_v48 = vadd.f32 %v6123_v37, %v17753_v7  ;;  %v6125_v9 = vpop.f32.mrb[109].mxu1  ;;  %v17869_v30 = vpack.c.bf16 %v6440_v60, %v6432_v16  ;;  %8606 = vmatprep.subr.bf16.mxu0 %v13943_v8 }
 0x4b8   :  { %19210 = vst [vmem:[#allocation9_spill] sm:$0xff] %v17861_v34  ;;  %v12232_v5 = vadd.f32 %v6125_v9, %v17761_v13  ;;  %v6127_v33 = vpop.f32.mrb[110].mxu1  ;;  %v17875_v49 = vpack.c.bf16 %v6441_v32, %v6433_v12  ;;  %v5441_v62 = vpop.f32.mrb[112].mxu0  ;;  %v13947_v12 = vld [vmem:[%s19021_s3 + $0x5c0] ss:$16 sps:$4 sm:$0xff]  }
 0x4b9   :  { %19211 = vst [vmem:[#allocation3_spill] sm:$0xff] %v17869_v30  ;;  %v12233_v45 = vadd.f32 %v6127_v33, %v17753_v7  ;;  %v6129_v58 = vpop.f32.mrb[111].mxu1  ;;  %v12203_v37 = vadd.f32 %v5441_v62, %v17537_v22  ;;  %v5443_v16 = vpop.f32.mrb[113].mxu0  ;;  %v6306_v60 = vmax.f32 %v12231_v48, 0.0  ;;  %v13952_v48 = vld [vmem:[%s19021_s3 + $0x5e4] ss:$16 sps:$4 sm:$0xff]  }
 0x4ba   :  { %v12234_v52 = vadd.f32 %v6129_v58, %v17761_v13  ;;  %v12204_v9 = vadd.f32 %v5443_v16, %v17541_v0  ;;  %v5445_v8 = vpop.f32.mrb[114].mxu0  ;;  %8607 = vmatpush1.bf16.msra.mxu0 %v13941_v54  ;;  %v6307_v32 = vmax.f32 %v12232_v5, 0.0  ;;  %v19214_v30 = vld [vmem:[#allocation32_spill] sm:$0xff] }
 0x4bb   :  { %v6314_v21 = vmax.f32 %v12233_v45, 0.0  ;;  %9139 = vmatmul.mubr.bf16.gmra.mrb[216].mxu1 %v19181_v51  ;;  %v12205_v34 = vadd.f32 %v5445_v8, %v17537_v22  ;;  %v5447_v58 = vpop.f32.mrb[115].mxu0  ;;  %8608 = vmatprep.subr.bf16.mxu0 %v13949_v19  ;;  %v6448_v62 = vmax.f32 %v12203_v37, 0.0 }
 0x4bc   :  { %v6315_v33 = vmax.f32 %v12234_v52, 0.0  ;;  %9148 = vmatprep.mubr.bf16.mxu1 %v19182_v57  ;;  %v12206_v51 = vadd.f32 %v5447_v58, %v17541_v0  ;;  %v6449_v52 = vmax.f32 %v12204_v9, 0.0 }
 0x4bd   :  { %v17890_v45 = vpack.c.bf16 %v6314_v21, %v6306_v60  ;;  %v6456_v16 = vmax.f32 %v12205_v34, 0.0  ;;  %8490 = vmatmul.mubr.bf16.gmra.mrb[156].mxu0 %v16628_v24  ;;  %v13950_v21 = vld [vmem:[%s19021_s3 + $0x5e0] ss:$16 sps:$4 sm:$0xff]  }
 0x4be   :  { %v17893_v54 = vpack.c.bf16 %v6315_v33, %v6307_v32  ;;  %v6133_v5 = vpop.f32.mrb[112].mxu1  ;;  %v6457_v8 = vmax.f32 %v12206_v51, 0.0  ;;  %8499 = vmatprep.mubr.bf16.mxu0 %v19214_v30  ;;  %8609 = vmatpush1.bf16.msra.mxu0 %v13947_v12 }
 0x4bf   :  { %19212 = vst [vmem:[#allocation5_spill] sm:$0xff] %v17890_v45  ;;  %v12235_v57 = vadd.f32 %v6133_v5, %v17753_v7  ;;  %v6135_v19 = vpop.f32.mrb[113].mxu1  ;;  %v17901_v60 = vpack.c.bf16 %v6456_v16, %v6448_v62  ;;  %8610 = vmatprep.subr.bf16.mxu0 %v13952_v48 }
 0x4c0   :  { %19213 = vst [vmem:[#allocation4_spill] sm:$0xff] %v17893_v54  ;;  %v12236_v37 = vadd.f32 %v6135_v19, %v17761_v13  ;;  %v6137_v34 = vpop.f32.mrb[114].mxu1  ;;  %v17904_v32 = vpack.c.bf16 %v6457_v8, %v6449_v52  ;;  %v5451_v58 = vpop.f32.mrb[116].mxu0 }
 0x4c1   :  { %19215 = vst [vmem:[#allocation10_spill] sm:$0xff] %v17901_v60  ;;  %v12237_v9 = vadd.f32 %v6137_v34, %v17753_v7  ;;  %v6139_v33 = vpop.f32.mrb[115].mxu1  ;;  %v12207_v12 = vadd.f32 %v5451_v58, %v17537_v22  ;;  %v5453_v5 = vpop.f32.mrb[117].mxu0  ;;  %v6322_v45 = vmax.f32 %v12235_v57, 0.0  ;;  %v13982_v57 = vld [vmem:[%s19021_s3 + $0x604] ss:$16 sps:$4 sm:$0xff]  }
 0x4c2   :  { %v12238_v51 = vadd.f32 %v6139_v33, %v17761_v13  ;;  %v12208_v62 = vadd.f32 %v5453_v5, %v17541_v0  ;;  %v5455_v16 = vpop.f32.mrb[118].mxu0  ;;  %8611 = vmatpush1.bf16.msra.mxu0 %v13950_v21  ;;  %v6323_v48 = vmax.f32 %v12236_v37, 0.0  ;;  %v19218_v37 = vld [vmem:[#allocation31_spill] sm:$0xff] }
 0x4c3   :  { %v6330_v54 = vmax.f32 %v12237_v9, 0.0  ;;  %9149 = vmatmul.mubr.bf16.gmra.mrb[220].mxu1 %v19183_v44  ;;  %v12209_v8 = vadd.f32 %v5455_v16, %v17537_v22  ;;  %v5457_v19 = vpop.f32.mrb[119].mxu0  ;;  %v6464_v44 = vmax.f32 %v12207_v12, 0.0  ;;  %8773 = vmatprep.subr.bf16.mxu0 %v13982_v57  ;;  %v13890_v12 = vld [vmem:[%s19021_s3 + $0x408] ss:$16 sps:$4 sm:$0xff]  }
 0x4c4   :  { %v6331_v52 = vmax.f32 %v12238_v51, 0.0  ;;  %9191 = vmatprep.mubr.bf16.mxu1 %v19184_v27  ;;  %v12210_v33 = vadd.f32 %v5457_v19, %v17541_v0  ;;  %v6465_v51 = vmax.f32 %v12208_v62, 0.0 }
 0x4c5   :  { %v17913_v34 = vpack.c.bf16 %v6330_v54, %v6322_v45  ;;  %v6472_v58 = vmax.f32 %v12209_v8, 0.0  ;;  %8500 = vmatmul.mubr.bf16.gmra.mrb[160].mxu0 %v19218_v37  ;;  %v19219_v45 = vld [vmem:[#allocation34_spill] sm:$0xff] }
 0x4c6   :  { %v17919_v9 = vpack.c.bf16 %v6331_v52, %v6323_v48  ;;  %v6143_v21 = vpop.f32.mrb[116].mxu1  ;;  %v6473_v5 = vmax.f32 %v12210_v33, 0.0  ;;  %8509 = vmatprep.mubr.bf16.mxu0 %v19219_v45  ;;  %v13901_v33 = vld [vmem:[%s19021_s3 + $0x42c] ss:$16 sps:$4 sm:$0xff]  }
 0x4c7   :  { %19216 = vst [vmem:[#allocation6_spill] sm:$0xff] %v17913_v34  ;;  %v12239_v27 = vadd.f32 %v6143_v21, %v17753_v7  ;;  %v6145_v16 = vpop.f32.mrb[117].mxu1  ;;  %v17924_v54 = vpack.c.bf16 %v6472_v58, %v6464_v44 }
 0x4c8   :  { %19217 = vst [vmem:[#allocation12_spill] sm:$0xff] %v17919_v9  ;;  %v12240_v19 = vadd.f32 %v6145_v16, %v17761_v13  ;;  %v6147_v34 = vpop.f32.mrb[118].mxu1  ;;  %v17930_v48 = vpack.c.bf16 %v6473_v5, %v6465_v51  ;;  %v5461_v8 = vpop.f32.mrb[120].mxu0 }
 0x4c9   :  { %19220 = vst [vmem:[#allocation11_spill] sm:$0xff] %v17924_v54  ;;  %v12241_v62 = vadd.f32 %v6147_v34, %v17753_v7  ;;  %v6149_v52 = vpop.f32.mrb[119].mxu1  ;;  %v12211_v44 = vadd.f32 %v5461_v8, %v17537_v22  ;;  %v5463_v58 = vpop.f32.mrb[121].mxu0  ;;  %v6338_v21 = vmax.f32 %v12239_v27, 0.0 }
 0x4ca   :  { %19221 = vst [vmem:[#allocation26_spill] sm:$0xff] %v17930_v48  ;;  %v12242_v57 = vadd.f32 %v6149_v52, %v17761_v13  ;;  %v12212_v9 = vadd.f32 %v5463_v58, %v17541_v0  ;;  %v5465_v51 = vpop.f32.mrb[122].mxu0  ;;  %v6339_v5 = vmax.f32 %v12240_v19, 0.0  ;;  %v13899_v52 = vld [vmem:[%s19021_s3 + $0x428] ss:$16 sps:$4 sm:$0xff]  }
 0x4cb   :  { %v6346_v16 = vmax.f32 %v12241_v62, 0.0  ;;  %9192 = vmatmul.mubr.bf16.vlgmr.msra.gmra.mrb[160].mxu1 %v19185_v15  ;;  %v12213_v54 = vadd.f32 %v5465_v51, %v17537_v22  ;;  %v5467_v48 = vpop.f32.mrb[123].mxu0  ;;  %v13910_v15 = vld [vmem:[%s19021_s3 + $0x44c] ss:$16 sps:$4 sm:$0xff]   ;;  %v6480_v62 = vmax.f32 %v12211_v44, 0.0 }
 0x4cc   :  { %v6347_v34 = vmax.f32 %v12242_v57, 0.0  ;;  %9201 = vmatprep.mubr.bf16.mxu1 %v19186_v31  ;;  %9353 = vmatpush1.bf16.msra.mxu1 %v13890_v12  ;;  %v12214_v27 = vadd.f32 %v5467_v48, %v17541_v0  ;;  %v19224_v12 = vld [vmem:[#allocation33_spill] sm:$0xff]  ;;  %v6481_v58 = vmax.f32 %v12212_v9, 0.0 }
 0x4cd   :  { %v17945_v8 = vpack.c.bf16 %v6346_v16, %v6338_v21  ;;  %9354 = vmatprep.subr.bf16.mxu1 %v13901_v33  ;;  %v6488_v57 = vmax.f32 %v12213_v54, 0.0  ;;  %8510 = vmatmul.mubr.bf16.gmra.mrb[164].mxu0 %v19224_v12  ;;  %v19225_v16 = vld [vmem:[#allocation36_spill] sm:$0xff]  ;;  %v13908_v54 = vld [vmem:[%s19021_s3 + $0x448] ss:$16 sps:$4 sm:$0xff]  }
 0x4ce   :  { %v17951_v19 = vpack.c.bf16 %v6347_v34, %v6339_v5  ;;  %v6153_v31 = vpop.f32.mrb[120].mxu1  ;;  %v6489_v51 = vmax.f32 %v12214_v27, 0.0  ;;  %8519 = vmatprep.mubr.bf16.mxu0 %v19225_v16  ;;  %v13919_v27 = vld [vmem:[%s19021_s3 + $0x46c] ss:$16 sps:$4 sm:$0xff]  }
 0x4cf   :  { %19222 = vst [vmem:[#allocation25_spill] sm:$0xff] %v17945_v8  ;;  %v12243_v60 = vadd.f32 %v6153_v31, %v17753_v7  ;;  %v6155_v21 = vpop.f32.mrb[121].mxu1  ;;  %v17956_v48 = vpack.c.bf16 %v6488_v57, %v6480_v62 }
 0x4d0   :  { %19223 = vst [vmem:[#allocation28_spill] sm:$0xff] %v17951_v19  ;;  %v12244_v33 = vadd.f32 %v6155_v21, %v17761_v13  ;;  %v6157_v8 = vpop.f32.mrb[122].mxu1  ;;  %9355 = vmatpush1.bf16.msra.mxu1 %v13899_v52  ;;  %v17962_v44 = vpack.c.bf16 %v6489_v51, %v6481_v58  ;;  %v5471_v34 = vpop.f32.mrb[124].mxu0 }
 0x4d1   :  { %19226 = vst [vmem:[#allocation27_spill] sm:$0xff] %v17956_v48  ;;  %v12245_v9 = vadd.f32 %v6157_v8, %v17753_v7  ;;  %v6159_v5 = vpop.f32.mrb[123].mxu1  ;;  %9356 = vmatprep.subr.bf16.mxu1 %v13910_v15  ;;  %v12215_v57 = vadd.f32 %v5471_v34, %v17537_v22  ;;  %v5473_v52 = vpop.f32.mrb[125].mxu0  ;;  %v6354_v31 = vmax.f32 %v12243_v60, 0.0 }
 0x4d2   :  { %v12246_v62 = vadd.f32 %v6159_v5, %v17761_v13  ;;  %v12216_v19 = vadd.f32 %v5473_v52, %v17541_v0  ;;  %v5475_v58 = vpop.f32.mrb[126].mxu0  ;;  %v6355_v8 = vmax.f32 %v12244_v33, 0.0  ;;  %v13917_v5 = vld [vmem:[%s19021_s3 + $0x468] ss:$16 sps:$4 sm:$0xff]  }
 0x4d3   :  { %v6362_v21 = vmax.f32 %v12245_v9, 0.0  ;;  %9202 = vmatmul.mubr.bf16.gmra.mrb[164].mxu1 %v19189_v11  ;;  %v12217_v15 = vadd.f32 %v5475_v58, %v17537_v22  ;;  %v5477_v48 = vpop.f32.mrb[127].mxu0  ;;  %v13928_v11 = vld [vmem:[%s19021_s3 + $0x48c] ss:$16 sps:$4 sm:$0xff]   ;;  %v6496_v22 = vmax.f32 %v12215_v57, 0.0 }
 0x4d4   :  { %v6363_v51 = vmax.f32 %v12246_v62, 0.0  ;;  %9211 = vmatprep.mubr.bf16.mxu1 %v19190_v50  ;;  %9357 = vmatpush1.bf16.msra.mxu1 %v13908_v54  ;;  %v12218_v60 = vadd.f32 %v5477_v48, %v17541_v0  ;;  %v19227_v62 = vld [vmem:[#allocation35_spill] sm:$0xff]  ;;  %v6497_v54 = vmax.f32 %v12216_v19, 0.0 }
 0x4d5   :  { %v17977_v34 = vpack.c.bf16 %v6362_v21, %v6354_v31  ;;  %9358 = vmatprep.subr.bf16.mxu1 %v13919_v27  ;;  %v6504_v9 = vmax.f32 %v12217_v15, 0.0  ;;  %8520 = vmatmul.mubr.bf16.gmra.mrb[168].mxu0 %v19227_v62  ;;  %v19228_v21 = vld [vmem:[#allocation38_spill] sm:$0xff]  ;;  %v13926_v57 = vld [vmem:[%s19021_s3 + $0x488] ss:$16 sps:$4 sm:$0xff]   ;;  %v13937_v15 = vld [vmem:[%s19021_s3 + $0x4ac] ss:$16 sps:$4 sm:$0xff]  }
 0x4d6   :  { %v17983_v33 = vpack.c.bf16 %v6363_v51, %v6355_v8  ;;  %v6163_v50 = vpop.f32.mrb[124].mxu1  ;;  %v6505_v52 = vmax.f32 %v12218_v60, 0.0  ;;  %8529 = vmatprep.mubr.bf16.mxu0 %v19228_v21 }
 0x4d7   :  { %v12247_v58 = vadd.f32 %v6163_v50, %v17753_v7  ;;  %v6165_v31 = vpop.f32.mrb[125].mxu1  ;;  %v17988_v0 = vpack.c.bf16 %v6504_v9, %v6496_v22 }
 0x4d8   :  { %v12248_v48 = vadd.f32 %v6165_v31, %v17761_v13  ;;  %v6167_v27 = vpop.f32.mrb[126].mxu1  ;;  %9359 = vmatpush1.bf16.msra.mxu1 %v13917_v5  ;;  %v17994_v8 = vpack.c.bf16 %v6505_v52, %v6497_v54  ;;  %v13935_v54 = vld [vmem:[%s19021_s3 + $0x4a8] ss:$16 sps:$4 sm:$0xff]   ;;  %v13946_v52 = vld [vmem:[%s19021_s3 + $0x4cc] ss:$16 sps:$4 sm:$0xff]  }
 0x4d9   :  { %v12249_v19 = vadd.f32 %v6167_v27, %v17753_v7  ;;  %v6169_v51 = vpop.f32.mrb[127].mxu1  ;;  %9360 = vmatprep.subr.bf16.mxu1 %v13928_v11  ;;  %v6370_v22 = vmax.f32 %v12247_v58, 0.0 }
 0x4da   :  { %v12250_v60 = vadd.f32 %v6169_v51, %v17761_v13  ;;  %v6371_v5 = vmax.f32 %v12248_v48, 0.0 }
 0x4db   :  { %v6378_v9 = vmax.f32 %v12249_v19, 0.0  ;;  %9212 = vmatmul.mubr.bf16.gmra.mrb[168].mxu1 %v19193_v20  ;;  %v19229_v20 = vld [vmem:[#allocation37_spill] sm:$0xff] }
 0x4dc   :  { %v6379_v50 = vmax.f32 %v12250_v60, 0.0  ;;  %9221 = vmatprep.mubr.bf16.mxu1 %v19194_v53  ;;  %9361 = vmatpush1.bf16.msra.mxu1 %v13926_v57  ;;  %v13944_v19 = vld [vmem:[%s19021_s3 + $0x4c8] ss:$16 sps:$4 sm:$0xff]   ;;  %v13955_v60 = vld [vmem:[%s19021_s3 + $0x4ec] ss:$16 sps:$4 sm:$0xff]  }
 0x4dd   :  { %v18006_v11 = vpack.c.bf16 %v6378_v9, %v6370_v22  ;;  %9362 = vmatprep.subr.bf16.mxu1 %v13937_v15  ;;  %8530 = vmatmul.mubr.bf16.gmra.mrb[172].mxu0 %v19229_v20 }
 0x4de   :  { %v18011_v58 = vpack.c.bf16 %v6379_v50, %v6371_v5  ;;  %v6173_v31 = vpop.f32.mrb[128].mxu1  ;;  %8539 = vmatprep.mubr.bf16.mxu0 %v16798_v56 }
 0x4df   :  { %v12251_v48 = vadd.f32 %v6173_v31, %v17753_v7  ;;  %v6175_v53 = vpop.f32.mrb[129].mxu1  ;;  %v13953_v31 = vld [vmem:[%s19021_s3 + $0x4e8] ss:$16 sps:$4 sm:$0xff]  }
 0x4e0   :  { %v12252_v27 = vadd.f32 %v6175_v53, %v17761_v13  ;;  %v6177_v57 = vpop.f32.mrb[130].mxu1  ;;  %9363 = vmatpush1.bf16.msra.mxu1 %v13935_v54  ;;  %v13958_v53 = vld [vmem:[%s19021_s3 + $0x50c] ss:$16 sps:$4 sm:$0xff]  }
 0x4e1   :  { %v12253_v51 = vadd.f32 %v6177_v57, %v17753_v7  ;;  %v6179_v15 = vpop.f32.mrb[131].mxu1  ;;  %9364 = vmatprep.subr.bf16.mxu1 %v13946_v52  ;;  %v6386_v9 = vmax.f32 %v12251_v48, 0.0 }
 0x4e2   :  { %v12254_v22 = vadd.f32 %v6179_v15, %v17761_v13  ;;  %v6387_v50 = vmax.f32 %v12252_v27, 0.0 }
 0x4e3   :  { %v6394_v5 = vmax.f32 %v12253_v51, 0.0  ;;  %9222 = vmatmul.mubr.bf16.gmra.mrb[172].mxu1 %v19197_v29  ;;  %v13956_v51 = vld [vmem:[%s19021_s3 + $0x508] ss:$16 sps:$4 sm:$0xff]  }
 0x4e4   :  { %v6395_v54 = vmax.f32 %v12254_v22, 0.0  ;;  %9231 = vmatprep.mubr.bf16.mxu1 %v19198_v2  ;;  %9365 = vmatpush1.bf16.msra.mxu1 %v13944_v19  ;;  %v13961_v22 = vld [vmem:[%s19021_s3 + $0x52c] ss:$16 sps:$4 sm:$0xff]  }
 0x4e5   :  { %v18030_v52 = vpack.c.bf16 %v6394_v5, %v6386_v9  ;;  %9366 = vmatprep.subr.bf16.mxu1 %v13955_v60  ;;  %8540 = vmatmul.mubr.bf16.gmra.mrb[176].mxu0 %v16794_v55 }
 0x4e6   :  { %v18035_v48 = vpack.c.bf16 %v6395_v54, %v6387_v50  ;;  %v6183_v57 = vpop.f32.mrb[132].mxu1  ;;  %8549 = vmatprep.mubr.bf16.mxu0 %v16820_v14 }
 0x4e7   :  { %v12255_v29 = vadd.f32 %v6183_v57, %v17753_v7  ;;  %v6185_v2 = vpop.f32.mrb[133].mxu1  ;;  %v13959_v57 = vld [vmem:[%s19021_s3 + $0x528] ss:$16 sps:$4 sm:$0xff]  }
 0x4e8   :  { %v12256_v27 = vadd.f32 %v6185_v2, %v17761_v13  ;;  %v6187_v19 = vpop.f32.mrb[134].mxu1  ;;  %9367 = vmatpush1.bf16.msra.mxu1 %v13953_v31  ;;  %v13964_v2 = vld [vmem:[%s19021_s3 + $0x54c] ss:$16 sps:$4 sm:$0xff]  }
 0x4e9   :  { %v12257_v15 = vadd.f32 %v6187_v19, %v17753_v7  ;;  %v6189_v60 = vpop.f32.mrb[135].mxu1  ;;  %9368 = vmatprep.subr.bf16.mxu1 %v13958_v53  ;;  %v6402_v5 = vmax.f32 %v12255_v29, 0.0 }
 0x4ea   :  { %v12258_v9 = vadd.f32 %v6189_v60, %v17761_v13  ;;  %v6403_v54 = vmax.f32 %v12256_v27, 0.0 }
 0x4eb   :  { %v6410_v50 = vmax.f32 %v12257_v15, 0.0  ;;  %9232 = vmatmul.mubr.bf16.gmra.mrb[176].mxu1 %v19203_v4  ;;  %v13962_v15 = vld [vmem:[%s19021_s3 + $0x548] ss:$16 sps:$4 sm:$0xff]  }
 0x4ec   :  { %v6411_v31 = vmax.f32 %v12258_v9, 0.0  ;;  %9241 = vmatprep.mubr.bf16.mxu1 %v19204_v10  ;;  %9369 = vmatpush1.bf16.msra.mxu1 %v13956_v51  ;;  %v13967_v9 = vld [vmem:[%s19021_s3 + $0x56c] ss:$16 sps:$4 sm:$0xff]  }
 0x4ed   :  { %v18054_v53 = vpack.c.bf16 %v6410_v50, %v6402_v5  ;;  %9370 = vmatprep.subr.bf16.mxu1 %v13961_v22  ;;  %8550 = vmatmul.mubr.bf16.gmra.mrb[180].mxu0 %v16818_v61 }
 0x4ee   :  { %v18059_v29 = vpack.c.bf16 %v6411_v31, %v6403_v54  ;;  %v6193_v19 = vpop.f32.mrb[136].mxu1  ;;  %8559 = vmatprep.mubr.bf16.mxu0 %v16842_v40 }
 0x4ef   :  { %v12259_v4 = vadd.f32 %v6193_v19, %v17753_v7  ;;  %v6195_v10 = vpop.f32.mrb[137].mxu1  ;;  %v13965_v19 = vld [vmem:[%s19021_s3 + $0x568] ss:$16 sps:$4 sm:$0xff]  }
 0x4f0   :  { %v12260_v27 = vadd.f32 %v6195_v10, %v17761_v13  ;;  %v6197_v51 = vpop.f32.mrb[138].mxu1  ;;  %9371 = vmatpush1.bf16.msra.mxu1 %v13959_v57  ;;  %v13970_v10 = vld [vmem:[%s19021_s3 + $0x58c] ss:$16 sps:$4 sm:$0xff]  }
 0x4f1   :  { %v12261_v60 = vadd.f32 %v6197_v51, %v17753_v7  ;;  %v6199_v22 = vpop.f32.mrb[139].mxu1  ;;  %9372 = vmatprep.subr.bf16.mxu1 %v13964_v2  ;;  %v6418_v50 = vmax.f32 %v12259_v4, 0.0 }
 0x4f2   :  { %v12262_v5 = vadd.f32 %v6199_v22, %v17761_v13  ;;  %v6419_v31 = vmax.f32 %v12260_v27, 0.0 }
 0x4f3   :  { %v6426_v54 = vmax.f32 %v12261_v60, 0.0  ;;  %9242 = vmatmul.mubr.bf16.gmra.mrb[180].mxu1 %v19208_v43  ;;  %v13968_v60 = vld [vmem:[%s19021_s3 + $0x588] ss:$16 sps:$4 sm:$0xff]  }
 0x4f4   :  { %v6427_v57 = vmax.f32 %v12262_v5, 0.0  ;;  %9251 = vmatprep.mubr.bf16.mxu1 %v16592_v42  ;;  %9373 = vmatpush1.bf16.msra.mxu1 %v13962_v15  ;;  %v13973_v5 = vld [vmem:[%s19021_s3 + $0x5ac] ss:$16 sps:$4 sm:$0xff]  }
 0x4f5   :  { %v18078_v2 = vpack.c.bf16 %v6426_v54, %v6418_v50  ;;  %9374 = vmatprep.subr.bf16.mxu1 %v13967_v9  ;;  %8560 = vmatmul.mubr.bf16.gmra.mrb[184].mxu0 %v16840_v38 }
 0x4f6   :  { %v18083_v4 = vpack.c.bf16 %v6427_v57, %v6419_v31  ;;  %v6203_v51 = vpop.f32.mrb[140].mxu1  ;;  %8569 = vmatprep.mubr.bf16.mxu0 %v16864_v41 }
 0x4f7   :  { %v12263_v43 = vadd.f32 %v6203_v51, %v17753_v7  ;;  %v6205_v42 = vpop.f32.mrb[141].mxu1  ;;  %v13971_v51 = vld [vmem:[%s19021_s3 + $0x5a8] ss:$16 sps:$4 sm:$0xff]  }
 0x4f8   :  { %v12264_v27 = vadd.f32 %v6205_v42, %v17761_v13  ;;  %v6207_v15 = vpop.f32.mrb[142].mxu1  ;;  %9375 = vmatpush1.bf16.msra.mxu1 %v13965_v19  ;;  %v13976_v42 = vld [vmem:[%s19021_s3 + $0x5cc] ss:$16 sps:$4 sm:$0xff]  }
 0x4f9   :  { %v12265_v22 = vadd.f32 %v6207_v15, %v17753_v7  ;;  %v6209_v9 = vpop.f32.mrb[143].mxu1  ;;  %9376 = vmatprep.subr.bf16.mxu1 %v13970_v10  ;;  %v6434_v54 = vmax.f32 %v12263_v43, 0.0 }
 0x4fa   :  { %v12266_v50 = vadd.f32 %v6209_v9, %v17761_v13  ;;  %v6435_v57 = vmax.f32 %v12264_v27, 0.0 }
 0x4fb   :  { %v6442_v31 = vmax.f32 %v12265_v22, 0.0  ;;  %9252 = vmatmul.mubr.bf16.gmra.mrb[184].mxu1 %v16589_v28  ;;  %v13974_v22 = vld [vmem:[%s19021_s3 + $0x5c8] ss:$16 sps:$4 sm:$0xff]  }
 0x4fc   :  { %v6443_v19 = vmax.f32 %v12266_v50, 0.0  ;;  %9261 = vmatprep.mubr.bf16.mxu1 %v16630_v47  ;;  %9377 = vmatpush1.bf16.msra.mxu1 %v13968_v60  ;;  %v13979_v50 = vld [vmem:[%s19021_s3 + $0x5ec] ss:$16 sps:$4 sm:$0xff]  }
 0x4fd   :  { %v18102_v10 = vpack.c.bf16 %v6442_v31, %v6434_v54  ;;  %9378 = vmatprep.subr.bf16.mxu1 %v13973_v5  ;;  %8570 = vmatmul.mubr.bf16.gmra.mrb[188].mxu0 %v16862_v18 }
 0x4fe   :  { %v18107_v43 = vpack.c.bf16 %v6443_v19, %v6435_v57  ;;  %v6213_v15 = vpop.f32.mrb[144].mxu1  ;;  %8612 = vmatprep.mubr.bf16.mxu0 %v17568_v35  ;;  %v13980_v19 = vld [vmem:[%s19021_s3 + $0x600] ss:$16 sps:$4 sm:$0xff]  }
 0x4ff   :  { %v12267_v28 = vadd.f32 %v6213_v15, %v17753_v7  ;;  %v6215_v47 = vpop.f32.mrb[145].mxu1 }
 0x500   :  { %v12268_v27 = vadd.f32 %v6215_v47, %v17761_v13  ;;  %v6217_v60 = vpop.f32.mrb[146].mxu1  ;;  %9379 = vmatpush1.bf16.msra.mxu1 %v13971_v51 }
 0x501   :  { %v12269_v9 = vadd.f32 %v6217_v60, %v17753_v7  ;;  %v6219_v5 = vpop.f32.mrb[147].mxu1  ;;  %9380 = vmatprep.subr.bf16.mxu1 %v13976_v42  ;;  %v6450_v31 = vmax.f32 %v12267_v28, 0.0  ;;  %v13977_v42 = vld [vmem:[%s19021_s3 + $0x5e8] ss:$16 sps:$4 sm:$0xff]   ;;  %v13985_v28 = vld [vmem:[%s19021_s3 + $0x624] ss:$16 sps:$4 sm:$0xff]  }
 0x502   :  { %v12270_v54 = vadd.f32 %v6219_v5, %v17761_v13  ;;  %v6451_v51 = vmax.f32 %v12268_v27, 0.0 }
 0x503   :  { %v6458_v57 = vmax.f32 %v12269_v9, 0.0  ;;  %9262 = vmatmul.mubr.bf16.gmra.mrb[188].mxu1 %v16628_v24  ;;  %v13988_v24 = vld [vmem:[%s19021_s3 + $0x60c] ss:$16 sps:$4 sm:$0xff]   ;;  %v13983_v9 = vld [vmem:[%s19021_s3 + $0x620] ss:$16 sps:$4 sm:$0xff]  }
 0x504   :  { %v6459_v15 = vmax.f32 %v12270_v54, 0.0  ;;  %9271 = vmatprep.mubr.bf16.mxu1 %v19214_v30  ;;  %9381 = vmatpush1.bf16.msra.mxu1 %v13974_v22  ;;  %v13991_v54 = vld [vmem:[%s19021_s3 + $0x644] ss:$16 sps:$4 sm:$0xff]  }
 0x505   :  { %v18132_v47 = vpack.c.bf16 %v6458_v57, %v6450_v31  ;;  %9382 = vmatprep.subr.bf16.mxu1 %v13979_v50  ;;  %8613 = vmatmul.mubr.bf16.vlgmr.msra.gmra.mrb[128].mxu0 %v17563_v39 }
 0x506   :  { %v18137_v27 = vpack.c.bf16 %v6459_v15, %v6451_v51  ;;  %v6223_v60 = vpop.f32.mrb[148].mxu1  ;;  %8622 = vmatprep.mubr.bf16.mxu0 %v17592_v1  ;;  %8774 = vmatpush1.bf16.msra.mxu0 %v13980_v19 }
 0x507   :  { %v12271_v30 = vadd.f32 %v6223_v60, %v17753_v7  ;;  %v6225_v22 = vpop.f32.mrb[149].mxu1  ;;  %8775 = vmatprep.subr.bf16.mxu0 %v13985_v28 }
 0x508   :  { %v12272_v5 = vadd.f32 %v6225_v22, %v17761_v13  ;;  %v6227_v50 = vpop.f32.mrb[150].mxu1  ;;  %9383 = vmatpush1.bf16.msra.mxu1 %v13977_v42  ;;  %v13989_v42 = vld [vmem:[%s19021_s3 + $0x640] ss:$16 sps:$4 sm:$0xff]  }
 0x509   :  { %v12273_v31 = vadd.f32 %v6227_v50, %v17753_v7  ;;  %v6229_v57 = vpop.f32.mrb[151].mxu1  ;;  %9545 = vmatprep.subr.bf16.mxu1 %v13988_v24  ;;  %v6466_v19 = vmax.f32 %v12271_v30, 0.0  ;;  %v13994_v24 = vld [vmem:[%s19021_s3 + $0x664] ss:$16 sps:$4 sm:$0xff]  }
 0x50a   :  { %v12274_v51 = vadd.f32 %v6229_v57, %v17761_v13  ;;  %8776 = vmatpush1.bf16.msra.mxu0 %v13983_v9  ;;  %v6467_v28 = vmax.f32 %v12272_v5, 0.0 }
 0x50b   :  { %v6474_v15 = vmax.f32 %v12273_v31, 0.0  ;;  %9272 = vmatmul.mubr.bf16.gmra.mrb[192].mxu1 %v19218_v37  ;;  %8777 = vmatprep.subr.bf16.mxu0 %v13991_v54  ;;  %v14000_v31 = vld [vmem:[%s19021_s3 + $0x684] ss:$16 sps:$4 sm:$0xff]  }
 0x50c   :  { %v6475_v60 = vmax.f32 %v12274_v51, 0.0  ;;  %9281 = vmatprep.mubr.bf16.mxu1 %v19219_v45  ;;  %v13992_v45 = vld [vmem:[%s19021_s3 + $0x660] ss:$16 sps:$4 sm:$0xff]  }
 0x50d   :  { %v18159_v22 = vpack.c.bf16 %v6474_v15, %v6466_v19  ;;  %8623 = vmatmul.mubr.bf16.gmra.mrb[132].mxu0 %v17587_v26 }
 0x50e   :  { %v18161_v30 = vpack.c.bf16 %v6475_v60, %v6467_v28  ;;  %v6233_v50 = vpop.f32.mrb[152].mxu1  ;;  %8632 = vmatprep.mubr.bf16.mxu0 %v17616_v46  ;;  %8778 = vmatpush1.bf16.msra.mxu0 %v13989_v42  ;;  %v13998_v42 = vld [vmem:[%s19021_s3 + $0x680] ss:$16 sps:$4 sm:$0xff]  }
 0x50f   :  { %v12275_v37 = vadd.f32 %v6233_v50, %v17753_v7  ;;  %v6235_v9 = vpop.f32.mrb[153].mxu1  ;;  %8779 = vmatprep.subr.bf16.mxu0 %v13994_v24  ;;  %v14003_v50 = vld [vmem:[%s19021_s3 + $0x6a4] ss:$16 sps:$4 sm:$0xff]  }
 0x510   :  { %v12276_v5 = vadd.f32 %v6235_v9, %v17761_v13  ;;  %v6237_v54 = vpop.f32.mrb[154].mxu1 }
 0x511   :  { %v12277_v57 = vadd.f32 %v6237_v54, %v17753_v7  ;;  %v6239_v51 = vpop.f32.mrb[155].mxu1  ;;  %v6482_v15 = vmax.f32 %v12275_v37, 0.0 }
 0x512   :  { %v12278_v19 = vadd.f32 %v6239_v51, %v17761_v13  ;;  %8780 = vmatpush1.bf16.msra.mxu0 %v13992_v45  ;;  %v6483_v60 = vmax.f32 %v12276_v5, 0.0 }
 0x513   :  { %v6490_v28 = vmax.f32 %v12277_v57, 0.0  ;;  %9282 = vmatmul.mubr.bf16.gmra.mrb[196].mxu1 %v19224_v12  ;;  %8781 = vmatprep.subr.bf16.mxu0 %v14000_v31  ;;  %v14009_v57 = vld [vmem:[%s19021_s3 + $0x6c4] ss:$16 sps:$4 sm:$0xff]  }
 0x514   :  { %v6491_v24 = vmax.f32 %v12278_v19, 0.0  ;;  %9291 = vmatprep.mubr.bf16.mxu1 %v19225_v16  ;;  %v14001_v16 = vld [vmem:[%s19021_s3 + $0x6a0] ss:$16 sps:$4 sm:$0xff]  }
 0x515   :  { %v18183_v9 = vpack.c.bf16 %v6490_v28, %v6482_v15  ;;  %8633 = vmatmul.mubr.bf16.gmra.mrb[136].mxu0 %v17611_v63 }
 0x516   :  { %v18185_v37 = vpack.c.bf16 %v6491_v24, %v6483_v60  ;;  %v6243_v54 = vpop.f32.mrb[156].mxu1  ;;  %8642 = vmatprep.mubr.bf16.mxu0 %v17640_v17  ;;  %8782 = vmatpush1.bf16.msra.mxu0 %v13998_v42  ;;  %v14007_v42 = vld [vmem:[%s19021_s3 + $0x6c0] ss:$16 sps:$4 sm:$0xff]  }
 0x517   :  { %v12279_v12 = vadd.f32 %v6243_v54, %v17753_v7  ;;  %v6245_v45 = vpop.f32.mrb[157].mxu1  ;;  %8783 = vmatprep.subr.bf16.mxu0 %v14003_v50 }
 0x518   :  { %v12280_v5 = vadd.f32 %v6245_v45, %v17761_v13  ;;  %v6247_v31 = vpop.f32.mrb[158].mxu1  ;;  %v14021_v45 = vld [vmem:[%s19021_s3 + $0x724] ss:$16 sps:$4 sm:$0xff]  }
 0x519   :  { %v12281_v51 = vadd.f32 %v6247_v31, %v17753_v7  ;;  %v6249_v19 = vpop.f32.mrb[159].mxu1  ;;  %v6498_v28 = vmax.f32 %v12279_v12, 0.0  ;;  %v14012_v7 = vld [vmem:[%s19021_s3 + $0x6e4] ss:$16 sps:$4 sm:$0xff]   ;;  %v14016_v12 = vld [vmem:[%s19021_s3 + $0x700] ss:$16 sps:$4 sm:$0xff]  }
 0x51a   :  { %v12282_v15 = vadd.f32 %v6249_v19, %v17761_v13  ;;  %8784 = vmatpush1.bf16.msra.mxu0 %v14001_v16  ;;  %v6499_v24 = vmax.f32 %v12280_v5, 0.0  ;;  %v19230_v16 = vld [vmem:[#allocation13_spill] sm:$0xff]  ;;  %v14027_v5 = vld [vmem:[%s19021_s3 + $0x744] ss:$16 sps:$4 sm:$0xff]  }
 0x51b   :  { %v6506_v60 = vmax.f32 %v12281_v51, 0.0  ;;  %9292 = vmatmul.mubr.bf16.gmra.mrb[200].mxu1 %v19227_v62  ;;  %8785 = vmatprep.subr.bf16.mxu0 %v14009_v57  ;;  %v14010_v62 = vld [vmem:[%s19021_s3 + $0x6e0] ss:$16 sps:$4 sm:$0xff]   ;;  %v14030_v31 = vld [vmem:[%s19021_s3 + $0x764] ss:$16 sps:$4 sm:$0xff]   ;;  %v19232_v51 = vld [vmem:[#allocation15_spill] sm:$0xff] }
 0x51c   :  { %v6507_v50 = vmax.f32 %v12282_v15, 0.0  ;;  %9301 = vmatprep.mubr.bf16.mxu1 %v19228_v21  ;;  %v14018_v21 = vld [vmem:[%s19021_s3 + $0x704] ss:$16 sps:$4 sm:$0xff]  }
 0x51d   :  { %v18207_v54 = vpack.c.bf16 %v6506_v60, %v6498_v28  ;;  %8643 = vmatmul.mubr.bf16.gmra.mrb[140].mxu0 %v17635_v59  ;;  %v19231_v57 = vld [vmem:[#allocation14_spill] sm:$0xff]  ;;  %v19233_v28 = vld [vmem:[#allocation16_spill] sm:$0xff]  ;;  %v19234_v60 = vld [vmem:[#allocation17_spill] sm:$0xff] }
 0x51e   :  { %v18209_v13 = vpack.c.bf16 %v6507_v50, %v6499_v24  ;;  %8652 = vmatprep.mubr.bf16.mxu0 %v17664_v6  ;;  %8786 = vmatpush1.bf16.msra.mxu0 %v14007_v42  ;;  %v14036_v19 = vld [vmem:[%s19021_s3 + $0x784] ss:$16 sps:$4 sm:$0xff]  }
 0x51f   :  { %8787 = vmatprep.subr.bf16.mxu0 %v14012_v7  ;;  %v14039_v15 = vld [vmem:[%s19021_s3 + $0x7a4] ss:$16 sps:$4 sm:$0xff]   ;;  %v19236_v7 = vld [vmem:[#allocation19_spill] sm:$0xff] }
 0x520   :  { %v14045_v42 = vld [vmem:[%s19021_s3 + $0x7c4] ss:$16 sps:$4 sm:$0xff]  }
 0x521   :  { %v14048_v24 = vld [vmem:[%s19021_s3 + $0x7e4] ss:$16 sps:$4 sm:$0xff]  }
 0x522   :  { %8788 = vmatpush1.bf16.msra.mxu0 %v14010_v62  ;;  %v19235_v50 = vld [vmem:[#allocation18_spill] sm:$0xff]  ;;  %v13986_v62 = vld [vmem:[%s19021_s3 + $0x608] ss:$16 sps:$4 sm:$0xff]  }
 0x523   :  { %9302 = vmatmul.mubr.bf16.gmra.mrb[204].mxu1 %v19229_v20  ;;  %8789 = vmatprep.subr.bf16.mxu0 %v14018_v21  ;;  %v14019_v20 = vld [vmem:[%s19021_s3 + $0x720] ss:$16 sps:$4 sm:$0xff]   ;;  %v13997_v21 = vld [vmem:[%s19021_s3 + $0x62c] ss:$16 sps:$4 sm:$0xff]  }
 0x524   :  { %9311 = vmatprep.mubr.bf16.mxu1 %v16798_v56  ;;  %v14025_v56 = vld [vmem:[%s19021_s3 + $0x740] ss:$16 sps:$4 sm:$0xff]  }
 0x525   :  { %8653 = vmatmul.mubr.bf16.gmra.mrb[144].mxu0 %v17659_v23 }
 0x526   :  { %8662 = vmatprep.mubr.bf16.mxu0 %v19230_v16  ;;  %8790 = vmatpush1.bf16.msra.mxu0 %v14016_v12  ;;  %v19238_v12 = vld [vmem:[#allocation24_spill] sm:$0xff] }
 0x527   :  { %8791 = vmatprep.subr.bf16.mxu0 %v14021_v45  ;;  %v14013_v45 = vld [vmem:[%s19021_s3 + $0x668] ss:$16 sps:$4 sm:$0xff]  }
 0x52a   :  { %8792 = vmatpush1.bf16.msra.mxu0 %v14019_v20  ;;  %v14024_v20 = vld [vmem:[%s19021_s3 + $0x68c] ss:$16 sps:$4 sm:$0xff]  }
 0x52b   :  { %9312 = vmatmul.mubr.bf16.gmra.mrb[208].mxu1 %v16794_v55  ;;  %8793 = vmatprep.subr.bf16.mxu0 %v14027_v5  ;;  %v14028_v55 = vld [vmem:[%s19021_s3 + $0x760] ss:$16 sps:$4 sm:$0xff]   ;;  %v14031_v5 = vld [vmem:[%s19021_s3 + $0x6a8] ss:$16 sps:$4 sm:$0xff]  }
 0x52c   :  { %9321 = vmatprep.mubr.bf16.mxu1 %v16820_v14  ;;  %v14034_v14 = vld [vmem:[%s19021_s3 + $0x780] ss:$16 sps:$4 sm:$0xff]  }
 0x52d   :  { %8663 = vmatmul.mubr.bf16.gmra.mrb[148].mxu0 %v19231_v57 }
 0x52e   :  { %8672 = vmatprep.mubr.bf16.mxu0 %v19232_v51  ;;  %8794 = vmatpush1.bf16.msra.mxu0 %v14025_v56  ;;  %v14042_v56 = vld [vmem:[%s19021_s3 + $0x6cc] ss:$16 sps:$4 sm:$0xff]  }
 0x52f   :  { %8795 = vmatprep.subr.bf16.mxu0 %v14030_v31  ;;  %v19239_v31 = vld [vmem:[#allocation3_spill] sm:$0xff] }
 0x532   :  { %8796 = vmatpush1.bf16.msra.mxu0 %v14028_v55  ;;  %v14049_v55 = vld [vmem:[%s19021_s3 + $0x6e8] ss:$16 sps:$4 sm:$0xff]  }
 0x533   :  { %9322 = vmatmul.mubr.bf16.gmra.mrb[212].mxu1 %v16818_v61  ;;  %8797 = vmatprep.subr.bf16.mxu0 %v14036_v19  ;;  %v14037_v61 = vld [vmem:[%s19021_s3 + $0x7a0] ss:$16 sps:$4 sm:$0xff]   ;;  %v14054_v19 = vld [vmem:[%s19021_s3 + $0x70c] ss:$16 sps:$4 sm:$0xff]  }
 0x534   :  { %9331 = vmatprep.mubr.bf16.mxu1 %v16842_v40  ;;  %v14043_v40 = vld [vmem:[%s19021_s3 + $0x7c0] ss:$16 sps:$4 sm:$0xff]  }
 0x535   :  { %8673 = vmatmul.mubr.bf16.gmra.mrb[152].mxu0 %v19233_v28 }
 0x536   :  { %8682 = vmatprep.mubr.bf16.mxu0 %v19234_v60  ;;  %8798 = vmatpush1.bf16.msra.mxu0 %v14034_v14  ;;  %v19240_v14 = vld [vmem:[#allocation10_spill] sm:$0xff] }
 0x537   :  { %8799 = vmatprep.subr.bf16.mxu0 %v14039_v15  ;;  %v19241_v15 = vld [vmem:[#allocation26_spill] sm:$0xff] }
 0x53a   :  { %8800 = vmatpush1.bf16.msra.mxu0 %v14037_v61  ;;  %v14055_v61 = vld [vmem:[%s19021_s3 + $0x728] ss:$16 sps:$4 sm:$0xff]  }
 0x53b   :  { %9332 = vmatmul.mubr.bf16.gmra.mrb[216].mxu1 %v16840_v38  ;;  %8801 = vmatprep.subr.bf16.mxu0 %v14045_v42  ;;  %v14046_v38 = vld [vmem:[%s19021_s3 + $0x7e0] ss:$16 sps:$4 sm:$0xff]   ;;  %v14060_v42 = vld [vmem:[%s19021_s3 + $0x74c] ss:$16 sps:$4 sm:$0xff]  }
 0x53c   :  { %9341 = vmatprep.mubr.bf16.mxu1 %v16864_v41  ;;  %v19237_v41 = vld [vmem:[#allocation20_spill] sm:$0xff] }
 0x53d   :  { %8683 = vmatmul.mubr.bf16.gmra.mrb[156].mxu0 %v19235_v50 }
 0x53e   :  { %8692 = vmatprep.mubr.bf16.mxu0 %v19236_v7  ;;  %8802 = vmatpush1.bf16.msra.mxu0 %v14043_v40  ;;  %v19242_v40 = vld [vmem:[#allocation11_spill] sm:$0xff] }
 0x53f   :  { %8803 = vmatprep.subr.bf16.mxu0 %v14048_v24  ;;  %v14061_v24 = vld [vmem:[%s19021_s3 + $0x768] ss:$16 sps:$4 sm:$0xff]  }
 0x542   :  { %8804 = vmatpush1.bf16.msra.mxu0 %v14046_v38  ;;  %v14066_v38 = vld [vmem:[%s19021_s3 + $0x78c] ss:$16 sps:$4 sm:$0xff]  }
 0x543   :  { %9342 = vmatmul.mubr.bf16.gmra.mrb[220].mxu1 %v16862_v18  ;;  %v13995_v18 = vld [vmem:[%s19021_s3 + $0x628] ss:$16 sps:$4 sm:$0xff]  }
 0x544   :  { %9384 = vmatprep.mubr.bf16.mxu1 %v17568_v35  ;;  %v14006_v35 = vld [vmem:[%s19021_s3 + $0x64c] ss:$16 sps:$4 sm:$0xff]  }
 0x545   :  { %8693 = vmatmul.mubr.bf16.gmra.mrb[160].mxu0 %v19237_v41 }
 0x546   :  { %8702 = vmatprep.mubr.bf16.mxu0 %v17811_v36 }
 0x54b   :  { %9385 = vmatmul.mubr.bf16.vlgmr.msra.gmra.mrb[160].mxu1 %v17563_v39  ;;  %v14004_v39 = vld [vmem:[%s19021_s3 + $0x648] ss:$16 sps:$4 sm:$0xff]  }
 0x54c   :  { %9394 = vmatprep.mubr.bf16.mxu1 %v17592_v1  ;;  %9546 = vmatpush1.bf16.msra.mxu1 %v13986_v62  ;;  %v14015_v1 = vld [vmem:[%s19021_s3 + $0x66c] ss:$16 sps:$4 sm:$0xff]  }
 0x54d   :  { %9547 = vmatprep.subr.bf16.mxu1 %v13997_v21  ;;  %8703 = vmatmul.mubr.bf16.gmra.mrb[164].mxu0 %v19238_v12  ;;  %v19243_v62 = vld [vmem:[#allocation27_spill] sm:$0xff] }
 0x54e   :  { %8712 = vmatprep.mubr.bf16.mxu0 %v17843_v3  ;;  %v14067_v21 = vld [vmem:[%s19021_s3 + $0x7a8] ss:$16 sps:$4 sm:$0xff]  }
 0x550   :  { %9548 = vmatpush1.bf16.msra.mxu1 %v13995_v18  ;;  %v14072_v18 = vld [vmem:[%s19021_s3 + $0x7cc] ss:$16 sps:$4 sm:$0xff]  }
 0x551   :  { %9549 = vmatprep.subr.bf16.mxu1 %v14006_v35  ;;  %v19244_v35 = vld [vmem:[#allocation21_spill] sm:$0xff] }
 0x553   :  { %9395 = vmatmul.mubr.bf16.gmra.mrb[164].mxu1 %v17587_v26  ;;  %v14022_v26 = vld [vmem:[%s19021_s3 + $0x688] ss:$16 sps:$4 sm:$0xff]  }
 0x554   :  { %9404 = vmatprep.mubr.bf16.mxu1 %v17616_v46  ;;  %9550 = vmatpush1.bf16.msra.mxu1 %v14004_v39  ;;  %v14033_v46 = vld [vmem:[%s19021_s3 + $0x6ac] ss:$16 sps:$4 sm:$0xff]   ;;  %v14073_v39 = vld [vmem:[%s19021_s3 + $0x7e8] ss:$16 sps:$4 sm:$0xff]  }
 0x555   :  { %9551 = vmatprep.subr.bf16.mxu1 %v14015_v1  ;;  %8713 = vmatmul.mubr.bf16.gmra.mrb[168].mxu0 %v17837_v25  ;;  %v19245_v1 = vld [vmem:[#allocation22_spill] sm:$0xff] }
 0x556   :  { %8722 = vmatprep.mubr.bf16.mxu0 %v17875_v49 }
 0x558   :  { %9552 = vmatpush1.bf16.msra.mxu1 %v14013_v45  ;;  %v19246_v45 = vld [vmem:[#allocation7_spill] sm:$0xff] }
 0x559   :  { %9553 = vmatprep.subr.bf16.mxu1 %v14024_v20  ;;  %v19247_v20 = vld [vmem:[#allocation23_spill] sm:$0xff] }
 0x55b   :  { %9405 = vmatmul.mubr.bf16.gmra.mrb[168].mxu1 %v17611_v63  ;;  %v14040_v63 = vld [vmem:[%s19021_s3 + $0x6c8] ss:$16 sps:$4 sm:$0xff]  }
 0x55c   :  { %9414 = vmatprep.mubr.bf16.mxu1 %v17640_v17  ;;  %9554 = vmatpush1.bf16.msra.mxu1 %v14022_v26  ;;  %v14051_v17 = vld [vmem:[%s19021_s3 + $0x6ec] ss:$16 sps:$4 sm:$0xff]   ;;  %v19250_v26 = vld [vmem:[#allocation4_spill] sm:$0xff] }
 0x55d   :  { %9555 = vmatprep.subr.bf16.mxu1 %v14033_v46  ;;  %8723 = vmatmul.mubr.bf16.gmra.mrb[172].mxu0 %v19239_v31  ;;  %v19251_v46 = vld [vmem:[#allocation5_spill] sm:$0xff] }
 0x55e   :  { %8732 = vmatprep.mubr.bf16.mxu0 %v17904_v32 }
 0x560   :  { %9556 = vmatpush1.bf16.msra.mxu1 %v14031_v5  ;;  %v14080_v5 = vld [vmem:[%s19022_s5 + $0x48] sm:$0xff]  }
 0x561   :  { %9557 = vmatprep.subr.bf16.mxu1 %v14042_v56  ;;  %v14081_v56 = vld [vmem:[%s19022_s5 + $0x8] sm:$0xff]  }
 0x563   :  { %9415 = vmatmul.mubr.bf16.gmra.mrb[172].mxu1 %v17635_v59  ;;  %v14052_v59 = vld [vmem:[%s19021_s3 + $0x708] ss:$16 sps:$4 sm:$0xff]  }
 0x564   :  { %9424 = vmatprep.mubr.bf16.mxu1 %v17664_v6  ;;  %9558 = vmatpush1.bf16.msra.mxu1 %v14040_v63  ;;  %v14057_v6 = vld [vmem:[%s19021_s3 + $0x72c] ss:$16 sps:$4 sm:$0xff]   ;;  %v14079_v63 = vld [vmem:[%s19022_s5 + $0x80] sm:$0xff]  }
 0x565   :  { %9559 = vmatprep.subr.bf16.mxu1 %v14051_v17  ;;  %8733 = vmatmul.mubr.bf16.gmra.mrb[176].mxu0 %v19240_v14  ;;  %v14082_v17 = vld [vmem:[%s19022_s5 + $0xc8] sm:$0xff]  }
 0x566   :  { %8742 = vmatprep.mubr.bf16.mxu0 %v19241_v15 }
 0x568   :  { %9560 = vmatpush1.bf16.msra.mxu1 %v14049_v55  ;;  %v14090_v55 = vld [vmem:[%s19022_s5 + $0x60] sm:$0xff]  }
 0x569   :  { %9561 = vmatprep.subr.bf16.mxu1 %v14054_v19  ;;  %v14091_v19 = vld [vmem:[%s19022_s5 + $0x20] sm:$0xff]  }
 0x56b   :  { %9425 = vmatmul.mubr.bf16.gmra.mrb[176].mxu1 %v17659_v23  ;;  %v14058_v23 = vld [vmem:[%s19021_s3 + $0x748] ss:$16 sps:$4 sm:$0xff]  }
 0x56c   :  { %9434 = vmatprep.mubr.bf16.mxu1 %v19230_v16  ;;  %9562 = vmatpush1.bf16.msra.mxu1 %v14052_v59  ;;  %v14063_v16 = vld [vmem:[%s19021_s3 + $0x76c] ss:$16 sps:$4 sm:$0xff]   ;;  %v14086_v59 = vld [vmem:[%s19022_s5 + $0xd0] sm:$0xff]  }
 0x56d   :  { %9563 = vmatprep.subr.bf16.mxu1 %v14057_v6  ;;  %8743 = vmatmul.mubr.bf16.gmra.mrb[180].mxu0 %v19242_v40  ;;  %v14087_v6 = vld [vmem:[%s19022_s5 + $0x90] sm:$0xff]  }
 0x56e   :  { %8752 = vmatprep.mubr.bf16.mxu0 %v17962_v44 }
 0x570   :  { %9564 = vmatpush1.bf16.msra.mxu1 %v14055_v61  ;;  %v14093_v61 = vld [vmem:[%s19022_s5 + $0xd8] sm:$0xff]  }
 0x571   :  { %9565 = vmatprep.subr.bf16.mxu1 %v14060_v42  ;;  %v14094_v42 = vld [vmem:[%s19022_s5 + $0x28] sm:$0xff]  }
 0x573   :  { %9435 = vmatmul.mubr.bf16.gmra.mrb[180].mxu1 %v19231_v57  ;;  %v14064_v57 = vld [vmem:[%s19021_s3 + $0x788] ss:$16 sps:$4 sm:$0xff]  }
 0x574   :  { %9444 = vmatprep.mubr.bf16.mxu1 %v19232_v51  ;;  %9566 = vmatpush1.bf16.msra.mxu1 %v14058_v23  ;;  %v14069_v51 = vld [vmem:[%s19021_s3 + $0x7ac] ss:$16 sps:$4 sm:$0xff]  }
 0x575   :  { %9567 = vmatprep.subr.bf16.mxu1 %v14063_v16  ;;  %8753 = vmatmul.mubr.bf16.gmra.mrb[184].mxu0 %v19243_v62  ;;  %v14095_v23 = vld [vmem:[%s19022_s5 + $0x98] sm:$0xff]   ;;  %v14097_v16 = vld [vmem:[%s19022_s5 + $0x30] sm:$0xff]  }
 0x576   :  { %8762 = vmatprep.mubr.bf16.mxu0 %v17994_v8 }
 0x578   :  { %9568 = vmatpush1.bf16.msra.mxu1 %v14061_v24  ;;  %v14098_v24 = vld [vmem:[%s19022_s5 + $0x78] sm:$0xff]  }
 0x579   :  { %9569 = vmatprep.subr.bf16.mxu1 %v14066_v38  ;;  %v14099_v38 = vld [vmem:[%s19022_s5 + $0x38] sm:$0xff]  }
 0x57b   :  { %9445 = vmatmul.mubr.bf16.gmra.mrb[184].mxu1 %v19233_v28  ;;  %v14070_v28 = vld [vmem:[%s19021_s3 + $0x7c8] ss:$16 sps:$4 sm:$0xff]  }
 0x57c   :  { %9454 = vmatprep.mubr.bf16.mxu1 %v19234_v60  ;;  %9570 = vmatpush1.bf16.msra.mxu1 %v14064_v57  ;;  %v14075_v60 = vld [vmem:[%s19021_s3 + $0x7ec] ss:$16 sps:$4 sm:$0xff]   ;;  %v14101_v57 = vld [vmem:[%s19022_s5 + $0xa0] sm:$0xff]  }
 0x57d   :  { %9571 = vmatprep.subr.bf16.mxu1 %v14069_v51  ;;  %8763 = vmatmul.mubr.bf16.gmra.mrb[188].mxu0 %v17988_v0  ;;  %v14102_v51 = vld [vmem:[%s19022_s5 + $0xe8] sm:$0xff]  }
 0x57e   :  { %8805 = vmatprep.mubr.bf16.mxu0 %v19244_v35 }
 0x580   :  { %9572 = vmatpush1.bf16.msra.mxu1 %v14067_v21  ;;  %v14103_v21 = vld [vmem:[%s19022_s5 + $0xa8] sm:$0xff]  }
 0x581   :  { %9573 = vmatprep.subr.bf16.mxu1 %v14072_v18 }
 0x583   :  { %9455 = vmatmul.mubr.bf16.gmra.mrb[188].mxu1 %v19235_v50  ;;  %v19248_v50 = vld [vmem:[#allocation9_spill] sm:$0xff] }
 0x584   :  { %9464 = vmatprep.mubr.bf16.mxu1 %v19236_v7  ;;  %9574 = vmatpush1.bf16.msra.mxu1 %v14070_v28  ;;  %v19249_v7 = vld [vmem:[#allocation2_spill] sm:$0xff] }
 0x585   :  { %9575 = vmatprep.subr.bf16.mxu1 %v14075_v60  ;;  %8806 = vmatmul.mubr.bf16.vlgmr.msra.gmra.mrb[128].mxu0 %v19245_v1 }
 0x586   :  { %8815 = vmatprep.mubr.bf16.mxu0 %v19246_v45 }
 0x588   :  { %9576 = vmatpush1.bf16.msra.mxu1 %v14073_v39 }
 0x58b   :  { %9465 = vmatmul.mubr.bf16.gmra.mrb[192].mxu1 %v19237_v41  ;;  %v19252_v41 = vld [vmem:[#allocation12_spill] sm:$0xff] }
 0x58c   :  { %9474 = vmatprep.mubr.bf16.mxu1 %v17811_v36  ;;  %v14076_v36 = vld [vmem:[%s19022_s5 + $0x40] sm:$0xff]  }
 0x58d   :  { %8816 = vmatmul.mubr.bf16.gmra.mrb[132].mxu0 %v19247_v20  ;;  %11697 = vmatprep.subr.bf16.mxu0 %v14076_v36 }
 0x58e   :  { %8825 = vmatprep.mubr.bf16.mxu0 %v19248_v50 }
 0x593   :  { %9475 = vmatmul.mubr.bf16.gmra.mrb[196].mxu1 %v19238_v12  ;;  %v19254_v12 = vld [vmem:[#allocation28_spill] sm:$0xff] }
 0x594   :  { %9484 = vmatprep.mubr.bf16.mxu1 %v17843_v3  ;;  %v19253_v3 = vld [vmem:[#allocation6_spill] sm:$0xff] }
 0x595   :  { %8826 = vmatmul.mubr.bf16.gmra.mrb[136].mxu0 %v19249_v7 }
 0x596   :  { %8835 = vmatprep.mubr.bf16.mxu0 %v19250_v26 }
 0x59b   :  { %9485 = vmatmul.mubr.bf16.gmra.mrb[200].mxu1 %v17837_v25  ;;  %v14077_v25 = vld [vmem:[%s19022_s5] sm:$0xff]  }
 0x59c   :  { %9494 = vmatprep.mubr.bf16.mxu1 %v17875_v49  ;;  %v14078_v49 = vld [vmem:[%s19022_s5 + $0xc0] sm:$0xff]   ;;  %11698 = vmatpush3.bf16.msra.mxu0 %v14077_v25 }
 0x59d   :  { %8836 = vmatmul.mubr.bf16.gmra.mrb[140].mxu0 %v19251_v46  ;;  %11809 = vmatprep.subr.bf16.mxu1 %v14078_v49 }
 0x59e   :  { %8845 = vmatprep.mubr.bf16.mxu0 %v19252_v41  ;;  %11699 = vmatprep.subr.bf16.mxu0 %v14080_v5 }
 0x5a0   :  { %11700 = vmatpush3.bf16.msra.mxu0 %v14081_v56 }
 0x5a3   :  { %9495 = vmatmul.mubr.bf16.gmra.mrb[204].mxu1 %v19239_v31  ;;  %v14085_v31 = vld [vmem:[%s19022_s5 + $0x10] sm:$0xff]  }
 0x5a4   :  { %9504 = vmatprep.mubr.bf16.mxu1 %v17904_v32  ;;  %v19255_v32 = vld [vmem:[#allocation25_spill] sm:$0xff] }
 0x5a5   :  { %8846 = vmatmul.mubr.bf16.gmra.mrb[144].mxu0 %v19253_v3 }
 0x5a6   :  { %8855 = vmatprep.mubr.bf16.mxu0 %v19254_v12 }
 0x5ab   :  { %9505 = vmatmul.mubr.bf16.gmra.mrb[208].mxu1 %v19240_v14  ;;  %v14083_v14 = vld [vmem:[%s19022_s5 + $0x88] sm:$0xff]  }
 0x5ac   :  { %9514 = vmatprep.mubr.bf16.mxu1 %v19241_v15  ;;  %v14092_v15 = vld [vmem:[%s19022_s5 + $0x68] sm:$0xff]  }
 0x5ad   :  { %8856 = vmatmul.mubr.bf16.gmra.mrb[148].mxu0 %v19255_v32 }
 0x5ae   :  { %8865 = vmatprep.mubr.bf16.mxu0 %v17983_v33 }
 0x5b3   :  { %9515 = vmatmul.mubr.bf16.gmra.mrb[212].mxu1 %v19242_v40  ;;  %v14096_v40 = vld [vmem:[%s19022_s5 + $0x70] sm:$0xff]  }
 0x5b4   :  { %9524 = vmatprep.mubr.bf16.mxu1 %v17962_v44  ;;  %v14084_v44 = vld [vmem:[%s19022_s5 + $0x50] sm:$0xff]  }
 0x5b5   :  { %8866 = vmatmul.mubr.bf16.gmra.mrb[152].mxu0 %v17977_v34  ;;  %11701 = vmatprep.subr.bf16.mxu0 %v14084_v44 }
 0x5b6   :  { %8875 = vmatprep.mubr.bf16.mxu0 %v18011_v58  ;;  %11702 = vmatpush3.bf16.msra.mxu0 %v14085_v31 }
 0x5bb   :  { %9525 = vmatmul.mubr.bf16.gmra.mrb[216].mxu1 %v19243_v62  ;;  %v14100_v62 = vld [vmem:[%s19022_s5 + $0xe0] sm:$0xff]  }
 0x5bc   :  { %9534 = vmatprep.mubr.bf16.mxu1 %v17994_v8  ;;  %v14088_v8 = vld [vmem:[%s19022_s5 + $0x58] sm:$0xff]  }
 0x5bd   :  { %8876 = vmatmul.mubr.bf16.gmra.mrb[156].mxu0 %v18006_v11  ;;  %11703 = vmatprep.subr.bf16.mxu0 %v14088_v8 }
 0x5be   :  { %8885 = vmatprep.mubr.bf16.mxu0 %v18035_v48 }
 0x5c3   :  { %9535 = vmatmul.mubr.bf16.gmra.mrb[220].mxu1 %v17988_v0  ;;  %v14089_v0 = vld [vmem:[%s19022_s5 + $0x18] sm:$0xff]  }
 0x5c4   :  { %9577 = vmatprep.mubr.bf16.mxu1 %v19244_v35  ;;  %11704 = vmatpush3.bf16.msra.mxu0 %v14089_v0 }
 0x5c5   :  { %8886 = vmatmul.mubr.bf16.gmra.mrb[160].mxu0 %v18030_v52  ;;  %11705 = vmatprep.subr.bf16.mxu0 %v14090_v55 }
 0x5c6   :  { %8895 = vmatprep.mubr.bf16.mxu0 %v18059_v29 }
 0x5c8   :  { %11706 = vmatpush3.bf16.msra.mxu0 %v14091_v19 }
 0x5c9   :  { %11707 = vmatprep.subr.bf16.mxu0 %v14092_v15 }
 0x5cb   :  { %9578 = vmatmul.mubr.bf16.vlgmr.msra.gmra.mrb[160].mxu1 %v19245_v1 }
 0x5cc   :  { %9587 = vmatprep.mubr.bf16.mxu1 %v19246_v45  ;;  %11810 = vmatpush3.bf16.msra.mxu1 %v14079_v63 }
 0x5cd   :  { %11811 = vmatprep.subr.bf16.mxu1 %v14082_v17  ;;  %8896 = vmatmul.mubr.bf16.gmra.mrb[164].mxu0 %v18054_v53 }
 0x5ce   :  { %8905 = vmatprep.mubr.bf16.mxu0 %v18083_v4  ;;  %11708 = vmatpush3.bf16.msra.mxu0 %v14094_v42 }
 0x5cf   :  { %11709 = vmatprep.subr.bf16.mxu0 %v14096_v40 }
 0x5d0   :  { %11812 = vmatpush3.bf16.msra.mxu1 %v14083_v14 }
 0x5d1   :  { %11813 = vmatprep.subr.bf16.mxu1 %v14086_v59 }
 0x5d2   :  { %11710 = vmatpush3.bf16.msra.mxu0 %v14097_v16 }
 0x5d3   :  { %9588 = vmatmul.mubr.bf16.gmra.mrb[164].mxu1 %v19247_v20  ;;  %11711 = vmatprep.subr.bf16.mxu0 %v14098_v24 }
 0x5d4   :  { %9597 = vmatprep.mubr.bf16.mxu1 %v19248_v50  ;;  %11814 = vmatpush3.bf16.msra.mxu1 %v14087_v6 }
 0x5d5   :  { %11815 = vmatprep.subr.bf16.mxu1 %v14093_v61  ;;  %8906 = vmatmul.mubr.bf16.gmra.mrb[168].mxu0 %v18078_v2 }
 0x5d6   :  { %8915 = vmatprep.mubr.bf16.mxu0 %v18107_v43  ;;  %11712 = vmatpush3.bf16.msra.mxu0 %v14099_v38 }
 0x5d8   :  { %11816 = vmatpush3.bf16.msra.mxu1 %v14095_v23 }
 0x5d9   :  { %11817 = vmatprep.subr.bf16.mxu1 %v14100_v62 }
 0x5db   :  { %9598 = vmatmul.mubr.bf16.gmra.mrb[168].mxu1 %v19249_v7 }
 0x5dc   :  { %9607 = vmatprep.mubr.bf16.mxu1 %v19250_v26  ;;  %11818 = vmatpush3.bf16.msra.mxu1 %v14101_v57 }
 0x5dd   :  { %8916 = vmatmul.mubr.bf16.gmra.mrb[172].mxu0 %v18102_v10  ;;  %11819 = vmatprep.subr.bf16.mxu1 %v14102_v51 }
 0x5de   :  { %8925 = vmatprep.mubr.bf16.mxu0 %v18137_v27 }
 0x5e0   :  { %11820 = vmatpush3.bf16.msra.mxu1 %v14103_v21 }
 0x5e3   :  { %9608 = vmatmul.mubr.bf16.gmra.mrb[172].mxu1 %v19251_v46 }
 0x5e4   :  { %9617 = vmatprep.mubr.bf16.mxu1 %v19252_v41 }
 0x5e5   :  { %8926 = vmatmul.mubr.bf16.gmra.mrb[176].mxu0 %v18132_v47 }
 0x5e6   :  { %8935 = vmatprep.mubr.bf16.mxu0 %v18161_v30 }
 0x5eb   :  { %9618 = vmatmul.mubr.bf16.gmra.mrb[176].mxu1 %v19253_v3 }
 0x5ec   :  { %9627 = vmatprep.mubr.bf16.mxu1 %v19254_v12 }
 0x5ed   :  { %8936 = vmatmul.mubr.bf16.gmra.mrb[180].mxu0 %v18159_v22 }
 0x5ee   :  { %8945 = vmatprep.mubr.bf16.mxu0 %v18185_v37 }
 0x5f3   :  { %9628 = vmatmul.mubr.bf16.gmra.mrb[180].mxu1 %v19255_v32 }
 0x5f4   :  { %9637 = vmatprep.mubr.bf16.mxu1 %v17983_v33  ;;  %v14104_v33 = vld [vmem:[%s19022_s5 + $0xf0] sm:$0xff]  }
 0x5f5   :  { %8946 = vmatmul.mubr.bf16.gmra.mrb[184].mxu0 %v18183_v9  ;;  %11821 = vmatprep.subr.bf16.mxu1 %v14104_v33 }
 0x5f6   :  { %8955 = vmatprep.mubr.bf16.mxu0 %v18209_v13 }
 0x5fb   :  { %9638 = vmatmul.mubr.bf16.gmra.mrb[184].mxu1 %v17977_v34  ;;  %v14105_v34 = vld [vmem:[%s19022_s5 + $0xb0] sm:$0xff]  }
 0x5fc   :  { %9647 = vmatprep.mubr.bf16.mxu1 %v18011_v58  ;;  %11822 = vmatpush3.bf16.msra.mxu1 %v14105_v34  ;;  %v14107_v58 = vld [vmem:[%s19022_s5 + $0xb8] sm:$0xff]  }
 0x5fd   :  { %8956 = vmatmul.mubr.bf16.gmra.mrb[188].mxu0 %v18207_v54 }
 0x603   :  { %9648 = vmatmul.mubr.bf16.gmra.mrb[188].mxu1 %v18006_v11  ;;  %v14106_v11 = vld [vmem:[%s19022_s5 + $0xf8] sm:$0xff]  }
 0x604   :  { %9657 = vmatprep.mubr.bf16.mxu1 %v18035_v48  ;;  %11823 = vmatprep.subr.bf16.mxu1 %v14106_v11  ;;  %v19256_v48 = vld [vmem:[#allocation8_spill] sm:$0xff] }
 0x605   :  { %11824 = vmatpush3.bf16.msra.mxu1 %v14107_v58 }
 0x60b   :  { %9658 = vmatmul.mubr.bf16.gmra.mrb[192].mxu1 %v18030_v52  ;;  %v18584_v52 = vld [vmem:[%s19023_s4] sm:$0xf] }
 0x60c   :  { %9667 = vmatprep.mubr.bf16.mxu1 %v18059_v29 }
 0x613   :  { %9668 = vmatmul.mubr.bf16.gmra.mrb[196].mxu1 %v18054_v53  ;;  %v19257_v53 = vsub.s32 0, %v19256_v48 }
 0x614   :  { %9677 = vmatprep.mubr.bf16.mxu1 %v18083_v4 }
 0x615   :  { %v18589_v29 = vrot.slane %v18584_v52, %v19257_v53 }
 0x61b   :  { %9678 = vmatmul.mubr.bf16.gmra.mrb[200].mxu1 %v18078_v2  ;;  %v19258_v2 = vsub.s32 1, %v19256_v48 }
 0x61c   :  { %9687 = vmatprep.mubr.bf16.mxu1 %v18107_v43 }
 0x61d   :  { %v18594_v4 = vrot.slane %v18584_v52, %v19258_v2 }
 0x623   :  { %9688 = vmatmul.mubr.bf16.gmra.mrb[204].mxu1 %v18102_v10 }
 0x624   :  { %9697 = vmatprep.mubr.bf16.mxu1 %v18137_v27 }
 0x62b   :  { %9698 = vmatmul.mubr.bf16.gmra.mrb[208].mxu1 %v18132_v47 }
 0x62c   :  { %9707 = vmatprep.mubr.bf16.mxu1 %v18161_v30 }
 0x633   :  { %9708 = vmatmul.mubr.bf16.gmra.mrb[212].mxu1 %v18159_v22 }
 0x634   :  { %9717 = vmatprep.mubr.bf16.mxu1 %v18185_v37 }
 0x63b   :  { %9718 = vmatmul.mubr.bf16.gmra.mrb[216].mxu1 %v18183_v9 }
 0x63c   :  { %9727 = vmatprep.mubr.bf16.mxu1 %v18209_v13 }
 0x643   :  { %9728 = vmatmul.mubr.bf16.gmra.mrb[220].mxu1 %v18207_v54 }
 0x658   :  { %v8807_v10 = vpop.f32.mrb[128].mxu0 }
 0x659   :  { %v12283_v43 = vadd.f32 %v8807_v10, %v18589_v29  ;;  %v8809_v47 = vpop.f32.mrb[129].mxu0 }
 0x65a   :  { %v12284_v27 = vadd.f32 %v8809_v47, %v18594_v4  ;;  %v8811_v22 = vpop.f32.mrb[130].mxu0 }
 0x65b   :  { %v12285_v30 = vadd.f32 %v8811_v22, %v18589_v29  ;;  %v8813_v9 = vpop.f32.mrb[131].mxu0  ;;  %v9738_v54 = vmax.f32 %v12283_v43, 0.0 }
 0x65c   :  { %v12286_v37 = vadd.f32 %v8813_v9, %v18594_v4  ;;  %v9739_v18 = vmax.f32 %v12284_v27, 0.0 }
 0x65d   :  { %v9742_v13 = vmax.f32 %v12285_v30, 0.0 }
 0x65e   :  { %v9743_v35 = vmax.f32 %v12286_v37, 0.0 }
 0x65f   :  { %v9866_v28 = vpack.c.bf16 %v9742_v13, %v9738_v54 }
 0x660   :  { %v9867_v60 = vpack.c.bf16 %v9743_v35, %v9739_v18  ;;  %v8817_v39 = vpop.f32.mrb[132].mxu0 }
 0x661   :  { %v12287_v1 = vadd.f32 %v8817_v39, %v18589_v29  ;;  %v8819_v45 = vpop.f32.mrb[133].mxu0 }
 0x662   :  { %v12288_v20 = vadd.f32 %v8819_v45, %v18594_v4  ;;  %v8821_v50 = vpop.f32.mrb[134].mxu0  ;;  %10225 = vmatprep.mubr.bf16.mxu0 %v9867_v60 }
 0x663   :  { %v12289_v7 = vadd.f32 %v8821_v50, %v18589_v29  ;;  %v8823_v26 = vpop.f32.mrb[135].mxu0  ;;  %10226 = vmatmul.mubr.bf16.vlgmr.msra.gmra.mrb[192].mxu0 %v9866_v28  ;;  %v9746_v41 = vmax.f32 %v12287_v1, 0.0 }
 0x664   :  { %v12290_v46 = vadd.f32 %v8823_v26, %v18594_v4  ;;  %v9747_v3 = vmax.f32 %v12288_v20, 0.0 }
 0x665   :  { %v9750_v36 = vmax.f32 %v12289_v7, 0.0 }
 0x666   :  { %v9751_v25 = vmax.f32 %v12290_v46, 0.0 }
 0x667   :  { %v9870_v12 = vpack.c.bf16 %v9750_v36, %v9746_v41 }
 0x668   :  { %v9871_v49 = vpack.c.bf16 %v9751_v25, %v9747_v3  ;;  %v8827_v32 = vpop.f32.mrb[136].mxu0 }
 0x669   :  { %v12291_v5 = vadd.f32 %v8827_v32, %v18589_v29  ;;  %v8829_v56 = vpop.f32.mrb[137].mxu0 }
 0x66a   :  { %v12292_v44 = vadd.f32 %v8829_v56, %v18594_v4  ;;  %v8831_v31 = vpop.f32.mrb[138].mxu0  ;;  %10233 = vmatprep.mubr.bf16.mxu0 %v9871_v49 }
 0x66b   :  { %v12293_v8 = vadd.f32 %v8831_v31, %v18589_v29  ;;  %v8833_v0 = vpop.f32.mrb[139].mxu0  ;;  %10234 = vmatmul.mubr.bf16.gmra.mrb[196].mxu0 %v9870_v12  ;;  %v9754_v17 = vmax.f32 %v12291_v5, 0.0 }
 0x66c   :  { %v12294_v63 = vadd.f32 %v8833_v0, %v18594_v4  ;;  %v9755_v19 = vmax.f32 %v12292_v44, 0.0 }
 0x66d   :  { %v9758_v55 = vmax.f32 %v12293_v8, 0.0 }
 0x66e   :  { %v9759_v14 = vmax.f32 %v12294_v63, 0.0 }
 0x66f   :  { %v9874_v15 = vpack.c.bf16 %v9758_v55, %v9754_v17 }
 0x670   :  { %v9875_v59 = vpack.c.bf16 %v9759_v14, %v9755_v19  ;;  %v8837_v6 = vpop.f32.mrb[140].mxu0 }
 0x671   :  { %v12295_v61 = vadd.f32 %v8837_v6, %v18589_v29  ;;  %v8839_v42 = vpop.f32.mrb[141].mxu0 }
 0x672   :  { %v12296_v40 = vadd.f32 %v8839_v42, %v18594_v4  ;;  %v8841_v23 = vpop.f32.mrb[142].mxu0  ;;  %10241 = vmatprep.mubr.bf16.mxu0 %v9875_v59 }
 0x673   :  { %v12297_v16 = vadd.f32 %v8841_v23, %v18589_v29  ;;  %v8843_v24 = vpop.f32.mrb[143].mxu0  ;;  %10242 = vmatmul.mubr.bf16.gmra.mrb[200].mxu0 %v9874_v15  ;;  %v9762_v62 = vmax.f32 %v12295_v61, 0.0 }
 0x674   :  { %v12298_v38 = vadd.f32 %v8843_v24, %v18594_v4  ;;  %v9763_v51 = vmax.f32 %v12296_v40, 0.0 }
 0x675   :  { %v9766_v57 = vmax.f32 %v12297_v16, 0.0 }
 0x676   :  { %v9767_v21 = vmax.f32 %v12298_v38, 0.0 }
 0x677   :  { %v9878_v33 = vpack.c.bf16 %v9766_v57, %v9762_v62 }
 0x678   :  { %v9879_v34 = vpack.c.bf16 %v9767_v21, %v9763_v51  ;;  %v8847_v11 = vpop.f32.mrb[144].mxu0 }
 0x679   :  { %v12299_v58 = vadd.f32 %v8847_v11, %v18589_v29  ;;  %v8849_v53 = vpop.f32.mrb[145].mxu0 }
 0x67a   :  { %v12300_v2 = vadd.f32 %v8849_v53, %v18594_v4  ;;  %v8851_v10 = vpop.f32.mrb[146].mxu0  ;;  %10249 = vmatprep.mubr.bf16.mxu0 %v9879_v34 }
 0x67b   :  { %v12301_v43 = vadd.f32 %v8851_v10, %v18589_v29  ;;  %v8853_v47 = vpop.f32.mrb[147].mxu0  ;;  %10250 = vmatmul.mubr.bf16.gmra.mrb[204].mxu0 %v9878_v33  ;;  %v9770_v22 = vmax.f32 %v12299_v58, 0.0  ;;  %v19259_v58 = vsub.s32 2, %v19256_v48 }
 0x67c   :  { %v12302_v27 = vadd.f32 %v8853_v47, %v18594_v4  ;;  %v9771_v9 = vmax.f32 %v12300_v2, 0.0 }
 0x67d   :  { %v9774_v30 = vmax.f32 %v12301_v43, 0.0  ;;  %v18633_v53 = vrot.slane %v18584_v52, %v19259_v58  ;;  %v19260_v43 = vsub.s32 3, %v19256_v48 }
 0x67e   :  { %v9775_v37 = vmax.f32 %v12302_v27, 0.0 }
 0x67f   :  { %v9882_v54 = vpack.c.bf16 %v9774_v30, %v9770_v22  ;;  %v18639_v47 = vrot.slane %v18584_v52, %v19260_v43 }
 0x680   :  { %v9883_v13 = vpack.c.bf16 %v9775_v37, %v9771_v9  ;;  %v8857_v18 = vpop.f32.mrb[148].mxu0 }
 0x681   :  { %v12303_v35 = vadd.f32 %v8857_v18, %v18589_v29  ;;  %v8859_v28 = vpop.f32.mrb[149].mxu0 }
 0x682   :  { %v12304_v60 = vadd.f32 %v8859_v28, %v18594_v4  ;;  %v8861_v39 = vpop.f32.mrb[150].mxu0  ;;  %10257 = vmatprep.mubr.bf16.mxu0 %v9883_v13 }
 0x683   :  { %v12305_v1 = vadd.f32 %v8861_v39, %v18589_v29  ;;  %v8863_v45 = vpop.f32.mrb[151].mxu0  ;;  %10258 = vmatmul.mubr.bf16.gmra.mrb[208].mxu0 %v9882_v54  ;;  %v9778_v50 = vmax.f32 %v12303_v35, 0.0 }
 0x684   :  { %v12306_v20 = vadd.f32 %v8863_v45, %v18594_v4  ;;  %v9779_v26 = vmax.f32 %v12304_v60, 0.0 }
 0x685   :  { %v9782_v7 = vmax.f32 %v12305_v1, 0.0 }
 0x686   :  { %v9783_v46 = vmax.f32 %v12306_v20, 0.0 }
 0x687   :  { %v9886_v41 = vpack.c.bf16 %v9782_v7, %v9778_v50 }
 0x688   :  { %v9887_v36 = vpack.c.bf16 %v9783_v46, %v9779_v26  ;;  %v8867_v3 = vpop.f32.mrb[152].mxu0 }
 0x689   :  { %v12307_v25 = vadd.f32 %v8867_v3, %v18589_v29  ;;  %v8869_v12 = vpop.f32.mrb[153].mxu0 }
 0x68a   :  { %v12308_v49 = vadd.f32 %v8869_v12, %v18594_v4  ;;  %v8871_v32 = vpop.f32.mrb[154].mxu0  ;;  %10265 = vmatprep.mubr.bf16.mxu0 %v9887_v36 }
 0x68b   :  { %v12309_v5 = vadd.f32 %v8871_v32, %v18589_v29  ;;  %v8873_v56 = vpop.f32.mrb[155].mxu0  ;;  %10266 = vmatmul.mubr.bf16.gmra.mrb[212].mxu0 %v9886_v41  ;;  %v9786_v31 = vmax.f32 %v12307_v25, 0.0 }
 0x68c   :  { %v12310_v44 = vadd.f32 %v8873_v56, %v18594_v4  ;;  %v9787_v0 = vmax.f32 %v12308_v49, 0.0 }
 0x68d   :  { %v9790_v8 = vmax.f32 %v12309_v5, 0.0 }
 0x68e   :  { %v9791_v63 = vmax.f32 %v12310_v44, 0.0 }
 0x68f   :  { %v9890_v17 = vpack.c.bf16 %v9790_v8, %v9786_v31 }
 0x690   :  { %v9891_v55 = vpack.c.bf16 %v9791_v63, %v9787_v0  ;;  %v8877_v19 = vpop.f32.mrb[156].mxu0 }
 0x691   :  { %v12311_v14 = vadd.f32 %v8877_v19, %v18589_v29  ;;  %v8879_v15 = vpop.f32.mrb[157].mxu0 }
 0x692   :  { %v12312_v59 = vadd.f32 %v8879_v15, %v18594_v4  ;;  %v8881_v6 = vpop.f32.mrb[158].mxu0  ;;  %10273 = vmatprep.mubr.bf16.mxu0 %v9891_v55 }
 0x693   :  { %v12313_v61 = vadd.f32 %v8881_v6, %v18589_v29  ;;  %v8883_v42 = vpop.f32.mrb[159].mxu0  ;;  %10274 = vmatmul.mubr.bf16.gmra.mrb[216].mxu0 %v9890_v17  ;;  %v9794_v23 = vmax.f32 %v12311_v14, 0.0 }
 0x694   :  { %v12314_v40 = vadd.f32 %v8883_v42, %v18594_v4  ;;  %v9795_v24 = vmax.f32 %v12312_v59, 0.0 }
 0x695   :  { %v9798_v16 = vmax.f32 %v12313_v61, 0.0 }
 0x696   :  { %v9799_v38 = vmax.f32 %v12314_v40, 0.0 }
 0x697   :  { %v9894_v62 = vpack.c.bf16 %v9798_v16, %v9794_v23 }
 0x698   :  { %v9895_v57 = vpack.c.bf16 %v9799_v38, %v9795_v24  ;;  %v8887_v51 = vpop.f32.mrb[160].mxu0 }
 0x699   :  { %v12315_v21 = vadd.f32 %v8887_v51, %v18589_v29  ;;  %v8889_v33 = vpop.f32.mrb[161].mxu0 }
 0x69a   :  { %v12316_v34 = vadd.f32 %v8889_v33, %v18594_v4  ;;  %v8891_v11 = vpop.f32.mrb[162].mxu0  ;;  %10281 = vmatprep.mubr.bf16.mxu0 %v9895_v57 }
 0x69b   :  { %v12317_v2 = vadd.f32 %v8891_v11, %v18589_v29  ;;  %v8893_v10 = vpop.f32.mrb[163].mxu0  ;;  %10282 = vmatmul.mubr.bf16.gmra.mrb[220].mxu0 %v9894_v62  ;;  %v9802_v22 = vmax.f32 %v12315_v21, 0.0 }
 0x69c   :  { %v12318_v27 = vadd.f32 %v8893_v10, %v18594_v4  ;;  %v9803_v37 = vmax.f32 %v12316_v34, 0.0 }
 0x69d   :  { %v9806_v30 = vmax.f32 %v12317_v2, 0.0 }
 0x69e   :  { %v9579_v9 = vpop.f32.mrb[160].mxu1  ;;  %v9807_v54 = vmax.f32 %v12318_v27, 0.0 }
 0x69f   :  { %v12347_v13 = vadd.f32 %v9579_v9, %v18633_v53  ;;  %v9581_v18 = vpop.f32.mrb[161].mxu1  ;;  %v9898_v35 = vpack.c.bf16 %v9806_v30, %v9802_v22 }
 0x6a0   :  { %v12348_v28 = vadd.f32 %v9581_v18, %v18639_v47  ;;  %v9583_v60 = vpop.f32.mrb[162].mxu1  ;;  %v9899_v39 = vpack.c.bf16 %v9807_v54, %v9803_v37  ;;  %v8897_v52 = vpop.f32.mrb[164].mxu0 }
 0x6a1   :  { %v12349_v48 = vadd.f32 %v9583_v60, %v18633_v53  ;;  %v9585_v1 = vpop.f32.mrb[163].mxu1  ;;  %v12319_v20 = vadd.f32 %v8897_v52, %v18589_v29  ;;  %v8899_v50 = vpop.f32.mrb[165].mxu0  ;;  %v9740_v7 = vmax.f32 %v12347_v13, 0.0 }
 0x6a2   :  { %v12350_v45 = vadd.f32 %v9585_v1, %v18639_v47  ;;  %v12320_v46 = vadd.f32 %v8899_v50, %v18594_v4  ;;  %v8901_v41 = vpop.f32.mrb[166].mxu0  ;;  %10289 = vmatprep.mubr.bf16.mxu0 %v9899_v39  ;;  %v9741_v36 = vmax.f32 %v12348_v28, 0.0 }
 0x6a3   :  { %v9744_v26 = vmax.f32 %v12349_v48, 0.0  ;;  %v12321_v25 = vadd.f32 %v8901_v41, %v18589_v29  ;;  %v8903_v12 = vpop.f32.mrb[167].mxu0  ;;  %10290 = vmatmul.mubr.bf16.gmra.mrb[224].mxu0 %v9898_v35  ;;  %v9810_v56 = vmax.f32 %v12319_v20, 0.0 }
 0x6a4   :  { %v9745_v3 = vmax.f32 %v12350_v45, 0.0  ;;  %v12322_v32 = vadd.f32 %v8903_v12, %v18594_v4  ;;  %v9811_v8 = vmax.f32 %v12320_v46, 0.0 }
 0x6a5   :  { %v9868_v49 = vpack.c.bf16 %v9744_v26, %v9740_v7  ;;  %v9814_v44 = vmax.f32 %v12321_v25, 0.0 }
 0x6a6   :  { %v9869_v5 = vpack.c.bf16 %v9745_v3, %v9741_v36  ;;  %v9589_v31 = vpop.f32.mrb[164].mxu1  ;;  %v9815_v0 = vmax.f32 %v12322_v32, 0.0 }
 0x6a7   :  { %v12351_v63 = vadd.f32 %v9589_v31, %v18633_v53  ;;  %v9591_v17 = vpop.f32.mrb[165].mxu1  ;;  %v9902_v55 = vpack.c.bf16 %v9814_v44, %v9810_v56 }
 0x6a8   :  { %v12352_v19 = vadd.f32 %v9591_v17, %v18639_v47  ;;  %v9593_v14 = vpop.f32.mrb[166].mxu1  ;;  %10386 = vmatprep.mubr.bf16.mxu1 %v9869_v5  ;;  %v9903_v15 = vpack.c.bf16 %v9815_v0, %v9811_v8  ;;  %v8907_v61 = vpop.f32.mrb[168].mxu0 }
 0x6a9   :  { %v12353_v59 = vadd.f32 %v9593_v14, %v18633_v53  ;;  %v9595_v6 = vpop.f32.mrb[167].mxu1  ;;  %10387 = vmatmul.mubr.bf16.vlgmr.msra.gmra.mrb[224].mxu1 %v9868_v49  ;;  %v12323_v40 = vadd.f32 %v8907_v61, %v18589_v29  ;;  %v8909_v23 = vpop.f32.mrb[169].mxu0  ;;  %v9748_v16 = vmax.f32 %v12351_v63, 0.0 }
 0x6aa   :  { %v12354_v42 = vadd.f32 %v9595_v6, %v18639_v47  ;;  %v12324_v38 = vadd.f32 %v8909_v23, %v18594_v4  ;;  %v8911_v62 = vpop.f32.mrb[170].mxu0  ;;  %10297 = vmatprep.mubr.bf16.mxu0 %v9903_v15  ;;  %v9749_v57 = vmax.f32 %v12352_v19, 0.0 }
 0x6ab   :  { %v9752_v24 = vmax.f32 %v12353_v59, 0.0  ;;  %v12325_v21 = vadd.f32 %v8911_v62, %v18589_v29  ;;  %v8913_v33 = vpop.f32.mrb[171].mxu0  ;;  %10298 = vmatmul.mubr.bf16.gmra.mrb[228].mxu0 %v9902_v55  ;;  %v9818_v2 = vmax.f32 %v12323_v40, 0.0 }
 0x6ac   :  { %v9753_v51 = vmax.f32 %v12354_v42, 0.0  ;;  %v12326_v11 = vadd.f32 %v8913_v33, %v18594_v4  ;;  %v9819_v27 = vmax.f32 %v12324_v38, 0.0 }
 0x6ad   :  { %v9872_v34 = vpack.c.bf16 %v9752_v24, %v9748_v16  ;;  %v9822_v10 = vmax.f32 %v12325_v21, 0.0 }
 0x6ae   :  { %v9873_v58 = vpack.c.bf16 %v9753_v51, %v9749_v57  ;;  %v9599_v43 = vpop.f32.mrb[168].mxu1  ;;  %v9823_v22 = vmax.f32 %v12326_v11, 0.0 }
 0x6af   :  { %v12355_v30 = vadd.f32 %v9599_v43, %v18633_v53  ;;  %v9601_v9 = vpop.f32.mrb[169].mxu1  ;;  %v9906_v37 = vpack.c.bf16 %v9822_v10, %v9818_v2 }
 0x6b0   :  { %v12356_v54 = vadd.f32 %v9601_v9, %v18639_v47  ;;  %v9603_v13 = vpop.f32.mrb[170].mxu1  ;;  %10394 = vmatprep.mubr.bf16.mxu1 %v9873_v58  ;;  %v9907_v18 = vpack.c.bf16 %v9823_v22, %v9819_v27  ;;  %v8917_v60 = vpop.f32.mrb[172].mxu0 }
 0x6b1   :  { %v12357_v35 = vadd.f32 %v9603_v13, %v18633_v53  ;;  %v9605_v28 = vpop.f32.mrb[171].mxu1  ;;  %10395 = vmatmul.mubr.bf16.gmra.mrb[228].mxu1 %v9872_v34  ;;  %v12327_v48 = vadd.f32 %v8917_v60, %v18589_v29  ;;  %v8919_v1 = vpop.f32.mrb[173].mxu0  ;;  %v9756_v52 = vmax.f32 %v12355_v30, 0.0 }
 0x6b2   :  { %v12358_v39 = vadd.f32 %v9605_v28, %v18639_v47  ;;  %v12328_v20 = vadd.f32 %v8919_v1, %v18594_v4  ;;  %v8921_v50 = vpop.f32.mrb[174].mxu0  ;;  %10305 = vmatprep.mubr.bf16.mxu0 %v9907_v18  ;;  %v9757_v7 = vmax.f32 %v12356_v54, 0.0 }
 0x6b3   :  { %v9760_v45 = vmax.f32 %v12357_v35, 0.0  ;;  %v12329_v46 = vadd.f32 %v8921_v50, %v18589_v29  ;;  %v8923_v41 = vpop.f32.mrb[175].mxu0  ;;  %10306 = vmatmul.mubr.bf16.gmra.mrb[232].mxu0 %v9906_v37  ;;  %v9826_v12 = vmax.f32 %v12327_v48, 0.0 }
 0x6b4   :  { %v9761_v26 = vmax.f32 %v12358_v39, 0.0  ;;  %v12330_v3 = vadd.f32 %v8923_v41, %v18594_v4  ;;  %v9827_v5 = vmax.f32 %v12328_v20, 0.0 }
 0x6b5   :  { %v9876_v36 = vpack.c.bf16 %v9760_v45, %v9756_v52  ;;  %v9830_v49 = vmax.f32 %v12329_v46, 0.0 }
 0x6b6   :  { %v9877_v25 = vpack.c.bf16 %v9761_v26, %v9757_v7  ;;  %v9609_v32 = vpop.f32.mrb[172].mxu1  ;;  %v9831_v56 = vmax.f32 %v12330_v3, 0.0 }
 0x6b7   :  { %v12359_v44 = vadd.f32 %v9609_v32, %v18633_v53  ;;  %v9611_v31 = vpop.f32.mrb[173].mxu1  ;;  %v9910_v8 = vpack.c.bf16 %v9830_v49, %v9826_v12 }
 0x6b8   :  { %v12360_v0 = vadd.f32 %v9611_v31, %v18639_v47  ;;  %v9613_v63 = vpop.f32.mrb[174].mxu1  ;;  %10402 = vmatprep.mubr.bf16.mxu1 %v9877_v25  ;;  %v9911_v17 = vpack.c.bf16 %v9831_v56, %v9827_v5  ;;  %v8927_v14 = vpop.f32.mrb[176].mxu0  ;;  %v14108_v31 = vld [vmem:[%s19024_s7] sm:$0xff]  }
 0x6b9   :  { %v12361_v55 = vadd.f32 %v9613_v63, %v18633_v53  ;;  %v9615_v19 = vpop.f32.mrb[175].mxu1  ;;  %10403 = vmatmul.mubr.bf16.gmra.mrb[232].mxu1 %v9876_v36  ;;  %v12331_v59 = vadd.f32 %v8927_v14, %v18589_v29  ;;  %v8929_v6 = vpop.f32.mrb[177].mxu0  ;;  %v9764_v61 = vmax.f32 %v12359_v44, 0.0  ;;  %11945 = vmatprep.subr.bf16.mxu0 %v14108_v31 }
 0x6ba   :  { %v12362_v15 = vadd.f32 %v9615_v19, %v18639_v47  ;;  %v12332_v40 = vadd.f32 %v8929_v6, %v18594_v4  ;;  %v8931_v23 = vpop.f32.mrb[178].mxu0  ;;  %10313 = vmatprep.mubr.bf16.mxu0 %v9911_v17  ;;  %v9765_v16 = vmax.f32 %v12360_v0, 0.0  ;;  %11946 = vmatpush3.bf16.msra.mxu0 %v14108_v31 }
 0x6bb   :  { %v9768_v42 = vmax.f32 %v12361_v55, 0.0  ;;  %v12333_v38 = vadd.f32 %v8931_v23, %v18589_v29  ;;  %v8933_v62 = vpop.f32.mrb[179].mxu0  ;;  %10314 = vmatmul.mubr.bf16.gmra.mrb[236].mxu0 %v9910_v8  ;;  %v9834_v33 = vmax.f32 %v12331_v59, 0.0 }
 0x6bc   :  { %v9769_v24 = vmax.f32 %v12362_v15, 0.0  ;;  %v12334_v51 = vadd.f32 %v8933_v62, %v18594_v4  ;;  %v9835_v58 = vmax.f32 %v12332_v40, 0.0 }
 0x6bd   :  { %v9880_v57 = vpack.c.bf16 %v9768_v42, %v9764_v61  ;;  %v9838_v34 = vmax.f32 %v12333_v38, 0.0 }
 0x6be   :  { %v9881_v21 = vpack.c.bf16 %v9769_v24, %v9765_v16  ;;  %v9619_v11 = vpop.f32.mrb[176].mxu1  ;;  %v9839_v2 = vmax.f32 %v12334_v51, 0.0 }
 0x6bf   :  { %v12363_v10 = vadd.f32 %v9619_v11, %v18633_v53  ;;  %v9621_v43 = vpop.f32.mrb[177].mxu1  ;;  %v9914_v27 = vpack.c.bf16 %v9838_v34, %v9834_v33 }
 0x6c0   :  { %v12364_v22 = vadd.f32 %v9621_v43, %v18639_v47  ;;  %v9623_v30 = vpop.f32.mrb[178].mxu1  ;;  %10410 = vmatprep.mubr.bf16.mxu1 %v9881_v21  ;;  %v9915_v9 = vpack.c.bf16 %v9839_v2, %v9835_v58  ;;  %v8937_v13 = vpop.f32.mrb[180].mxu0 }
 0x6c1   :  { %v12365_v37 = vadd.f32 %v9623_v30, %v18633_v53  ;;  %v9625_v54 = vpop.f32.mrb[179].mxu1  ;;  %10411 = vmatmul.mubr.bf16.gmra.mrb[236].mxu1 %v9880_v57  ;;  %v12335_v35 = vadd.f32 %v8937_v13, %v18589_v29  ;;  %v8939_v28 = vpop.f32.mrb[181].mxu0  ;;  %v9772_v60 = vmax.f32 %v12363_v10, 0.0 }
 0x6c2   :  { %v12366_v18 = vadd.f32 %v9625_v54, %v18639_v47  ;;  %v12336_v48 = vadd.f32 %v8939_v28, %v18594_v4  ;;  %v8941_v1 = vpop.f32.mrb[182].mxu0  ;;  %10321 = vmatprep.mubr.bf16.mxu0 %v9915_v9  ;;  %v9773_v52 = vmax.f32 %v12364_v22, 0.0 }
 0x6c3   :  { %v9776_v39 = vmax.f32 %v12365_v37, 0.0  ;;  %v12337_v20 = vadd.f32 %v8941_v1, %v18589_v29  ;;  %v8943_v50 = vpop.f32.mrb[183].mxu0  ;;  %10322 = vmatmul.mubr.bf16.gmra.mrb[240].mxu0 %v9914_v27  ;;  %v9842_v41 = vmax.f32 %v12335_v35, 0.0 }
 0x6c4   :  { %v9777_v45 = vmax.f32 %v12366_v18, 0.0  ;;  %v12338_v26 = vadd.f32 %v8943_v50, %v18594_v4  ;;  %v9843_v25 = vmax.f32 %v12336_v48, 0.0 }
 0x6c5   :  { %v9884_v7 = vpack.c.bf16 %v9776_v39, %v9772_v60  ;;  %v9846_v36 = vmax.f32 %v12337_v20, 0.0 }
 0x6c6   :  { %v9885_v46 = vpack.c.bf16 %v9777_v45, %v9773_v52  ;;  %v9629_v3 = vpop.f32.mrb[180].mxu1  ;;  %v9847_v12 = vmax.f32 %v12338_v26, 0.0 }
 0x6c7   :  { %v12367_v49 = vadd.f32 %v9629_v3, %v18633_v53  ;;  %v9631_v32 = vpop.f32.mrb[181].mxu1  ;;  %v9918_v5 = vpack.c.bf16 %v9846_v36, %v9842_v41 }
 0x6c8   :  { %v12368_v56 = vadd.f32 %v9631_v32, %v18639_v47  ;;  %v9633_v44 = vpop.f32.mrb[182].mxu1  ;;  %10418 = vmatprep.mubr.bf16.mxu1 %v9885_v46  ;;  %v9919_v8 = vpack.c.bf16 %v9847_v12, %v9843_v25  ;;  %v8947_v17 = vpop.f32.mrb[184].mxu0  ;;  %v14109_v12 = vld [vmem:[%s19024_s7 + $0x8] sm:$0xff]  }
 0x6c9   :  { %v12369_v0 = vadd.f32 %v9633_v44, %v18633_v53  ;;  %v9635_v63 = vpop.f32.mrb[183].mxu1  ;;  %10419 = vmatmul.mubr.bf16.gmra.mrb[240].mxu1 %v9884_v7  ;;  %v9780_v55 = vmax.f32 %v12367_v49, 0.0  ;;  %v12339_v14 = vadd.f32 %v8947_v17, %v18589_v29  ;;  %v8949_v15 = vpop.f32.mrb[185].mxu0  ;;  %11947 = vmatprep.subr.bf16.mxu0 %v14109_v12 }
 0x6ca   :  { %v12370_v19 = vadd.f32 %v9635_v63, %v18639_v47  ;;  %v12340_v6 = vadd.f32 %v8949_v15, %v18594_v4  ;;  %v8951_v61 = vpop.f32.mrb[186].mxu0  ;;  %10329 = vmatprep.mubr.bf16.mxu0 %v9919_v8  ;;  %v9781_v42 = vmax.f32 %v12368_v56, 0.0  ;;  %11948 = vmatpush3.bf16.msra.mxu0 %v14109_v12 }
 0x6cb   :  { %v9784_v59 = vmax.f32 %v12369_v0, 0.0  ;;  %v12341_v23 = vadd.f32 %v8951_v61, %v18589_v29  ;;  %v8953_v16 = vpop.f32.mrb[187].mxu0  ;;  %10330 = vmatmul.mubr.bf16.gmra.mrb[244].mxu0 %v9918_v5  ;;  %v9850_v38 = vmax.f32 %v12339_v14, 0.0 }
 0x6cc   :  { %v9785_v40 = vmax.f32 %v12370_v19, 0.0  ;;  %v9851_v62 = vmax.f32 %v12340_v6, 0.0  ;;  %v12342_v57 = vadd.f32 %v8953_v16, %v18594_v4 }
 0x6cd   :  { %v9888_v24 = vpack.c.bf16 %v9784_v59, %v9780_v55  ;;  %v9854_v21 = vmax.f32 %v12341_v23, 0.0 }
 0x6ce   :  { %v9889_v51 = vpack.c.bf16 %v9785_v40, %v9781_v42  ;;  %v9639_v33 = vpop.f32.mrb[184].mxu1  ;;  %v9855_v34 = vmax.f32 %v12342_v57, 0.0 }
 0x6cf   :  { %v12371_v11 = vadd.f32 %v9639_v33, %v18633_v53  ;;  %v9641_v58 = vpop.f32.mrb[185].mxu1  ;;  %v9922_v2 = vpack.c.bf16 %v9854_v21, %v9850_v38 }
 0x6d0   :  { %v12372_v10 = vadd.f32 %v9641_v58, %v18639_v47  ;;  %v9643_v43 = vpop.f32.mrb[186].mxu1  ;;  %10426 = vmatprep.mubr.bf16.mxu1 %v9889_v51  ;;  %v9923_v27 = vpack.c.bf16 %v9855_v34, %v9851_v62  ;;  %v8957_v9 = vpop.f32.mrb[188].mxu0  ;;  %v14110_v34 = vld [vmem:[%s19024_s7 + $0x10] sm:$0xff]  }
 0x6d1   :  { %v12373_v22 = vadd.f32 %v9643_v43, %v18633_v53  ;;  %v9645_v30 = vpop.f32.mrb[187].mxu1  ;;  %10427 = vmatmul.mubr.bf16.gmra.mrb[244].mxu1 %v9888_v24  ;;  %v12343_v54 = vadd.f32 %v8957_v9, %v18589_v29  ;;  %v8959_v13 = vpop.f32.mrb[189].mxu0  ;;  %v9788_v18 = vmax.f32 %v12371_v11, 0.0  ;;  %11949 = vmatprep.subr.bf16.mxu0 %v14110_v34 }
 0x6d2   :  { %v12374_v37 = vadd.f32 %v9645_v30, %v18639_v47  ;;  %v12344_v28 = vadd.f32 %v8959_v13, %v18594_v4  ;;  %v8961_v60 = vpop.f32.mrb[190].mxu0  ;;  %10337 = vmatprep.mubr.bf16.mxu0 %v9923_v27  ;;  %v9789_v39 = vmax.f32 %v12372_v10, 0.0  ;;  %11950 = vmatpush3.bf16.msra.mxu0 %v14110_v34 }
 0x6d3   :  { %v9792_v35 = vmax.f32 %v12373_v22, 0.0  ;;  %v12345_v1 = vadd.f32 %v8961_v60, %v18589_v29  ;;  %v8963_v52 = vpop.f32.mrb[191].mxu0  ;;  %10338 = vmatmul.mubr.bf16.gmra.mrb[248].mxu0 %v9922_v2  ;;  %v9858_v7 = vmax.f32 %v12343_v54, 0.0 }
 0x6d4   :  { %v9793_v48 = vmax.f32 %v12374_v37, 0.0  ;;  %v12346_v20 = vadd.f32 %v8963_v52, %v18594_v4  ;;  %v9859_v41 = vmax.f32 %v12344_v28, 0.0 }
 0x6d5   :  { %v9892_v45 = vpack.c.bf16 %v9792_v35, %v9788_v18  ;;  %v9862_v26 = vmax.f32 %v12345_v1, 0.0 }
 0x6d6   :  { %v9893_v50 = vpack.c.bf16 %v9793_v48, %v9789_v39  ;;  %v9649_v46 = vpop.f32.mrb[188].mxu1  ;;  %v9863_v36 = vmax.f32 %v12346_v20, 0.0 }
 0x6d7   :  { %v12375_v3 = vadd.f32 %v9649_v46, %v18633_v53  ;;  %v9651_v25 = vpop.f32.mrb[189].mxu1  ;;  %v9926_v49 = vpack.c.bf16 %v9862_v26, %v9858_v7 }
 0x6d8   :  { %v12376_v29 = vadd.f32 %v9651_v25, %v18639_v47  ;;  %v9653_v32 = vpop.f32.mrb[190].mxu1  ;;  %10434 = vmatprep.mubr.bf16.mxu1 %v9893_v50  ;;  %v9927_v5 = vpack.c.bf16 %v9863_v36, %v9859_v41 }
 0x6d9   :  { %v12377_v4 = vadd.f32 %v9653_v32, %v18633_v53  ;;  %v9655_v56 = vpop.f32.mrb[191].mxu1  ;;  %10435 = vmatmul.mubr.bf16.gmra.mrb[248].mxu1 %v9892_v45  ;;  %v9796_v31 = vmax.f32 %v12375_v3, 0.0  ;;  %v14111_v3 = vld [vmem:[%s19024_s7 + $0x18] sm:$0xff]  }
 0x6da   :  { %v12378_v44 = vadd.f32 %v9655_v56, %v18639_v47  ;;  %10345 = vmatprep.mubr.bf16.mxu0 %v9927_v5  ;;  %v9797_v0 = vmax.f32 %v12376_v29, 0.0  ;;  %11951 = vmatprep.subr.bf16.mxu0 %v14111_v3 }
 0x6db   :  { %v9800_v8 = vmax.f32 %v12377_v4, 0.0  ;;  %10346 = vmatmul.mubr.bf16.gmra.mrb[252].mxu0 %v9926_v49 }
 0x6dc   :  { %v9801_v63 = vmax.f32 %v12378_v44, 0.0  ;;  %11952 = vmatpush3.bf16.msra.mxu0 %v14111_v3 }
 0x6dd   :  { %v9896_v17 = vpack.c.bf16 %v9800_v8, %v9796_v31 }
 0x6de   :  { %v9897_v55 = vpack.c.bf16 %v9801_v63, %v9797_v0  ;;  %v9659_v19 = vpop.f32.mrb[192].mxu1  ;;  %v14112_v63 = vld [vmem:[%s19024_s7 + $0x20] sm:$0xff]  }
 0x6df   :  { %v12379_v14 = vadd.f32 %v9659_v19, %v18633_v53  ;;  %v9661_v15 = vpop.f32.mrb[193].mxu1  ;;  %11953 = vmatprep.subr.bf16.mxu0 %v14112_v63 }
 0x6e0   :  { %v12380_v59 = vadd.f32 %v9661_v15, %v18639_v47  ;;  %v9663_v6 = vpop.f32.mrb[194].mxu1  ;;  %10442 = vmatprep.mubr.bf16.mxu1 %v9897_v55  ;;  %11954 = vmatpush3.bf16.msra.mxu0 %v14112_v63 }
 0x6e1   :  { %v12381_v61 = vadd.f32 %v9663_v6, %v18633_v53  ;;  %v9665_v42 = vpop.f32.mrb[195].mxu1  ;;  %10443 = vmatmul.mubr.bf16.gmra.mrb[252].mxu1 %v9896_v17  ;;  %v9804_v23 = vmax.f32 %v12379_v14, 0.0 }
 0x6e2   :  { %v12382_v40 = vadd.f32 %v9665_v42, %v18639_v47  ;;  %v9805_v24 = vmax.f32 %v12380_v59, 0.0 }
 0x6e3   :  { %v9808_v16 = vmax.f32 %v12381_v61, 0.0  ;;  %v14113_v61 = vld [vmem:[%s19024_s7 + $0x28] sm:$0xff]  }
 0x6e4   :  { %v9809_v38 = vmax.f32 %v12382_v40, 0.0  ;;  %11955 = vmatprep.subr.bf16.mxu0 %v14113_v61 }
 0x6e5   :  { %v9900_v62 = vpack.c.bf16 %v9808_v16, %v9804_v23  ;;  %11956 = vmatpush3.bf16.msra.mxu0 %v14113_v61 }
 0x6e6   :  { %v9901_v57 = vpack.c.bf16 %v9809_v38, %v9805_v24  ;;  %v9669_v51 = vpop.f32.mrb[196].mxu1 }
 0x6e7   :  { %v12383_v21 = vadd.f32 %v9669_v51, %v18633_v53  ;;  %v9671_v33 = vpop.f32.mrb[197].mxu1 }
 0x6e8   :  { %v12384_v11 = vadd.f32 %v9671_v33, %v18639_v47  ;;  %v9673_v58 = vpop.f32.mrb[198].mxu1  ;;  %10450 = vmatprep.mubr.bf16.mxu1 %v9901_v57  ;;  %v14114_v57 = vld [vmem:[%s19024_s7 + $0x30] sm:$0xff]  }
 0x6e9   :  { %v12385_v2 = vadd.f32 %v9673_v58, %v18633_v53  ;;  %v9675_v10 = vpop.f32.mrb[199].mxu1  ;;  %10451 = vmatmul.mubr.bf16.gmra.mrb[0].mxu1 %v9900_v62  ;;  %v9812_v27 = vmax.f32 %v12383_v21, 0.0  ;;  %11957 = vmatprep.subr.bf16.mxu0 %v14114_v57 }
 0x6ea   :  { %v12386_v43 = vadd.f32 %v9675_v10, %v18639_v47  ;;  %v9813_v30 = vmax.f32 %v12384_v11, 0.0  ;;  %11958 = vmatpush3.bf16.msra.mxu0 %v14114_v57  ;;  %v14115_v10 = vld [vmem:[%s19024_s7 + $0x38] sm:$0xff]  }
 0x6eb   :  { %v9816_v22 = vmax.f32 %v12385_v2, 0.0  ;;  %11959 = vmatprep.subr.bf16.mxu0 %v14115_v10 }
 0x6ec   :  { %v9817_v9 = vmax.f32 %v12386_v43, 0.0 }
 0x6ed   :  { %v9904_v37 = vpack.c.bf16 %v9816_v22, %v9812_v27 }
 0x6ee   :  { %v9905_v54 = vpack.c.bf16 %v9817_v9, %v9813_v30  ;;  %v9679_v13 = vpop.f32.mrb[200].mxu1  ;;  %11960 = vmatpush3.bf16.msra.mxu0 %v14115_v10 }
 0x6ef   :  { %v12387_v18 = vadd.f32 %v9679_v13, %v18633_v53  ;;  %v9681_v35 = vpop.f32.mrb[201].mxu1 }
 0x6f0   :  { %v12388_v28 = vadd.f32 %v9681_v35, %v18639_v47  ;;  %v9683_v60 = vpop.f32.mrb[202].mxu1  ;;  %10458 = vmatprep.mubr.bf16.mxu1 %v9905_v54 }
 0x6f1   :  { %v12389_v39 = vadd.f32 %v9683_v60, %v18633_v53  ;;  %v9685_v48 = vpop.f32.mrb[203].mxu1  ;;  %10459 = vmatmul.mubr.bf16.gmra.mrb[4].mxu1 %v9904_v37  ;;  %v9820_v52 = vmax.f32 %v12387_v18, 0.0 }
 0x6f2   :  { %v12390_v1 = vadd.f32 %v9685_v48, %v18639_v47  ;;  %v9821_v20 = vmax.f32 %v12388_v28, 0.0 }
 0x6f3   :  { %v9824_v45 = vmax.f32 %v12389_v39, 0.0 }
 0x6f4   :  { %v9825_v50 = vmax.f32 %v12390_v1, 0.0 }
 0x6f5   :  { %v9908_v7 = vpack.c.bf16 %v9824_v45, %v9820_v52 }
 0x6f6   :  { %v9909_v26 = vpack.c.bf16 %v9825_v50, %v9821_v20  ;;  %v9689_v46 = vpop.f32.mrb[204].mxu1 }
 0x6f7   :  { %v12391_v41 = vadd.f32 %v9689_v46, %v18633_v53  ;;  %v9691_v36 = vpop.f32.mrb[205].mxu1 }
 0x6f8   :  { %v12392_v25 = vadd.f32 %v9691_v36, %v18639_v47  ;;  %v9693_v12 = vpop.f32.mrb[206].mxu1  ;;  %10466 = vmatprep.mubr.bf16.mxu1 %v9909_v26 }
 0x6f9   :  { %v12393_v49 = vadd.f32 %v9693_v12, %v18633_v53  ;;  %v9695_v29 = vpop.f32.mrb[207].mxu1  ;;  %10467 = vmatmul.mubr.bf16.gmra.mrb[8].mxu1 %v9908_v7  ;;  %v9828_v5 = vmax.f32 %v12391_v41, 0.0 }
 0x6fa   :  { %v12394_v32 = vadd.f32 %v9695_v29, %v18639_v47  ;;  %v9829_v56 = vmax.f32 %v12392_v25, 0.0 }
 0x6fb   :  { %v9832_v4 = vmax.f32 %v12393_v49, 0.0 }
 0x6fc   :  { %v9833_v44 = vmax.f32 %v12394_v32, 0.0 }
 0x6fd   :  { %v9912_v31 = vpack.c.bf16 %v9832_v4, %v9828_v5 }
 0x6fe   :  { %v9913_v8 = vpack.c.bf16 %v9833_v44, %v9829_v56  ;;  %v9699_v0 = vpop.f32.mrb[208].mxu1 }
 0x6ff   :  { %v12395_v17 = vadd.f32 %v9699_v0, %v18633_v53  ;;  %v9701_v55 = vpop.f32.mrb[209].mxu1 }
 0x700   :  { %v12396_v19 = vadd.f32 %v9701_v55, %v18639_v47  ;;  %v9703_v14 = vpop.f32.mrb[210].mxu1  ;;  %10474 = vmatprep.mubr.bf16.mxu1 %v9913_v8 }
 0x701   :  { %v12397_v15 = vadd.f32 %v9703_v14, %v18633_v53  ;;  %v9705_v59 = vpop.f32.mrb[211].mxu1  ;;  %10475 = vmatmul.mubr.bf16.gmra.mrb[12].mxu1 %v9912_v31  ;;  %v9836_v42 = vmax.f32 %v12395_v17, 0.0 }
 0x702   :  { %v12398_v6 = vadd.f32 %v9705_v59, %v18639_v47  ;;  %v9837_v23 = vmax.f32 %v12396_v19, 0.0 }
 0x703   :  { %v9840_v40 = vmax.f32 %v12397_v15, 0.0 }
 0x704   :  { %v9841_v16 = vmax.f32 %v12398_v6, 0.0 }
 0x705   :  { %v9916_v24 = vpack.c.bf16 %v9840_v40, %v9836_v42 }
 0x706   :  { %v9917_v38 = vpack.c.bf16 %v9841_v16, %v9837_v23  ;;  %v9709_v62 = vpop.f32.mrb[212].mxu1 }
 0x707   :  { %v12399_v51 = vadd.f32 %v9709_v62, %v18633_v53  ;;  %v9711_v21 = vpop.f32.mrb[213].mxu1 }
 0x708   :  { %v12400_v33 = vadd.f32 %v9711_v21, %v18639_v47  ;;  %v9713_v34 = vpop.f32.mrb[214].mxu1  ;;  %10482 = vmatprep.mubr.bf16.mxu1 %v9917_v38 }
 0x709   :  { %v12401_v11 = vadd.f32 %v9713_v34, %v18633_v53  ;;  %v9715_v58 = vpop.f32.mrb[215].mxu1  ;;  %10483 = vmatmul.mubr.bf16.gmra.mrb[16].mxu1 %v9916_v24  ;;  %v9844_v43 = vmax.f32 %v12399_v51, 0.0 }
 0x70a   :  { %v12402_v2 = vadd.f32 %v9715_v58, %v18639_v47  ;;  %v9845_v22 = vmax.f32 %v12400_v33, 0.0 }
 0x70b   :  { %v9848_v27 = vmax.f32 %v12401_v11, 0.0 }
 0x70c   :  { %v9849_v30 = vmax.f32 %v12402_v2, 0.0 }
 0x70d   :  { %v9920_v9 = vpack.c.bf16 %v9848_v27, %v9844_v43 }
 0x70e   :  { %v9921_v37 = vpack.c.bf16 %v9849_v30, %v9845_v22  ;;  %v9719_v54 = vpop.f32.mrb[216].mxu1 }
 0x70f   :  { %v12403_v13 = vadd.f32 %v9719_v54, %v18633_v53  ;;  %v9721_v18 = vpop.f32.mrb[217].mxu1 }
 0x710   :  { %v12404_v35 = vadd.f32 %v9721_v18, %v18639_v47  ;;  %v9723_v28 = vpop.f32.mrb[218].mxu1  ;;  %10490 = vmatprep.mubr.bf16.mxu1 %v9921_v37 }
 0x711   :  { %v12405_v60 = vadd.f32 %v9723_v28, %v18633_v53  ;;  %v9725_v39 = vpop.f32.mrb[219].mxu1  ;;  %10491 = vmatmul.mubr.bf16.gmra.mrb[20].mxu1 %v9920_v9  ;;  %v9852_v1 = vmax.f32 %v12403_v13, 0.0 }
 0x712   :  { %v12406_v48 = vadd.f32 %v9725_v39, %v18639_v47  ;;  %v9853_v45 = vmax.f32 %v12404_v35, 0.0 }
 0x713   :  { %v9856_v52 = vmax.f32 %v12405_v60, 0.0 }
 0x714   :  { %v9857_v20 = vmax.f32 %v12406_v48, 0.0 }
 0x715   :  { %v9924_v50 = vpack.c.bf16 %v9856_v52, %v9852_v1 }
 0x716   :  { %v9925_v7 = vpack.c.bf16 %v9857_v20, %v9853_v45  ;;  %v9729_v26 = vpop.f32.mrb[220].mxu1 }
 0x717   :  { %v12407_v46 = vadd.f32 %v9729_v26, %v18633_v53  ;;  %v9731_v41 = vpop.f32.mrb[221].mxu1 }
 0x718   :  { %v12408_v36 = vadd.f32 %v9731_v41, %v18639_v47  ;;  %v9733_v3 = vpop.f32.mrb[222].mxu1  ;;  %10498 = vmatprep.mubr.bf16.mxu1 %v9925_v7 }
 0x719   :  { %v12409_v25 = vadd.f32 %v9733_v3, %v18633_v53  ;;  %v9735_v12 = vpop.f32.mrb[223].mxu1  ;;  %10499 = vmatmul.mubr.bf16.gmra.mrb[24].mxu1 %v9924_v50  ;;  %v9860_v29 = vmax.f32 %v12407_v46, 0.0 }
 0x71a   :  { %v12410_v49 = vadd.f32 %v9735_v12, %v18639_v47  ;;  %v9861_v5 = vmax.f32 %v12408_v36, 0.0  ;;  %v18791_v36 = vld [vmem:[%s19025_s6] ss:$0 sm:$0xff] }
 0x71b   :  { %v9864_v32 = vmax.f32 %v12409_v25, 0.0 }
 0x71c   :  { %v9865_v4 = vmax.f32 %v12410_v49, 0.0 }
 0x71d   :  { %v9928_v56 = vpack.c.bf16 %v9864_v32, %v9860_v29 }
 0x71e   :  { %v9929_v44 = vpack.c.bf16 %v9865_v4, %v9861_v5 }
 0x720   :  { %10506 = vmatprep.mubr.bf16.mxu1 %v9929_v44 }
 0x721   :  { %10507 = vmatmul.mubr.bf16.gmra.mrb[28].mxu1 %v9928_v56 }
 0x736   :  { %v11713_v31 = vpop.f32.mrb[192].mxu0 }
 0x737   :  { %v11714_v8 = vpop.f32.mrb[193].mxu0 }
 0x738   :  { %v11715_v0 = vadd.f32 %v11714_v8, %v11713_v31  ;;  %v11716_v63 = vpop.f32.mrb[194].mxu0 }
 0x739   :  { %v11717_v17 = vpop.f32.mrb[195].mxu0 }
 0x73a   :  { %v11718_v55 = vadd.f32 %v11717_v17, %v11716_v63  ;;  %v10228_v49 = vadd.f32 %v11715_v0, %v18791_v36 }
 0x73c   :  { %v10231_v56 = vadd.f32 %v11718_v55, %v18791_v36 }
 0x73e   :  { %v11719_v19 = vpop.f32.mrb[196].mxu0 }
 0x73f   :  { %v11720_v53 = vpop.f32.mrb[197].mxu0 }
 0x740   :  { %v18758_v14 = vadd.f32 %v11720_v53, %v11719_v19  ;;  %v11722_v15 = vpop.f32.mrb[198].mxu0 }
 0x741   :  { %v11723_v47 = vpop.f32.mrb[199].mxu0 }
 0x742   :  { %v18760_v59 = vadd.f32 %v11723_v47, %v11722_v15 }
 0x746   :  { %v11725_v6 = vpop.f32.mrb[200].mxu0 }
 0x747   :  { %v11726_v61 = vpop.f32.mrb[201].mxu0 }
 0x748   :  { %v18762_v42 = vadd.f32 %v11726_v61, %v11725_v6  ;;  %v11728_v40 = vpop.f32.mrb[202].mxu0 }
 0x749   :  { %v11729_v23 = vpop.f32.mrb[203].mxu0 }
 0x74a   :  { %v18764_v16 = vadd.f32 %v11729_v23, %v11728_v40  ;;  %v10236_v40 = vadd.f32 %v18758_v14, %v18791_v36 }
 0x74e   :  { %v11731_v24 = vpop.f32.mrb[204].mxu0 }
 0x74f   :  { %v11732_v38 = vpop.f32.mrb[205].mxu0 }
 0x750   :  { %v18766_v62 = vadd.f32 %v11732_v38, %v11731_v24  ;;  %v11734_v57 = vpop.f32.mrb[206].mxu0 }
 0x751   :  { %v11735_v51 = vpop.f32.mrb[207].mxu0 }
 0x752   :  { %v18768_v21 = vadd.f32 %v11735_v51, %v11734_v57  ;;  %v10239_v51 = vadd.f32 %v18760_v59, %v18791_v36 }
 0x756   :  { %v11737_v33 = vpop.f32.mrb[208].mxu0 }
 0x757   :  { %v11738_v34 = vpop.f32.mrb[209].mxu0 }
 0x758   :  { %v18770_v11 = vadd.f32 %v11738_v34, %v11737_v33  ;;  %v11740_v58 = vpop.f32.mrb[210].mxu0 }
 0x759   :  { %v11741_v2 = vpop.f32.mrb[211].mxu0 }
 0x75a   :  { %v18772_v10 = vadd.f32 %v11741_v2, %v11740_v58 }
 0x75e   :  { %v11743_v43 = vpop.f32.mrb[212].mxu0 }
 0x75f   :  { %v11744_v27 = vpop.f32.mrb[213].mxu0 }
 0x760   :  { %v18774_v22 = vadd.f32 %v11744_v27, %v11743_v43  ;;  %v11746_v30 = vpop.f32.mrb[214].mxu0 }
 0x761   :  { %v11747_v9 = vpop.f32.mrb[215].mxu0 }
 0x762   :  { %v18776_v37 = vadd.f32 %v11747_v9, %v11746_v30 }
 0x766   :  { %v11749_v54 = vpop.f32.mrb[216].mxu0 }
 0x767   :  { %v11750_v13 = vpop.f32.mrb[217].mxu0 }
 0x768   :  { %v18778_v18 = vadd.f32 %v11750_v13, %v11749_v54  ;;  %v11752_v35 = vpop.f32.mrb[218].mxu0 }
 0x769   :  { %v11753_v28 = vpop.f32.mrb[219].mxu0 }
 0x76a   :  { %v18780_v60 = vadd.f32 %v11753_v28, %v11752_v35  ;;  %v10244_v28 = vadd.f32 %v18762_v42, %v18791_v36 }
 0x76e   :  { %v11755_v39 = vpop.f32.mrb[220].mxu0 }
 0x76f   :  { %v11756_v48 = vpop.f32.mrb[221].mxu0 }
 0x770   :  { %v18782_v1 = vadd.f32 %v11756_v48, %v11755_v39  ;;  %v11758_v52 = vpop.f32.mrb[222].mxu0 }
 0x771   :  { %v11759_v45 = vpop.f32.mrb[223].mxu0 }
 0x772   :  { %v18784_v20 = vadd.f32 %v11759_v45, %v11758_v52 }
 0x776   :  { %v11761_v50 = vpop.f32.mrb[224].mxu0 }
 0x777   :  { %v11762_v7 = vpop.f32.mrb[225].mxu0 }
 0x778   :  { %v18786_v26 = vadd.f32 %v11762_v7, %v11761_v50  ;;  %v11764_v46 = vpop.f32.mrb[226].mxu0  ;;  %v10247_v50 = vadd.f32 %v18764_v16, %v18791_v36 }
 0x779   :  { %v11765_v41 = vpop.f32.mrb[227].mxu0 }
 0x77a   :  { %v18793_v3 = vadd.f32 %v11765_v41, %v11764_v46 }
 0x77c   :  { %v11825_v25 = vpop.f32.mrb[224].mxu1 }
 0x77d   :  { %v11826_v12 = vpop.f32.mrb[225].mxu1 }
 0x77e   :  { %v11827_v29 = vadd.f32 %v11826_v12, %v11825_v25  ;;  %v11828_v32 = vpop.f32.mrb[226].mxu1  ;;  %v11767_v4 = vpop.f32.mrb[228].mxu0 }
 0x77f   :  { %v11829_v5 = vpop.f32.mrb[227].mxu1  ;;  %v11768_v8 = vpop.f32.mrb[229].mxu0 }
 0x780   :  { %v10389_v44 = vadd.f32 %v11827_v29, %v10228_v49  ;;  %v11830_v31 = vadd.f32 %v11829_v5, %v11828_v32  ;;  %v18797_v63 = vadd.f32 %v11768_v8, %v11767_v4  ;;  %v11770_v17 = vpop.f32.mrb[230].mxu0 }
 0x781   :  { %v11771_v53 = vpop.f32.mrb[231].mxu0 }
 0x782   :  { %v10392_v19 = vadd.f32 %v11830_v31, %v10231_v56  ;;  %v18799_v15 = vadd.f32 %v11771_v53, %v11770_v17  ;;  %v10515_v47 = vmax.f32 %v10389_v44, 0.0  ;;  %v10252_v44 = vadd.f32 %v18766_v62, %v18791_v36 }
 0x783   :  { %v10255_v53 = vadd.f32 %v18768_v21, %v18791_v36 }
 0x784   :  { %v10516_v6 = vmax.f32 %v10392_v19, 0.0  ;;  %v11831_v61 = vpop.f32.mrb[228].mxu1 }
 0x785   :  { %v11832_v0 = vpop.f32.mrb[229].mxu1 }
 0x786   :  { %v11833_v23 = vadd.f32 %v11832_v0, %v11831_v61  ;;  %v11834_v24 = vpop.f32.mrb[230].mxu1  ;;  %v10547_v55 = vpack.c.bf16 %v10516_v6, %v10515_v47  ;;  %v11773_v57 = vpop.f32.mrb[232].mxu0 }
 0x787   :  { %v11835_v38 = vpop.f32.mrb[231].mxu1  ;;  %v11774_v58 = vpop.f32.mrb[233].mxu0 }
 0x788   :  { %v10397_v33 = vadd.f32 %v11833_v23, %v10236_v40  ;;  %v11836_v34 = vadd.f32 %v11835_v38, %v11834_v24  ;;  %11961 = vmatprep.mubr.bf16.mxu0 %v10547_v55  ;;  %v18805_v2 = vadd.f32 %v11774_v58, %v11773_v57  ;;  %v11776_v43 = vpop.f32.mrb[234].mxu0 }
 0x789   :  { %v11777_v30 = vpop.f32.mrb[235].mxu0 }
 0x78a   :  { %v10400_v27 = vadd.f32 %v11836_v34, %v10239_v51  ;;  %v18807_v9 = vadd.f32 %v11777_v30, %v11776_v43  ;;  %v10517_v14 = vmax.f32 %v10397_v33, 0.0  ;;  %v10260_v33 = vadd.f32 %v18770_v11, %v18791_v36 }
 0x78b   :  { %v10263_v30 = vadd.f32 %v18772_v10, %v18791_v36 }
 0x78c   :  { %v10518_v54 = vmax.f32 %v10400_v27, 0.0  ;;  %v11837_v13 = vpop.f32.mrb[232].mxu1 }
 0x78d   :  { %v11838_v35 = vpop.f32.mrb[233].mxu1 }
 0x78e   :  { %v10548_v39 = vpack.c.bf16 %v10518_v54, %v10517_v14  ;;  %v11839_v59 = vadd.f32 %v11838_v35, %v11837_v13  ;;  %v11840_v48 = vpop.f32.mrb[234].mxu1  ;;  %v11779_v45 = vpop.f32.mrb[236].mxu0 }
 0x78f   :  { %v11841_v52 = vpop.f32.mrb[235].mxu1  ;;  %v11780_v41 = vpop.f32.mrb[237].mxu0 }
 0x790   :  { %v10405_v7 = vadd.f32 %v11839_v59, %v10244_v28  ;;  %v11842_v46 = vadd.f32 %v11841_v52, %v11840_v48  ;;  %11962 = vmatmul.mubr.bf16.vlgmr.msra.gmra.mrb[0].mxu0 %v10548_v39  ;;  %v18813_v25 = vadd.f32 %v11780_v41, %v11779_v45  ;;  %v11782_v12 = vpop.f32.mrb[238].mxu0 }
 0x791   :  { %v11783_v29 = vpop.f32.mrb[239].mxu0 }
 0x792   :  { %v10408_v49 = vadd.f32 %v11842_v46, %v10247_v50  ;;  %v18815_v32 = vadd.f32 %v11783_v29, %v11782_v12  ;;  %v10519_v42 = vmax.f32 %v10405_v7, 0.0  ;;  %v10268_v7 = vadd.f32 %v18774_v22, %v18791_v36 }
 0x793   :  { %v10271_v29 = vadd.f32 %v18776_v37, %v18791_v36 }
 0x794   :  { %v10520_v5 = vmax.f32 %v10408_v49, 0.0  ;;  %v11843_v4 = vpop.f32.mrb[236].mxu1 }
 0x795   :  { %v11844_v56 = vpop.f32.mrb[237].mxu1 }
 0x796   :  { %v11845_v31 = vadd.f32 %v11844_v56, %v11843_v4  ;;  %v11846_v16 = vpop.f32.mrb[238].mxu1  ;;  %v10549_v8 = vpack.c.bf16 %v10520_v5, %v10519_v42  ;;  %v11785_v19 = vpop.f32.mrb[240].mxu0 }
 0x797   :  { %v11847_v17 = vpop.f32.mrb[239].mxu1  ;;  %v11786_v61 = vpop.f32.mrb[241].mxu0 }
 0x798   :  { %v10413_v47 = vadd.f32 %v11845_v31, %v10252_v44  ;;  %v11848_v6 = vadd.f32 %v11847_v17, %v11846_v16  ;;  %11965 = vmatprep.mubr.bf16.mxu0 %v10549_v8  ;;  %v18821_v0 = vadd.f32 %v11786_v61, %v11785_v19  ;;  %v11788_v40 = vpop.f32.mrb[242].mxu0 }
 0x799   :  { %v11789_v24 = vpop.f32.mrb[243].mxu0 }
 0x79a   :  { %v10416_v23 = vadd.f32 %v11848_v6, %v10255_v53  ;;  %v18823_v55 = vadd.f32 %v11789_v24, %v11788_v40  ;;  %v10521_v62 = vmax.f32 %v10413_v47, 0.0  ;;  %v10276_v47 = vadd.f32 %v18778_v18, %v18791_v36 }
 0x79b   :  { %v10279_v24 = vadd.f32 %v18780_v60, %v18791_v36 }
 0x79c   :  { %v10522_v38 = vmax.f32 %v10416_v23, 0.0  ;;  %v11849_v57 = vpop.f32.mrb[240].mxu1 }
 0x79d   :  { %v11850_v51 = vpop.f32.mrb[241].mxu1 }
 0x79e   :  { %v10550_v34 = vpack.c.bf16 %v10522_v38, %v10521_v62  ;;  %v11851_v21 = vadd.f32 %v11850_v51, %v11849_v57  ;;  %v11852_v58 = vpop.f32.mrb[242].mxu1  ;;  %v11791_v27 = vpop.f32.mrb[244].mxu0 }
 0x79f   :  { %v11853_v43 = vpop.f32.mrb[243].mxu1  ;;  %v11792_v13 = vpop.f32.mrb[245].mxu0 }
 0x7a0   :  { %v10421_v14 = vadd.f32 %v11851_v21, %v10260_v33  ;;  %v11854_v54 = vadd.f32 %v11853_v43, %v11852_v58  ;;  %11966 = vmatmul.mubr.bf16.gmra.mrb[4].mxu0 %v10550_v34  ;;  %v18829_v35 = vadd.f32 %v11792_v13, %v11791_v27  ;;  %v11794_v28 = vpop.f32.mrb[246].mxu0 }
 0x7a1   :  { %v11795_v59 = vpop.f32.mrb[247].mxu0 }
 0x7a2   :  { %v10424_v39 = vadd.f32 %v11854_v54, %v10263_v30  ;;  %v18831_v48 = vadd.f32 %v11795_v59, %v11794_v28  ;;  %v10523_v11 = vmax.f32 %v10421_v14, 0.0  ;;  %v10284_v14 = vadd.f32 %v18782_v1, %v18791_v36 }
 0x7a4   :  { %v10524_v52 = vmax.f32 %v10424_v39, 0.0  ;;  %v11855_v45 = vpop.f32.mrb[244].mxu1  ;;  %v10287_v39 = vadd.f32 %v18784_v20, %v18791_v36 }
 0x7a5   :  { %v11856_v50 = vpop.f32.mrb[245].mxu1 }
 0x7a6   :  { %v11857_v46 = vadd.f32 %v11856_v50, %v11855_v45  ;;  %v11858_v10 = vpop.f32.mrb[246].mxu1  ;;  %v10551_v41 = vpack.c.bf16 %v10524_v52, %v10523_v11  ;;  %v11797_v49 = vpop.f32.mrb[248].mxu0 }
 0x7a7   :  { %v11859_v12 = vpop.f32.mrb[247].mxu1  ;;  %v11798_v4 = vpop.f32.mrb[249].mxu0 }
 0x7a8   :  { %v10429_v42 = vadd.f32 %v11857_v46, %v10268_v7  ;;  %v11860_v5 = vadd.f32 %v11859_v12, %v11858_v10  ;;  %11969 = vmatprep.mubr.bf16.mxu0 %v10551_v41  ;;  %v18837_v56 = vadd.f32 %v11798_v4, %v11797_v49  ;;  %v11800_v44 = vpop.f32.mrb[250].mxu0  ;;  %v10292_v10 = vadd.f32 %v18786_v26, %v18791_v36 }
 0x7a9   :  { %v11801_v16 = vpop.f32.mrb[251].mxu0 }
 0x7aa   :  { %v10432_v31 = vadd.f32 %v11860_v5, %v10271_v29  ;;  %v18839_v8 = vadd.f32 %v11801_v16, %v11800_v44  ;;  %v10525_v22 = vmax.f32 %v10429_v42, 0.0  ;;  %v10295_v29 = vadd.f32 %v18793_v3, %v18791_v36 }
 0x7ac   :  { %v10526_v17 = vmax.f32 %v10432_v31, 0.0  ;;  %v11861_v19 = vpop.f32.mrb[248].mxu1 }
 0x7ad   :  { %v11862_v53 = vpop.f32.mrb[249].mxu1 }
 0x7ae   :  { %v10552_v6 = vpack.c.bf16 %v10526_v17, %v10525_v22  ;;  %v11863_v37 = vadd.f32 %v11862_v53, %v11861_v19  ;;  %v11864_v61 = vpop.f32.mrb[250].mxu1  ;;  %v11803_v23 = vpop.f32.mrb[252].mxu0  ;;  %v10300_v22 = vadd.f32 %v18797_v63, %v18791_v36 }
 0x7af   :  { %v11865_v40 = vpop.f32.mrb[251].mxu1  ;;  %v11804_v57 = vpop.f32.mrb[253].mxu0 }
 0x7b0   :  { %v10437_v62 = vadd.f32 %v11863_v37, %v10276_v47  ;;  %v11866_v38 = vadd.f32 %v11865_v40, %v11864_v61  ;;  %11970 = vmatmul.mubr.bf16.gmra.mrb[8].mxu0 %v10552_v6  ;;  %v18845_v51 = vadd.f32 %v11804_v57, %v11803_v23  ;;  %v11806_v33 = vpop.f32.mrb[254].mxu0  ;;  %v10303_v47 = vadd.f32 %v18799_v15, %v18791_v36 }
 0x7b1   :  { %v11807_v21 = vpop.f32.mrb[255].mxu0 }
 0x7b2   :  { %v10440_v34 = vadd.f32 %v11866_v38, %v10279_v24  ;;  %v18847_v58 = vadd.f32 %v11807_v21, %v11806_v33  ;;  %v10527_v18 = vmax.f32 %v10437_v62, 0.0  ;;  %v10308_v62 = vadd.f32 %v18805_v2, %v18791_v36 }
 0x7b4   :  { %v10528_v43 = vmax.f32 %v10440_v34, 0.0  ;;  %v11867_v27 = vpop.f32.mrb[252].mxu1  ;;  %v10311_v34 = vadd.f32 %v18807_v9, %v18791_v36 }
 0x7b5   :  { %v11868_v30 = vpop.f32.mrb[253].mxu1 }
 0x7b6   :  { %v11869_v54 = vadd.f32 %v11868_v30, %v11867_v27  ;;  %v11870_v60 = vpop.f32.mrb[254].mxu1  ;;  %v10553_v13 = vpack.c.bf16 %v10528_v43, %v10527_v18 }
 0x7b7   :  { %v11871_v28 = vpop.f32.mrb[255].mxu1 }
 0x7b8   :  { %v10445_v59 = vadd.f32 %v11869_v54, %v10284_v14  ;;  %v11872_v11 = vadd.f32 %v11871_v28, %v11870_v60  ;;  %11973 = vmatprep.mubr.bf16.mxu0 %v10553_v13  ;;  %v10316_v54 = vadd.f32 %v18813_v25, %v18791_v36 }
 0x7ba   :  { %v10448_v52 = vadd.f32 %v11872_v11, %v10287_v39  ;;  %v10529_v45 = vmax.f32 %v10445_v59, 0.0  ;;  %v10319_v39 = vadd.f32 %v18815_v32, %v18791_v36 }
 0x7bc   :  { %v10530_v50 = vmax.f32 %v10448_v52, 0.0  ;;  %v11873_v7 = vpop.f32.mrb[0].mxu1 }
 0x7bd   :  { %v11874_v46 = vpop.f32.mrb[1].mxu1 }
 0x7be   :  { %v10554_v41 = vpack.c.bf16 %v10530_v50, %v10529_v45  ;;  %v11875_v1 = vadd.f32 %v11874_v46, %v11873_v7  ;;  %v11876_v12 = vpop.f32.mrb[2].mxu1  ;;  %v10324_v46 = vadd.f32 %v18821_v0, %v18791_v36 }
 0x7bf   :  { %v11877_v49 = vpop.f32.mrb[3].mxu1 }
 0x7c0   :  { %v10453_v42 = vadd.f32 %v11875_v1, %v10292_v10  ;;  %v11878_v20 = vadd.f32 %v11877_v49, %v11876_v12  ;;  %11974 = vmatmul.mubr.bf16.gmra.mrb[12].mxu0 %v10554_v41  ;;  %v10327_v12 = vadd.f32 %v18823_v55, %v18791_v36 }
 0x7c2   :  { %v10456_v5 = vadd.f32 %v11878_v20, %v10295_v29  ;;  %v10531_v4 = vmax.f32 %v10453_v42, 0.0 }
 0x7c4   :  { %v10532_v44 = vmax.f32 %v10456_v5, 0.0  ;;  %v11879_v31 = vpop.f32.mrb[4].mxu1 }
 0x7c5   :  { %v11880_v16 = vpop.f32.mrb[5].mxu1 }
 0x7c6   :  { %v11881_v17 = vadd.f32 %v11880_v16, %v11879_v31  ;;  %v11882_v26 = vpop.f32.mrb[6].mxu1  ;;  %v10555_v19 = vpack.c.bf16 %v10532_v44, %v10531_v4  ;;  %v10332_v44 = vadd.f32 %v18829_v35, %v18791_v36 }
 0x7c7   :  { %v11883_v53 = vpop.f32.mrb[7].mxu1 }
 0x7c8   :  { %v10461_v6 = vadd.f32 %v11881_v17, %v10300_v22  ;;  %v11884_v3 = vadd.f32 %v11883_v53, %v11882_v26  ;;  %11977 = vmatprep.mubr.bf16.mxu0 %v10555_v19  ;;  %v10335_v17 = vadd.f32 %v18831_v48, %v18791_v36 }
 0x7ca   :  { %v10464_v37 = vadd.f32 %v11884_v3, %v10303_v47  ;;  %v10533_v61 = vmax.f32 %v10461_v6, 0.0 }
 0x7cc   :  { %v10534_v40 = vmax.f32 %v10464_v37, 0.0  ;;  %v11885_v23 = vpop.f32.mrb[8].mxu1  ;;  %v10340_v37 = vadd.f32 %v18837_v56, %v18791_v36 }
 0x7cd   :  { %v11886_v24 = vpop.f32.mrb[9].mxu1 }
 0x7ce   :  { %v10556_v38 = vpack.c.bf16 %v10534_v40, %v10533_v61  ;;  %v11887_v63 = vadd.f32 %v11886_v24, %v11885_v23  ;;  %v11888_v57 = vpop.f32.mrb[10].mxu1  ;;  %v10343_v24 = vadd.f32 %v18839_v8, %v18791_v36 }
 0x7cf   :  { %v11889_v33 = vpop.f32.mrb[11].mxu1 }
 0x7d0   :  { %v10469_v21 = vadd.f32 %v11887_v63, %v10308_v62  ;;  %v11890_v15 = vadd.f32 %v11889_v33, %v11888_v57  ;;  %11978 = vmatmul.mubr.bf16.gmra.mrb[16].mxu0 %v10556_v38 }
 0x7d2   :  { %v10472_v18 = vadd.f32 %v11890_v15, %v10311_v34  ;;  %v10535_v43 = vmax.f32 %v10469_v21, 0.0  ;;  %v10348_v21 = vadd.f32 %v18845_v51, %v18791_v36 }
 0x7d4   :  { %v10536_v27 = vmax.f32 %v10472_v18, 0.0  ;;  %v11891_v30 = vpop.f32.mrb[12].mxu1 }
 0x7d5   :  { %v11892_v14 = vpop.f32.mrb[13].mxu1 }
 0x7d6   :  { %v11893_v60 = vadd.f32 %v11892_v14, %v11891_v30  ;;  %v11894_v2 = vpop.f32.mrb[14].mxu1  ;;  %v10557_v13 = vpack.c.bf16 %v10536_v27, %v10535_v43  ;;  %v10351_v27 = vadd.f32 %v18847_v58, %v18791_v36 }
 0x7d7   :  { %v11895_v28 = vpop.f32.mrb[15].mxu1 }
 0x7d8   :  { %v10477_v59 = vadd.f32 %v11893_v60, %v10316_v54  ;;  %v11896_v9 = vadd.f32 %v11895_v28, %v11894_v2  ;;  %11981 = vmatprep.mubr.bf16.mxu0 %v10557_v13  ;;  %v18888_v13 = vld [vmem:[%s19026_s8] ss:$0 sm:$0xff] }
 0x7da   :  { %v10480_v11 = vadd.f32 %v11896_v9, %v10319_v39  ;;  %v10537_v52 = vmax.f32 %v10477_v59, 0.0 }
 0x7dc   :  { %v10538_v45 = vmax.f32 %v10480_v11, 0.0  ;;  %v11897_v50 = vpop.f32.mrb[16].mxu1 }
 0x7dd   :  { %v11898_v7 = vpop.f32.mrb[17].mxu1 }
 0x7de   :  { %v10558_v10 = vpack.c.bf16 %v10538_v45, %v10537_v52  ;;  %v11899_v25 = vadd.f32 %v11898_v7, %v11897_v50  ;;  %v11900_v41 = vpop.f32.mrb[18].mxu1 }
 0x7df   :  { %v11901_v1 = vpop.f32.mrb[19].mxu1 }
 0x7e0   :  { %v10485_v49 = vadd.f32 %v11899_v25, %v10324_v46  ;;  %v11902_v32 = vadd.f32 %v11901_v1, %v11900_v41  ;;  %11982 = vmatmul.mubr.bf16.gmra.mrb[20].mxu0 %v10558_v10 }
 0x7e2   :  { %v10488_v29 = vadd.f32 %v11902_v32, %v10327_v12  ;;  %v10539_v42 = vmax.f32 %v10485_v49, 0.0 }
 0x7e4   :  { %v10540_v20 = vmax.f32 %v10488_v29, 0.0  ;;  %v11903_v5 = vpop.f32.mrb[20].mxu1 }
 0x7e5   :  { %v11904_v4 = vpop.f32.mrb[21].mxu1 }
 0x7e6   :  { %v11905_v31 = vadd.f32 %v11904_v4, %v11903_v5  ;;  %v11906_v0 = vpop.f32.mrb[22].mxu1  ;;  %v10559_v16 = vpack.c.bf16 %v10540_v20, %v10539_v42 }
 0x7e7   :  { %v11907_v22 = vpop.f32.mrb[23].mxu1 }
 0x7e8   :  { %v10493_v26 = vadd.f32 %v11905_v31, %v10332_v44  ;;  %v11908_v55 = vadd.f32 %v11907_v22, %v11906_v0  ;;  %11985 = vmatprep.mubr.bf16.mxu0 %v10559_v16 }
 0x7ea   :  { %v10496_v19 = vadd.f32 %v11908_v55, %v10335_v17  ;;  %v10541_v53 = vmax.f32 %v10493_v26, 0.0 }
 0x7ec   :  { %v10542_v47 = vmax.f32 %v10496_v19, 0.0  ;;  %v11909_v6 = vpop.f32.mrb[24].mxu1 }
 0x7ed   :  { %v11910_v3 = vpop.f32.mrb[25].mxu1 }
 0x7ee   :  { %v10560_v61 = vpack.c.bf16 %v10542_v47, %v10541_v53  ;;  %v11911_v35 = vadd.f32 %v11910_v3, %v11909_v6  ;;  %v11912_v40 = vpop.f32.mrb[26].mxu1 }
 0x7ef   :  { %v11913_v23 = vpop.f32.mrb[27].mxu1 }
 0x7f0   :  { %v10501_v62 = vadd.f32 %v11911_v35, %v10340_v37  ;;  %v11914_v48 = vadd.f32 %v11913_v23, %v11912_v40  ;;  %11986 = vmatmul.mubr.bf16.gmra.mrb[24].mxu0 %v10560_v61 }
 0x7f2   :  { %v10504_v38 = vadd.f32 %v11914_v48, %v10343_v24  ;;  %v10543_v63 = vmax.f32 %v10501_v62, 0.0 }
 0x7f4   :  { %v10544_v57 = vmax.f32 %v10504_v38, 0.0  ;;  %v11915_v33 = vpop.f32.mrb[28].mxu1 }
 0x7f5   :  { %v11916_v34 = vpop.f32.mrb[29].mxu1 }
 0x7f6   :  { %v11917_v15 = vadd.f32 %v11916_v34, %v11915_v33  ;;  %v11918_v56 = vpop.f32.mrb[30].mxu1  ;;  %v10561_v18 = vpack.c.bf16 %v10544_v57, %v10543_v63 }
 0x7f7   :  { %v11919_v43 = vpop.f32.mrb[31].mxu1 }
 0x7f8   :  { %v10509_v30 = vadd.f32 %v11917_v15, %v10348_v21  ;;  %v11920_v8 = vadd.f32 %v11919_v43, %v11918_v56  ;;  %11989 = vmatprep.mubr.bf16.mxu0 %v10561_v18 }
 0x7fa   :  { %v10512_v14 = vadd.f32 %v11920_v8, %v10351_v27  ;;  %v10545_v54 = vmax.f32 %v10509_v30, 0.0 }
 0x7fc   :  { %v10546_v60 = vmax.f32 %v10512_v14, 0.0 }
 0x7fe   :  { %v10562_v2 = vpack.c.bf16 %v10546_v60, %v10545_v54 }
 0x800   :  { %11990 = vmatmul.mubr.bf16.gmra.mrb[32].mxu0 %v10562_v2 }
 0x863   :  { %v11963_v51 = vpop.f32.mrb[0].mxu0 }
 0x864   :  { %v10677_v28 = vadd.f32 %v11963_v51, %v18888_v13  ;;  %v10668_v39 = vpop.f32.mrb[1].mxu0 }
 0x865   :  { %v10669_v59 = vadd.f32 %v18888_v13, %v10668_v39  ;;  %v11964_v36 = vpop.f32.mrb[2].mxu0 }
 0x866   :  { %10797 = vst [vmem:[%s19027_s9 + $0x10] sm:$0xff] %v10677_v28  ;;  %v10680_v58 = vadd.f32 %v11964_v36, %v18888_v13  ;;  %v10671_v9 = vpop.f32.mrb[3].mxu0 }
 0x867   :  { %10795 = vst [vmem:[%s19027_s9] sm:$0xff] %v10669_v59  ;;  %v10672_v11 = vadd.f32 %v18888_v13, %v10671_v9 }
 0x868   :  { %10798 = vst [vmem:[%s19027_s9 + $0x18] sm:$0xff] %v10680_v58 }
 0x869   :  { %10796 = vst [vmem:[%s19027_s9 + $0x8] sm:$0xff] %v10672_v11 }
 0x873   :  { %v11967_v52 = vpop.f32.mrb[4].mxu0 }
 0x874   :  { %v10693_v45 = vadd.f32 %v11967_v52, %v18888_v13  ;;  %v10684_v50 = vpop.f32.mrb[5].mxu0 }
 0x875   :  { %v10685_v7 = vadd.f32 %v18888_v13, %v10684_v50  ;;  %v11968_v46 = vpop.f32.mrb[6].mxu0 }
 0x876   :  { %10801 = vst [vmem:[%s19027_s9 + $0x30] sm:$0xff] %v10693_v45  ;;  %v10696_v10 = vadd.f32 %v11968_v46, %v18888_v13  ;;  %v10687_v25 = vpop.f32.mrb[7].mxu0 }
 0x877   :  { %10799 = vst [vmem:[%s19027_s9 + $0x20] sm:$0xff] %v10685_v7  ;;  %v10688_v41 = vadd.f32 %v18888_v13, %v10687_v25 }
 0x878   :  { %10802 = vst [vmem:[%s19027_s9 + $0x38] sm:$0xff] %v10696_v10 }
 0x879   :  { %10800 = vst [vmem:[%s19027_s9 + $0x28] sm:$0xff] %v10688_v41 }
 0x883   :  { %v11971_v1 = vpop.f32.mrb[8].mxu0 }
 0x884   :  { %v10709_v12 = vadd.f32 %v11971_v1, %v18888_v13  ;;  %v10700_v49 = vpop.f32.mrb[9].mxu0 }
 0x885   :  { %v10701_v32 = vadd.f32 %v18888_v13, %v10700_v49  ;;  %v11972_v29 = vpop.f32.mrb[10].mxu0 }
 0x886   :  { %10805 = vst [vmem:[%s19027_s9 + $0x50] sm:$0xff] %v10709_v12  ;;  %v10712_v42 = vadd.f32 %v11972_v29, %v18888_v13  ;;  %v10703_v20 = vpop.f32.mrb[11].mxu0 }
 0x887   :  { %10803 = vst [vmem:[%s19027_s9 + $0x40] sm:$0xff] %v10701_v32  ;;  %v10704_v5 = vadd.f32 %v18888_v13, %v10703_v20 }
 0x888   :  { %10806 = vst [vmem:[%s19027_s9 + $0x58] sm:$0xff] %v10712_v42 }
 0x889   :  { %10804 = vst [vmem:[%s19027_s9 + $0x48] sm:$0xff] %v10704_v5 }
 0x893   :  { %v11975_v4 = vpop.f32.mrb[12].mxu0 }
 0x894   :  { %v10725_v44 = vadd.f32 %v11975_v4, %v18888_v13  ;;  %v10716_v31 = vpop.f32.mrb[13].mxu0 }
 0x895   :  { %v10717_v0 = vadd.f32 %v18888_v13, %v10716_v31  ;;  %v11976_v16 = vpop.f32.mrb[14].mxu0 }
 0x896   :  { %10809 = vst [vmem:[%s19027_s9 + $0x70] sm:$0xff] %v10725_v44  ;;  %v10728_v22 = vadd.f32 %v11976_v16, %v18888_v13  ;;  %v10719_v17 = vpop.f32.mrb[15].mxu0 }
 0x897   :  { %10807 = vst [vmem:[%s19027_s9 + $0x60] sm:$0xff] %v10717_v0  ;;  %v10720_v26 = vadd.f32 %v18888_v13, %v10719_v17 }
 0x898   :  { %10810 = vst [vmem:[%s19027_s9 + $0x78] sm:$0xff] %v10728_v22 }
 0x899   :  { %10808 = vst [vmem:[%s19027_s9 + $0x68] sm:$0xff] %v10720_v26 }
 0x8a3   :  { %v11979_v55 = vpop.f32.mrb[16].mxu0 }
 0x8a4   :  { %v10741_v19 = vadd.f32 %v11979_v55, %v18888_v13  ;;  %v10732_v53 = vpop.f32.mrb[17].mxu0 }
 0x8a5   :  { %v10733_v47 = vadd.f32 %v18888_v13, %v10732_v53  ;;  %v11980_v6 = vpop.f32.mrb[18].mxu0 }
 0x8a6   :  { %10813 = vst [vmem:[%s19027_s9 + $0x90] sm:$0xff] %v10741_v19  ;;  %v10744_v3 = vadd.f32 %v11980_v6, %v18888_v13  ;;  %v10735_v37 = vpop.f32.mrb[19].mxu0 }
 0x8a7   :  { %10811 = vst [vmem:[%s19027_s9 + $0x80] sm:$0xff] %v10733_v47  ;;  %v10736_v61 = vadd.f32 %v18888_v13, %v10735_v37 }
 0x8a8   :  { %10814 = vst [vmem:[%s19027_s9 + $0x98] sm:$0xff] %v10744_v3 }
 0x8a9   :  { %10812 = vst [vmem:[%s19027_s9 + $0x88] sm:$0xff] %v10736_v61 }
 0x8b3   :  { %v11983_v35 = vpop.f32.mrb[20].mxu0 }
 0x8b4   :  { %v10757_v40 = vadd.f32 %v11983_v35, %v18888_v13  ;;  %v10748_v23 = vpop.f32.mrb[21].mxu0 }
 0x8b5   :  { %v10749_v24 = vadd.f32 %v18888_v13, %v10748_v23  ;;  %v11984_v62 = vpop.f32.mrb[22].mxu0 }
 0x8b6   :  { %10817 = vst [vmem:[%s19027_s9 + $0xb0] sm:$0xff] %v10757_v40  ;;  %v10760_v48 = vadd.f32 %v11984_v62, %v18888_v13  ;;  %v10751_v38 = vpop.f32.mrb[23].mxu0 }
 0x8b7   :  { %10815 = vst [vmem:[%s19027_s9 + $0xa0] sm:$0xff] %v10749_v24  ;;  %v10752_v63 = vadd.f32 %v18888_v13, %v10751_v38 }
 0x8b8   :  { %10818 = vst [vmem:[%s19027_s9 + $0xb8] sm:$0xff] %v10760_v48 }
 0x8b9   :  { %10816 = vst [vmem:[%s19027_s9 + $0xa8] sm:$0xff] %v10752_v63 }
 0x8c3   :  { %v11987_v57 = vpop.f32.mrb[24].mxu0 }
 0x8c4   :  { %v10773_v33 = vadd.f32 %v11987_v57, %v18888_v13  ;;  %v10764_v34 = vpop.f32.mrb[25].mxu0 }
 0x8c5   :  { %v10765_v21 = vadd.f32 %v18888_v13, %v10764_v34  ;;  %v11988_v15 = vpop.f32.mrb[26].mxu0 }
 0x8c6   :  { %10821 = vst [vmem:[%s19027_s9 + $0xd0] sm:$0xff] %v10773_v33  ;;  %v10776_v56 = vadd.f32 %v11988_v15, %v18888_v13  ;;  %v10767_v18 = vpop.f32.mrb[27].mxu0 }
 0x8c7   :  { %10819 = vst [vmem:[%s19027_s9 + $0xc0] sm:$0xff] %v10765_v21  ;;  %v10768_v43 = vadd.f32 %v18888_v13, %v10767_v18 }
 0x8c8   :  { %10822 = vst [vmem:[%s19027_s9 + $0xd8] sm:$0xff] %v10776_v56 }
 0x8c9   :  { %10820 = vst [vmem:[%s19027_s9 + $0xc8] sm:$0xff] %v10768_v43 }
 0x8d3   :  { %v11991_v27 = vpop.f32.mrb[32].mxu0 }
 0x8d4   :  { %v10789_v30 = vadd.f32 %v11991_v27, %v18888_v13  ;;  %v10780_v8 = vpop.f32.mrb[33].mxu0 }
 0x8d5   :  { %v10781_v14 = vadd.f32 %v18888_v13, %v10780_v8  ;;  %v11992_v54 = vpop.f32.mrb[34].mxu0 }
 0x8d6   :  { %10825 = vst [vmem:[%s19027_s9 + $0xf0] sm:$0xff] %v10789_v30  ;;  %v10792_v60 = vadd.f32 %v11992_v54, %v18888_v13  ;;  %v10783_v2 = vpop.f32.mrb[35].mxu0 }
 0x8d7   :  { %10823 = vst [vmem:[%s19027_s9 + $0xe0] sm:$0xff] %v10781_v14  ;;  %v10784_v51 = vadd.f32 %v18888_v13, %v10783_v2 }
 0x8d8   :  { %10826 = vst [vmem:[%s19027_s9 + $0xf8] sm:$0xff] %v10792_v60 }
 0x8d9   :  { %10824 = vst [vmem:[%s19027_s9 + $0xe8] sm:$0xff] %v10784_v51 }

</bundles_post_ra>
